<compile_context>
chip_gen: v5e
topology: v5e:2x2
jax: 0.10.0
libtpu: 0.0.40
codegen_flags: <defaults>
</compile_context>

<pallas_src>
import functools
import math

import jax
import jax.numpy as jnp
from jax.experimental import pallas as pl
from jax.experimental.pallas import tpu as pltpu

F32 = jnp.float32
BF16 = jnp.bfloat16


# ----------------------------- in-kernel helpers -----------------------------

def _layernorm(x, g, b, eps=1e-5):
    mu = jnp.mean(x, axis=-1, keepdims=True)
    xc = x - mu
    var = jnp.mean(xc * xc, axis=-1, keepdims=True)
    return xc * jax.lax.rsqrt(var + eps) * g + b


def _silu(x):
    return x * jax.nn.sigmoid(x)


# ------------------------------ fused kernel ----------------------------------

def _fused_forward_kernel(
        # flattened per-example inputs
        seq_ref, struct_ref, bias_ref, pool_ref, pe_ref, mcol_ref,
        # shared weights
        seqtab_ref, structtab_ref, embw_ref, embb_ref,
        outw1_ref, outb1_ref, outw2_ref, outb2_ref,
        # per-block weights, stacked along a leading block axis
        g1_ref, be1_ref, wqkv_ref, bqkv_ref, wo_ref, bo_ref,
        g2_ref, be2_ref, w1_ref, b1_ref, w2_ref, b2_ref,
        gc_ref, bc_ref, cw1_ref, cb1_ref, cw2_ref, cb2_ref,
        cw3_ref, cb3_ref, wl_ref, bl_ref,
        # output + scratch
        o_ref, attn_sc, *, num_blocks, nheads, batch, seq_len):
    BL, D = pe_ref.shape
    L = seq_len
    B = batch
    dh = D // nheads
    NT = (((1,), (1,)), ((), ()))       # contract dim 1 of both: q @ k^T folded in MXU

    # ---- embedding lookups as one-hot MXU matmuls (no XLA gather) ----
    viota = jax.lax.broadcasted_iota(jnp.int32, (BL, seqtab_ref.shape[0]), 1)
    one_s = (seq_ref[...] == viota).astype(F32)
    one_ss = (struct_ref[...] == viota).astype(F32)
    s_emb = jnp.dot(one_s, seqtab_ref[...], preferred_element_type=F32)
    ss_emb = jnp.dot(one_ss, structtab_ref[...], preferred_element_type=F32)

    # ---- emb_out (include_ss): Linear(2D->D) split to avoid a lane concat ----
    embw = embw_ref[...]
    h = (jnp.dot((s_emb + pe_ref[...]).astype(BF16), embw[:D],
                 preferred_element_type=F32)
         + jnp.dot(ss_emb.astype(BF16), embw[D:], preferred_element_type=F32)
         + embb_ref[...])
    s = _silu(h) * mcol_ref[...]

    # ---- per-tap row-validity masks for 'same' convs on the flattened batch axis --
    pos = jax.lax.broadcasted_iota(jnp.int32, (BL, 1), 0) % L
    tap_ok = {d: jnp.logical_and(pos + d >= 0, pos + d < L)
              for d in (-2, -1, 1, 2)}

    def tap(x, d):
        # y[l] = x[l + d] within each length-L sequence, zero outside.
        if d == 0:
            return x
        xr = pltpu.roll(x, (-d) % BL, axis=0)
        return jnp.where(tap_ok[d], xr, 0.0)

    def conv1d(x, w_ref, b_ref, blk, K):
        # PyTorch Conv1d(kernel=K, stride=1, padding='same'), channels-last,
        # as a sum over taps of MXU matmuls (f32 accumulation).
        pad = (K - 1) // 2
        acc = None
        for k in range(K):
            r = jnp.dot(tap(x, k - pad).astype(BF16), w_ref[blk, k],
                        preferred_element_type=F32)
            acc = r if acc is None else acc + r
        return acc + b_ref[blk]

    # ---- joint ConvTransformerBlocks (statically unrolled) ----
    for blk in range(num_blocks):
        # -- nn.TransformerEncoderLayer (norm_first, batch_first, eval) --
        hln = _layernorm(s, g1_ref[blk], be1_ref[blk])
        # 1/sqrt(dh) is already folded into the Q third of wqkv/bqkv on the host.
        qkv = (jnp.dot(hln.astype(BF16), wqkv_ref[blk], preferred_element_type=F32)
               + bqkv_ref[blk])
        wo_b = wo_ref[blk]
        for b in range(B):
            r0 = b * L
            att = jnp.zeros((L, D), F32)
            for hd in range(nheads):
                c0 = hd * dh
                q = qkv[r0:r0 + L, c0:c0 + dh].astype(BF16)
                k = qkv[r0:r0 + L, D + c0:D + c0 + dh].astype(BF16)
                v = qkv[r0:r0 + L, 2 * D + c0:2 * D + c0 + dh].astype(BF16)
                sc = jax.lax.dot_general(q, k, NT, preferred_element_type=F32)
                sc = sc + bias_ref[b, blk, hd]           # spatial + key-padding bias
                sc = sc - jnp.max(sc, axis=-1, keepdims=True)
                e = jnp.exp(sc)
                p = e * pl.reciprocal(jnp.sum(e, axis=-1, keepdims=True), approx=True)
                hv = jnp.dot(p.astype(BF16), v, preferred_element_type=F32)
                # per-head output-projection accumulation (no 8-lane head concat)
                att = att + jnp.dot(hv.astype(BF16), wo_b[c0:c0 + dh],
                                    preferred_element_type=F32)
            attn_sc[r0:r0 + L, :] = att + bo_ref[blk]
        s = s + attn_sc[...]                              # residual 1

        h2 = _layernorm(s, g2_ref[blk], be2_ref[blk])
        # TODO(synk): PyTorch uses exact (erf) GELU; tanh approximation kept for a
        # Mosaic-safe lowering.
        f = jax.nn.gelu(jnp.dot(h2.astype(BF16), w1_ref[blk],
                                preferred_element_type=F32) + b1_ref[blk],
                        approximate=True)
        f = jnp.dot(f.astype(BF16), w2_ref[blk], preferred_element_type=F32) + b2_ref[blk]
        s = s + f                                         # residual 2

        # -- conv branch: s + lin_out(conv_block(norm(s))), dropout = identity --
        c = _layernorm(s, gc_ref[blk], bc_ref[blk])
        c = _silu(conv1d(c, cw1_ref, cb1_ref, blk, 3))    # (BL, 2D)
        c = _silu(conv1d(c, cw2_ref, cb2_ref, blk, 3))    # (BL, 4D)
        c = conv1d(c, cw3_ref, cb3_ref, blk, 5)           # (BL, D)
        c = jnp.dot(c.astype(BF16), wl_ref[blk], preferred_element_type=F32) + bl_ref[blk]
        s = s + c

    # ---- masked pooling on the MXU + out_block: Linear -> SiLU -> Linear ----
    pooled = jnp.dot(pool_ref[...], s, preferred_element_type=F32)       # (B, D)
    hh = _silu(jnp.dot(pooled, outw1_ref[...], preferred_element_type=F32)
               + outb1_ref[...])
    o_ref[...] = jnp.dot(hh, outw2_ref[...], preferred_element_type=F32) + outb2_ref[...]


# ------------------------------ model (glue) ----------------------------------

def positional_encoding_1d(L, D):
    # PositionalEncoding1D (channels = D, even), interleaved sin/cos.
    inv_freq = 1.0 / (10000.0 ** (jnp.arange(0, D, 2, dtype=F32) / D))
    pos = jnp.arange(L, dtype=F32)
    sin_inp = pos[:, None] * inv_freq[None, :]                     # (L, D//2)
    emb = jnp.stack([jnp.sin(sin_inp), jnp.cos(sin_inp)], axis=-1).reshape(L, -1)
    return emb[:, :D]


def rna_model_forward(params, seq, struct, edge_attr, mask, nhead=4):
    B, L = seq.shape
    D = params["seq_emb"].shape[1]
    blk = params["blk"]
    NB = blk["g1"].shape[0]
    H = nhead
    dh = D // H
    BL = B * L

    # --- XLA-side glue: id/mask reshapes, pooling matrix, spatial attention bias ---
    seq_ids = seq.reshape(BL, 1).astype(jnp.int32)
    struct_ids = struct.reshape(BL, 1).astype(jnp.int32)
    mcol = mask.astype(F32).reshape(BL, 1)
    pe = jnp.tile(positional_encoding_1d(L, D), (B, 1))            # (BL, D)

    # masked-sum pooling as a block-diagonal (B, BL) MXU operand
    bidx = jax.lax.broadcasted_iota(jnp.int32, (B, BL), 0)
    cidx = jax.lax.broadcasted_iota(jnp.int32, (B, BL), 1)
    pool = jnp.where(cidx // L == bidx, mask.astype(F32).reshape(1, BL), 0.0)

    # spatial bias: z_emb MLP + linear_z + permute + key-padding fold (XLA glue)
    # TODO(synk): at large L this (B, NB, H, L, L) bias must be tiled per (block, head)
    # or computed on the fly in-kernel to fit v7x's 32 MiB scoped VMEM.
    ea = edge_attr.reshape(B, L * L, 1).astype(F32)
    zh = jax.nn.silu(ea * params["z_w1"] + params["z_b1"])         # (B, L*L, D)
    zij = jnp.einsum("bnd,de->bne", zh, params["z_w2"]) + params["z_b2"]
    zb = jnp.einsum("bnd,kdh->bknh", zij, blk["wz"])               # (B, NB, L*L, H)
    bias = zb.reshape(B, NB, L, L, H).transpose(0, 1, 4, 2, 3)     # (B, NB, H, L, L)
    keypad = jnp.where(mask > 0, 0.0, -1e9).astype(F32)
    bias = bias + keypad[:, None, None, None, :]

    # embedding tables padded to 8 rows for a clean one-hot MXU matmul
    seq_tab = jnp.zeros((8, D), F32).at[:params["seq_emb"].shape[0]].set(params["seq_emb"])
    struct_tab = jnp.zeros((8, D), F32).at[:params["struct_emb"].shape[0]].set(params["struct_emb"])

    # fold the 1/sqrt(dh) attention scale into the Q third of the packed QKV proj
    qscale = jnp.concatenate([jnp.full((D,), 1.0 / math.sqrt(dh), F32),
                              jnp.ones((2 * D,), F32)])
    wqkv = (blk["wqkv"] * qscale).astype(BF16)
    bqkv = blk["bqkv"] * qscale

    inputs = [
        seq_ids, struct_ids, bias, pool, pe, mcol,
        seq_tab, struct_tab,
        params["emb_w"].astype(BF16), params["emb_b"],
        params["out_w1"], params["out_b1"], params["out_w2"], params["out_b2"],
        blk["g1"], blk["be1"], wqkv, bqkv,
        blk["wo"].astype(BF16), blk["bo"],
        blk["g2"], blk["be2"],
        blk["w1"].astype(BF16), blk["b1"], blk["w2"].astype(BF16), blk["b2"],
        blk["gc"], blk["bc"],
        blk["cw1"].astype(BF16), blk["cb1"],
        blk["cw2"].astype(BF16), blk["cb2"],
        blk["cw3"].astype(BF16), blk["cb3"],
        blk["wl"].astype(BF16), blk["bl"],
    ]

    def full_spec(a):
        nd = a.ndim
        return pl.BlockSpec(a.shape, lambda i, nd=nd: (0,) * nd)

    in_specs = [full_spec(a) for a in inputs]

    # rough advisory cost estimate for the XLA scheduler
    dff = 2 * D
    flops_emb = 2 * (2 * BL * 8 * D) + 2 * 2 * BL * D * D
    flops_blk = (2 * BL * D * 3 * D
                 + B * H * (4 * L * L * dh + 2 * L * dh * D)
                 + 2 * BL * D * dff + 2 * BL * dff * D
                 + 3 * 2 * BL * D * 2 * D
                 + 3 * 2 * BL * 2 * D * 4 * D
                 + 5 * 2 * BL * 4 * D * D
                 + 2 * BL * D * D)
    flops_out = 2 * B * BL * D + 2 * B * D * D + 2 * B * D
    flops = int(flops_emb + NB * flops_blk + flops_out)
    transc = int(BL * D + NB * (B * H * L * L + BL * dff + BL * 6 * D) + B * D)
    bytes_accessed = int(sum(a.size * a.dtype.itemsize for a in inputs) + B * 4)

    out = pl.pallas_call(
        functools.partial(_fused_forward_kernel, num_blocks=NB, nheads=H,
                          batch=B, seq_len=L),
        out_shape=jax.ShapeDtypeStruct((B, 1), F32),
        grid=(1,),
        in_specs=in_specs,
        out_specs=pl.BlockSpec((B, 1), lambda i: (0, 0)),
        scratch_shapes=[pltpu.VMEM((BL, D), F32)],
        cost_estimate=pl.CostEstimate(flops=flops, transcendentals=transc,
                                      bytes_accessed=bytes_accessed),
        compiler_params=pltpu.CompilerParams(dimension_semantics=("arbitrary",)),
    )(*inputs)
    return out


# ------------------------------ parameter init --------------------------------

def _w(key, shape, fan_in):
    return jax.random.normal(key, shape, F32) / math.sqrt(fan_in)


def _bias(key, shape):
    return 0.02 * jax.random.normal(key, shape, F32)


def init_block(key, D, H):
    k = iter(jax.random.split(key, 32))
    p = {}
    p["wz"] = _w(next(k), (D, H), D)                              # linear_z (no bias)
    p["g1"] = jnp.ones((1, D), F32)
    p["be1"] = jnp.zeros((1, D), F32)
    p["wqkv"] = _w(next(k), (D, 3 * D), D)                        # packed in_proj (Q|K|V)
    p["bqkv"] = _bias(next(k), (1, 3 * D))
    p["wo"] = _w(next(k), (D, D), D); p["bo"] = _bias(next(k), (1, D))
    p["g2"] = jnp.ones((1, D), F32)
    p["be2"] = jnp.zeros((1, D), F32)
    p["w1"] = _w(next(k), (D, 2 * D), D); p["b1"] = _bias(next(k), (1, 2 * D))
    p["w2"] = _w(next(k), (2 * D, D), 2 * D); p["b2"] = _bias(next(k), (1, D))
    p["gc"] = jnp.ones((1, D), F32)
    p["bc"] = jnp.zeros((1, D), F32)
    # conv weights stored per tap as (K, Cin, Cout): w[k, cin, cout] == torch_w[cout, cin, k]
    p["cw1"] = _w(next(k), (3, D, 2 * D), 3 * D); p["cb1"] = _bias(next(k), (1, 2 * D))
    p["cw2"] = _w(next(k), (3, 2 * D, 4 * D), 6 * D); p["cb2"] = _bias(next(k), (1, 4 * D))
    p["cw3"] = _w(next(k), (5, 4 * D, D), 20 * D); p["cb3"] = _bias(next(k), (1, D))
    # lin_out: nonzero deterministic init (see header note).
    p["wl"] = _w(next(k), (D, D), D); p["bl"] = _bias(next(k), (1, D))
    return p


def init_params(key, D, H, num_blocks_joint):
    k = iter(jax.random.split(key, 16 + num_blocks_joint))
    p = {}
    p["seq_emb"] = jax.random.normal(next(k), (5, D), F32)
    p["struct_emb"] = jax.random.normal(next(k), (6, D), F32)
    p["z_w1"] = _w(next(k), (1, D), 1); p["z_b1"] = _bias(next(k), (1, D))
    p["z_w2"] = _w(next(k), (D, D), D); p["z_b2"] = _bias(next(k), (1, D))
    p["emb_w"] = _w(next(k), (2 * D, D), 2 * D); p["emb_b"] = _bias(next(k), (1, D))
    p["out_w1"] = _w(next(k), (D, D), D); p["out_b1"] = _bias(next(k), (1, D))
    p["out_w2"] = _w(next(k), (D, 1), D); p["out_b2"] = _bias(next(k), (1, 1))
    blocks = [init_block(next(k), D, H) for _ in range(num_blocks_joint)]
    # stack per-block weights along a leading block axis for the fused kernel
    p["blk"] = {name: jnp.stack([b[name] for b in blocks], axis=0)
                for name in blocks[0]}
    return p


# ----------------------------------- main --------------------------------------

if __name__ == "__main__":
    B, L, D, H = 2, 16, 32, 4
    NUM_BLOCKS_JOINT = 2

    key = jax.random.PRNGKey(0)
    kp, kd = jax.random.split(key)
    params = init_params(kp, D, H, NUM_BLOCKS_JOINT)

    ks = jax.random.split(kd, 3)
    seq = jax.random.randint(ks[0], (B, L), 0, 5)                  # vocab 5
    struct = jax.random.randint(ks[1], (B, L), 0, 6)               # vocab 6
    edge_attr = jax.random.normal(ks[2], (B, L, L, 1), F32)
    lengths = jnp.array([L, L - 4])
    mask = (jnp.arange(L)[None, :] < lengths[:, None]).astype(F32)

    fwd = jax.jit(rna_model_forward, static_argnames=("nhead",))
    out = fwd(params, seq, struct, edge_attr, mask, nhead=H)
    out = jax.block_until_ready(out)

    assert out.shape == (B, 1), out.shape
    assert bool(jnp.all(jnp.isfinite(out)))
    print("KERNEL_OK")
</pallas_src>

<mosaic_0001>
module attributes {stable_mosaic.version = 11 : i64} {
  func.func @_fused_forward_kernel(%arg0: i32, %arg1: memref<32x1xi32, #tpu.memory_space<vmem>>, %arg2: memref<32x1xi32, #tpu.memory_space<vmem>>, %arg3: memref<2x2x4x16x16xf32, #tpu.memory_space<vmem>>, %arg4: memref<2x32xf32, #tpu.memory_space<vmem>>, %arg5: memref<32x32xf32, #tpu.memory_space<vmem>>, %arg6: memref<32x1xf32, #tpu.memory_space<vmem>>, %arg7: memref<8x32xf32, #tpu.memory_space<vmem>>, %arg8: memref<8x32xf32, #tpu.memory_space<vmem>>, %arg9: memref<64x32xbf16, #tpu.memory_space<vmem>>, %arg10: memref<1x32xf32, #tpu.memory_space<vmem>>, %arg11: memref<32x32xf32, #tpu.memory_space<vmem>>, %arg12: memref<1x32xf32, #tpu.memory_space<vmem>>, %arg13: memref<32x1xf32, #tpu.memory_space<vmem>>, %arg14: memref<1x1xf32, #tpu.memory_space<vmem>>, %arg15: memref<2x1x32xf32, #tpu.memory_space<vmem>>, %arg16: memref<2x1x32xf32, #tpu.memory_space<vmem>>, %arg17: memref<2x32x96xbf16, #tpu.memory_space<vmem>>, %arg18: memref<2x1x96xf32, #tpu.memory_space<vmem>>, %arg19: memref<2x32x32xbf16, #tpu.memory_space<vmem>>, %arg20: memref<2x1x32xf32, #tpu.memory_space<vmem>>, %arg21: memref<2x1x32xf32, #tpu.memory_space<vmem>>, %arg22: memref<2x1x32xf32, #tpu.memory_space<vmem>>, %arg23: memref<2x32x64xbf16, #tpu.memory_space<vmem>>, %arg24: memref<2x1x64xf32, #tpu.memory_space<vmem>>, %arg25: memref<2x64x32xbf16, #tpu.memory_space<vmem>>, %arg26: memref<2x1x32xf32, #tpu.memory_space<vmem>>, %arg27: memref<2x1x32xf32, #tpu.memory_space<vmem>>, %arg28: memref<2x1x32xf32, #tpu.memory_space<vmem>>, %arg29: memref<2x3x32x64xbf16, #tpu.memory_space<vmem>>, %arg30: memref<2x1x64xf32, #tpu.memory_space<vmem>>, %arg31: memref<2x3x64x128xbf16, #tpu.memory_space<vmem>>, %arg32: memref<2x1x128xf32, #tpu.memory_space<vmem>>, %arg33: memref<2x5x128x32xbf16, #tpu.memory_space<vmem>>, %arg34: memref<2x1x32xf32, #tpu.memory_space<vmem>>, %arg35: memref<2x32x32xbf16, #tpu.memory_space<vmem>>, %arg36: memref<2x1x32xf32, #tpu.memory_space<vmem>>, %arg37: memref<2x1xf32, #tpu.memory_space<vmem>>, %arg38: memref<32x32xf32, #tpu.memory_space<vmem>>) attributes {dimension_semantics = [#tpu.dimension_semantics<arbitrary>], iteration_bounds = array<i64: 1>, scalar_prefetch = 0 : i64, scratch_operands = 1 : i64, tpu.core_type = #tpu.core_type<tc>, window_params = [{pipeline_mode = #tpu.pipeline_mode<synchronous>, transform_indices = @transform_0, window_bounds = array<i64: 32, 1>}, {pipeline_mode = #tpu.pipeline_mode<synchronous>, transform_indices = @transform_1, window_bounds = array<i64: 32, 1>}, {pipeline_mode = #tpu.pipeline_mode<synchronous>, transform_indices = @transform_2, window_bounds = array<i64: 2, 2, 4, 16, 16>}, {pipeline_mode = #tpu.pipeline_mode<synchronous>, transform_indices = @transform_3, window_bounds = array<i64: 2, 32>}, {pipeline_mode = #tpu.pipeline_mode<synchronous>, transform_indices = @transform_4, window_bounds = array<i64: 32, 32>}, {pipeline_mode = #tpu.pipeline_mode<synchronous>, transform_indices = @transform_5, window_bounds = array<i64: 32, 1>}, {pipeline_mode = #tpu.pipeline_mode<synchronous>, transform_indices = @transform_6, window_bounds = array<i64: 8, 32>}, {pipeline_mode = #tpu.pipeline_mode<synchronous>, transform_indices = @transform_7, window_bounds = array<i64: 8, 32>}, {pipeline_mode = #tpu.pipeline_mode<synchronous>, transform_indices = @transform_8, window_bounds = array<i64: 64, 32>}, {pipeline_mode = #tpu.pipeline_mode<synchronous>, transform_indices = @transform_9, window_bounds = array<i64: 1, 32>}, {pipeline_mode = #tpu.pipeline_mode<synchronous>, transform_indices = @transform_10, window_bounds = array<i64: 32, 32>}, {pipeline_mode = #tpu.pipeline_mode<synchronous>, transform_indices = @transform_11, window_bounds = array<i64: 1, 32>}, {pipeline_mode = #tpu.pipeline_mode<synchronous>, transform_indices = @transform_12, window_bounds = array<i64: 32, 1>}, {pipeline_mode = #tpu.pipeline_mode<synchronous>, transform_indices = @transform_13, window_bounds = array<i64: 1, 1>}, {pipeline_mode = #tpu.pipeline_mode<synchronous>, transform_indices = @transform_14, window_bounds = array<i64: 2, 1, 32>}, {pipeline_mode = #tpu.pipeline_mode<synchronous>, transform_indices = @transform_15, window_bounds = array<i64: 2, 1, 32>}, {pipeline_mode = #tpu.pipeline_mode<synchronous>, transform_indices = @transform_16, window_bounds = array<i64: 2, 32, 96>}, {pipeline_mode = #tpu.pipeline_mode<synchronous>, transform_indices = @transform_17, window_bounds = array<i64: 2, 1, 96>}, {pipeline_mode = #tpu.pipeline_mode<synchronous>, transform_indices = @transform_18, window_bounds = array<i64: 2, 32, 32>}, {pipeline_mode = #tpu.pipeline_mode<synchronous>, transform_indices = @transform_19, window_bounds = array<i64: 2, 1, 32>}, {pipeline_mode = #tpu.pipeline_mode<synchronous>, transform_indices = @transform_20, window_bounds = array<i64: 2, 1, 32>}, {pipeline_mode = #tpu.pipeline_mode<synchronous>, transform_indices = @transform_21, window_bounds = array<i64: 2, 1, 32>}, {pipeline_mode = #tpu.pipeline_mode<synchronous>, transform_indices = @transform_22, window_bounds = array<i64: 2, 32, 64>}, {pipeline_mode = #tpu.pipeline_mode<synchronous>, transform_indices = @transform_23, window_bounds = array<i64: 2, 1, 64>}, {pipeline_mode = #tpu.pipeline_mode<synchronous>, transform_indices = @transform_24, window_bounds = array<i64: 2, 64, 32>}, {pipeline_mode = #tpu.pipeline_mode<synchronous>, transform_indices = @transform_25, window_bounds = array<i64: 2, 1, 32>}, {pipeline_mode = #tpu.pipeline_mode<synchronous>, transform_indices = @transform_26, window_bounds = array<i64: 2, 1, 32>}, {pipeline_mode = #tpu.pipeline_mode<synchronous>, transform_indices = @transform_27, window_bounds = array<i64: 2, 1, 32>}, {pipeline_mode = #tpu.pipeline_mode<synchronous>, transform_indices = @transform_28, window_bounds = array<i64: 2, 3, 32, 64>}, {pipeline_mode = #tpu.pipeline_mode<synchronous>, transform_indices = @transform_29, window_bounds = array<i64: 2, 1, 64>}, {pipeline_mode = #tpu.pipeline_mode<synchronous>, transform_indices = @transform_30, window_bounds = array<i64: 2, 3, 64, 128>}, {pipeline_mode = #tpu.pipeline_mode<synchronous>, transform_indices = @transform_31, window_bounds = array<i64: 2, 1, 128>}, {pipeline_mode = #tpu.pipeline_mode<synchronous>, transform_indices = @transform_32, window_bounds = array<i64: 2, 5, 128, 32>}, {pipeline_mode = #tpu.pipeline_mode<synchronous>, transform_indices = @transform_33, window_bounds = array<i64: 2, 1, 32>}, {pipeline_mode = #tpu.pipeline_mode<synchronous>, transform_indices = @transform_34, window_bounds = array<i64: 2, 32, 32>}, {pipeline_mode = #tpu.pipeline_mode<synchronous>, transform_indices = @transform_35, window_bounds = array<i64: 2, 1, 32>}, {pipeline_mode = #tpu.pipeline_mode<synchronous>, transform_indices = @transform_36, window_bounds = array<i64: 2, 1>}]} {
    %0 = tpu.iota {dimensions = array<i32: 1>} : vector<32x8xi32>
    %c0 = arith.constant 0 : index
    %c0_0 = arith.constant 0 : index
    %1 = vector.load %arg1[%c0, %c0_0] : memref<32x1xi32, #tpu.memory_space<vmem>>, vector<32x1xi32>
    %2 = vector.broadcast %1 : vector<32x1xi32> to vector<32x8xi32>
    %3 = arith.cmpi eq, %2, %0 : vector<32x8xi32>
    %4 = arith.extui %3 : vector<32x8xi1> to vector<32x8xi32>
    %5 = arith.sitofp %4 : vector<32x8xi32> to vector<32x8xf32>
    %c0_1 = arith.constant 0 : index
    %c0_2 = arith.constant 0 : index
    %6 = vector.load %arg2[%c0_1, %c0_2] : memref<32x1xi32, #tpu.memory_space<vmem>>, vector<32x1xi32>
    %7 = vector.broadcast %6 : vector<32x1xi32> to vector<32x8xi32>
    %8 = arith.cmpi eq, %7, %0 : vector<32x8xi32>
    %9 = arith.extui %8 : vector<32x8xi1> to vector<32x8xi32>
    %10 = arith.sitofp %9 : vector<32x8xi32> to vector<32x8xf32>
    %c0_3 = arith.constant 0 : index
    %c0_4 = arith.constant 0 : index
    %11 = vector.load %arg7[%c0_3, %c0_4] : memref<8x32xf32, #tpu.memory_space<vmem>>, vector<8x32xf32>
    %cst = arith.constant dense<0.000000e+00> : vector<32x32xf32>
    %12 = tpu.matmul %5, %11, %cst {dimension_numbers = #tpu.dot_dimension_numbers<[1], [0], [0], [1], [0, 0, 1, 1], [], []>} : vector<32x8xf32>, vector<8x32xf32>, vector<32x32xf32> -> vector<32x32xf32>
    %c0_5 = arith.constant 0 : index
    %c0_6 = arith.constant 0 : index
    %13 = vector.load %arg8[%c0_5, %c0_6] : memref<8x32xf32, #tpu.memory_space<vmem>>, vector<8x32xf32>
    %cst_7 = arith.constant dense<0.000000e+00> : vector<32x32xf32>
    %14 = tpu.matmul %10, %13, %cst_7 {dimension_numbers = #tpu.dot_dimension_numbers<[1], [0], [0], [1], [0, 0, 1, 1], [], []>} : vector<32x8xf32>, vector<8x32xf32>, vector<32x32xf32> -> vector<32x32xf32>
    %c0_8 = arith.constant 0 : index
    %c0_9 = arith.constant 0 : index
    %15 = vector.load %arg9[%c0_8, %c0_9] : memref<64x32xbf16, #tpu.memory_space<vmem>>, vector<64x32xbf16>
    %c0_10 = arith.constant 0 : index
    %c0_11 = arith.constant 0 : index
    %16 = vector.load %arg5[%c0_10, %c0_11] : memref<32x32xf32, #tpu.memory_space<vmem>>, vector<32x32xf32>
    %17 = arith.addf %12, %16 : vector<32x32xf32>
    %18 = arith.truncf %17 : vector<32x32xf32> to vector<32x32xbf16>
    %19 = vector.extract_strided_slice %15 {offsets = [0, 0], sizes = [32, 32], strides = [1, 1]} : vector<64x32xbf16> to vector<32x32xbf16>
    %cst_12 = arith.constant dense<0.000000e+00> : vector<32x32xf32>
    %20 = tpu.matmul %18, %19, %cst_12 {dimension_numbers = #tpu.dot_dimension_numbers<[1], [0], [0], [1], [0, 0, 1, 1], [], []>} : vector<32x32xbf16>, vector<32x32xbf16>, vector<32x32xf32> -> vector<32x32xf32>
    %21 = arith.truncf %14 : vector<32x32xf32> to vector<32x32xbf16>
    %22 = vector.extract_strided_slice %15 {offsets = [32, 0], sizes = [32, 32], strides = [1, 1]} : vector<64x32xbf16> to vector<32x32xbf16>
    %cst_13 = arith.constant dense<0.000000e+00> : vector<32x32xf32>
    %23 = tpu.matmul %21, %22, %cst_13 {dimension_numbers = #tpu.dot_dimension_numbers<[1], [0], [0], [1], [0, 0, 1, 1], [], []>} : vector<32x32xbf16>, vector<32x32xbf16>, vector<32x32xf32> -> vector<32x32xf32>
    %24 = arith.addf %20, %23 : vector<32x32xf32>
    %c0_14 = arith.constant 0 : index
    %c0_15 = arith.constant 0 : index
    %25 = vector.load %arg10[%c0_14, %c0_15] : memref<1x32xf32, #tpu.memory_space<vmem>>, vector<1x32xf32>
    %26 = vector.broadcast %25 : vector<1x32xf32> to vector<32x32xf32>
    %27 = arith.addf %24, %26 : vector<32x32xf32>
    %28 = arith.negf %27 : vector<32x32xf32>
    %29 = math.exp %28 : vector<32x32xf32>
    %cst_16 = arith.constant 1.000000e+00 : f32
    %30 = vector.broadcast %cst_16 : f32 to vector<32x32xf32>
    %31 = arith.addf %30, %29 : vector<32x32xf32>
    %32 = arith.divf %30, %31 : vector<32x32xf32>
    %33 = arith.mulf %27, %32 : vector<32x32xf32>
    %c0_17 = arith.constant 0 : index
    %c0_18 = arith.constant 0 : index
    %34 = vector.load %arg6[%c0_17, %c0_18] : memref<32x1xf32, #tpu.memory_space<vmem>>, vector<32x1xf32>
    %35 = vector.broadcast %34 : vector<32x1xf32> to vector<32x32xf32>
    %36 = arith.mulf %33, %35 : vector<32x32xf32>
    %37 = tpu.iota {dimensions = array<i32: 0>} : vector<32x1xi32>
    %c16_i32 = arith.constant 16 : i32
    %c0_i32 = arith.constant 0 : i32
    %38 = arith.cmpi eq, %c16_i32, %c0_i32 : i32
    %c1_i32 = arith.constant 1 : i32
    %39 = arith.select %38, %c1_i32, %c16_i32 : i32
    %40 = vector.broadcast %39 : i32 to vector<32x1xi32>
    %41 = arith.remsi %37, %40 : vector<32x1xi32>
    %c0_i32_19 = arith.constant 0 : i32
    %42 = vector.broadcast %c0_i32_19 : i32 to vector<32x1xi32>
    %43 = arith.cmpi ne, %41, %42 : vector<32x1xi32>
    %c0_i32_20 = arith.constant 0 : i32
    %44 = vector.broadcast %c0_i32_20 : i32 to vector<32x1xi32>
    %45 = arith.cmpi slt, %41, %44 : vector<32x1xi32>
    %c0_i32_21 = arith.constant 0 : i32
    %46 = arith.cmpi slt, %39, %c0_i32_21 : i32
    %47 = vector.broadcast %46 : i1 to vector<32x1xi1>
    %48 = vector.broadcast %47 : vector<32x1xi1> to vector<32x1xi1>
    %49 = arith.xori %45, %48 : vector<32x1xi1>
    %50 = arith.andi %49, %43 : vector<32x1xi1>
    %51 = vector.broadcast %39 : i32 to vector<32x1xi32>
    %52 = arith.addi %41, %51 : vector<32x1xi32>
    %53 = arith.select %50, %52, %41 : vector<32x1xi1>, vector<32x1xi32>
    %c-2_i32 = arith.constant -2 : i32
    %54 = vector.broadcast %c-2_i32 : i32 to vector<32x1xi32>
    %55 = arith.addi %53, %54 : vector<32x1xi32>
    %c0_i32_22 = arith.constant 0 : i32
    %56 = vector.broadcast %c0_i32_22 : i32 to vector<32x1xi32>
    %57 = arith.cmpi sge, %55, %56 : vector<32x1xi32>
    %c-2_i32_23 = arith.constant -2 : i32
    %58 = vector.broadcast %c-2_i32_23 : i32 to vector<32x1xi32>
    %59 = arith.addi %53, %58 : vector<32x1xi32>
    %c16_i32_24 = arith.constant 16 : i32
    %60 = vector.broadcast %c16_i32_24 : i32 to vector<32x1xi32>
    %61 = arith.cmpi slt, %59, %60 : vector<32x1xi32>
    %62 = arith.andi %57, %61 : vector<32x1xi1>
    %c-1_i32 = arith.constant -1 : i32
    %63 = vector.broadcast %c-1_i32 : i32 to vector<32x1xi32>
    %64 = arith.addi %53, %63 : vector<32x1xi32>
    %c0_i32_25 = arith.constant 0 : i32
    %65 = vector.broadcast %c0_i32_25 : i32 to vector<32x1xi32>
    %66 = arith.cmpi sge, %64, %65 : vector<32x1xi32>
    %c-1_i32_26 = arith.constant -1 : i32
    %67 = vector.broadcast %c-1_i32_26 : i32 to vector<32x1xi32>
    %68 = arith.addi %53, %67 : vector<32x1xi32>
    %c16_i32_27 = arith.constant 16 : i32
    %69 = vector.broadcast %c16_i32_27 : i32 to vector<32x1xi32>
    %70 = arith.cmpi slt, %68, %69 : vector<32x1xi32>
    %71 = arith.andi %66, %70 : vector<32x1xi1>
    %c1_i32_28 = arith.constant 1 : i32
    %72 = vector.broadcast %c1_i32_28 : i32 to vector<32x1xi32>
    %73 = arith.addi %53, %72 : vector<32x1xi32>
    %c0_i32_29 = arith.constant 0 : i32
    %74 = vector.broadcast %c0_i32_29 : i32 to vector<32x1xi32>
    %75 = arith.cmpi sge, %73, %74 : vector<32x1xi32>
    %c1_i32_30 = arith.constant 1 : i32
    %76 = vector.broadcast %c1_i32_30 : i32 to vector<32x1xi32>
    %77 = arith.addi %53, %76 : vector<32x1xi32>
    %c16_i32_31 = arith.constant 16 : i32
    %78 = vector.broadcast %c16_i32_31 : i32 to vector<32x1xi32>
    %79 = arith.cmpi slt, %77, %78 : vector<32x1xi32>
    %80 = arith.andi %75, %79 : vector<32x1xi1>
    %c2_i32 = arith.constant 2 : i32
    %81 = vector.broadcast %c2_i32 : i32 to vector<32x1xi32>
    %82 = arith.addi %53, %81 : vector<32x1xi32>
    %c0_i32_32 = arith.constant 0 : i32
    %83 = vector.broadcast %c0_i32_32 : i32 to vector<32x1xi32>
    %84 = arith.cmpi sge, %82, %83 : vector<32x1xi32>
    %c2_i32_33 = arith.constant 2 : i32
    %85 = vector.broadcast %c2_i32_33 : i32 to vector<32x1xi32>
    %86 = arith.addi %53, %85 : vector<32x1xi32>
    %c16_i32_34 = arith.constant 16 : i32
    %87 = vector.broadcast %c16_i32_34 : i32 to vector<32x1xi32>
    %88 = arith.cmpi slt, %86, %87 : vector<32x1xi32>
    %89 = arith.andi %84, %88 : vector<32x1xi1>
    %c0_35 = arith.constant 0 : index
    %c0_36 = arith.constant 0 : index
    %c0_37 = arith.constant 0 : index
    %90 = vector.load %arg15[%c0_35, %c0_36, %c0_37] : memref<2x1x32xf32, #tpu.memory_space<vmem>>, vector<1x1x32xf32>
    %91 = vector.shape_cast %90 : vector<1x1x32xf32> to vector<1x32xf32>
    %c0_38 = arith.constant 0 : index
    %c0_39 = arith.constant 0 : index
    %c0_40 = arith.constant 0 : index
    %92 = vector.load %arg16[%c0_38, %c0_39, %c0_40] : memref<2x1x32xf32, #tpu.memory_space<vmem>>, vector<1x1x32xf32>
    %93 = vector.shape_cast %92 : vector<1x1x32xf32> to vector<1x32xf32>
    %cst_41 = arith.constant dense<0.000000e+00> : vector<32xf32>
    %94 = vector.multi_reduction <add>, %36, %cst_41 [1] : vector<32x32xf32> to vector<32xf32>
    %95 = vector.shape_cast %94 : vector<32xf32> to vector<32x1xf32>
    %cst_42 = arith.constant 3.200000e+01 : f32
    %96 = vector.broadcast %cst_42 : f32 to vector<32x1xf32>
    %97 = arith.divf %95, %96 : vector<32x1xf32>
    %98 = vector.broadcast %97 : vector<32x1xf32> to vector<32x32xf32>
    %99 = arith.subf %36, %98 : vector<32x32xf32>
    %100 = arith.mulf %99, %99 : vector<32x32xf32>
    %cst_43 = arith.constant dense<0.000000e+00> : vector<32xf32>
    %101 = vector.multi_reduction <add>, %100, %cst_43 [1] : vector<32x32xf32> to vector<32xf32>
    %102 = vector.shape_cast %101 : vector<32xf32> to vector<32x1xf32>
    %cst_44 = arith.constant 3.200000e+01 : f32
    %103 = vector.broadcast %cst_44 : f32 to vector<32x1xf32>
    %104 = arith.divf %102, %103 : vector<32x1xf32>
    %cst_45 = arith.constant 9.99999974E-6 : f32
    %105 = vector.broadcast %cst_45 : f32 to vector<32x1xf32>
    %106 = arith.addf %104, %105 : vector<32x1xf32>
    %107 = math.rsqrt %106 : vector<32x1xf32>
    %108 = vector.broadcast %107 : vector<32x1xf32> to vector<32x32xf32>
    %109 = arith.mulf %99, %108 : vector<32x32xf32>
    %110 = vector.broadcast %91 : vector<1x32xf32> to vector<32x32xf32>
    %111 = arith.mulf %109, %110 : vector<32x32xf32>
    %112 = vector.broadcast %93 : vector<1x32xf32> to vector<32x32xf32>
    %113 = arith.addf %111, %112 : vector<32x32xf32>
    %114 = arith.truncf %113 : vector<32x32xf32> to vector<32x32xbf16>
    %c0_46 = arith.constant 0 : index
    %c0_47 = arith.constant 0 : index
    %c0_48 = arith.constant 0 : index
    %115 = vector.load %arg17[%c0_46, %c0_47, %c0_48] : memref<2x32x96xbf16, #tpu.memory_space<vmem>>, vector<1x32x96xbf16>
    %116 = vector.shape_cast %115 : vector<1x32x96xbf16> to vector<32x96xbf16>
    %cst_49 = arith.constant dense<0.000000e+00> : vector<32x96xf32>
    %117 = tpu.matmul %114, %116, %cst_49 {dimension_numbers = #tpu.dot_dimension_numbers<[1], [0], [0], [1], [0, 0, 1, 1], [], []>} : vector<32x32xbf16>, vector<32x96xbf16>, vector<32x96xf32> -> vector<32x96xf32>
    %c0_50 = arith.constant 0 : index
    %c0_51 = arith.constant 0 : index
    %c0_52 = arith.constant 0 : index
    %118 = vector.load %arg18[%c0_50, %c0_51, %c0_52] : memref<2x1x96xf32, #tpu.memory_space<vmem>>, vector<1x1x96xf32>
    %119 = vector.shape_cast %118 : vector<1x1x96xf32> to vector<1x96xf32>
    %120 = vector.broadcast %119 : vector<1x96xf32> to vector<32x96xf32>
    %121 = arith.addf %117, %120 : vector<32x96xf32>
    %c0_53 = arith.constant 0 : index
    %c0_54 = arith.constant 0 : index
    %c0_55 = arith.constant 0 : index
    %122 = vector.load %arg19[%c0_53, %c0_54, %c0_55] : memref<2x32x32xbf16, #tpu.memory_space<vmem>>, vector<1x32x32xbf16>
    %123 = vector.shape_cast %122 : vector<1x32x32xbf16> to vector<32x32xbf16>
    %cst_56 = arith.constant 0.000000e+00 : f32
    %124 = vector.broadcast %cst_56 : f32 to vector<16x32xf32>
    %125 = vector.extract_strided_slice %121 {offsets = [0, 0], sizes = [16, 8], strides = [1, 1]} : vector<32x96xf32> to vector<16x8xf32>
    %126 = arith.truncf %125 : vector<16x8xf32> to vector<16x8xbf16>
    %127 = vector.extract_strided_slice %121 {offsets = [0, 32], sizes = [16, 8], strides = [1, 1]} : vector<32x96xf32> to vector<16x8xf32>
    %128 = arith.truncf %127 : vector<16x8xf32> to vector<16x8xbf16>
    %129 = vector.extract_strided_slice %121 {offsets = [0, 64], sizes = [16, 8], strides = [1, 1]} : vector<32x96xf32> to vector<16x8xf32>
    %130 = arith.truncf %129 : vector<16x8xf32> to vector<16x8xbf16>
    %cst_57 = arith.constant dense<0.000000e+00> : vector<16x16xf32>
    %131 = tpu.matmul %126, %128, %cst_57 {dimension_numbers = #tpu.dot_dimension_numbers<[1], [1], [0], [0], [0, 0, 1, 0], [], []>} : vector<16x8xbf16>, vector<16x8xbf16>, vector<16x16xf32> -> vector<16x16xf32>
    %c0_58 = arith.constant 0 : index
    %c0_59 = arith.constant 0 : index
    %c0_60 = arith.constant 0 : index
    %c0_61 = arith.constant 0 : index
    %c0_62 = arith.constant 0 : index
    %132 = vector.load %arg3[%c0_58, %c0_59, %c0_60, %c0_61, %c0_62] : memref<2x2x4x16x16xf32, #tpu.memory_space<vmem>>, vector<1x1x1x16x16xf32>
    %133 = vector.shape_cast %132 : vector<1x1x1x16x16xf32> to vector<16x16xf32>
    %134 = arith.addf %131, %133 : vector<16x16xf32>
    %cst_63 = arith.constant dense<0xFF800000> : vector<16xf32>
    %135 = vector.multi_reduction <maximumf>, %134, %cst_63 [1] : vector<16x16xf32> to vector<16xf32>
    %136 = vector.shape_cast %135 : vector<16xf32> to vector<16x1xf32>
    %137 = vector.broadcast %136 : vector<16x1xf32> to vector<16x16xf32>
    %138 = arith.subf %134, %137 : vector<16x16xf32>
    %139 = math.exp %138 : vector<16x16xf32>
    %cst_64 = arith.constant dense<0.000000e+00> : vector<16xf32>
    %140 = vector.multi_reduction <add>, %139, %cst_64 [1] : vector<16x16xf32> to vector<16xf32>
    %141 = vector.shape_cast %140 : vector<16xf32> to vector<16x1xf32>
    %142 = tpu.reciprocal %141 {approx = true} : vector<16x1xf32> -> vector<16x1xf32>
    %143 = vector.broadcast %142 : vector<16x1xf32> to vector<16x16xf32>
    %144 = arith.mulf %139, %143 : vector<16x16xf32>
    %145 = arith.truncf %144 : vector<16x16xf32> to vector<16x16xbf16>
    %cst_65 = arith.constant dense<0.000000e+00> : vector<16x8xf32>
    %146 = tpu.matmul %145, %130, %cst_65 {dimension_numbers = #tpu.dot_dimension_numbers<[1], [0], [0], [1], [0, 0, 1, 1], [], []>} : vector<16x16xbf16>, vector<16x8xbf16>, vector<16x8xf32> -> vector<16x8xf32>
    %147 = arith.truncf %146 : vector<16x8xf32> to vector<16x8xbf16>
    %148 = vector.extract_strided_slice %123 {offsets = [0, 0], sizes = [8, 32], strides = [1, 1]} : vector<32x32xbf16> to vector<8x32xbf16>
    %cst_66 = arith.constant dense<0.000000e+00> : vector<16x32xf32>
    %149 = tpu.matmul %147, %148, %cst_66 {dimension_numbers = #tpu.dot_dimension_numbers<[1], [0], [0], [1], [0, 0, 1, 1], [], []>} : vector<16x8xbf16>, vector<8x32xbf16>, vector<16x32xf32> -> vector<16x32xf32>
    %150 = arith.addf %124, %149 : vector<16x32xf32>
    %151 = vector.extract_strided_slice %121 {offsets = [0, 8], sizes = [16, 8], strides = [1, 1]} : vector<32x96xf32> to vector<16x8xf32>
    %152 = arith.truncf %151 : vector<16x8xf32> to vector<16x8xbf16>
    %153 = vector.extract_strided_slice %121 {offsets = [0, 40], sizes = [16, 8], strides = [1, 1]} : vector<32x96xf32> to vector<16x8xf32>
    %154 = arith.truncf %153 : vector<16x8xf32> to vector<16x8xbf16>
    %155 = vector.extract_strided_slice %121 {offsets = [0, 72], sizes = [16, 8], strides = [1, 1]} : vector<32x96xf32> to vector<16x8xf32>
    %156 = arith.truncf %155 : vector<16x8xf32> to vector<16x8xbf16>
    %cst_67 = arith.constant dense<0.000000e+00> : vector<16x16xf32>
    %157 = tpu.matmul %152, %154, %cst_67 {dimension_numbers = #tpu.dot_dimension_numbers<[1], [1], [0], [0], [0, 0, 1, 0], [], []>} : vector<16x8xbf16>, vector<16x8xbf16>, vector<16x16xf32> -> vector<16x16xf32>
    %c0_68 = arith.constant 0 : index
    %c0_69 = arith.constant 0 : index
    %c1 = arith.constant 1 : index
    %c0_70 = arith.constant 0 : index
    %c0_71 = arith.constant 0 : index
    %158 = vector.load %arg3[%c0_68, %c0_69, %c1, %c0_70, %c0_71] : memref<2x2x4x16x16xf32, #tpu.memory_space<vmem>>, vector<1x1x1x16x16xf32>
    %159 = vector.shape_cast %158 : vector<1x1x1x16x16xf32> to vector<16x16xf32>
    %160 = arith.addf %157, %159 : vector<16x16xf32>
    %cst_72 = arith.constant dense<0xFF800000> : vector<16xf32>
    %161 = vector.multi_reduction <maximumf>, %160, %cst_72 [1] : vector<16x16xf32> to vector<16xf32>
    %162 = vector.shape_cast %161 : vector<16xf32> to vector<16x1xf32>
    %163 = vector.broadcast %162 : vector<16x1xf32> to vector<16x16xf32>
    %164 = arith.subf %160, %163 : vector<16x16xf32>
    %165 = math.exp %164 : vector<16x16xf32>
    %cst_73 = arith.constant dense<0.000000e+00> : vector<16xf32>
    %166 = vector.multi_reduction <add>, %165, %cst_73 [1] : vector<16x16xf32> to vector<16xf32>
    %167 = vector.shape_cast %166 : vector<16xf32> to vector<16x1xf32>
    %168 = tpu.reciprocal %167 {approx = true} : vector<16x1xf32> -> vector<16x1xf32>
    %169 = vector.broadcast %168 : vector<16x1xf32> to vector<16x16xf32>
    %170 = arith.mulf %165, %169 : vector<16x16xf32>
    %171 = arith.truncf %170 : vector<16x16xf32> to vector<16x16xbf16>
    %cst_74 = arith.constant dense<0.000000e+00> : vector<16x8xf32>
    %172 = tpu.matmul %171, %156, %cst_74 {dimension_numbers = #tpu.dot_dimension_numbers<[1], [0], [0], [1], [0, 0, 1, 1], [], []>} : vector<16x16xbf16>, vector<16x8xbf16>, vector<16x8xf32> -> vector<16x8xf32>
    %173 = arith.truncf %172 : vector<16x8xf32> to vector<16x8xbf16>
    %174 = vector.extract_strided_slice %123 {offsets = [8, 0], sizes = [8, 32], strides = [1, 1]} : vector<32x32xbf16> to vector<8x32xbf16>
    %cst_75 = arith.constant dense<0.000000e+00> : vector<16x32xf32>
    %175 = tpu.matmul %173, %174, %cst_75 {dimension_numbers = #tpu.dot_dimension_numbers<[1], [0], [0], [1], [0, 0, 1, 1], [], []>} : vector<16x8xbf16>, vector<8x32xbf16>, vector<16x32xf32> -> vector<16x32xf32>
    %176 = arith.addf %150, %175 : vector<16x32xf32>
    %177 = vector.extract_strided_slice %121 {offsets = [0, 16], sizes = [16, 8], strides = [1, 1]} : vector<32x96xf32> to vector<16x8xf32>
    %178 = arith.truncf %177 : vector<16x8xf32> to vector<16x8xbf16>
    %179 = vector.extract_strided_slice %121 {offsets = [0, 48], sizes = [16, 8], strides = [1, 1]} : vector<32x96xf32> to vector<16x8xf32>
    %180 = arith.truncf %179 : vector<16x8xf32> to vector<16x8xbf16>
    %181 = vector.extract_strided_slice %121 {offsets = [0, 80], sizes = [16, 8], strides = [1, 1]} : vector<32x96xf32> to vector<16x8xf32>
    %182 = arith.truncf %181 : vector<16x8xf32> to vector<16x8xbf16>
    %cst_76 = arith.constant dense<0.000000e+00> : vector<16x16xf32>
    %183 = tpu.matmul %178, %180, %cst_76 {dimension_numbers = #tpu.dot_dimension_numbers<[1], [1], [0], [0], [0, 0, 1, 0], [], []>} : vector<16x8xbf16>, vector<16x8xbf16>, vector<16x16xf32> -> vector<16x16xf32>
    %c0_77 = arith.constant 0 : index
    %c0_78 = arith.constant 0 : index
    %c2 = arith.constant 2 : index
    %c0_79 = arith.constant 0 : index
    %c0_80 = arith.constant 0 : index
    %184 = vector.load %arg3[%c0_77, %c0_78, %c2, %c0_79, %c0_80] : memref<2x2x4x16x16xf32, #tpu.memory_space<vmem>>, vector<1x1x1x16x16xf32>
    %185 = vector.shape_cast %184 : vector<1x1x1x16x16xf32> to vector<16x16xf32>
    %186 = arith.addf %183, %185 : vector<16x16xf32>
    %cst_81 = arith.constant dense<0xFF800000> : vector<16xf32>
    %187 = vector.multi_reduction <maximumf>, %186, %cst_81 [1] : vector<16x16xf32> to vector<16xf32>
    %188 = vector.shape_cast %187 : vector<16xf32> to vector<16x1xf32>
    %189 = vector.broadcast %188 : vector<16x1xf32> to vector<16x16xf32>
    %190 = arith.subf %186, %189 : vector<16x16xf32>
    %191 = math.exp %190 : vector<16x16xf32>
    %cst_82 = arith.constant dense<0.000000e+00> : vector<16xf32>
    %192 = vector.multi_reduction <add>, %191, %cst_82 [1] : vector<16x16xf32> to vector<16xf32>
    %193 = vector.shape_cast %192 : vector<16xf32> to vector<16x1xf32>
    %194 = tpu.reciprocal %193 {approx = true} : vector<16x1xf32> -> vector<16x1xf32>
    %195 = vector.broadcast %194 : vector<16x1xf32> to vector<16x16xf32>
    %196 = arith.mulf %191, %195 : vector<16x16xf32>
    %197 = arith.truncf %196 : vector<16x16xf32> to vector<16x16xbf16>
    %cst_83 = arith.constant dense<0.000000e+00> : vector<16x8xf32>
    %198 = tpu.matmul %197, %182, %cst_83 {dimension_numbers = #tpu.dot_dimension_numbers<[1], [0], [0], [1], [0, 0, 1, 1], [], []>} : vector<16x16xbf16>, vector<16x8xbf16>, vector<16x8xf32> -> vector<16x8xf32>
    %199 = arith.truncf %198 : vector<16x8xf32> to vector<16x8xbf16>
    %200 = vector.extract_strided_slice %123 {offsets = [16, 0], sizes = [8, 32], strides = [1, 1]} : vector<32x32xbf16> to vector<8x32xbf16>
    %cst_84 = arith.constant dense<0.000000e+00> : vector<16x32xf32>
    %201 = tpu.matmul %199, %200, %cst_84 {dimension_numbers = #tpu.dot_dimension_numbers<[1], [0], [0], [1], [0, 0, 1, 1], [], []>} : vector<16x8xbf16>, vector<8x32xbf16>, vector<16x32xf32> -> vector<16x32xf32>
    %202 = arith.addf %176, %201 : vector<16x32xf32>
    %203 = vector.extract_strided_slice %121 {offsets = [0, 24], sizes = [16, 8], strides = [1, 1]} : vector<32x96xf32> to vector<16x8xf32>
    %204 = arith.truncf %203 : vector<16x8xf32> to vector<16x8xbf16>
    %205 = vector.extract_strided_slice %121 {offsets = [0, 56], sizes = [16, 8], strides = [1, 1]} : vector<32x96xf32> to vector<16x8xf32>
    %206 = arith.truncf %205 : vector<16x8xf32> to vector<16x8xbf16>
    %207 = vector.extract_strided_slice %121 {offsets = [0, 88], sizes = [16, 8], strides = [1, 1]} : vector<32x96xf32> to vector<16x8xf32>
    %208 = arith.truncf %207 : vector<16x8xf32> to vector<16x8xbf16>
    %cst_85 = arith.constant dense<0.000000e+00> : vector<16x16xf32>
    %209 = tpu.matmul %204, %206, %cst_85 {dimension_numbers = #tpu.dot_dimension_numbers<[1], [1], [0], [0], [0, 0, 1, 0], [], []>} : vector<16x8xbf16>, vector<16x8xbf16>, vector<16x16xf32> -> vector<16x16xf32>
    %c0_86 = arith.constant 0 : index
    %c0_87 = arith.constant 0 : index
    %c3 = arith.constant 3 : index
    %c0_88 = arith.constant 0 : index
    %c0_89 = arith.constant 0 : index
    %210 = vector.load %arg3[%c0_86, %c0_87, %c3, %c0_88, %c0_89] : memref<2x2x4x16x16xf32, #tpu.memory_space<vmem>>, vector<1x1x1x16x16xf32>
    %211 = vector.shape_cast %210 : vector<1x1x1x16x16xf32> to vector<16x16xf32>
    %212 = arith.addf %209, %211 : vector<16x16xf32>
    %cst_90 = arith.constant dense<0xFF800000> : vector<16xf32>
    %213 = vector.multi_reduction <maximumf>, %212, %cst_90 [1] : vector<16x16xf32> to vector<16xf32>
    %214 = vector.shape_cast %213 : vector<16xf32> to vector<16x1xf32>
    %215 = vector.broadcast %214 : vector<16x1xf32> to vector<16x16xf32>
    %216 = arith.subf %212, %215 : vector<16x16xf32>
    %217 = math.exp %216 : vector<16x16xf32>
    %cst_91 = arith.constant dense<0.000000e+00> : vector<16xf32>
    %218 = vector.multi_reduction <add>, %217, %cst_91 [1] : vector<16x16xf32> to vector<16xf32>
    %219 = vector.shape_cast %218 : vector<16xf32> to vector<16x1xf32>
    %220 = tpu.reciprocal %219 {approx = true} : vector<16x1xf32> -> vector<16x1xf32>
    %221 = vector.broadcast %220 : vector<16x1xf32> to vector<16x16xf32>
    %222 = arith.mulf %217, %221 : vector<16x16xf32>
    %223 = arith.truncf %222 : vector<16x16xf32> to vector<16x16xbf16>
    %cst_92 = arith.constant dense<0.000000e+00> : vector<16x8xf32>
    %224 = tpu.matmul %223, %208, %cst_92 {dimension_numbers = #tpu.dot_dimension_numbers<[1], [0], [0], [1], [0, 0, 1, 1], [], []>} : vector<16x16xbf16>, vector<16x8xbf16>, vector<16x8xf32> -> vector<16x8xf32>
    %225 = arith.truncf %224 : vector<16x8xf32> to vector<16x8xbf16>
    %226 = vector.extract_strided_slice %123 {offsets = [24, 0], sizes = [8, 32], strides = [1, 1]} : vector<32x32xbf16> to vector<8x32xbf16>
    %cst_93 = arith.constant dense<0.000000e+00> : vector<16x32xf32>
    %227 = tpu.matmul %225, %226, %cst_93 {dimension_numbers = #tpu.dot_dimension_numbers<[1], [0], [0], [1], [0, 0, 1, 1], [], []>} : vector<16x8xbf16>, vector<8x32xbf16>, vector<16x32xf32> -> vector<16x32xf32>
    %228 = arith.addf %202, %227 : vector<16x32xf32>
    %c0_94 = arith.constant 0 : index
    %c0_95 = arith.constant 0 : index
    %c0_96 = arith.constant 0 : index
    %229 = vector.load %arg20[%c0_94, %c0_95, %c0_96] : memref<2x1x32xf32, #tpu.memory_space<vmem>>, vector<1x1x32xf32>
    %230 = vector.shape_cast %229 : vector<1x1x32xf32> to vector<1x32xf32>
    %231 = vector.broadcast %230 : vector<1x32xf32> to vector<16x32xf32>
    %232 = arith.addf %228, %231 : vector<16x32xf32>
    %c0_97 = arith.constant 0 : index
    %c0_98 = arith.constant 0 : index
    %233 = vector.load %arg38[%c0_97, %c0_98] : memref<32x32xf32, #tpu.memory_space<vmem>>, vector<16x32xf32>
    tpu.vector_store %arg38[%c0_97, %c0_98], %232 {strides = array<i32>} : memref<32x32xf32, #tpu.memory_space<vmem>>, vector<16x32xf32>,
    %cst_99 = arith.constant 0.000000e+00 : f32
    %234 = vector.broadcast %cst_99 : f32 to vector<16x32xf32>
    %235 = vector.extract_strided_slice %121 {offsets = [16, 0], sizes = [16, 8], strides = [1, 1]} : vector<32x96xf32> to vector<16x8xf32>
    %236 = arith.truncf %235 : vector<16x8xf32> to vector<16x8xbf16>
    %237 = vector.extract_strided_slice %121 {offsets = [16, 32], sizes = [16, 8], strides = [1, 1]} : vector<32x96xf32> to vector<16x8xf32>
    %238 = arith.truncf %237 : vector<16x8xf32> to vector<16x8xbf16>
    %239 = vector.extract_strided_slice %121 {offsets = [16, 64], sizes = [16, 8], strides = [1, 1]} : vector<32x96xf32> to vector<16x8xf32>
    %240 = arith.truncf %239 : vector<16x8xf32> to vector<16x8xbf16>
    %cst_100 = arith.constant dense<0.000000e+00> : vector<16x16xf32>
    %241 = tpu.matmul %236, %238, %cst_100 {dimension_numbers = #tpu.dot_dimension_numbers<[1], [1], [0], [0], [0, 0, 1, 0], [], []>} : vector<16x8xbf16>, vector<16x8xbf16>, vector<16x16xf32> -> vector<16x16xf32>
    %c1_101 = arith.constant 1 : index
    %c0_102 = arith.constant 0 : index
    %c0_103 = arith.constant 0 : index
    %c0_104 = arith.constant 0 : index
    %c0_105 = arith.constant 0 : index
    %242 = vector.load %arg3[%c1_101, %c0_102, %c0_103, %c0_104, %c0_105] : memref<2x2x4x16x16xf32, #tpu.memory_space<vmem>>, vector<1x1x1x16x16xf32>
    %243 = vector.shape_cast %242 : vector<1x1x1x16x16xf32> to vector<16x16xf32>
    %244 = arith.addf %241, %243 : vector<16x16xf32>
    %cst_106 = arith.constant dense<0xFF800000> : vector<16xf32>
    %245 = vector.multi_reduction <maximumf>, %244, %cst_106 [1] : vector<16x16xf32> to vector<16xf32>
    %246 = vector.shape_cast %245 : vector<16xf32> to vector<16x1xf32>
    %247 = vector.broadcast %246 : vector<16x1xf32> to vector<16x16xf32>
    %248 = arith.subf %244, %247 : vector<16x16xf32>
    %249 = math.exp %248 : vector<16x16xf32>
    %cst_107 = arith.constant dense<0.000000e+00> : vector<16xf32>
    %250 = vector.multi_reduction <add>, %249, %cst_107 [1] : vector<16x16xf32> to vector<16xf32>
    %251 = vector.shape_cast %250 : vector<16xf32> to vector<16x1xf32>
    %252 = tpu.reciprocal %251 {approx = true} : vector<16x1xf32> -> vector<16x1xf32>
    %253 = vector.broadcast %252 : vector<16x1xf32> to vector<16x16xf32>
    %254 = arith.mulf %249, %253 : vector<16x16xf32>
    %255 = arith.truncf %254 : vector<16x16xf32> to vector<16x16xbf16>
    %cst_108 = arith.constant dense<0.000000e+00> : vector<16x8xf32>
    %256 = tpu.matmul %255, %240, %cst_108 {dimension_numbers = #tpu.dot_dimension_numbers<[1], [0], [0], [1], [0, 0, 1, 1], [], []>} : vector<16x16xbf16>, vector<16x8xbf16>, vector<16x8xf32> -> vector<16x8xf32>
    %257 = arith.truncf %256 : vector<16x8xf32> to vector<16x8xbf16>
    %258 = vector.extract_strided_slice %123 {offsets = [0, 0], sizes = [8, 32], strides = [1, 1]} : vector<32x32xbf16> to vector<8x32xbf16>
    %cst_109 = arith.constant dense<0.000000e+00> : vector<16x32xf32>
    %259 = tpu.matmul %257, %258, %cst_109 {dimension_numbers = #tpu.dot_dimension_numbers<[1], [0], [0], [1], [0, 0, 1, 1], [], []>} : vector<16x8xbf16>, vector<8x32xbf16>, vector<16x32xf32> -> vector<16x32xf32>
    %260 = arith.addf %234, %259 : vector<16x32xf32>
    %261 = vector.extract_strided_slice %121 {offsets = [16, 8], sizes = [16, 8], strides = [1, 1]} : vector<32x96xf32> to vector<16x8xf32>
    %262 = arith.truncf %261 : vector<16x8xf32> to vector<16x8xbf16>
    %263 = vector.extract_strided_slice %121 {offsets = [16, 40], sizes = [16, 8], strides = [1, 1]} : vector<32x96xf32> to vector<16x8xf32>
    %264 = arith.truncf %263 : vector<16x8xf32> to vector<16x8xbf16>
    %265 = vector.extract_strided_slice %121 {offsets = [16, 72], sizes = [16, 8], strides = [1, 1]} : vector<32x96xf32> to vector<16x8xf32>
    %266 = arith.truncf %265 : vector<16x8xf32> to vector<16x8xbf16>
    %cst_110 = arith.constant dense<0.000000e+00> : vector<16x16xf32>
    %267 = tpu.matmul %262, %264, %cst_110 {dimension_numbers = #tpu.dot_dimension_numbers<[1], [1], [0], [0], [0, 0, 1, 0], [], []>} : vector<16x8xbf16>, vector<16x8xbf16>, vector<16x16xf32> -> vector<16x16xf32>
    %c1_111 = arith.constant 1 : index
    %c0_112 = arith.constant 0 : index
    %c1_113 = arith.constant 1 : index
    %c0_114 = arith.constant 0 : index
    %c0_115 = arith.constant 0 : index
    %268 = vector.load %arg3[%c1_111, %c0_112, %c1_113, %c0_114, %c0_115] : memref<2x2x4x16x16xf32, #tpu.memory_space<vmem>>, vector<1x1x1x16x16xf32>
    %269 = vector.shape_cast %268 : vector<1x1x1x16x16xf32> to vector<16x16xf32>
    %270 = arith.addf %267, %269 : vector<16x16xf32>
    %cst_116 = arith.constant dense<0xFF800000> : vector<16xf32>
    %271 = vector.multi_reduction <maximumf>, %270, %cst_116 [1] : vector<16x16xf32> to vector<16xf32>
    %272 = vector.shape_cast %271 : vector<16xf32> to vector<16x1xf32>
    %273 = vector.broadcast %272 : vector<16x1xf32> to vector<16x16xf32>
    %274 = arith.subf %270, %273 : vector<16x16xf32>
    %275 = math.exp %274 : vector<16x16xf32>
    %cst_117 = arith.constant dense<0.000000e+00> : vector<16xf32>
    %276 = vector.multi_reduction <add>, %275, %cst_117 [1] : vector<16x16xf32> to vector<16xf32>
    %277 = vector.shape_cast %276 : vector<16xf32> to vector<16x1xf32>
    %278 = tpu.reciprocal %277 {approx = true} : vector<16x1xf32> -> vector<16x1xf32>
    %279 = vector.broadcast %278 : vector<16x1xf32> to vector<16x16xf32>
    %280 = arith.mulf %275, %279 : vector<16x16xf32>
    %281 = arith.truncf %280 : vector<16x16xf32> to vector<16x16xbf16>
    %cst_118 = arith.constant dense<0.000000e+00> : vector<16x8xf32>
    %282 = tpu.matmul %281, %266, %cst_118 {dimension_numbers = #tpu.dot_dimension_numbers<[1], [0], [0], [1], [0, 0, 1, 1], [], []>} : vector<16x16xbf16>, vector<16x8xbf16>, vector<16x8xf32> -> vector<16x8xf32>
    %283 = arith.truncf %282 : vector<16x8xf32> to vector<16x8xbf16>
    %284 = vector.extract_strided_slice %123 {offsets = [8, 0], sizes = [8, 32], strides = [1, 1]} : vector<32x32xbf16> to vector<8x32xbf16>
    %cst_119 = arith.constant dense<0.000000e+00> : vector<16x32xf32>
    %285 = tpu.matmul %283, %284, %cst_119 {dimension_numbers = #tpu.dot_dimension_numbers<[1], [0], [0], [1], [0, 0, 1, 1], [], []>} : vector<16x8xbf16>, vector<8x32xbf16>, vector<16x32xf32> -> vector<16x32xf32>
    %286 = arith.addf %260, %285 : vector<16x32xf32>
    %287 = vector.extract_strided_slice %121 {offsets = [16, 16], sizes = [16, 8], strides = [1, 1]} : vector<32x96xf32> to vector<16x8xf32>
    %288 = arith.truncf %287 : vector<16x8xf32> to vector<16x8xbf16>
    %289 = vector.extract_strided_slice %121 {offsets = [16, 48], sizes = [16, 8], strides = [1, 1]} : vector<32x96xf32> to vector<16x8xf32>
    %290 = arith.truncf %289 : vector<16x8xf32> to vector<16x8xbf16>
    %291 = vector.extract_strided_slice %121 {offsets = [16, 80], sizes = [16, 8], strides = [1, 1]} : vector<32x96xf32> to vector<16x8xf32>
    %292 = arith.truncf %291 : vector<16x8xf32> to vector<16x8xbf16>
    %cst_120 = arith.constant dense<0.000000e+00> : vector<16x16xf32>
    %293 = tpu.matmul %288, %290, %cst_120 {dimension_numbers = #tpu.dot_dimension_numbers<[1], [1], [0], [0], [0, 0, 1, 0], [], []>} : vector<16x8xbf16>, vector<16x8xbf16>, vector<16x16xf32> -> vector<16x16xf32>
    %c1_121 = arith.constant 1 : index
    %c0_122 = arith.constant 0 : index
    %c2_123 = arith.constant 2 : index
    %c0_124 = arith.constant 0 : index
    %c0_125 = arith.constant 0 : index
    %294 = vector.load %arg3[%c1_121, %c0_122, %c2_123, %c0_124, %c0_125] : memref<2x2x4x16x16xf32, #tpu.memory_space<vmem>>, vector<1x1x1x16x16xf32>
    %295 = vector.shape_cast %294 : vector<1x1x1x16x16xf32> to vector<16x16xf32>
    %296 = arith.addf %293, %295 : vector<16x16xf32>
    %cst_126 = arith.constant dense<0xFF800000> : vector<16xf32>
    %297 = vector.multi_reduction <maximumf>, %296, %cst_126 [1] : vector<16x16xf32> to vector<16xf32>
    %298 = vector.shape_cast %297 : vector<16xf32> to vector<16x1xf32>
    %299 = vector.broadcast %298 : vector<16x1xf32> to vector<16x16xf32>
    %300 = arith.subf %296, %299 : vector<16x16xf32>
    %301 = math.exp %300 : vector<16x16xf32>
    %cst_127 = arith.constant dense<0.000000e+00> : vector<16xf32>
    %302 = vector.multi_reduction <add>, %301, %cst_127 [1] : vector<16x16xf32> to vector<16xf32>
    %303 = vector.shape_cast %302 : vector<16xf32> to vector<16x1xf32>
    %304 = tpu.reciprocal %303 {approx = true} : vector<16x1xf32> -> vector<16x1xf32>
    %305 = vector.broadcast %304 : vector<16x1xf32> to vector<16x16xf32>
    %306 = arith.mulf %301, %305 : vector<16x16xf32>
    %307 = arith.truncf %306 : vector<16x16xf32> to vector<16x16xbf16>
    %cst_128 = arith.constant dense<0.000000e+00> : vector<16x8xf32>
    %308 = tpu.matmul %307, %292, %cst_128 {dimension_numbers = #tpu.dot_dimension_numbers<[1], [0], [0], [1], [0, 0, 1, 1], [], []>} : vector<16x16xbf16>, vector<16x8xbf16>, vector<16x8xf32> -> vector<16x8xf32>
    %309 = arith.truncf %308 : vector<16x8xf32> to vector<16x8xbf16>
    %310 = vector.extract_strided_slice %123 {offsets = [16, 0], sizes = [8, 32], strides = [1, 1]} : vector<32x32xbf16> to vector<8x32xbf16>
    %cst_129 = arith.constant dense<0.000000e+00> : vector<16x32xf32>
    %311 = tpu.matmul %309, %310, %cst_129 {dimension_numbers = #tpu.dot_dimension_numbers<[1], [0], [0], [1], [0, 0, 1, 1], [], []>} : vector<16x8xbf16>, vector<8x32xbf16>, vector<16x32xf32> -> vector<16x32xf32>
    %312 = arith.addf %286, %311 : vector<16x32xf32>
    %313 = vector.extract_strided_slice %121 {offsets = [16, 24], sizes = [16, 8], strides = [1, 1]} : vector<32x96xf32> to vector<16x8xf32>
    %314 = arith.truncf %313 : vector<16x8xf32> to vector<16x8xbf16>
    %315 = vector.extract_strided_slice %121 {offsets = [16, 56], sizes = [16, 8], strides = [1, 1]} : vector<32x96xf32> to vector<16x8xf32>
    %316 = arith.truncf %315 : vector<16x8xf32> to vector<16x8xbf16>
    %317 = vector.extract_strided_slice %121 {offsets = [16, 88], sizes = [16, 8], strides = [1, 1]} : vector<32x96xf32> to vector<16x8xf32>
    %318 = arith.truncf %317 : vector<16x8xf32> to vector<16x8xbf16>
    %cst_130 = arith.constant dense<0.000000e+00> : vector<16x16xf32>
    %319 = tpu.matmul %314, %316, %cst_130 {dimension_numbers = #tpu.dot_dimension_numbers<[1], [1], [0], [0], [0, 0, 1, 0], [], []>} : vector<16x8xbf16>, vector<16x8xbf16>, vector<16x16xf32> -> vector<16x16xf32>
    %c1_131 = arith.constant 1 : index
    %c0_132 = arith.constant 0 : index
    %c3_133 = arith.constant 3 : index
    %c0_134 = arith.constant 0 : index
    %c0_135 = arith.constant 0 : index
    %320 = vector.load %arg3[%c1_131, %c0_132, %c3_133, %c0_134, %c0_135] : memref<2x2x4x16x16xf32, #tpu.memory_space<vmem>>, vector<1x1x1x16x16xf32>
    %321 = vector.shape_cast %320 : vector<1x1x1x16x16xf32> to vector<16x16xf32>
    %322 = arith.addf %319, %321 : vector<16x16xf32>
    %cst_136 = arith.constant dense<0xFF800000> : vector<16xf32>
    %323 = vector.multi_reduction <maximumf>, %322, %cst_136 [1] : vector<16x16xf32> to vector<16xf32>
    %324 = vector.shape_cast %323 : vector<16xf32> to vector<16x1xf32>
    %325 = vector.broadcast %324 : vector<16x1xf32> to vector<16x16xf32>
    %326 = arith.subf %322, %325 : vector<16x16xf32>
    %327 = math.exp %326 : vector<16x16xf32>
    %cst_137 = arith.constant dense<0.000000e+00> : vector<16xf32>
    %328 = vector.multi_reduction <add>, %327, %cst_137 [1] : vector<16x16xf32> to vector<16xf32>
    %329 = vector.shape_cast %328 : vector<16xf32> to vector<16x1xf32>
    %330 = tpu.reciprocal %329 {approx = true} : vector<16x1xf32> -> vector<16x1xf32>
    %331 = vector.broadcast %330 : vector<16x1xf32> to vector<16x16xf32>
    %332 = arith.mulf %327, %331 : vector<16x16xf32>
    %333 = arith.truncf %332 : vector<16x16xf32> to vector<16x16xbf16>
    %cst_138 = arith.constant dense<0.000000e+00> : vector<16x8xf32>
    %334 = tpu.matmul %333, %318, %cst_138 {dimension_numbers = #tpu.dot_dimension_numbers<[1], [0], [0], [1], [0, 0, 1, 1], [], []>} : vector<16x16xbf16>, vector<16x8xbf16>, vector<16x8xf32> -> vector<16x8xf32>
    %335 = arith.truncf %334 : vector<16x8xf32> to vector<16x8xbf16>
    %336 = vector.extract_strided_slice %123 {offsets = [24, 0], sizes = [8, 32], strides = [1, 1]} : vector<32x32xbf16> to vector<8x32xbf16>
    %cst_139 = arith.constant dense<0.000000e+00> : vector<16x32xf32>
    %337 = tpu.matmul %335, %336, %cst_139 {dimension_numbers = #tpu.dot_dimension_numbers<[1], [0], [0], [1], [0, 0, 1, 1], [], []>} : vector<16x8xbf16>, vector<8x32xbf16>, vector<16x32xf32> -> vector<16x32xf32>
    %338 = arith.addf %312, %337 : vector<16x32xf32>
    %c0_140 = arith.constant 0 : index
    %c0_141 = arith.constant 0 : index
    %c0_142 = arith.constant 0 : index
    %339 = vector.load %arg20[%c0_140, %c0_141, %c0_142] : memref<2x1x32xf32, #tpu.memory_space<vmem>>, vector<1x1x32xf32>
    %340 = vector.shape_cast %339 : vector<1x1x32xf32> to vector<1x32xf32>
    %341 = vector.broadcast %340 : vector<1x32xf32> to vector<16x32xf32>
    %342 = arith.addf %338, %341 : vector<16x32xf32>
    %c16 = arith.constant 16 : index
    %c0_143 = arith.constant 0 : index
    %343 = vector.load %arg38[%c16, %c0_143] : memref<32x32xf32, #tpu.memory_space<vmem>>, vector<16x32xf32>
    tpu.vector_store %arg38[%c16, %c0_143], %342 {strides = array<i32>} : memref<32x32xf32, #tpu.memory_space<vmem>>, vector<16x32xf32>,
    %c0_144 = arith.constant 0 : index
    %c0_145 = arith.constant 0 : index
    %344 = vector.load %arg38[%c0_144, %c0_145] : memref<32x32xf32, #tpu.memory_space<vmem>>, vector<32x32xf32>
    %345 = arith.addf %36, %344 : vector<32x32xf32>
    %c0_146 = arith.constant 0 : index
    %c0_147 = arith.constant 0 : index
    %c0_148 = arith.constant 0 : index
    %346 = vector.load %arg21[%c0_146, %c0_147, %c0_148] : memref<2x1x32xf32, #tpu.memory_space<vmem>>, vector<1x1x32xf32>
    %347 = vector.shape_cast %346 : vector<1x1x32xf32> to vector<1x32xf32>
    %c0_149 = arith.constant 0 : index
    %c0_150 = arith.constant 0 : index
    %c0_151 = arith.constant 0 : index
    %348 = vector.load %arg22[%c0_149, %c0_150, %c0_151] : memref<2x1x32xf32, #tpu.memory_space<vmem>>, vector<1x1x32xf32>
    %349 = vector.shape_cast %348 : vector<1x1x32xf32> to vector<1x32xf32>
    %cst_152 = arith.constant dense<0.000000e+00> : vector<32xf32>
    %350 = vector.multi_reduction <add>, %345, %cst_152 [1] : vector<32x32xf32> to vector<32xf32>
    %351 = vector.shape_cast %350 : vector<32xf32> to vector<32x1xf32>
    %cst_153 = arith.constant 3.200000e+01 : f32
    %352 = vector.broadcast %cst_153 : f32 to vector<32x1xf32>
    %353 = arith.divf %351, %352 : vector<32x1xf32>
    %354 = vector.broadcast %353 : vector<32x1xf32> to vector<32x32xf32>
    %355 = arith.subf %345, %354 : vector<32x32xf32>
    %356 = arith.mulf %355, %355 : vector<32x32xf32>
    %cst_154 = arith.constant dense<0.000000e+00> : vector<32xf32>
    %357 = vector.multi_reduction <add>, %356, %cst_154 [1] : vector<32x32xf32> to vector<32xf32>
    %358 = vector.shape_cast %357 : vector<32xf32> to vector<32x1xf32>
    %cst_155 = arith.constant 3.200000e+01 : f32
    %359 = vector.broadcast %cst_155 : f32 to vector<32x1xf32>
    %360 = arith.divf %358, %359 : vector<32x1xf32>
    %cst_156 = arith.constant 9.99999974E-6 : f32
    %361 = vector.broadcast %cst_156 : f32 to vector<32x1xf32>
    %362 = arith.addf %360, %361 : vector<32x1xf32>
    %363 = math.rsqrt %362 : vector<32x1xf32>
    %364 = vector.broadcast %363 : vector<32x1xf32> to vector<32x32xf32>
    %365 = arith.mulf %355, %364 : vector<32x32xf32>
    %366 = vector.broadcast %347 : vector<1x32xf32> to vector<32x32xf32>
    %367 = arith.mulf %365, %366 : vector<32x32xf32>
    %368 = vector.broadcast %349 : vector<1x32xf32> to vector<32x32xf32>
    %369 = arith.addf %367, %368 : vector<32x32xf32>
    %370 = arith.truncf %369 : vector<32x32xf32> to vector<32x32xbf16>
    %c0_157 = arith.constant 0 : index
    %c0_158 = arith.constant 0 : index
    %c0_159 = arith.constant 0 : index
    %371 = vector.load %arg23[%c0_157, %c0_158, %c0_159] : memref<2x32x64xbf16, #tpu.memory_space<vmem>>, vector<1x32x64xbf16>
    %372 = vector.shape_cast %371 : vector<1x32x64xbf16> to vector<32x64xbf16>
    %cst_160 = arith.constant dense<0.000000e+00> : vector<32x64xf32>
    %373 = tpu.matmul %370, %372, %cst_160 {dimension_numbers = #tpu.dot_dimension_numbers<[1], [0], [0], [1], [0, 0, 1, 1], [], []>} : vector<32x32xbf16>, vector<32x64xbf16>, vector<32x64xf32> -> vector<32x64xf32>
    %c0_161 = arith.constant 0 : index
    %c0_162 = arith.constant 0 : index
    %c0_163 = arith.constant 0 : index
    %374 = vector.load %arg24[%c0_161, %c0_162, %c0_163] : memref<2x1x64xf32, #tpu.memory_space<vmem>>, vector<1x1x64xf32>
    %375 = vector.shape_cast %374 : vector<1x1x64xf32> to vector<1x64xf32>
    %376 = vector.broadcast %375 : vector<1x64xf32> to vector<32x64xf32>
    %377 = arith.addf %373, %376 : vector<32x64xf32>
    %378 = arith.mulf %377, %377 : vector<32x64xf32>
    %379 = arith.mulf %377, %378 : vector<32x64xf32>
    %cst_164 = arith.constant 4.471500e-02 : f32
    %380 = vector.broadcast %cst_164 : f32 to vector<32x64xf32>
    %381 = arith.mulf %380, %379 : vector<32x64xf32>
    %382 = arith.addf %377, %381 : vector<32x64xf32>
    %cst_165 = arith.constant 0.797884583 : f32
    %383 = vector.broadcast %cst_165 : f32 to vector<32x64xf32>
    %384 = arith.mulf %383, %382 : vector<32x64xf32>
    %385 = math.tanh %384 : vector<32x64xf32>
    %cst_166 = arith.constant 1.000000e+00 : f32
    %386 = vector.broadcast %cst_166 : f32 to vector<32x64xf32>
    %387 = arith.addf %386, %385 : vector<32x64xf32>
    %cst_167 = arith.constant 5.000000e-01 : f32
    %388 = vector.broadcast %cst_167 : f32 to vector<32x64xf32>
    %389 = arith.mulf %388, %387 : vector<32x64xf32>
    %390 = arith.mulf %377, %389 : vector<32x64xf32>
    %391 = arith.truncf %390 : vector<32x64xf32> to vector<32x64xbf16>
    %c0_168 = arith.constant 0 : index
    %c0_169 = arith.constant 0 : index
    %c0_170 = arith.constant 0 : index
    %392 = vector.load %arg25[%c0_168, %c0_169, %c0_170] : memref<2x64x32xbf16, #tpu.memory_space<vmem>>, vector<1x64x32xbf16>
    %393 = vector.shape_cast %392 : vector<1x64x32xbf16> to vector<64x32xbf16>
    %cst_171 = arith.constant dense<0.000000e+00> : vector<32x32xf32>
    %394 = tpu.matmul %391, %393, %cst_171 {dimension_numbers = #tpu.dot_dimension_numbers<[1], [0], [0], [1], [0, 0, 1, 1], [], []>} : vector<32x64xbf16>, vector<64x32xbf16>, vector<32x32xf32> -> vector<32x32xf32>
    %c0_172 = arith.constant 0 : index
    %c0_173 = arith.constant 0 : index
    %c0_174 = arith.constant 0 : index
    %395 = vector.load %arg26[%c0_172, %c0_173, %c0_174] : memref<2x1x32xf32, #tpu.memory_space<vmem>>, vector<1x1x32xf32>
    %396 = vector.shape_cast %395 : vector<1x1x32xf32> to vector<1x32xf32>
    %397 = vector.broadcast %396 : vector<1x32xf32> to vector<32x32xf32>
    %398 = arith.addf %394, %397 : vector<32x32xf32>
    %399 = arith.addf %345, %398 : vector<32x32xf32>
    %c0_175 = arith.constant 0 : index
    %c0_176 = arith.constant 0 : index
    %c0_177 = arith.constant 0 : index
    %400 = vector.load %arg27[%c0_175, %c0_176, %c0_177] : memref<2x1x32xf32, #tpu.memory_space<vmem>>, vector<1x1x32xf32>
    %401 = vector.shape_cast %400 : vector<1x1x32xf32> to vector<1x32xf32>
    %c0_178 = arith.constant 0 : index
    %c0_179 = arith.constant 0 : index
    %c0_180 = arith.constant 0 : index
    %402 = vector.load %arg28[%c0_178, %c0_179, %c0_180] : memref<2x1x32xf32, #tpu.memory_space<vmem>>, vector<1x1x32xf32>
    %403 = vector.shape_cast %402 : vector<1x1x32xf32> to vector<1x32xf32>
    %cst_181 = arith.constant dense<0.000000e+00> : vector<32xf32>
    %404 = vector.multi_reduction <add>, %399, %cst_181 [1] : vector<32x32xf32> to vector<32xf32>
    %405 = vector.shape_cast %404 : vector<32xf32> to vector<32x1xf32>
    %cst_182 = arith.constant 3.200000e+01 : f32
    %406 = vector.broadcast %cst_182 : f32 to vector<32x1xf32>
    %407 = arith.divf %405, %406 : vector<32x1xf32>
    %408 = vector.broadcast %407 : vector<32x1xf32> to vector<32x32xf32>
    %409 = arith.subf %399, %408 : vector<32x32xf32>
    %410 = arith.mulf %409, %409 : vector<32x32xf32>
    %cst_183 = arith.constant dense<0.000000e+00> : vector<32xf32>
    %411 = vector.multi_reduction <add>, %410, %cst_183 [1] : vector<32x32xf32> to vector<32xf32>
    %412 = vector.shape_cast %411 : vector<32xf32> to vector<32x1xf32>
    %cst_184 = arith.constant 3.200000e+01 : f32
    %413 = vector.broadcast %cst_184 : f32 to vector<32x1xf32>
    %414 = arith.divf %412, %413 : vector<32x1xf32>
    %cst_185 = arith.constant 9.99999974E-6 : f32
    %415 = vector.broadcast %cst_185 : f32 to vector<32x1xf32>
    %416 = arith.addf %414, %415 : vector<32x1xf32>
    %417 = math.rsqrt %416 : vector<32x1xf32>
    %418 = vector.broadcast %417 : vector<32x1xf32> to vector<32x32xf32>
    %419 = arith.mulf %409, %418 : vector<32x32xf32>
    %420 = vector.broadcast %401 : vector<1x32xf32> to vector<32x32xf32>
    %421 = arith.mulf %419, %420 : vector<32x32xf32>
    %422 = vector.broadcast %403 : vector<1x32xf32> to vector<32x32xf32>
    %423 = arith.addf %421, %422 : vector<32x32xf32>
    %c1_i32_186 = arith.constant 1 : i32
    %424 = tpu.dynamic_rotate %423 by %c1_i32_186 dim 0 : vector<32x32xf32>, i32 -> vector<32x32xf32>
    %cst_187 = arith.constant 0.000000e+00 : f32
    %425 = vector.shape_cast %71 : vector<32x1xi1> to vector<32x1xi1>
    %426 = vector.broadcast %425 : vector<32x1xi1> to vector<32x32xi1>
    %427 = vector.broadcast %cst_187 : f32 to vector<32x32xf32>
    %428 = arith.select %426, %424, %427 : vector<32x32xi1>, vector<32x32xf32>
    %429 = arith.truncf %428 : vector<32x32xf32> to vector<32x32xbf16>
    %c0_188 = arith.constant 0 : index
    %c0_189 = arith.constant 0 : index
    %c0_190 = arith.constant 0 : index
    %c0_191 = arith.constant 0 : index
    %430 = vector.load %arg29[%c0_188, %c0_189, %c0_190, %c0_191] : memref<2x3x32x64xbf16, #tpu.memory_space<vmem>>, vector<1x1x32x64xbf16>
    %431 = vector.shape_cast %430 : vector<1x1x32x64xbf16> to vector<32x64xbf16>
    %cst_192 = arith.constant dense<0.000000e+00> : vector<32x64xf32>
    %432 = tpu.matmul %429, %431, %cst_192 {dimension_numbers = #tpu.dot_dimension_numbers<[1], [0], [0], [1], [0, 0, 1, 1], [], []>} : vector<32x32xbf16>, vector<32x64xbf16>, vector<32x64xf32> -> vector<32x64xf32>
    %433 = arith.truncf %423 : vector<32x32xf32> to vector<32x32xbf16>
    %c0_193 = arith.constant 0 : index
    %c1_194 = arith.constant 1 : index
    %c0_195 = arith.constant 0 : index
    %c0_196 = arith.constant 0 : index
    %434 = vector.load %arg29[%c0_193, %c1_194, %c0_195, %c0_196] : memref<2x3x32x64xbf16, #tpu.memory_space<vmem>>, vector<1x1x32x64xbf16>
    %435 = vector.shape_cast %434 : vector<1x1x32x64xbf16> to vector<32x64xbf16>
    %cst_197 = arith.constant dense<0.000000e+00> : vector<32x64xf32>
    %436 = tpu.matmul %433, %435, %cst_197 {dimension_numbers = #tpu.dot_dimension_numbers<[1], [0], [0], [1], [0, 0, 1, 1], [], []>} : vector<32x32xbf16>, vector<32x64xbf16>, vector<32x64xf32> -> vector<32x64xf32>
    %437 = arith.addf %432, %436 : vector<32x64xf32>
    %c31_i32 = arith.constant 31 : i32
    %438 = tpu.dynamic_rotate %423 by %c31_i32 dim 0 : vector<32x32xf32>, i32 -> vector<32x32xf32>
    %cst_198 = arith.constant 0.000000e+00 : f32
    %439 = vector.shape_cast %80 : vector<32x1xi1> to vector<32x1xi1>
    %440 = vector.broadcast %439 : vector<32x1xi1> to vector<32x32xi1>
    %441 = vector.broadcast %cst_198 : f32 to vector<32x32xf32>
    %442 = arith.select %440, %438, %441 : vector<32x32xi1>, vector<32x32xf32>
    %443 = arith.truncf %442 : vector<32x32xf32> to vector<32x32xbf16>
    %c0_199 = arith.constant 0 : index
    %c2_200 = arith.constant 2 : index
    %c0_201 = arith.constant 0 : index
    %c0_202 = arith.constant 0 : index
    %444 = vector.load %arg29[%c0_199, %c2_200, %c0_201, %c0_202] : memref<2x3x32x64xbf16, #tpu.memory_space<vmem>>, vector<1x1x32x64xbf16>
    %445 = vector.shape_cast %444 : vector<1x1x32x64xbf16> to vector<32x64xbf16>
    %cst_203 = arith.constant dense<0.000000e+00> : vector<32x64xf32>
    %446 = tpu.matmul %443, %445, %cst_203 {dimension_numbers = #tpu.dot_dimension_numbers<[1], [0], [0], [1], [0, 0, 1, 1], [], []>} : vector<32x32xbf16>, vector<32x64xbf16>, vector<32x64xf32> -> vector<32x64xf32>
    %447 = arith.addf %437, %446 : vector<32x64xf32>
    %c0_204 = arith.constant 0 : index
    %c0_205 = arith.constant 0 : index
    %c0_206 = arith.constant 0 : index
    %448 = vector.load %arg30[%c0_204, %c0_205, %c0_206] : memref<2x1x64xf32, #tpu.memory_space<vmem>>, vector<1x1x64xf32>
    %449 = vector.shape_cast %448 : vector<1x1x64xf32> to vector<1x64xf32>
    %450 = vector.broadcast %449 : vector<1x64xf32> to vector<32x64xf32>
    %451 = arith.addf %447, %450 : vector<32x64xf32>
    %452 = arith.negf %451 : vector<32x64xf32>
    %453 = math.exp %452 : vector<32x64xf32>
    %cst_207 = arith.constant 1.000000e+00 : f32
    %454 = vector.broadcast %cst_207 : f32 to vector<32x64xf32>
    %455 = arith.addf %454, %453 : vector<32x64xf32>
    %456 = arith.divf %454, %455 : vector<32x64xf32>
    %457 = arith.mulf %451, %456 : vector<32x64xf32>
    %c1_i32_208 = arith.constant 1 : i32
    %458 = tpu.dynamic_rotate %457 by %c1_i32_208 dim 0 : vector<32x64xf32>, i32 -> vector<32x64xf32>
    %cst_209 = arith.constant 0.000000e+00 : f32
    %459 = vector.shape_cast %71 : vector<32x1xi1> to vector<32x1xi1>
    %460 = vector.broadcast %459 : vector<32x1xi1> to vector<32x64xi1>
    %461 = vector.broadcast %cst_209 : f32 to vector<32x64xf32>
    %462 = arith.select %460, %458, %461 : vector<32x64xi1>, vector<32x64xf32>
    %463 = arith.truncf %462 : vector<32x64xf32> to vector<32x64xbf16>
    %c0_210 = arith.constant 0 : index
    %c0_211 = arith.constant 0 : index
    %c0_212 = arith.constant 0 : index
    %c0_213 = arith.constant 0 : index
    %464 = vector.load %arg31[%c0_210, %c0_211, %c0_212, %c0_213] : memref<2x3x64x128xbf16, #tpu.memory_space<vmem>>, vector<1x1x64x128xbf16>
    %465 = vector.shape_cast %464 : vector<1x1x64x128xbf16> to vector<64x128xbf16>
    %cst_214 = arith.constant dense<0.000000e+00> : vector<32x128xf32>
    %466 = tpu.matmul %463, %465, %cst_214 {dimension_numbers = #tpu.dot_dimension_numbers<[1], [0], [0], [1], [0, 0, 1, 1], [], []>} : vector<32x64xbf16>, vector<64x128xbf16>, vector<32x128xf32> -> vector<32x128xf32>
    %467 = arith.truncf %457 : vector<32x64xf32> to vector<32x64xbf16>
    %c0_215 = arith.constant 0 : index
    %c1_216 = arith.constant 1 : index
    %c0_217 = arith.constant 0 : index
    %c0_218 = arith.constant 0 : index
    %468 = vector.load %arg31[%c0_215, %c1_216, %c0_217, %c0_218] : memref<2x3x64x128xbf16, #tpu.memory_space<vmem>>, vector<1x1x64x128xbf16>
    %469 = vector.shape_cast %468 : vector<1x1x64x128xbf16> to vector<64x128xbf16>
    %cst_219 = arith.constant dense<0.000000e+00> : vector<32x128xf32>
    %470 = tpu.matmul %467, %469, %cst_219 {dimension_numbers = #tpu.dot_dimension_numbers<[1], [0], [0], [1], [0, 0, 1, 1], [], []>} : vector<32x64xbf16>, vector<64x128xbf16>, vector<32x128xf32> -> vector<32x128xf32>
    %471 = arith.addf %466, %470 : vector<32x128xf32>
    %c31_i32_220 = arith.constant 31 : i32
    %472 = tpu.dynamic_rotate %457 by %c31_i32_220 dim 0 : vector<32x64xf32>, i32 -> vector<32x64xf32>
    %cst_221 = arith.constant 0.000000e+00 : f32
    %473 = vector.shape_cast %80 : vector<32x1xi1> to vector<32x1xi1>
    %474 = vector.broadcast %473 : vector<32x1xi1> to vector<32x64xi1>
    %475 = vector.broadcast %cst_221 : f32 to vector<32x64xf32>
    %476 = arith.select %474, %472, %475 : vector<32x64xi1>, vector<32x64xf32>
    %477 = arith.truncf %476 : vector<32x64xf32> to vector<32x64xbf16>
    %c0_222 = arith.constant 0 : index
    %c2_223 = arith.constant 2 : index
    %c0_224 = arith.constant 0 : index
    %c0_225 = arith.constant 0 : index
    %478 = vector.load %arg31[%c0_222, %c2_223, %c0_224, %c0_225] : memref<2x3x64x128xbf16, #tpu.memory_space<vmem>>, vector<1x1x64x128xbf16>
    %479 = vector.shape_cast %478 : vector<1x1x64x128xbf16> to vector<64x128xbf16>
    %cst_226 = arith.constant dense<0.000000e+00> : vector<32x128xf32>
    %480 = tpu.matmul %477, %479, %cst_226 {dimension_numbers = #tpu.dot_dimension_numbers<[1], [0], [0], [1], [0, 0, 1, 1], [], []>} : vector<32x64xbf16>, vector<64x128xbf16>, vector<32x128xf32> -> vector<32x128xf32>
    %481 = arith.addf %471, %480 : vector<32x128xf32>
    %c0_227 = arith.constant 0 : index
    %c0_228 = arith.constant 0 : index
    %c0_229 = arith.constant 0 : index
    %482 = vector.load %arg32[%c0_227, %c0_228, %c0_229] : memref<2x1x128xf32, #tpu.memory_space<vmem>>, vector<1x1x128xf32>
    %483 = vector.shape_cast %482 : vector<1x1x128xf32> to vector<1x128xf32>
    %484 = vector.broadcast %483 : vector<1x128xf32> to vector<32x128xf32>
    %485 = arith.addf %481, %484 : vector<32x128xf32>
    %486 = arith.negf %485 : vector<32x128xf32>
    %487 = math.exp %486 : vector<32x128xf32>
    %cst_230 = arith.constant 1.000000e+00 : f32
    %488 = vector.broadcast %cst_230 : f32 to vector<32x128xf32>
    %489 = arith.addf %488, %487 : vector<32x128xf32>
    %490 = arith.divf %488, %489 : vector<32x128xf32>
    %491 = arith.mulf %485, %490 : vector<32x128xf32>
    %c2_i32_231 = arith.constant 2 : i32
    %492 = tpu.dynamic_rotate %491 by %c2_i32_231 dim 0 : vector<32x128xf32>, i32 -> vector<32x128xf32>
    %cst_232 = arith.constant 0.000000e+00 : f32
    %493 = vector.shape_cast %62 : vector<32x1xi1> to vector<32x1xi1>
    %494 = vector.broadcast %493 : vector<32x1xi1> to vector<32x128xi1>
    %495 = vector.broadcast %cst_232 : f32 to vector<32x128xf32>
    %496 = arith.select %494, %492, %495 : vector<32x128xi1>, vector<32x128xf32>
    %497 = arith.truncf %496 : vector<32x128xf32> to vector<32x128xbf16>
    %c0_233 = arith.constant 0 : index
    %c0_234 = arith.constant 0 : index
    %c0_235 = arith.constant 0 : index
    %c0_236 = arith.constant 0 : index
    %498 = vector.load %arg33[%c0_233, %c0_234, %c0_235, %c0_236] : memref<2x5x128x32xbf16, #tpu.memory_space<vmem>>, vector<1x1x128x32xbf16>
    %499 = vector.shape_cast %498 : vector<1x1x128x32xbf16> to vector<128x32xbf16>
    %cst_237 = arith.constant dense<0.000000e+00> : vector<32x32xf32>
    %500 = tpu.matmul %497, %499, %cst_237 {dimension_numbers = #tpu.dot_dimension_numbers<[1], [0], [0], [1], [0, 0, 1, 1], [], []>} : vector<32x128xbf16>, vector<128x32xbf16>, vector<32x32xf32> -> vector<32x32xf32>
    %c1_i32_238 = arith.constant 1 : i32
    %501 = tpu.dynamic_rotate %491 by %c1_i32_238 dim 0 : vector<32x128xf32>, i32 -> vector<32x128xf32>
    %cst_239 = arith.constant 0.000000e+00 : f32
    %502 = vector.shape_cast %71 : vector<32x1xi1> to vector<32x1xi1>
    %503 = vector.broadcast %502 : vector<32x1xi1> to vector<32x128xi1>
    %504 = vector.broadcast %cst_239 : f32 to vector<32x128xf32>
    %505 = arith.select %503, %501, %504 : vector<32x128xi1>, vector<32x128xf32>
    %506 = arith.truncf %505 : vector<32x128xf32> to vector<32x128xbf16>
    %c0_240 = arith.constant 0 : index
    %c1_241 = arith.constant 1 : index
    %c0_242 = arith.constant 0 : index
    %c0_243 = arith.constant 0 : index
    %507 = vector.load %arg33[%c0_240, %c1_241, %c0_242, %c0_243] : memref<2x5x128x32xbf16, #tpu.memory_space<vmem>>, vector<1x1x128x32xbf16>
    %508 = vector.shape_cast %507 : vector<1x1x128x32xbf16> to vector<128x32xbf16>
    %cst_244 = arith.constant dense<0.000000e+00> : vector<32x32xf32>
    %509 = tpu.matmul %506, %508, %cst_244 {dimension_numbers = #tpu.dot_dimension_numbers<[1], [0], [0], [1], [0, 0, 1, 1], [], []>} : vector<32x128xbf16>, vector<128x32xbf16>, vector<32x32xf32> -> vector<32x32xf32>
    %510 = arith.addf %500, %509 : vector<32x32xf32>
    %511 = arith.truncf %491 : vector<32x128xf32> to vector<32x128xbf16>
    %c0_245 = arith.constant 0 : index
    %c2_246 = arith.constant 2 : index
    %c0_247 = arith.constant 0 : index
    %c0_248 = arith.constant 0 : index
    %512 = vector.load %arg33[%c0_245, %c2_246, %c0_247, %c0_248] : memref<2x5x128x32xbf16, #tpu.memory_space<vmem>>, vector<1x1x128x32xbf16>
    %513 = vector.shape_cast %512 : vector<1x1x128x32xbf16> to vector<128x32xbf16>
    %cst_249 = arith.constant dense<0.000000e+00> : vector<32x32xf32>
    %514 = tpu.matmul %511, %513, %cst_249 {dimension_numbers = #tpu.dot_dimension_numbers<[1], [0], [0], [1], [0, 0, 1, 1], [], []>} : vector<32x128xbf16>, vector<128x32xbf16>, vector<32x32xf32> -> vector<32x32xf32>
    %515 = arith.addf %510, %514 : vector<32x32xf32>
    %c31_i32_250 = arith.constant 31 : i32
    %516 = tpu.dynamic_rotate %491 by %c31_i32_250 dim 0 : vector<32x128xf32>, i32 -> vector<32x128xf32>
    %cst_251 = arith.constant 0.000000e+00 : f32
    %517 = vector.shape_cast %80 : vector<32x1xi1> to vector<32x1xi1>
    %518 = vector.broadcast %517 : vector<32x1xi1> to vector<32x128xi1>
    %519 = vector.broadcast %cst_251 : f32 to vector<32x128xf32>
    %520 = arith.select %518, %516, %519 : vector<32x128xi1>, vector<32x128xf32>
    %521 = arith.truncf %520 : vector<32x128xf32> to vector<32x128xbf16>
    %c0_252 = arith.constant 0 : index
    %c3_253 = arith.constant 3 : index
    %c0_254 = arith.constant 0 : index
    %c0_255 = arith.constant 0 : index
    %522 = vector.load %arg33[%c0_252, %c3_253, %c0_254, %c0_255] : memref<2x5x128x32xbf16, #tpu.memory_space<vmem>>, vector<1x1x128x32xbf16>
    %523 = vector.shape_cast %522 : vector<1x1x128x32xbf16> to vector<128x32xbf16>
    %cst_256 = arith.constant dense<0.000000e+00> : vector<32x32xf32>
    %524 = tpu.matmul %521, %523, %cst_256 {dimension_numbers = #tpu.dot_dimension_numbers<[1], [0], [0], [1], [0, 0, 1, 1], [], []>} : vector<32x128xbf16>, vector<128x32xbf16>, vector<32x32xf32> -> vector<32x32xf32>
    %525 = arith.addf %515, %524 : vector<32x32xf32>
    %c30_i32 = arith.constant 30 : i32
    %526 = tpu.dynamic_rotate %491 by %c30_i32 dim 0 : vector<32x128xf32>, i32 -> vector<32x128xf32>
    %cst_257 = arith.constant 0.000000e+00 : f32
    %527 = vector.shape_cast %89 : vector<32x1xi1> to vector<32x1xi1>
    %528 = vector.broadcast %527 : vector<32x1xi1> to vector<32x128xi1>
    %529 = vector.broadcast %cst_257 : f32 to vector<32x128xf32>
    %530 = arith.select %528, %526, %529 : vector<32x128xi1>, vector<32x128xf32>
    %531 = arith.truncf %530 : vector<32x128xf32> to vector<32x128xbf16>
    %c0_258 = arith.constant 0 : index
    %c4 = arith.constant 4 : index
    %c0_259 = arith.constant 0 : index
    %c0_260 = arith.constant 0 : index
    %532 = vector.load %arg33[%c0_258, %c4, %c0_259, %c0_260] : memref<2x5x128x32xbf16, #tpu.memory_space<vmem>>, vector<1x1x128x32xbf16>
    %533 = vector.shape_cast %532 : vector<1x1x128x32xbf16> to vector<128x32xbf16>
    %cst_261 = arith.constant dense<0.000000e+00> : vector<32x32xf32>
    %534 = tpu.matmul %531, %533, %cst_261 {dimension_numbers = #tpu.dot_dimension_numbers<[1], [0], [0], [1], [0, 0, 1, 1], [], []>} : vector<32x128xbf16>, vector<128x32xbf16>, vector<32x32xf32> -> vector<32x32xf32>
    %535 = arith.addf %525, %534 : vector<32x32xf32>
    %c0_262 = arith.constant 0 : index
    %c0_263 = arith.constant 0 : index
    %c0_264 = arith.constant 0 : index
    %536 = vector.load %arg34[%c0_262, %c0_263, %c0_264] : memref<2x1x32xf32, #tpu.memory_space<vmem>>, vector<1x1x32xf32>
    %537 = vector.shape_cast %536 : vector<1x1x32xf32> to vector<1x32xf32>
    %538 = vector.broadcast %537 : vector<1x32xf32> to vector<32x32xf32>
    %539 = arith.addf %535, %538 : vector<32x32xf32>
    %540 = arith.truncf %539 : vector<32x32xf32> to vector<32x32xbf16>
    %c0_265 = arith.constant 0 : index
    %c0_266 = arith.constant 0 : index
    %c0_267 = arith.constant 0 : index
    %541 = vector.load %arg35[%c0_265, %c0_266, %c0_267] : memref<2x32x32xbf16, #tpu.memory_space<vmem>>, vector<1x32x32xbf16>
    %542 = vector.shape_cast %541 : vector<1x32x32xbf16> to vector<32x32xbf16>
    %cst_268 = arith.constant dense<0.000000e+00> : vector<32x32xf32>
    %543 = tpu.matmul %540, %542, %cst_268 {dimension_numbers = #tpu.dot_dimension_numbers<[1], [0], [0], [1], [0, 0, 1, 1], [], []>} : vector<32x32xbf16>, vector<32x32xbf16>, vector<32x32xf32> -> vector<32x32xf32>
    %c0_269 = arith.constant 0 : index
    %c0_270 = arith.constant 0 : index
    %c0_271 = arith.constant 0 : index
    %544 = vector.load %arg36[%c0_269, %c0_270, %c0_271] : memref<2x1x32xf32, #tpu.memory_space<vmem>>, vector<1x1x32xf32>
    %545 = vector.shape_cast %544 : vector<1x1x32xf32> to vector<1x32xf32>
    %546 = vector.broadcast %545 : vector<1x32xf32> to vector<32x32xf32>
    %547 = arith.addf %543, %546 : vector<32x32xf32>
    %548 = arith.addf %399, %547 : vector<32x32xf32>
    %c1_272 = arith.constant 1 : index
    %c0_273 = arith.constant 0 : index
    %c0_274 = arith.constant 0 : index
    %549 = vector.load %arg15[%c1_272, %c0_273, %c0_274] : memref<2x1x32xf32, #tpu.memory_space<vmem>>, vector<1x1x32xf32>
    %550 = vector.shape_cast %549 : vector<1x1x32xf32> to vector<1x32xf32>
    %c1_275 = arith.constant 1 : index
    %c0_276 = arith.constant 0 : index
    %c0_277 = arith.constant 0 : index
    %551 = vector.load %arg16[%c1_275, %c0_276, %c0_277] : memref<2x1x32xf32, #tpu.memory_space<vmem>>, vector<1x1x32xf32>
    %552 = vector.shape_cast %551 : vector<1x1x32xf32> to vector<1x32xf32>
    %cst_278 = arith.constant dense<0.000000e+00> : vector<32xf32>
    %553 = vector.multi_reduction <add>, %548, %cst_278 [1] : vector<32x32xf32> to vector<32xf32>
    %554 = vector.shape_cast %553 : vector<32xf32> to vector<32x1xf32>
    %cst_279 = arith.constant 3.200000e+01 : f32
    %555 = vector.broadcast %cst_279 : f32 to vector<32x1xf32>
    %556 = arith.divf %554, %555 : vector<32x1xf32>
    %557 = vector.broadcast %556 : vector<32x1xf32> to vector<32x32xf32>
    %558 = arith.subf %548, %557 : vector<32x32xf32>
    %559 = arith.mulf %558, %558 : vector<32x32xf32>
    %cst_280 = arith.constant dense<0.000000e+00> : vector<32xf32>
    %560 = vector.multi_reduction <add>, %559, %cst_280 [1] : vector<32x32xf32> to vector<32xf32>
    %561 = vector.shape_cast %560 : vector<32xf32> to vector<32x1xf32>
    %cst_281 = arith.constant 3.200000e+01 : f32
    %562 = vector.broadcast %cst_281 : f32 to vector<32x1xf32>
    %563 = arith.divf %561, %562 : vector<32x1xf32>
    %cst_282 = arith.constant 9.99999974E-6 : f32
    %564 = vector.broadcast %cst_282 : f32 to vector<32x1xf32>
    %565 = arith.addf %563, %564 : vector<32x1xf32>
    %566 = math.rsqrt %565 : vector<32x1xf32>
    %567 = vector.broadcast %566 : vector<32x1xf32> to vector<32x32xf32>
    %568 = arith.mulf %558, %567 : vector<32x32xf32>
    %569 = vector.broadcast %550 : vector<1x32xf32> to vector<32x32xf32>
    %570 = arith.mulf %568, %569 : vector<32x32xf32>
    %571 = vector.broadcast %552 : vector<1x32xf32> to vector<32x32xf32>
    %572 = arith.addf %570, %571 : vector<32x32xf32>
    %573 = arith.truncf %572 : vector<32x32xf32> to vector<32x32xbf16>
    %c1_283 = arith.constant 1 : index
    %c0_284 = arith.constant 0 : index
    %c0_285 = arith.constant 0 : index
    %574 = vector.load %arg17[%c1_283, %c0_284, %c0_285] : memref<2x32x96xbf16, #tpu.memory_space<vmem>>, vector<1x32x96xbf16>
    %575 = vector.shape_cast %574 : vector<1x32x96xbf16> to vector<32x96xbf16>
    %cst_286 = arith.constant dense<0.000000e+00> : vector<32x96xf32>
    %576 = tpu.matmul %573, %575, %cst_286 {dimension_numbers = #tpu.dot_dimension_numbers<[1], [0], [0], [1], [0, 0, 1, 1], [], []>} : vector<32x32xbf16>, vector<32x96xbf16>, vector<32x96xf32> -> vector<32x96xf32>
    %c1_287 = arith.constant 1 : index
    %c0_288 = arith.constant 0 : index
    %c0_289 = arith.constant 0 : index
    %577 = vector.load %arg18[%c1_287, %c0_288, %c0_289] : memref<2x1x96xf32, #tpu.memory_space<vmem>>, vector<1x1x96xf32>
    %578 = vector.shape_cast %577 : vector<1x1x96xf32> to vector<1x96xf32>
    %579 = vector.broadcast %578 : vector<1x96xf32> to vector<32x96xf32>
    %580 = arith.addf %576, %579 : vector<32x96xf32>
    %c1_290 = arith.constant 1 : index
    %c0_291 = arith.constant 0 : index
    %c0_292 = arith.constant 0 : index
    %581 = vector.load %arg19[%c1_290, %c0_291, %c0_292] : memref<2x32x32xbf16, #tpu.memory_space<vmem>>, vector<1x32x32xbf16>
    %582 = vector.shape_cast %581 : vector<1x32x32xbf16> to vector<32x32xbf16>
    %cst_293 = arith.constant 0.000000e+00 : f32
    %583 = vector.broadcast %cst_293 : f32 to vector<16x32xf32>
    %584 = vector.extract_strided_slice %580 {offsets = [0, 0], sizes = [16, 8], strides = [1, 1]} : vector<32x96xf32> to vector<16x8xf32>
    %585 = arith.truncf %584 : vector<16x8xf32> to vector<16x8xbf16>
    %586 = vector.extract_strided_slice %580 {offsets = [0, 32], sizes = [16, 8], strides = [1, 1]} : vector<32x96xf32> to vector<16x8xf32>
    %587 = arith.truncf %586 : vector<16x8xf32> to vector<16x8xbf16>
    %588 = vector.extract_strided_slice %580 {offsets = [0, 64], sizes = [16, 8], strides = [1, 1]} : vector<32x96xf32> to vector<16x8xf32>
    %589 = arith.truncf %588 : vector<16x8xf32> to vector<16x8xbf16>
    %cst_294 = arith.constant dense<0.000000e+00> : vector<16x16xf32>
    %590 = tpu.matmul %585, %587, %cst_294 {dimension_numbers = #tpu.dot_dimension_numbers<[1], [1], [0], [0], [0, 0, 1, 0], [], []>} : vector<16x8xbf16>, vector<16x8xbf16>, vector<16x16xf32> -> vector<16x16xf32>
    %c0_295 = arith.constant 0 : index
    %c1_296 = arith.constant 1 : index
    %c0_297 = arith.constant 0 : index
    %c0_298 = arith.constant 0 : index
    %c0_299 = arith.constant 0 : index
    %591 = vector.load %arg3[%c0_295, %c1_296, %c0_297, %c0_298, %c0_299] : memref<2x2x4x16x16xf32, #tpu.memory_space<vmem>>, vector<1x1x1x16x16xf32>
    %592 = vector.shape_cast %591 : vector<1x1x1x16x16xf32> to vector<16x16xf32>
    %593 = arith.addf %590, %592 : vector<16x16xf32>
    %cst_300 = arith.constant dense<0xFF800000> : vector<16xf32>
    %594 = vector.multi_reduction <maximumf>, %593, %cst_300 [1] : vector<16x16xf32> to vector<16xf32>
    %595 = vector.shape_cast %594 : vector<16xf32> to vector<16x1xf32>
    %596 = vector.broadcast %595 : vector<16x1xf32> to vector<16x16xf32>
    %597 = arith.subf %593, %596 : vector<16x16xf32>
    %598 = math.exp %597 : vector<16x16xf32>
    %cst_301 = arith.constant dense<0.000000e+00> : vector<16xf32>
    %599 = vector.multi_reduction <add>, %598, %cst_301 [1] : vector<16x16xf32> to vector<16xf32>
    %600 = vector.shape_cast %599 : vector<16xf32> to vector<16x1xf32>
    %601 = tpu.reciprocal %600 {approx = true} : vector<16x1xf32> -> vector<16x1xf32>
    %602 = vector.broadcast %601 : vector<16x1xf32> to vector<16x16xf32>
    %603 = arith.mulf %598, %602 : vector<16x16xf32>
    %604 = arith.truncf %603 : vector<16x16xf32> to vector<16x16xbf16>
    %cst_302 = arith.constant dense<0.000000e+00> : vector<16x8xf32>
    %605 = tpu.matmul %604, %589, %cst_302 {dimension_numbers = #tpu.dot_dimension_numbers<[1], [0], [0], [1], [0, 0, 1, 1], [], []>} : vector<16x16xbf16>, vector<16x8xbf16>, vector<16x8xf32> -> vector<16x8xf32>
    %606 = arith.truncf %605 : vector<16x8xf32> to vector<16x8xbf16>
    %607 = vector.extract_strided_slice %582 {offsets = [0, 0], sizes = [8, 32], strides = [1, 1]} : vector<32x32xbf16> to vector<8x32xbf16>
    %cst_303 = arith.constant dense<0.000000e+00> : vector<16x32xf32>
    %608 = tpu.matmul %606, %607, %cst_303 {dimension_numbers = #tpu.dot_dimension_numbers<[1], [0], [0], [1], [0, 0, 1, 1], [], []>} : vector<16x8xbf16>, vector<8x32xbf16>, vector<16x32xf32> -> vector<16x32xf32>
    %609 = arith.addf %583, %608 : vector<16x32xf32>
    %610 = vector.extract_strided_slice %580 {offsets = [0, 8], sizes = [16, 8], strides = [1, 1]} : vector<32x96xf32> to vector<16x8xf32>
    %611 = arith.truncf %610 : vector<16x8xf32> to vector<16x8xbf16>
    %612 = vector.extract_strided_slice %580 {offsets = [0, 40], sizes = [16, 8], strides = [1, 1]} : vector<32x96xf32> to vector<16x8xf32>
    %613 = arith.truncf %612 : vector<16x8xf32> to vector<16x8xbf16>
    %614 = vector.extract_strided_slice %580 {offsets = [0, 72], sizes = [16, 8], strides = [1, 1]} : vector<32x96xf32> to vector<16x8xf32>
    %615 = arith.truncf %614 : vector<16x8xf32> to vector<16x8xbf16>
    %cst_304 = arith.constant dense<0.000000e+00> : vector<16x16xf32>
    %616 = tpu.matmul %611, %613, %cst_304 {dimension_numbers = #tpu.dot_dimension_numbers<[1], [1], [0], [0], [0, 0, 1, 0], [], []>} : vector<16x8xbf16>, vector<16x8xbf16>, vector<16x16xf32> -> vector<16x16xf32>
    %c0_305 = arith.constant 0 : index
    %c1_306 = arith.constant 1 : index
    %c1_307 = arith.constant 1 : index
    %c0_308 = arith.constant 0 : index
    %c0_309 = arith.constant 0 : index
    %617 = vector.load %arg3[%c0_305, %c1_306, %c1_307, %c0_308, %c0_309] : memref<2x2x4x16x16xf32, #tpu.memory_space<vmem>>, vector<1x1x1x16x16xf32>
    %618 = vector.shape_cast %617 : vector<1x1x1x16x16xf32> to vector<16x16xf32>
    %619 = arith.addf %616, %618 : vector<16x16xf32>
    %cst_310 = arith.constant dense<0xFF800000> : vector<16xf32>
    %620 = vector.multi_reduction <maximumf>, %619, %cst_310 [1] : vector<16x16xf32> to vector<16xf32>
    %621 = vector.shape_cast %620 : vector<16xf32> to vector<16x1xf32>
    %622 = vector.broadcast %621 : vector<16x1xf32> to vector<16x16xf32>
    %623 = arith.subf %619, %622 : vector<16x16xf32>
    %624 = math.exp %623 : vector<16x16xf32>
    %cst_311 = arith.constant dense<0.000000e+00> : vector<16xf32>
    %625 = vector.multi_reduction <add>, %624, %cst_311 [1] : vector<16x16xf32> to vector<16xf32>
    %626 = vector.shape_cast %625 : vector<16xf32> to vector<16x1xf32>
    %627 = tpu.reciprocal %626 {approx = true} : vector<16x1xf32> -> vector<16x1xf32>
    %628 = vector.broadcast %627 : vector<16x1xf32> to vector<16x16xf32>
    %629 = arith.mulf %624, %628 : vector<16x16xf32>
    %630 = arith.truncf %629 : vector<16x16xf32> to vector<16x16xbf16>
    %cst_312 = arith.constant dense<0.000000e+00> : vector<16x8xf32>
    %631 = tpu.matmul %630, %615, %cst_312 {dimension_numbers = #tpu.dot_dimension_numbers<[1], [0], [0], [1], [0, 0, 1, 1], [], []>} : vector<16x16xbf16>, vector<16x8xbf16>, vector<16x8xf32> -> vector<16x8xf32>
    %632 = arith.truncf %631 : vector<16x8xf32> to vector<16x8xbf16>
    %633 = vector.extract_strided_slice %582 {offsets = [8, 0], sizes = [8, 32], strides = [1, 1]} : vector<32x32xbf16> to vector<8x32xbf16>
    %cst_313 = arith.constant dense<0.000000e+00> : vector<16x32xf32>
    %634 = tpu.matmul %632, %633, %cst_313 {dimension_numbers = #tpu.dot_dimension_numbers<[1], [0], [0], [1], [0, 0, 1, 1], [], []>} : vector<16x8xbf16>, vector<8x32xbf16>, vector<16x32xf32> -> vector<16x32xf32>
    %635 = arith.addf %609, %634 : vector<16x32xf32>
    %636 = vector.extract_strided_slice %580 {offsets = [0, 16], sizes = [16, 8], strides = [1, 1]} : vector<32x96xf32> to vector<16x8xf32>
    %637 = arith.truncf %636 : vector<16x8xf32> to vector<16x8xbf16>
    %638 = vector.extract_strided_slice %580 {offsets = [0, 48], sizes = [16, 8], strides = [1, 1]} : vector<32x96xf32> to vector<16x8xf32>
    %639 = arith.truncf %638 : vector<16x8xf32> to vector<16x8xbf16>
    %640 = vector.extract_strided_slice %580 {offsets = [0, 80], sizes = [16, 8], strides = [1, 1]} : vector<32x96xf32> to vector<16x8xf32>
    %641 = arith.truncf %640 : vector<16x8xf32> to vector<16x8xbf16>
    %cst_314 = arith.constant dense<0.000000e+00> : vector<16x16xf32>
    %642 = tpu.matmul %637, %639, %cst_314 {dimension_numbers = #tpu.dot_dimension_numbers<[1], [1], [0], [0], [0, 0, 1, 0], [], []>} : vector<16x8xbf16>, vector<16x8xbf16>, vector<16x16xf32> -> vector<16x16xf32>
    %c0_315 = arith.constant 0 : index
    %c1_316 = arith.constant 1 : index
    %c2_317 = arith.constant 2 : index
    %c0_318 = arith.constant 0 : index
    %c0_319 = arith.constant 0 : index
    %643 = vector.load %arg3[%c0_315, %c1_316, %c2_317, %c0_318, %c0_319] : memref<2x2x4x16x16xf32, #tpu.memory_space<vmem>>, vector<1x1x1x16x16xf32>
    %644 = vector.shape_cast %643 : vector<1x1x1x16x16xf32> to vector<16x16xf32>
    %645 = arith.addf %642, %644 : vector<16x16xf32>
    %cst_320 = arith.constant dense<0xFF800000> : vector<16xf32>
    %646 = vector.multi_reduction <maximumf>, %645, %cst_320 [1] : vector<16x16xf32> to vector<16xf32>
    %647 = vector.shape_cast %646 : vector<16xf32> to vector<16x1xf32>
    %648 = vector.broadcast %647 : vector<16x1xf32> to vector<16x16xf32>
    %649 = arith.subf %645, %648 : vector<16x16xf32>
    %650 = math.exp %649 : vector<16x16xf32>
    %cst_321 = arith.constant dense<0.000000e+00> : vector<16xf32>
    %651 = vector.multi_reduction <add>, %650, %cst_321 [1] : vector<16x16xf32> to vector<16xf32>
    %652 = vector.shape_cast %651 : vector<16xf32> to vector<16x1xf32>
    %653 = tpu.reciprocal %652 {approx = true} : vector<16x1xf32> -> vector<16x1xf32>
    %654 = vector.broadcast %653 : vector<16x1xf32> to vector<16x16xf32>
    %655 = arith.mulf %650, %654 : vector<16x16xf32>
    %656 = arith.truncf %655 : vector<16x16xf32> to vector<16x16xbf16>
    %cst_322 = arith.constant dense<0.000000e+00> : vector<16x8xf32>
    %657 = tpu.matmul %656, %641, %cst_322 {dimension_numbers = #tpu.dot_dimension_numbers<[1], [0], [0], [1], [0, 0, 1, 1], [], []>} : vector<16x16xbf16>, vector<16x8xbf16>, vector<16x8xf32> -> vector<16x8xf32>
    %658 = arith.truncf %657 : vector<16x8xf32> to vector<16x8xbf16>
    %659 = vector.extract_strided_slice %582 {offsets = [16, 0], sizes = [8, 32], strides = [1, 1]} : vector<32x32xbf16> to vector<8x32xbf16>
    %cst_323 = arith.constant dense<0.000000e+00> : vector<16x32xf32>
    %660 = tpu.matmul %658, %659, %cst_323 {dimension_numbers = #tpu.dot_dimension_numbers<[1], [0], [0], [1], [0, 0, 1, 1], [], []>} : vector<16x8xbf16>, vector<8x32xbf16>, vector<16x32xf32> -> vector<16x32xf32>
    %661 = arith.addf %635, %660 : vector<16x32xf32>
    %662 = vector.extract_strided_slice %580 {offsets = [0, 24], sizes = [16, 8], strides = [1, 1]} : vector<32x96xf32> to vector<16x8xf32>
    %663 = arith.truncf %662 : vector<16x8xf32> to vector<16x8xbf16>
    %664 = vector.extract_strided_slice %580 {offsets = [0, 56], sizes = [16, 8], strides = [1, 1]} : vector<32x96xf32> to vector<16x8xf32>
    %665 = arith.truncf %664 : vector<16x8xf32> to vector<16x8xbf16>
    %666 = vector.extract_strided_slice %580 {offsets = [0, 88], sizes = [16, 8], strides = [1, 1]} : vector<32x96xf32> to vector<16x8xf32>
    %667 = arith.truncf %666 : vector<16x8xf32> to vector<16x8xbf16>
    %cst_324 = arith.constant dense<0.000000e+00> : vector<16x16xf32>
    %668 = tpu.matmul %663, %665, %cst_324 {dimension_numbers = #tpu.dot_dimension_numbers<[1], [1], [0], [0], [0, 0, 1, 0], [], []>} : vector<16x8xbf16>, vector<16x8xbf16>, vector<16x16xf32> -> vector<16x16xf32>
    %c0_325 = arith.constant 0 : index
    %c1_326 = arith.constant 1 : index
    %c3_327 = arith.constant 3 : index
    %c0_328 = arith.constant 0 : index
    %c0_329 = arith.constant 0 : index
    %669 = vector.load %arg3[%c0_325, %c1_326, %c3_327, %c0_328, %c0_329] : memref<2x2x4x16x16xf32, #tpu.memory_space<vmem>>, vector<1x1x1x16x16xf32>
    %670 = vector.shape_cast %669 : vector<1x1x1x16x16xf32> to vector<16x16xf32>
    %671 = arith.addf %668, %670 : vector<16x16xf32>
    %cst_330 = arith.constant dense<0xFF800000> : vector<16xf32>
    %672 = vector.multi_reduction <maximumf>, %671, %cst_330 [1] : vector<16x16xf32> to vector<16xf32>
    %673 = vector.shape_cast %672 : vector<16xf32> to vector<16x1xf32>
    %674 = vector.broadcast %673 : vector<16x1xf32> to vector<16x16xf32>
    %675 = arith.subf %671, %674 : vector<16x16xf32>
    %676 = math.exp %675 : vector<16x16xf32>
    %cst_331 = arith.constant dense<0.000000e+00> : vector<16xf32>
    %677 = vector.multi_reduction <add>, %676, %cst_331 [1] : vector<16x16xf32> to vector<16xf32>
    %678 = vector.shape_cast %677 : vector<16xf32> to vector<16x1xf32>
    %679 = tpu.reciprocal %678 {approx = true} : vector<16x1xf32> -> vector<16x1xf32>
    %680 = vector.broadcast %679 : vector<16x1xf32> to vector<16x16xf32>
    %681 = arith.mulf %676, %680 : vector<16x16xf32>
    %682 = arith.truncf %681 : vector<16x16xf32> to vector<16x16xbf16>
    %cst_332 = arith.constant dense<0.000000e+00> : vector<16x8xf32>
    %683 = tpu.matmul %682, %667, %cst_332 {dimension_numbers = #tpu.dot_dimension_numbers<[1], [0], [0], [1], [0, 0, 1, 1], [], []>} : vector<16x16xbf16>, vector<16x8xbf16>, vector<16x8xf32> -> vector<16x8xf32>
    %684 = arith.truncf %683 : vector<16x8xf32> to vector<16x8xbf16>
    %685 = vector.extract_strided_slice %582 {offsets = [24, 0], sizes = [8, 32], strides = [1, 1]} : vector<32x32xbf16> to vector<8x32xbf16>
    %cst_333 = arith.constant dense<0.000000e+00> : vector<16x32xf32>
    %686 = tpu.matmul %684, %685, %cst_333 {dimension_numbers = #tpu.dot_dimension_numbers<[1], [0], [0], [1], [0, 0, 1, 1], [], []>} : vector<16x8xbf16>, vector<8x32xbf16>, vector<16x32xf32> -> vector<16x32xf32>
    %687 = arith.addf %661, %686 : vector<16x32xf32>
    %c1_334 = arith.constant 1 : index
    %c0_335 = arith.constant 0 : index
    %c0_336 = arith.constant 0 : index
    %688 = vector.load %arg20[%c1_334, %c0_335, %c0_336] : memref<2x1x32xf32, #tpu.memory_space<vmem>>, vector<1x1x32xf32>
    %689 = vector.shape_cast %688 : vector<1x1x32xf32> to vector<1x32xf32>
    %690 = vector.broadcast %689 : vector<1x32xf32> to vector<16x32xf32>
    %691 = arith.addf %687, %690 : vector<16x32xf32>
    %c0_337 = arith.constant 0 : index
    %c0_338 = arith.constant 0 : index
    %692 = vector.load %arg38[%c0_337, %c0_338] : memref<32x32xf32, #tpu.memory_space<vmem>>, vector<16x32xf32>
    tpu.vector_store %arg38[%c0_337, %c0_338], %691 {strides = array<i32>} : memref<32x32xf32, #tpu.memory_space<vmem>>, vector<16x32xf32>,
    %cst_339 = arith.constant 0.000000e+00 : f32
    %693 = vector.broadcast %cst_339 : f32 to vector<16x32xf32>
    %694 = vector.extract_strided_slice %580 {offsets = [16, 0], sizes = [16, 8], strides = [1, 1]} : vector<32x96xf32> to vector<16x8xf32>
    %695 = arith.truncf %694 : vector<16x8xf32> to vector<16x8xbf16>
    %696 = vector.extract_strided_slice %580 {offsets = [16, 32], sizes = [16, 8], strides = [1, 1]} : vector<32x96xf32> to vector<16x8xf32>
    %697 = arith.truncf %696 : vector<16x8xf32> to vector<16x8xbf16>
    %698 = vector.extract_strided_slice %580 {offsets = [16, 64], sizes = [16, 8], strides = [1, 1]} : vector<32x96xf32> to vector<16x8xf32>
    %699 = arith.truncf %698 : vector<16x8xf32> to vector<16x8xbf16>
    %cst_340 = arith.constant dense<0.000000e+00> : vector<16x16xf32>
    %700 = tpu.matmul %695, %697, %cst_340 {dimension_numbers = #tpu.dot_dimension_numbers<[1], [1], [0], [0], [0, 0, 1, 0], [], []>} : vector<16x8xbf16>, vector<16x8xbf16>, vector<16x16xf32> -> vector<16x16xf32>
    %c1_341 = arith.constant 1 : index
    %c1_342 = arith.constant 1 : index
    %c0_343 = arith.constant 0 : index
    %c0_344 = arith.constant 0 : index
    %c0_345 = arith.constant 0 : index
    %701 = vector.load %arg3[%c1_341, %c1_342, %c0_343, %c0_344, %c0_345] : memref<2x2x4x16x16xf32, #tpu.memory_space<vmem>>, vector<1x1x1x16x16xf32>
    %702 = vector.shape_cast %701 : vector<1x1x1x16x16xf32> to vector<16x16xf32>
    %703 = arith.addf %700, %702 : vector<16x16xf32>
    %cst_346 = arith.constant dense<0xFF800000> : vector<16xf32>
    %704 = vector.multi_reduction <maximumf>, %703, %cst_346 [1] : vector<16x16xf32> to vector<16xf32>
    %705 = vector.shape_cast %704 : vector<16xf32> to vector<16x1xf32>
    %706 = vector.broadcast %705 : vector<16x1xf32> to vector<16x16xf32>
    %707 = arith.subf %703, %706 : vector<16x16xf32>
    %708 = math.exp %707 : vector<16x16xf32>
    %cst_347 = arith.constant dense<0.000000e+00> : vector<16xf32>
    %709 = vector.multi_reduction <add>, %708, %cst_347 [1] : vector<16x16xf32> to vector<16xf32>
    %710 = vector.shape_cast %709 : vector<16xf32> to vector<16x1xf32>
    %711 = tpu.reciprocal %710 {approx = true} : vector<16x1xf32> -> vector<16x1xf32>
    %712 = vector.broadcast %711 : vector<16x1xf32> to vector<16x16xf32>
    %713 = arith.mulf %708, %712 : vector<16x16xf32>
    %714 = arith.truncf %713 : vector<16x16xf32> to vector<16x16xbf16>
    %cst_348 = arith.constant dense<0.000000e+00> : vector<16x8xf32>
    %715 = tpu.matmul %714, %699, %cst_348 {dimension_numbers = #tpu.dot_dimension_numbers<[1], [0], [0], [1], [0, 0, 1, 1], [], []>} : vector<16x16xbf16>, vector<16x8xbf16>, vector<16x8xf32> -> vector<16x8xf32>
    %716 = arith.truncf %715 : vector<16x8xf32> to vector<16x8xbf16>
    %717 = vector.extract_strided_slice %582 {offsets = [0, 0], sizes = [8, 32], strides = [1, 1]} : vector<32x32xbf16> to vector<8x32xbf16>
    %cst_349 = arith.constant dense<0.000000e+00> : vector<16x32xf32>
    %718 = tpu.matmul %716, %717, %cst_349 {dimension_numbers = #tpu.dot_dimension_numbers<[1], [0], [0], [1], [0, 0, 1, 1], [], []>} : vector<16x8xbf16>, vector<8x32xbf16>, vector<16x32xf32> -> vector<16x32xf32>
    %719 = arith.addf %693, %718 : vector<16x32xf32>
    %720 = vector.extract_strided_slice %580 {offsets = [16, 8], sizes = [16, 8], strides = [1, 1]} : vector<32x96xf32> to vector<16x8xf32>
    %721 = arith.truncf %720 : vector<16x8xf32> to vector<16x8xbf16>
    %722 = vector.extract_strided_slice %580 {offsets = [16, 40], sizes = [16, 8], strides = [1, 1]} : vector<32x96xf32> to vector<16x8xf32>
    %723 = arith.truncf %722 : vector<16x8xf32> to vector<16x8xbf16>
    %724 = vector.extract_strided_slice %580 {offsets = [16, 72], sizes = [16, 8], strides = [1, 1]} : vector<32x96xf32> to vector<16x8xf32>
    %725 = arith.truncf %724 : vector<16x8xf32> to vector<16x8xbf16>
    %cst_350 = arith.constant dense<0.000000e+00> : vector<16x16xf32>
    %726 = tpu.matmul %721, %723, %cst_350 {dimension_numbers = #tpu.dot_dimension_numbers<[1], [1], [0], [0], [0, 0, 1, 0], [], []>} : vector<16x8xbf16>, vector<16x8xbf16>, vector<16x16xf32> -> vector<16x16xf32>
    %c1_351 = arith.constant 1 : index
    %c1_352 = arith.constant 1 : index
    %c1_353 = arith.constant 1 : index
    %c0_354 = arith.constant 0 : index
    %c0_355 = arith.constant 0 : index
    %727 = vector.load %arg3[%c1_351, %c1_352, %c1_353, %c0_354, %c0_355] : memref<2x2x4x16x16xf32, #tpu.memory_space<vmem>>, vector<1x1x1x16x16xf32>
    %728 = vector.shape_cast %727 : vector<1x1x1x16x16xf32> to vector<16x16xf32>
    %729 = arith.addf %726, %728 : vector<16x16xf32>
    %cst_356 = arith.constant dense<0xFF800000> : vector<16xf32>
    %730 = vector.multi_reduction <maximumf>, %729, %cst_356 [1] : vector<16x16xf32> to vector<16xf32>
    %731 = vector.shape_cast %730 : vector<16xf32> to vector<16x1xf32>
    %732 = vector.broadcast %731 : vector<16x1xf32> to vector<16x16xf32>
    %733 = arith.subf %729, %732 : vector<16x16xf32>
    %734 = math.exp %733 : vector<16x16xf32>
    %cst_357 = arith.constant dense<0.000000e+00> : vector<16xf32>
    %735 = vector.multi_reduction <add>, %734, %cst_357 [1] : vector<16x16xf32> to vector<16xf32>
    %736 = vector.shape_cast %735 : vector<16xf32> to vector<16x1xf32>
    %737 = tpu.reciprocal %736 {approx = true} : vector<16x1xf32> -> vector<16x1xf32>
    %738 = vector.broadcast %737 : vector<16x1xf32> to vector<16x16xf32>
    %739 = arith.mulf %734, %738 : vector<16x16xf32>
    %740 = arith.truncf %739 : vector<16x16xf32> to vector<16x16xbf16>
    %cst_358 = arith.constant dense<0.000000e+00> : vector<16x8xf32>
    %741 = tpu.matmul %740, %725, %cst_358 {dimension_numbers = #tpu.dot_dimension_numbers<[1], [0], [0], [1], [0, 0, 1, 1], [], []>} : vector<16x16xbf16>, vector<16x8xbf16>, vector<16x8xf32> -> vector<16x8xf32>
    %742 = arith.truncf %741 : vector<16x8xf32> to vector<16x8xbf16>
    %743 = vector.extract_strided_slice %582 {offsets = [8, 0], sizes = [8, 32], strides = [1, 1]} : vector<32x32xbf16> to vector<8x32xbf16>
    %cst_359 = arith.constant dense<0.000000e+00> : vector<16x32xf32>
    %744 = tpu.matmul %742, %743, %cst_359 {dimension_numbers = #tpu.dot_dimension_numbers<[1], [0], [0], [1], [0, 0, 1, 1], [], []>} : vector<16x8xbf16>, vector<8x32xbf16>, vector<16x32xf32> -> vector<16x32xf32>
    %745 = arith.addf %719, %744 : vector<16x32xf32>
    %746 = vector.extract_strided_slice %580 {offsets = [16, 16], sizes = [16, 8], strides = [1, 1]} : vector<32x96xf32> to vector<16x8xf32>
    %747 = arith.truncf %746 : vector<16x8xf32> to vector<16x8xbf16>
    %748 = vector.extract_strided_slice %580 {offsets = [16, 48], sizes = [16, 8], strides = [1, 1]} : vector<32x96xf32> to vector<16x8xf32>
    %749 = arith.truncf %748 : vector<16x8xf32> to vector<16x8xbf16>
    %750 = vector.extract_strided_slice %580 {offsets = [16, 80], sizes = [16, 8], strides = [1, 1]} : vector<32x96xf32> to vector<16x8xf32>
    %751 = arith.truncf %750 : vector<16x8xf32> to vector<16x8xbf16>
    %cst_360 = arith.constant dense<0.000000e+00> : vector<16x16xf32>
    %752 = tpu.matmul %747, %749, %cst_360 {dimension_numbers = #tpu.dot_dimension_numbers<[1], [1], [0], [0], [0, 0, 1, 0], [], []>} : vector<16x8xbf16>, vector<16x8xbf16>, vector<16x16xf32> -> vector<16x16xf32>
    %c1_361 = arith.constant 1 : index
    %c1_362 = arith.constant 1 : index
    %c2_363 = arith.constant 2 : index
    %c0_364 = arith.constant 0 : index
    %c0_365 = arith.constant 0 : index
    %753 = vector.load %arg3[%c1_361, %c1_362, %c2_363, %c0_364, %c0_365] : memref<2x2x4x16x16xf32, #tpu.memory_space<vmem>>, vector<1x1x1x16x16xf32>
    %754 = vector.shape_cast %753 : vector<1x1x1x16x16xf32> to vector<16x16xf32>
    %755 = arith.addf %752, %754 : vector<16x16xf32>
    %cst_366 = arith.constant dense<0xFF800000> : vector<16xf32>
    %756 = vector.multi_reduction <maximumf>, %755, %cst_366 [1] : vector<16x16xf32> to vector<16xf32>
    %757 = vector.shape_cast %756 : vector<16xf32> to vector<16x1xf32>
    %758 = vector.broadcast %757 : vector<16x1xf32> to vector<16x16xf32>
    %759 = arith.subf %755, %758 : vector<16x16xf32>
    %760 = math.exp %759 : vector<16x16xf32>
    %cst_367 = arith.constant dense<0.000000e+00> : vector<16xf32>
    %761 = vector.multi_reduction <add>, %760, %cst_367 [1] : vector<16x16xf32> to vector<16xf32>
    %762 = vector.shape_cast %761 : vector<16xf32> to vector<16x1xf32>
    %763 = tpu.reciprocal %762 {approx = true} : vector<16x1xf32> -> vector<16x1xf32>
    %764 = vector.broadcast %763 : vector<16x1xf32> to vector<16x16xf32>
    %765 = arith.mulf %760, %764 : vector<16x16xf32>
    %766 = arith.truncf %765 : vector<16x16xf32> to vector<16x16xbf16>
    %cst_368 = arith.constant dense<0.000000e+00> : vector<16x8xf32>
    %767 = tpu.matmul %766, %751, %cst_368 {dimension_numbers = #tpu.dot_dimension_numbers<[1], [0], [0], [1], [0, 0, 1, 1], [], []>} : vector<16x16xbf16>, vector<16x8xbf16>, vector<16x8xf32> -> vector<16x8xf32>
    %768 = arith.truncf %767 : vector<16x8xf32> to vector<16x8xbf16>
    %769 = vector.extract_strided_slice %582 {offsets = [16, 0], sizes = [8, 32], strides = [1, 1]} : vector<32x32xbf16> to vector<8x32xbf16>
    %cst_369 = arith.constant dense<0.000000e+00> : vector<16x32xf32>
    %770 = tpu.matmul %768, %769, %cst_369 {dimension_numbers = #tpu.dot_dimension_numbers<[1], [0], [0], [1], [0, 0, 1, 1], [], []>} : vector<16x8xbf16>, vector<8x32xbf16>, vector<16x32xf32> -> vector<16x32xf32>
    %771 = arith.addf %745, %770 : vector<16x32xf32>
    %772 = vector.extract_strided_slice %580 {offsets = [16, 24], sizes = [16, 8], strides = [1, 1]} : vector<32x96xf32> to vector<16x8xf32>
    %773 = arith.truncf %772 : vector<16x8xf32> to vector<16x8xbf16>
    %774 = vector.extract_strided_slice %580 {offsets = [16, 56], sizes = [16, 8], strides = [1, 1]} : vector<32x96xf32> to vector<16x8xf32>
    %775 = arith.truncf %774 : vector<16x8xf32> to vector<16x8xbf16>
    %776 = vector.extract_strided_slice %580 {offsets = [16, 88], sizes = [16, 8], strides = [1, 1]} : vector<32x96xf32> to vector<16x8xf32>
    %777 = arith.truncf %776 : vector<16x8xf32> to vector<16x8xbf16>
    %cst_370 = arith.constant dense<0.000000e+00> : vector<16x16xf32>
    %778 = tpu.matmul %773, %775, %cst_370 {dimension_numbers = #tpu.dot_dimension_numbers<[1], [1], [0], [0], [0, 0, 1, 0], [], []>} : vector<16x8xbf16>, vector<16x8xbf16>, vector<16x16xf32> -> vector<16x16xf32>
    %c1_371 = arith.constant 1 : index
    %c1_372 = arith.constant 1 : index
    %c3_373 = arith.constant 3 : index
    %c0_374 = arith.constant 0 : index
    %c0_375 = arith.constant 0 : index
    %779 = vector.load %arg3[%c1_371, %c1_372, %c3_373, %c0_374, %c0_375] : memref<2x2x4x16x16xf32, #tpu.memory_space<vmem>>, vector<1x1x1x16x16xf32>
    %780 = vector.shape_cast %779 : vector<1x1x1x16x16xf32> to vector<16x16xf32>
    %781 = arith.addf %778, %780 : vector<16x16xf32>
    %cst_376 = arith.constant dense<0xFF800000> : vector<16xf32>
    %782 = vector.multi_reduction <maximumf>, %781, %cst_376 [1] : vector<16x16xf32> to vector<16xf32>
    %783 = vector.shape_cast %782 : vector<16xf32> to vector<16x1xf32>
    %784 = vector.broadcast %783 : vector<16x1xf32> to vector<16x16xf32>
    %785 = arith.subf %781, %784 : vector<16x16xf32>
    %786 = math.exp %785 : vector<16x16xf32>
    %cst_377 = arith.constant dense<0.000000e+00> : vector<16xf32>
    %787 = vector.multi_reduction <add>, %786, %cst_377 [1] : vector<16x16xf32> to vector<16xf32>
    %788 = vector.shape_cast %787 : vector<16xf32> to vector<16x1xf32>
    %789 = tpu.reciprocal %788 {approx = true} : vector<16x1xf32> -> vector<16x1xf32>
    %790 = vector.broadcast %789 : vector<16x1xf32> to vector<16x16xf32>
    %791 = arith.mulf %786, %790 : vector<16x16xf32>
    %792 = arith.truncf %791 : vector<16x16xf32> to vector<16x16xbf16>
    %cst_378 = arith.constant dense<0.000000e+00> : vector<16x8xf32>
    %793 = tpu.matmul %792, %777, %cst_378 {dimension_numbers = #tpu.dot_dimension_numbers<[1], [0], [0], [1], [0, 0, 1, 1], [], []>} : vector<16x16xbf16>, vector<16x8xbf16>, vector<16x8xf32> -> vector<16x8xf32>
    %794 = arith.truncf %793 : vector<16x8xf32> to vector<16x8xbf16>
    %795 = vector.extract_strided_slice %582 {offsets = [24, 0], sizes = [8, 32], strides = [1, 1]} : vector<32x32xbf16> to vector<8x32xbf16>
    %cst_379 = arith.constant dense<0.000000e+00> : vector<16x32xf32>
    %796 = tpu.matmul %794, %795, %cst_379 {dimension_numbers = #tpu.dot_dimension_numbers<[1], [0], [0], [1], [0, 0, 1, 1], [], []>} : vector<16x8xbf16>, vector<8x32xbf16>, vector<16x32xf32> -> vector<16x32xf32>
    %797 = arith.addf %771, %796 : vector<16x32xf32>
    %c1_380 = arith.constant 1 : index
    %c0_381 = arith.constant 0 : index
    %c0_382 = arith.constant 0 : index
    %798 = vector.load %arg20[%c1_380, %c0_381, %c0_382] : memref<2x1x32xf32, #tpu.memory_space<vmem>>, vector<1x1x32xf32>
    %799 = vector.shape_cast %798 : vector<1x1x32xf32> to vector<1x32xf32>
    %800 = vector.broadcast %799 : vector<1x32xf32> to vector<16x32xf32>
    %801 = arith.addf %797, %800 : vector<16x32xf32>
    %c16_383 = arith.constant 16 : index
    %c0_384 = arith.constant 0 : index
    %802 = vector.load %arg38[%c16_383, %c0_384] : memref<32x32xf32, #tpu.memory_space<vmem>>, vector<16x32xf32>
    tpu.vector_store %arg38[%c16_383, %c0_384], %801 {strides = array<i32>} : memref<32x32xf32, #tpu.memory_space<vmem>>, vector<16x32xf32>,
    %c0_385 = arith.constant 0 : index
    %c0_386 = arith.constant 0 : index
    %803 = vector.load %arg38[%c0_385, %c0_386] : memref<32x32xf32, #tpu.memory_space<vmem>>, vector<32x32xf32>
    %804 = arith.addf %548, %803 : vector<32x32xf32>
    %c1_387 = arith.constant 1 : index
    %c0_388 = arith.constant 0 : index
    %c0_389 = arith.constant 0 : index
    %805 = vector.load %arg21[%c1_387, %c0_388, %c0_389] : memref<2x1x32xf32, #tpu.memory_space<vmem>>, vector<1x1x32xf32>
    %806 = vector.shape_cast %805 : vector<1x1x32xf32> to vector<1x32xf32>
    %c1_390 = arith.constant 1 : index
    %c0_391 = arith.constant 0 : index
    %c0_392 = arith.constant 0 : index
    %807 = vector.load %arg22[%c1_390, %c0_391, %c0_392] : memref<2x1x32xf32, #tpu.memory_space<vmem>>, vector<1x1x32xf32>
    %808 = vector.shape_cast %807 : vector<1x1x32xf32> to vector<1x32xf32>
    %cst_393 = arith.constant dense<0.000000e+00> : vector<32xf32>
    %809 = vector.multi_reduction <add>, %804, %cst_393 [1] : vector<32x32xf32> to vector<32xf32>
    %810 = vector.shape_cast %809 : vector<32xf32> to vector<32x1xf32>
    %cst_394 = arith.constant 3.200000e+01 : f32
    %811 = vector.broadcast %cst_394 : f32 to vector<32x1xf32>
    %812 = arith.divf %810, %811 : vector<32x1xf32>
    %813 = vector.broadcast %812 : vector<32x1xf32> to vector<32x32xf32>
    %814 = arith.subf %804, %813 : vector<32x32xf32>
    %815 = arith.mulf %814, %814 : vector<32x32xf32>
    %cst_395 = arith.constant dense<0.000000e+00> : vector<32xf32>
    %816 = vector.multi_reduction <add>, %815, %cst_395 [1] : vector<32x32xf32> to vector<32xf32>
    %817 = vector.shape_cast %816 : vector<32xf32> to vector<32x1xf32>
    %cst_396 = arith.constant 3.200000e+01 : f32
    %818 = vector.broadcast %cst_396 : f32 to vector<32x1xf32>
    %819 = arith.divf %817, %818 : vector<32x1xf32>
    %cst_397 = arith.constant 9.99999974E-6 : f32
    %820 = vector.broadcast %cst_397 : f32 to vector<32x1xf32>
    %821 = arith.addf %819, %820 : vector<32x1xf32>
    %822 = math.rsqrt %821 : vector<32x1xf32>
    %823 = vector.broadcast %822 : vector<32x1xf32> to vector<32x32xf32>
    %824 = arith.mulf %814, %823 : vector<32x32xf32>
    %825 = vector.broadcast %806 : vector<1x32xf32> to vector<32x32xf32>
    %826 = arith.mulf %824, %825 : vector<32x32xf32>
    %827 = vector.broadcast %808 : vector<1x32xf32> to vector<32x32xf32>
    %828 = arith.addf %826, %827 : vector<32x32xf32>
    %829 = arith.truncf %828 : vector<32x32xf32> to vector<32x32xbf16>
    %c1_398 = arith.constant 1 : index
    %c0_399 = arith.constant 0 : index
    %c0_400 = arith.constant 0 : index
    %830 = vector.load %arg23[%c1_398, %c0_399, %c0_400] : memref<2x32x64xbf16, #tpu.memory_space<vmem>>, vector<1x32x64xbf16>
    %831 = vector.shape_cast %830 : vector<1x32x64xbf16> to vector<32x64xbf16>
    %cst_401 = arith.constant dense<0.000000e+00> : vector<32x64xf32>
    %832 = tpu.matmul %829, %831, %cst_401 {dimension_numbers = #tpu.dot_dimension_numbers<[1], [0], [0], [1], [0, 0, 1, 1], [], []>} : vector<32x32xbf16>, vector<32x64xbf16>, vector<32x64xf32> -> vector<32x64xf32>
    %c1_402 = arith.constant 1 : index
    %c0_403 = arith.constant 0 : index
    %c0_404 = arith.constant 0 : index
    %833 = vector.load %arg24[%c1_402, %c0_403, %c0_404] : memref<2x1x64xf32, #tpu.memory_space<vmem>>, vector<1x1x64xf32>
    %834 = vector.shape_cast %833 : vector<1x1x64xf32> to vector<1x64xf32>
    %835 = vector.broadcast %834 : vector<1x64xf32> to vector<32x64xf32>
    %836 = arith.addf %832, %835 : vector<32x64xf32>
    %837 = arith.mulf %836, %836 : vector<32x64xf32>
    %838 = arith.mulf %836, %837 : vector<32x64xf32>
    %cst_405 = arith.constant 4.471500e-02 : f32
    %839 = vector.broadcast %cst_405 : f32 to vector<32x64xf32>
    %840 = arith.mulf %839, %838 : vector<32x64xf32>
    %841 = arith.addf %836, %840 : vector<32x64xf32>
    %cst_406 = arith.constant 0.797884583 : f32
    %842 = vector.broadcast %cst_406 : f32 to vector<32x64xf32>
    %843 = arith.mulf %842, %841 : vector<32x64xf32>
    %844 = math.tanh %843 : vector<32x64xf32>
    %cst_407 = arith.constant 1.000000e+00 : f32
    %845 = vector.broadcast %cst_407 : f32 to vector<32x64xf32>
    %846 = arith.addf %845, %844 : vector<32x64xf32>
    %cst_408 = arith.constant 5.000000e-01 : f32
    %847 = vector.broadcast %cst_408 : f32 to vector<32x64xf32>
    %848 = arith.mulf %847, %846 : vector<32x64xf32>
    %849 = arith.mulf %836, %848 : vector<32x64xf32>
    %850 = arith.truncf %849 : vector<32x64xf32> to vector<32x64xbf16>
    %c1_409 = arith.constant 1 : index
    %c0_410 = arith.constant 0 : index
    %c0_411 = arith.constant 0 : index
    %851 = vector.load %arg25[%c1_409, %c0_410, %c0_411] : memref<2x64x32xbf16, #tpu.memory_space<vmem>>, vector<1x64x32xbf16>
    %852 = vector.shape_cast %851 : vector<1x64x32xbf16> to vector<64x32xbf16>
    %cst_412 = arith.constant dense<0.000000e+00> : vector<32x32xf32>
    %853 = tpu.matmul %850, %852, %cst_412 {dimension_numbers = #tpu.dot_dimension_numbers<[1], [0], [0], [1], [0, 0, 1, 1], [], []>} : vector<32x64xbf16>, vector<64x32xbf16>, vector<32x32xf32> -> vector<32x32xf32>
    %c1_413 = arith.constant 1 : index
    %c0_414 = arith.constant 0 : index
    %c0_415 = arith.constant 0 : index
    %854 = vector.load %arg26[%c1_413, %c0_414, %c0_415] : memref<2x1x32xf32, #tpu.memory_space<vmem>>, vector<1x1x32xf32>
    %855 = vector.shape_cast %854 : vector<1x1x32xf32> to vector<1x32xf32>
    %856 = vector.broadcast %855 : vector<1x32xf32> to vector<32x32xf32>
    %857 = arith.addf %853, %856 : vector<32x32xf32>
    %858 = arith.addf %804, %857 : vector<32x32xf32>
    %c1_416 = arith.constant 1 : index
    %c0_417 = arith.constant 0 : index
    %c0_418 = arith.constant 0 : index
    %859 = vector.load %arg27[%c1_416, %c0_417, %c0_418] : memref<2x1x32xf32, #tpu.memory_space<vmem>>, vector<1x1x32xf32>
    %860 = vector.shape_cast %859 : vector<1x1x32xf32> to vector<1x32xf32>
    %c1_419 = arith.constant 1 : index
    %c0_420 = arith.constant 0 : index
    %c0_421 = arith.constant 0 : index
    %861 = vector.load %arg28[%c1_419, %c0_420, %c0_421] : memref<2x1x32xf32, #tpu.memory_space<vmem>>, vector<1x1x32xf32>
    %862 = vector.shape_cast %861 : vector<1x1x32xf32> to vector<1x32xf32>
    %cst_422 = arith.constant dense<0.000000e+00> : vector<32xf32>
    %863 = vector.multi_reduction <add>, %858, %cst_422 [1] : vector<32x32xf32> to vector<32xf32>
    %864 = vector.shape_cast %863 : vector<32xf32> to vector<32x1xf32>
    %cst_423 = arith.constant 3.200000e+01 : f32
    %865 = vector.broadcast %cst_423 : f32 to vector<32x1xf32>
    %866 = arith.divf %864, %865 : vector<32x1xf32>
    %867 = vector.broadcast %866 : vector<32x1xf32> to vector<32x32xf32>
    %868 = arith.subf %858, %867 : vector<32x32xf32>
    %869 = arith.mulf %868, %868 : vector<32x32xf32>
    %cst_424 = arith.constant dense<0.000000e+00> : vector<32xf32>
    %870 = vector.multi_reduction <add>, %869, %cst_424 [1] : vector<32x32xf32> to vector<32xf32>
    %871 = vector.shape_cast %870 : vector<32xf32> to vector<32x1xf32>
    %cst_425 = arith.constant 3.200000e+01 : f32
    %872 = vector.broadcast %cst_425 : f32 to vector<32x1xf32>
    %873 = arith.divf %871, %872 : vector<32x1xf32>
    %cst_426 = arith.constant 9.99999974E-6 : f32
    %874 = vector.broadcast %cst_426 : f32 to vector<32x1xf32>
    %875 = arith.addf %873, %874 : vector<32x1xf32>
    %876 = math.rsqrt %875 : vector<32x1xf32>
    %877 = vector.broadcast %876 : vector<32x1xf32> to vector<32x32xf32>
    %878 = arith.mulf %868, %877 : vector<32x32xf32>
    %879 = vector.broadcast %860 : vector<1x32xf32> to vector<32x32xf32>
    %880 = arith.mulf %878, %879 : vector<32x32xf32>
    %881 = vector.broadcast %862 : vector<1x32xf32> to vector<32x32xf32>
    %882 = arith.addf %880, %881 : vector<32x32xf32>
    %c1_i32_427 = arith.constant 1 : i32
    %883 = tpu.dynamic_rotate %882 by %c1_i32_427 dim 0 : vector<32x32xf32>, i32 -> vector<32x32xf32>
    %cst_428 = arith.constant 0.000000e+00 : f32
    %884 = vector.shape_cast %71 : vector<32x1xi1> to vector<32x1xi1>
    %885 = vector.broadcast %884 : vector<32x1xi1> to vector<32x32xi1>
    %886 = vector.broadcast %cst_428 : f32 to vector<32x32xf32>
    %887 = arith.select %885, %883, %886 : vector<32x32xi1>, vector<32x32xf32>
    %888 = arith.truncf %887 : vector<32x32xf32> to vector<32x32xbf16>
    %c1_429 = arith.constant 1 : index
    %c0_430 = arith.constant 0 : index
    %c0_431 = arith.constant 0 : index
    %c0_432 = arith.constant 0 : index
    %889 = vector.load %arg29[%c1_429, %c0_430, %c0_431, %c0_432] : memref<2x3x32x64xbf16, #tpu.memory_space<vmem>>, vector<1x1x32x64xbf16>
    %890 = vector.shape_cast %889 : vector<1x1x32x64xbf16> to vector<32x64xbf16>
    %cst_433 = arith.constant dense<0.000000e+00> : vector<32x64xf32>
    %891 = tpu.matmul %888, %890, %cst_433 {dimension_numbers = #tpu.dot_dimension_numbers<[1], [0], [0], [1], [0, 0, 1, 1], [], []>} : vector<32x32xbf16>, vector<32x64xbf16>, vector<32x64xf32> -> vector<32x64xf32>
    %892 = arith.truncf %882 : vector<32x32xf32> to vector<32x32xbf16>
    %c1_434 = arith.constant 1 : index
    %c1_435 = arith.constant 1 : index
    %c0_436 = arith.constant 0 : index
    %c0_437 = arith.constant 0 : index
    %893 = vector.load %arg29[%c1_434, %c1_435, %c0_436, %c0_437] : memref<2x3x32x64xbf16, #tpu.memory_space<vmem>>, vector<1x1x32x64xbf16>
    %894 = vector.shape_cast %893 : vector<1x1x32x64xbf16> to vector<32x64xbf16>
    %cst_438 = arith.constant dense<0.000000e+00> : vector<32x64xf32>
    %895 = tpu.matmul %892, %894, %cst_438 {dimension_numbers = #tpu.dot_dimension_numbers<[1], [0], [0], [1], [0, 0, 1, 1], [], []>} : vector<32x32xbf16>, vector<32x64xbf16>, vector<32x64xf32> -> vector<32x64xf32>
    %896 = arith.addf %891, %895 : vector<32x64xf32>
    %c31_i32_439 = arith.constant 31 : i32
    %897 = tpu.dynamic_rotate %882 by %c31_i32_439 dim 0 : vector<32x32xf32>, i32 -> vector<32x32xf32>
    %cst_440 = arith.constant 0.000000e+00 : f32
    %898 = vector.shape_cast %80 : vector<32x1xi1> to vector<32x1xi1>
    %899 = vector.broadcast %898 : vector<32x1xi1> to vector<32x32xi1>
    %900 = vector.broadcast %cst_440 : f32 to vector<32x32xf32>
    %901 = arith.select %899, %897, %900 : vector<32x32xi1>, vector<32x32xf32>
    %902 = arith.truncf %901 : vector<32x32xf32> to vector<32x32xbf16>
    %c1_441 = arith.constant 1 : index
    %c2_442 = arith.constant 2 : index
    %c0_443 = arith.constant 0 : index
    %c0_444 = arith.constant 0 : index
    %903 = vector.load %arg29[%c1_441, %c2_442, %c0_443, %c0_444] : memref<2x3x32x64xbf16, #tpu.memory_space<vmem>>, vector<1x1x32x64xbf16>
    %904 = vector.shape_cast %903 : vector<1x1x32x64xbf16> to vector<32x64xbf16>
    %cst_445 = arith.constant dense<0.000000e+00> : vector<32x64xf32>
    %905 = tpu.matmul %902, %904, %cst_445 {dimension_numbers = #tpu.dot_dimension_numbers<[1], [0], [0], [1], [0, 0, 1, 1], [], []>} : vector<32x32xbf16>, vector<32x64xbf16>, vector<32x64xf32> -> vector<32x64xf32>
    %906 = arith.addf %896, %905 : vector<32x64xf32>
    %c1_446 = arith.constant 1 : index
    %c0_447 = arith.constant 0 : index
    %c0_448 = arith.constant 0 : index
    %907 = vector.load %arg30[%c1_446, %c0_447, %c0_448] : memref<2x1x64xf32, #tpu.memory_space<vmem>>, vector<1x1x64xf32>
    %908 = vector.shape_cast %907 : vector<1x1x64xf32> to vector<1x64xf32>
    %909 = vector.broadcast %908 : vector<1x64xf32> to vector<32x64xf32>
    %910 = arith.addf %906, %909 : vector<32x64xf32>
    %911 = arith.negf %910 : vector<32x64xf32>
    %912 = math.exp %911 : vector<32x64xf32>
    %cst_449 = arith.constant 1.000000e+00 : f32
    %913 = vector.broadcast %cst_449 : f32 to vector<32x64xf32>
    %914 = arith.addf %913, %912 : vector<32x64xf32>
    %915 = arith.divf %913, %914 : vector<32x64xf32>
    %916 = arith.mulf %910, %915 : vector<32x64xf32>
    %c1_i32_450 = arith.constant 1 : i32
    %917 = tpu.dynamic_rotate %916 by %c1_i32_450 dim 0 : vector<32x64xf32>, i32 -> vector<32x64xf32>
    %cst_451 = arith.constant 0.000000e+00 : f32
    %918 = vector.shape_cast %71 : vector<32x1xi1> to vector<32x1xi1>
    %919 = vector.broadcast %918 : vector<32x1xi1> to vector<32x64xi1>
    %920 = vector.broadcast %cst_451 : f32 to vector<32x64xf32>
    %921 = arith.select %919, %917, %920 : vector<32x64xi1>, vector<32x64xf32>
    %922 = arith.truncf %921 : vector<32x64xf32> to vector<32x64xbf16>
    %c1_452 = arith.constant 1 : index
    %c0_453 = arith.constant 0 : index
    %c0_454 = arith.constant 0 : index
    %c0_455 = arith.constant 0 : index
    %923 = vector.load %arg31[%c1_452, %c0_453, %c0_454, %c0_455] : memref<2x3x64x128xbf16, #tpu.memory_space<vmem>>, vector<1x1x64x128xbf16>
    %924 = vector.shape_cast %923 : vector<1x1x64x128xbf16> to vector<64x128xbf16>
    %cst_456 = arith.constant dense<0.000000e+00> : vector<32x128xf32>
    %925 = tpu.matmul %922, %924, %cst_456 {dimension_numbers = #tpu.dot_dimension_numbers<[1], [0], [0], [1], [0, 0, 1, 1], [], []>} : vector<32x64xbf16>, vector<64x128xbf16>, vector<32x128xf32> -> vector<32x128xf32>
    %926 = arith.truncf %916 : vector<32x64xf32> to vector<32x64xbf16>
    %c1_457 = arith.constant 1 : index
    %c1_458 = arith.constant 1 : index
    %c0_459 = arith.constant 0 : index
    %c0_460 = arith.constant 0 : index
    %927 = vector.load %arg31[%c1_457, %c1_458, %c0_459, %c0_460] : memref<2x3x64x128xbf16, #tpu.memory_space<vmem>>, vector<1x1x64x128xbf16>
    %928 = vector.shape_cast %927 : vector<1x1x64x128xbf16> to vector<64x128xbf16>
    %cst_461 = arith.constant dense<0.000000e+00> : vector<32x128xf32>
    %929 = tpu.matmul %926, %928, %cst_461 {dimension_numbers = #tpu.dot_dimension_numbers<[1], [0], [0], [1], [0, 0, 1, 1], [], []>} : vector<32x64xbf16>, vector<64x128xbf16>, vector<32x128xf32> -> vector<32x128xf32>
    %930 = arith.addf %925, %929 : vector<32x128xf32>
    %c31_i32_462 = arith.constant 31 : i32
    %931 = tpu.dynamic_rotate %916 by %c31_i32_462 dim 0 : vector<32x64xf32>, i32 -> vector<32x64xf32>
    %cst_463 = arith.constant 0.000000e+00 : f32
    %932 = vector.shape_cast %80 : vector<32x1xi1> to vector<32x1xi1>
    %933 = vector.broadcast %932 : vector<32x1xi1> to vector<32x64xi1>
    %934 = vector.broadcast %cst_463 : f32 to vector<32x64xf32>
    %935 = arith.select %933, %931, %934 : vector<32x64xi1>, vector<32x64xf32>
    %936 = arith.truncf %935 : vector<32x64xf32> to vector<32x64xbf16>
    %c1_464 = arith.constant 1 : index
    %c2_465 = arith.constant 2 : index
    %c0_466 = arith.constant 0 : index
    %c0_467 = arith.constant 0 : index
    %937 = vector.load %arg31[%c1_464, %c2_465, %c0_466, %c0_467] : memref<2x3x64x128xbf16, #tpu.memory_space<vmem>>, vector<1x1x64x128xbf16>
    %938 = vector.shape_cast %937 : vector<1x1x64x128xbf16> to vector<64x128xbf16>
    %cst_468 = arith.constant dense<0.000000e+00> : vector<32x128xf32>
    %939 = tpu.matmul %936, %938, %cst_468 {dimension_numbers = #tpu.dot_dimension_numbers<[1], [0], [0], [1], [0, 0, 1, 1], [], []>} : vector<32x64xbf16>, vector<64x128xbf16>, vector<32x128xf32> -> vector<32x128xf32>
    %940 = arith.addf %930, %939 : vector<32x128xf32>
    %c1_469 = arith.constant 1 : index
    %c0_470 = arith.constant 0 : index
    %c0_471 = arith.constant 0 : index
    %941 = vector.load %arg32[%c1_469, %c0_470, %c0_471] : memref<2x1x128xf32, #tpu.memory_space<vmem>>, vector<1x1x128xf32>
    %942 = vector.shape_cast %941 : vector<1x1x128xf32> to vector<1x128xf32>
    %943 = vector.broadcast %942 : vector<1x128xf32> to vector<32x128xf32>
    %944 = arith.addf %940, %943 : vector<32x128xf32>
    %945 = arith.negf %944 : vector<32x128xf32>
    %946 = math.exp %945 : vector<32x128xf32>
    %cst_472 = arith.constant 1.000000e+00 : f32
    %947 = vector.broadcast %cst_472 : f32 to vector<32x128xf32>
    %948 = arith.addf %947, %946 : vector<32x128xf32>
    %949 = arith.divf %947, %948 : vector<32x128xf32>
    %950 = arith.mulf %944, %949 : vector<32x128xf32>
    %c2_i32_473 = arith.constant 2 : i32
    %951 = tpu.dynamic_rotate %950 by %c2_i32_473 dim 0 : vector<32x128xf32>, i32 -> vector<32x128xf32>
    %cst_474 = arith.constant 0.000000e+00 : f32
    %952 = vector.shape_cast %62 : vector<32x1xi1> to vector<32x1xi1>
    %953 = vector.broadcast %952 : vector<32x1xi1> to vector<32x128xi1>
    %954 = vector.broadcast %cst_474 : f32 to vector<32x128xf32>
    %955 = arith.select %953, %951, %954 : vector<32x128xi1>, vector<32x128xf32>
    %956 = arith.truncf %955 : vector<32x128xf32> to vector<32x128xbf16>
    %c1_475 = arith.constant 1 : index
    %c0_476 = arith.constant 0 : index
    %c0_477 = arith.constant 0 : index
    %c0_478 = arith.constant 0 : index
    %957 = vector.load %arg33[%c1_475, %c0_476, %c0_477, %c0_478] : memref<2x5x128x32xbf16, #tpu.memory_space<vmem>>, vector<1x1x128x32xbf16>
    %958 = vector.shape_cast %957 : vector<1x1x128x32xbf16> to vector<128x32xbf16>
    %cst_479 = arith.constant dense<0.000000e+00> : vector<32x32xf32>
    %959 = tpu.matmul %956, %958, %cst_479 {dimension_numbers = #tpu.dot_dimension_numbers<[1], [0], [0], [1], [0, 0, 1, 1], [], []>} : vector<32x128xbf16>, vector<128x32xbf16>, vector<32x32xf32> -> vector<32x32xf32>
    %c1_i32_480 = arith.constant 1 : i32
    %960 = tpu.dynamic_rotate %950 by %c1_i32_480 dim 0 : vector<32x128xf32>, i32 -> vector<32x128xf32>
    %cst_481 = arith.constant 0.000000e+00 : f32
    %961 = vector.shape_cast %71 : vector<32x1xi1> to vector<32x1xi1>
    %962 = vector.broadcast %961 : vector<32x1xi1> to vector<32x128xi1>
    %963 = vector.broadcast %cst_481 : f32 to vector<32x128xf32>
    %964 = arith.select %962, %960, %963 : vector<32x128xi1>, vector<32x128xf32>
    %965 = arith.truncf %964 : vector<32x128xf32> to vector<32x128xbf16>
    %c1_482 = arith.constant 1 : index
    %c1_483 = arith.constant 1 : index
    %c0_484 = arith.constant 0 : index
    %c0_485 = arith.constant 0 : index
    %966 = vector.load %arg33[%c1_482, %c1_483, %c0_484, %c0_485] : memref<2x5x128x32xbf16, #tpu.memory_space<vmem>>, vector<1x1x128x32xbf16>
    %967 = vector.shape_cast %966 : vector<1x1x128x32xbf16> to vector<128x32xbf16>
    %cst_486 = arith.constant dense<0.000000e+00> : vector<32x32xf32>
    %968 = tpu.matmul %965, %967, %cst_486 {dimension_numbers = #tpu.dot_dimension_numbers<[1], [0], [0], [1], [0, 0, 1, 1], [], []>} : vector<32x128xbf16>, vector<128x32xbf16>, vector<32x32xf32> -> vector<32x32xf32>
    %969 = arith.addf %959, %968 : vector<32x32xf32>
    %970 = arith.truncf %950 : vector<32x128xf32> to vector<32x128xbf16>
    %c1_487 = arith.constant 1 : index
    %c2_488 = arith.constant 2 : index
    %c0_489 = arith.constant 0 : index
    %c0_490 = arith.constant 0 : index
    %971 = vector.load %arg33[%c1_487, %c2_488, %c0_489, %c0_490] : memref<2x5x128x32xbf16, #tpu.memory_space<vmem>>, vector<1x1x128x32xbf16>
    %972 = vector.shape_cast %971 : vector<1x1x128x32xbf16> to vector<128x32xbf16>
    %cst_491 = arith.constant dense<0.000000e+00> : vector<32x32xf32>
    %973 = tpu.matmul %970, %972, %cst_491 {dimension_numbers = #tpu.dot_dimension_numbers<[1], [0], [0], [1], [0, 0, 1, 1], [], []>} : vector<32x128xbf16>, vector<128x32xbf16>, vector<32x32xf32> -> vector<32x32xf32>
    %974 = arith.addf %969, %973 : vector<32x32xf32>
    %c31_i32_492 = arith.constant 31 : i32
    %975 = tpu.dynamic_rotate %950 by %c31_i32_492 dim 0 : vector<32x128xf32>, i32 -> vector<32x128xf32>
    %cst_493 = arith.constant 0.000000e+00 : f32
    %976 = vector.shape_cast %80 : vector<32x1xi1> to vector<32x1xi1>
    %977 = vector.broadcast %976 : vector<32x1xi1> to vector<32x128xi1>
    %978 = vector.broadcast %cst_493 : f32 to vector<32x128xf32>
    %979 = arith.select %977, %975, %978 : vector<32x128xi1>, vector<32x128xf32>
    %980 = arith.truncf %979 : vector<32x128xf32> to vector<32x128xbf16>
    %c1_494 = arith.constant 1 : index
    %c3_495 = arith.constant 3 : index
    %c0_496 = arith.constant 0 : index
    %c0_497 = arith.constant 0 : index
    %981 = vector.load %arg33[%c1_494, %c3_495, %c0_496, %c0_497] : memref<2x5x128x32xbf16, #tpu.memory_space<vmem>>, vector<1x1x128x32xbf16>
    %982 = vector.shape_cast %981 : vector<1x1x128x32xbf16> to vector<128x32xbf16>
    %cst_498 = arith.constant dense<0.000000e+00> : vector<32x32xf32>
    %983 = tpu.matmul %980, %982, %cst_498 {dimension_numbers = #tpu.dot_dimension_numbers<[1], [0], [0], [1], [0, 0, 1, 1], [], []>} : vector<32x128xbf16>, vector<128x32xbf16>, vector<32x32xf32> -> vector<32x32xf32>
    %984 = arith.addf %974, %983 : vector<32x32xf32>
    %c30_i32_499 = arith.constant 30 : i32
    %985 = tpu.dynamic_rotate %950 by %c30_i32_499 dim 0 : vector<32x128xf32>, i32 -> vector<32x128xf32>
    %cst_500 = arith.constant 0.000000e+00 : f32
    %986 = vector.shape_cast %89 : vector<32x1xi1> to vector<32x1xi1>
    %987 = vector.broadcast %986 : vector<32x1xi1> to vector<32x128xi1>
    %988 = vector.broadcast %cst_500 : f32 to vector<32x128xf32>
    %989 = arith.select %987, %985, %988 : vector<32x128xi1>, vector<32x128xf32>
    %990 = arith.truncf %989 : vector<32x128xf32> to vector<32x128xbf16>
    %c1_501 = arith.constant 1 : index
    %c4_502 = arith.constant 4 : index
    %c0_503 = arith.constant 0 : index
    %c0_504 = arith.constant 0 : index
    %991 = vector.load %arg33[%c1_501, %c4_502, %c0_503, %c0_504] : memref<2x5x128x32xbf16, #tpu.memory_space<vmem>>, vector<1x1x128x32xbf16>
    %992 = vector.shape_cast %991 : vector<1x1x128x32xbf16> to vector<128x32xbf16>
    %cst_505 = arith.constant dense<0.000000e+00> : vector<32x32xf32>
    %993 = tpu.matmul %990, %992, %cst_505 {dimension_numbers = #tpu.dot_dimension_numbers<[1], [0], [0], [1], [0, 0, 1, 1], [], []>} : vector<32x128xbf16>, vector<128x32xbf16>, vector<32x32xf32> -> vector<32x32xf32>
    %994 = arith.addf %984, %993 : vector<32x32xf32>
    %c1_506 = arith.constant 1 : index
    %c0_507 = arith.constant 0 : index
    %c0_508 = arith.constant 0 : index
    %995 = vector.load %arg34[%c1_506, %c0_507, %c0_508] : memref<2x1x32xf32, #tpu.memory_space<vmem>>, vector<1x1x32xf32>
    %996 = vector.shape_cast %995 : vector<1x1x32xf32> to vector<1x32xf32>
    %997 = vector.broadcast %996 : vector<1x32xf32> to vector<32x32xf32>
    %998 = arith.addf %994, %997 : vector<32x32xf32>
    %999 = arith.truncf %998 : vector<32x32xf32> to vector<32x32xbf16>
    %c1_509 = arith.constant 1 : index
    %c0_510 = arith.constant 0 : index
    %c0_511 = arith.constant 0 : index
    %1000 = vector.load %arg35[%c1_509, %c0_510, %c0_511] : memref<2x32x32xbf16, #tpu.memory_space<vmem>>, vector<1x32x32xbf16>
    %1001 = vector.shape_cast %1000 : vector<1x32x32xbf16> to vector<32x32xbf16>
    %cst_512 = arith.constant dense<0.000000e+00> : vector<32x32xf32>
    %1002 = tpu.matmul %999, %1001, %cst_512 {dimension_numbers = #tpu.dot_dimension_numbers<[1], [0], [0], [1], [0, 0, 1, 1], [], []>} : vector<32x32xbf16>, vector<32x32xbf16>, vector<32x32xf32> -> vector<32x32xf32>
    %c1_513 = arith.constant 1 : index
    %c0_514 = arith.constant 0 : index
    %c0_515 = arith.constant 0 : index
    %1003 = vector.load %arg36[%c1_513, %c0_514, %c0_515] : memref<2x1x32xf32, #tpu.memory_space<vmem>>, vector<1x1x32xf32>
    %1004 = vector.shape_cast %1003 : vector<1x1x32xf32> to vector<1x32xf32>
    %1005 = vector.broadcast %1004 : vector<1x32xf32> to vector<32x32xf32>
    %1006 = arith.addf %1002, %1005 : vector<32x32xf32>
    %1007 = arith.addf %858, %1006 : vector<32x32xf32>
    %c0_516 = arith.constant 0 : index
    %c0_517 = arith.constant 0 : index
    %1008 = vector.load %arg4[%c0_516, %c0_517] : memref<2x32xf32, #tpu.memory_space<vmem>>, vector<2x32xf32>
    %cst_518 = arith.constant dense<0.000000e+00> : vector<2x32xf32>
    %1009 = tpu.matmul %1008, %1007, %cst_518 {dimension_numbers = #tpu.dot_dimension_numbers<[1], [0], [0], [1], [0, 0, 1, 1], [], []>} : vector<2x32xf32>, vector<32x32xf32>, vector<2x32xf32> -> vector<2x32xf32>
    %c0_519 = arith.constant 0 : index
    %c0_520 = arith.constant 0 : index
    %1010 = vector.load %arg11[%c0_519, %c0_520] : memref<32x32xf32, #tpu.memory_space<vmem>>, vector<32x32xf32>
    %cst_521 = arith.constant dense<0.000000e+00> : vector<2x32xf32>
    %1011 = tpu.matmul %1009, %1010, %cst_521 {dimension_numbers = #tpu.dot_dimension_numbers<[1], [0], [0], [1], [0, 0, 1, 1], [], []>} : vector<2x32xf32>, vector<32x32xf32>, vector<2x32xf32> -> vector<2x32xf32>
    %c0_522 = arith.constant 0 : index
    %c0_523 = arith.constant 0 : index
    %1012 = vector.load %arg12[%c0_522, %c0_523] : memref<1x32xf32, #tpu.memory_space<vmem>>, vector<1x32xf32>
    %1013 = vector.broadcast %1012 : vector<1x32xf32> to vector<2x32xf32>
    %1014 = arith.addf %1011, %1013 : vector<2x32xf32>
    %1015 = arith.negf %1014 : vector<2x32xf32>
    %1016 = math.exp %1015 : vector<2x32xf32>
    %cst_524 = arith.constant 1.000000e+00 : f32
    %1017 = vector.broadcast %cst_524 : f32 to vector<2x32xf32>
    %1018 = arith.addf %1017, %1016 : vector<2x32xf32>
    %1019 = arith.divf %1017, %1018 : vector<2x32xf32>
    %1020 = arith.mulf %1014, %1019 : vector<2x32xf32>
    %c0_525 = arith.constant 0 : index
    %c0_526 = arith.constant 0 : index
    %1021 = vector.load %arg13[%c0_525, %c0_526] : memref<32x1xf32, #tpu.memory_space<vmem>>, vector<32x1xf32>
    %cst_527 = arith.constant dense<0.000000e+00> : vector<2x1xf32>
    %1022 = tpu.matmul %1020, %1021, %cst_527 {dimension_numbers = #tpu.dot_dimension_numbers<[1], [0], [0], [1], [0, 0, 1, 1], [], []>} : vector<2x32xf32>, vector<32x1xf32>, vector<2x1xf32> -> vector<2x1xf32>
    %c0_528 = arith.constant 0 : index
    %c0_529 = arith.constant 0 : index
    %1023 = vector.load %arg14[%c0_528, %c0_529] : memref<1x1xf32, #tpu.memory_space<vmem>>, vector<1x1xf32>
    %1024 = vector.broadcast %1023 : vector<1x1xf32> to vector<2x1xf32>
    %1025 = arith.addf %1022, %1024 : vector<2x1xf32>
    %c0_530 = arith.constant 0 : index
    %c0_531 = arith.constant 0 : index
    %1026 = vector.load %arg37[%c0_530, %c0_531] : memref<2x1xf32, #tpu.memory_space<vmem>>, vector<2x1xf32>
    tpu.vector_store %arg37[%c0_530, %c0_531], %1025 {strides = array<i32>} : memref<2x1xf32, #tpu.memory_space<vmem>>, vector<2x1xf32>,
    return
  }
  func.func @transform_0(%arg0: i32) -> (i32, i32) {
    %c0_i32 = arith.constant 0 : i32
    %c0_i32_0 = arith.constant 0 : i32
    %c0_i32_1 = arith.constant 0 : i32
    return %c0_i32, %c0_i32_0 : i32, i32
  }
  func.func @transform_1(%arg0: i32) -> (i32, i32) {
    %c0_i32 = arith.constant 0 : i32
    %c0_i32_0 = arith.constant 0 : i32
    %c0_i32_1 = arith.constant 0 : i32
    return %c0_i32, %c0_i32_0 : i32, i32
  }
  func.func @transform_2(%arg0: i32) -> (i32, i32, i32, i32, i32) {
    %c0_i32 = arith.constant 0 : i32
    %c0_i32_0 = arith.constant 0 : i32
    %c0_i32_1 = arith.constant 0 : i32
    %c0_i32_2 = arith.constant 0 : i32
    %c0_i32_3 = arith.constant 0 : i32
    %c0_i32_4 = arith.constant 0 : i32
    return %c0_i32, %c0_i32_0, %c0_i32_1, %c0_i32_2, %c0_i32_3 : i32, i32, i32, i32, i32
  }
  func.func @transform_3(%arg0: i32) -> (i32, i32) {
    %c0_i32 = arith.constant 0 : i32
    %c0_i32_0 = arith.constant 0 : i32
    %c0_i32_1 = arith.constant 0 : i32
    return %c0_i32, %c0_i32_0 : i32, i32
  }
  func.func @transform_4(%arg0: i32) -> (i32, i32) {
    %c0_i32 = arith.constant 0 : i32
    %c0_i32_0 = arith.constant 0 : i32
    %c0_i32_1 = arith.constant 0 : i32
    return %c0_i32, %c0_i32_0 : i32, i32
  }
  func.func @transform_5(%arg0: i32) -> (i32, i32) {
    %c0_i32 = arith.constant 0 : i32
    %c0_i32_0 = arith.constant 0 : i32
    %c0_i32_1 = arith.constant 0 : i32
    return %c0_i32, %c0_i32_0 : i32, i32
  }
  func.func @transform_6(%arg0: i32) -> (i32, i32) {
    %c0_i32 = arith.constant 0 : i32
    %c0_i32_0 = arith.constant 0 : i32
    %c0_i32_1 = arith.constant 0 : i32
    return %c0_i32, %c0_i32_0 : i32, i32
  }
  func.func @transform_7(%arg0: i32) -> (i32, i32) {
    %c0_i32 = arith.constant 0 : i32
    %c0_i32_0 = arith.constant 0 : i32
    %c0_i32_1 = arith.constant 0 : i32
    return %c0_i32, %c0_i32_0 : i32, i32
  }
  func.func @transform_8(%arg0: i32) -> (i32, i32) {
    %c0_i32 = arith.constant 0 : i32
    %c0_i32_0 = arith.constant 0 : i32
    %c0_i32_1 = arith.constant 0 : i32
    return %c0_i32, %c0_i32_0 : i32, i32
  }
  func.func @transform_9(%arg0: i32) -> (i32, i32) {
    %c0_i32 = arith.constant 0 : i32
    %c0_i32_0 = arith.constant 0 : i32
    %c0_i32_1 = arith.constant 0 : i32
    return %c0_i32, %c0_i32_0 : i32, i32
  }
  func.func @transform_10(%arg0: i32) -> (i32, i32) {
    %c0_i32 = arith.constant 0 : i32
    %c0_i32_0 = arith.constant 0 : i32
    %c0_i32_1 = arith.constant 0 : i32
    return %c0_i32, %c0_i32_0 : i32, i32
  }
  func.func @transform_11(%arg0: i32) -> (i32, i32) {
    %c0_i32 = arith.constant 0 : i32
    %c0_i32_0 = arith.constant 0 : i32
    %c0_i32_1 = arith.constant 0 : i32
    return %c0_i32, %c0_i32_0 : i32, i32
  }
  func.func @transform_12(%arg0: i32) -> (i32, i32) {
    %c0_i32 = arith.constant 0 : i32
    %c0_i32_0 = arith.constant 0 : i32
    %c0_i32_1 = arith.constant 0 : i32
    return %c0_i32, %c0_i32_0 : i32, i32
  }
  func.func @transform_13(%arg0: i32) -> (i32, i32) {
    %c0_i32 = arith.constant 0 : i32
    %c0_i32_0 = arith.constant 0 : i32
    %c0_i32_1 = arith.constant 0 : i32
    return %c0_i32, %c0_i32_0 : i32, i32
  }
  func.func @transform_14(%arg0: i32) -> (i32, i32, i32) {
    %c0_i32 = arith.constant 0 : i32
    %c0_i32_0 = arith.constant 0 : i32
    %c0_i32_1 = arith.constant 0 : i32
    %c0_i32_2 = arith.constant 0 : i32
    return %c0_i32, %c0_i32_0, %c0_i32_1 : i32, i32, i32
  }
  func.func @transform_15(%arg0: i32) -> (i32, i32, i32) {
    %c0_i32 = arith.constant 0 : i32
    %c0_i32_0 = arith.constant 0 : i32
    %c0_i32_1 = arith.constant 0 : i32
    %c0_i32_2 = arith.constant 0 : i32
    return %c0_i32, %c0_i32_0, %c0_i32_1 : i32, i32, i32
  }
  func.func @transform_16(%arg0: i32) -> (i32, i32, i32) {
    %c0_i32 = arith.constant 0 : i32
    %c0_i32_0 = arith.constant 0 : i32
    %c0_i32_1 = arith.constant 0 : i32
    %c0_i32_2 = arith.constant 0 : i32
    return %c0_i32, %c0_i32_0, %c0_i32_1 : i32, i32, i32
  }
  func.func @transform_17(%arg0: i32) -> (i32, i32, i32) {
    %c0_i32 = arith.constant 0 : i32
    %c0_i32_0 = arith.constant 0 : i32
    %c0_i32_1 = arith.constant 0 : i32
    %c0_i32_2 = arith.constant 0 : i32
    return %c0_i32, %c0_i32_0, %c0_i32_1 : i32, i32, i32
  }
  func.func @transform_18(%arg0: i32) -> (i32, i32, i32) {
    %c0_i32 = arith.constant 0 : i32
    %c0_i32_0 = arith.constant 0 : i32
    %c0_i32_1 = arith.constant 0 : i32
    %c0_i32_2 = arith.constant 0 : i32
    return %c0_i32, %c0_i32_0, %c0_i32_1 : i32, i32, i32
  }
  func.func @transform_19(%arg0: i32) -> (i32, i32, i32) {
    %c0_i32 = arith.constant 0 : i32
    %c0_i32_0 = arith.constant 0 : i32
    %c0_i32_1 = arith.constant 0 : i32
    %c0_i32_2 = arith.constant 0 : i32
    return %c0_i32, %c0_i32_0, %c0_i32_1 : i32, i32, i32
  }
  func.func @transform_20(%arg0: i32) -> (i32, i32, i32) {
    %c0_i32 = arith.constant 0 : i32
    %c0_i32_0 = arith.constant 0 : i32
    %c0_i32_1 = arith.constant 0 : i32
    %c0_i32_2 = arith.constant 0 : i32
    return %c0_i32, %c0_i32_0, %c0_i32_1 : i32, i32, i32
  }
  func.func @transform_21(%arg0: i32) -> (i32, i32, i32) {
    %c0_i32 = arith.constant 0 : i32
    %c0_i32_0 = arith.constant 0 : i32
    %c0_i32_1 = arith.constant 0 : i32
    %c0_i32_2 = arith.constant 0 : i32
    return %c0_i32, %c0_i32_0, %c0_i32_1 : i32, i32, i32
  }
  func.func @transform_22(%arg0: i32) -> (i32, i32, i32) {
    %c0_i32 = arith.constant 0 : i32
    %c0_i32_0 = arith.constant 0 : i32
    %c0_i32_1 = arith.constant 0 : i32
    %c0_i32_2 = arith.constant 0 : i32
    return %c0_i32, %c0_i32_0, %c0_i32_1 : i32, i32, i32
  }
  func.func @transform_23(%arg0: i32) -> (i32, i32, i32) {
    %c0_i32 = arith.constant 0 : i32
    %c0_i32_0 = arith.constant 0 : i32
    %c0_i32_1 = arith.constant 0 : i32
    %c0_i32_2 = arith.constant 0 : i32
    return %c0_i32, %c0_i32_0, %c0_i32_1 : i32, i32, i32
  }
  func.func @transform_24(%arg0: i32) -> (i32, i32, i32) {
    %c0_i32 = arith.constant 0 : i32
    %c0_i32_0 = arith.constant 0 : i32
    %c0_i32_1 = arith.constant 0 : i32
    %c0_i32_2 = arith.constant 0 : i32
    return %c0_i32, %c0_i32_0, %c0_i32_1 : i32, i32, i32
  }
  func.func @transform_25(%arg0: i32) -> (i32, i32, i32) {
    %c0_i32 = arith.constant 0 : i32
    %c0_i32_0 = arith.constant 0 : i32
    %c0_i32_1 = arith.constant 0 : i32
    %c0_i32_2 = arith.constant 0 : i32
    return %c0_i32, %c0_i32_0, %c0_i32_1 : i32, i32, i32
  }
  func.func @transform_26(%arg0: i32) -> (i32, i32, i32) {
    %c0_i32 = arith.constant 0 : i32
    %c0_i32_0 = arith.constant 0 : i32
    %c0_i32_1 = arith.constant 0 : i32
    %c0_i32_2 = arith.constant 0 : i32
    return %c0_i32, %c0_i32_0, %c0_i32_1 : i32, i32, i32
  }
  func.func @transform_27(%arg0: i32) -> (i32, i32, i32) {
    %c0_i32 = arith.constant 0 : i32
    %c0_i32_0 = arith.constant 0 : i32
    %c0_i32_1 = arith.constant 0 : i32
    %c0_i32_2 = arith.constant 0 : i32
    return %c0_i32, %c0_i32_0, %c0_i32_1 : i32, i32, i32
  }
  func.func @transform_28(%arg0: i32) -> (i32, i32, i32, i32) {
    %c0_i32 = arith.constant 0 : i32
    %c0_i32_0 = arith.constant 0 : i32
    %c0_i32_1 = arith.constant 0 : i32
    %c0_i32_2 = arith.constant 0 : i32
    %c0_i32_3 = arith.constant 0 : i32
    return %c0_i32, %c0_i32_0, %c0_i32_1, %c0_i32_2 : i32, i32, i32, i32
  }
  func.func @transform_29(%arg0: i32) -> (i32, i32, i32) {
    %c0_i32 = arith.constant 0 : i32
    %c0_i32_0 = arith.constant 0 : i32
    %c0_i32_1 = arith.constant 0 : i32
    %c0_i32_2 = arith.constant 0 : i32
    return %c0_i32, %c0_i32_0, %c0_i32_1 : i32, i32, i32
  }
  func.func @transform_30(%arg0: i32) -> (i32, i32, i32, i32) {
    %c0_i32 = arith.constant 0 : i32
    %c0_i32_0 = arith.constant 0 : i32
    %c0_i32_1 = arith.constant 0 : i32
    %c0_i32_2 = arith.constant 0 : i32
    %c0_i32_3 = arith.constant 0 : i32
    return %c0_i32, %c0_i32_0, %c0_i32_1, %c0_i32_2 : i32, i32, i32, i32
  }
  func.func @transform_31(%arg0: i32) -> (i32, i32, i32) {
    %c0_i32 = arith.constant 0 : i32
    %c0_i32_0 = arith.constant 0 : i32
    %c0_i32_1 = arith.constant 0 : i32
    %c0_i32_2 = arith.constant 0 : i32
    return %c0_i32, %c0_i32_0, %c0_i32_1 : i32, i32, i32
  }
  func.func @transform_32(%arg0: i32) -> (i32, i32, i32, i32) {
    %c0_i32 = arith.constant 0 : i32
    %c0_i32_0 = arith.constant 0 : i32
    %c0_i32_1 = arith.constant 0 : i32
    %c0_i32_2 = arith.constant 0 : i32
    %c0_i32_3 = arith.constant 0 : i32
    return %c0_i32, %c0_i32_0, %c0_i32_1, %c0_i32_2 : i32, i32, i32, i32
  }
  func.func @transform_33(%arg0: i32) -> (i32, i32, i32) {
    %c0_i32 = arith.constant 0 : i32
    %c0_i32_0 = arith.constant 0 : i32
    %c0_i32_1 = arith.constant 0 : i32
    %c0_i32_2 = arith.constant 0 : i32
    return %c0_i32, %c0_i32_0, %c0_i32_1 : i32, i32, i32
  }
  func.func @transform_34(%arg0: i32) -> (i32, i32, i32) {
    %c0_i32 = arith.constant 0 : i32
    %c0_i32_0 = arith.constant 0 : i32
    %c0_i32_1 = arith.constant 0 : i32
    %c0_i32_2 = arith.constant 0 : i32
    return %c0_i32, %c0_i32_0, %c0_i32_1 : i32, i32, i32
  }
  func.func @transform_35(%arg0: i32) -> (i32, i32, i32) {
    %c0_i32 = arith.constant 0 : i32
    %c0_i32_0 = arith.constant 0 : i32
    %c0_i32_1 = arith.constant 0 : i32
    %c0_i32_2 = arith.constant 0 : i32
    return %c0_i32, %c0_i32_0, %c0_i32_1 : i32, i32, i32
  }
  func.func @transform_36(%arg0: i32) -> (i32, i32) {
    %c0_i32 = arith.constant 0 : i32
    %c0_i32_0 = arith.constant 0 : i32
    %c0_i32_1 = arith.constant 0 : i32
    return %c0_i32, %c0_i32_0 : i32, i32
  }
}

</mosaic_0001>

<bundles_post_ra>
// kernel: mul.34
= control target key start
LH: loop header
LB: loop body
LE: loop exit
PB: predicated region body
PF: predicated region fallthrough
CT: control target
= control target key end

     0   :  { %s8_s6 = smov 3  ;;  %s11_s7 = smov 12  ;;  %vm13_vm0 = vcmask 1043458   ;;  %vm3_vm1 = vcmask 130048   ;;  %vm17_vm2 = vcmask 1048448   ;;  %vm31_vm3 = vcmask 917248   ;;  %s214_s0 = inlined_call_operand.vmem [shape: f32[2,16,16], index: 0, kind: input, shape index: {}]   ;;  %s215_s1 = inlined_call_operand.vmem [shape: f32[2,256], index: 1, kind: output, shape index: {}]  }
   0x1   :  { %v117_v0 = vld [vmem:[%s214_s0 + $0x7] ss:$16 sm:%s8_s6]   ;;  %v118_v1 = vld [vmem:[%s214_s0 - $0x11] ss:$16 sm:%s11_s7]   ;;  %s36_s12 = smov 3  ;;  %s39_s15 = smov 12 }
   0x2   :  { %v14_v2 = vsel %vm13_vm0, %v118_v1, %v117_v0  ;;  %v121_v3 = vld [vmem:[%s214_s0 + $0x5] ss:$16 sm:%s36_s12]   ;;  %s139_s16 = smov 112   ;;  %v122_v4 = vld [vmem:[%s214_s0 - $0x13] ss:$16 sm:%s39_s15]   ;;  %s22_s19 = smov 3 }
   0x3   :  { %15 = vrot.lane.b32.xlu0 %v14_v2, %s139_s16  ;;  %s25_s20 = smov 12  ;;  %v42_v5 = vsel %vm13_vm0, %v122_v4, %v121_v3  ;;  %v119_v6 = vld [vmem:[%s214_s0 + $0x6] ss:$16 sm:%s22_s19]   ;;  %s50_s23 = smov 3  ;;  %vm45_vm4 = vcmask 786048   ;;  %vm59_vm5 = vcmask 654848  }
   0x4   :  { %s140_s24 = smov 80   ;;  %v120_v7 = vld [vmem:[%s214_s0 - $0x12] ss:$16 sm:%s25_s20]   ;;  %s53_s27 = smov 12  ;;  %v123_v8 = vld [vmem:[%s214_s0 + $0x4] ss:$16 sm:%s50_s23]  }
   0x5   :  { %43 = vrot.lane.b32.xlu1 %v42_v5, %s140_s24  ;;  %v124_v9 = vld [vmem:[%s214_s0 - $0x14] ss:$16 sm:%s53_s27]   ;;  %s92_s3 = smov 3  ;;  %s64_s4 = smov 3  ;;  %v28_v10 = vsel %vm13_vm0, %v120_v7, %v119_v6  ;;  %vm73_vm6 = vcmask 523648   ;;  %vm87_vm7 = vcmask 392448  }
   0x6   :  { %v125_v11 = vld [vmem:[%s214_s0 + $0x3] ss:$16 sm:%s64_s4]   ;;  %s67_s7 = smov 12  ;;  %s95_s8 = smov 12  ;;  %v56_v13 = vsel %vm13_vm0, %v124_v9, %v123_v8  ;;  %v129_v15 = vld [vmem:[%s214_s0 + $0x1] ss:$16 sm:%s92_s3]  }
   0x7   :  { %v126_v12 = vld [vmem:[%s214_s0 - $0x15] ss:$16 sm:%s67_s7]   ;;  %s78_s11 = smov 3  ;;  %s81_s12 = smov 12  ;;  %v130_v16 = vld [vmem:[%s214_s0 - $0x17] ss:$16 sm:%s95_s8]  }
   0x8   :  { %v70_v14 = vsel %vm13_vm0, %v126_v12, %v125_v11  ;;  %s141_s13 = smov 96   ;;  %s142_s16 = smov 48   ;;  %v127_v17 = vld [vmem:[%s214_s0 + $0x2] ss:$16 sm:%s78_s11]   ;;  %v128_v18 = vld [vmem:[%s214_s0 - $0x16] ss:$16 sm:%s81_s12]   ;;  %v98_v19 = vsel %vm13_vm0, %v130_v16, %v129_v15 }
   0x9   :  { %71 = vrot.lane.b32.xlu2 %v70_v14, %s142_s16  ;;  %s143_s21 = smov 64   ;;  %v84_v20 = vsel %vm13_vm0, %v128_v18, %v127_v17  ;;  %s144_s24 = smov 16   ;;  %v2_v21 = vld [vmem:[%s214_s0] ss:$8 sm:$0xf]   ;;  %vm101_vm8 = vcmask 261248  }
   0xa   :  { %s145_s25 = smov 32   ;;  %4 = vst.msk [vmem:[#allocation0] ss:$8 sm:$0x3] %vm3_vm1, %v2_v21  }
   0xb   :  { %29 = vrot.lane.b32.xlu0 %v28_v10, %s141_s13  ;;  %6 = vst.msk [vmem:[#allocation0 - $0xf] ss:$8 sm:$0xc] %vm3_vm1, %v2_v21  }
   0xd   :  { %57 = vrot.lane.b32.xlu1 %v56_v13, %s143_s21 }
  0x11   :  { %85 = vrot.lane.b32.xlu2 %v84_v20, %s145_s25 }
  0x13   :  { %99 = vrot.lane.b32.xlu0 %v98_v19, %s144_s24 }
  0x63   :  { %v72_v22 = vpop.permute.xlu2 %71  }
  0x6b   :  { %v86_v23 = vpop.permute.xlu2 %85  }
  0x75   :  { %v16_v24 = vpop.permute.xlu0 %15  }
  0x76   :  { %18 = vst.msk [vmem:[#allocation0] sm:$0x3] %vm17_vm2, %v16_v24  }
  0x77   :  { %20 = vst.msk [vmem:[#allocation0 + $0x6] sm:$0xc] %vm17_vm2, %v16_v24   ;;  %v44_v25 = vpop.permute.xlu1 %43  }
  0x7d   :  { %v30_v26 = vpop.permute.xlu0 %29  }
  0x7e   :  { %32 = vst.msk [vmem:[#allocation0] sm:$0x3] %vm31_vm3, %v30_v26  }
  0x7f   :  { %34 = vst.msk [vmem:[#allocation0 + $0x6] sm:$0xc] %vm31_vm3, %v30_v26   ;;  %v58_v27 = vpop.permute.xlu1 %57  }
  0x80   :  { %46 = vst.msk [vmem:[#allocation0] sm:$0x3] %vm45_vm4, %v44_v25  }
  0x81   :  { %48 = vst.msk [vmem:[#allocation0 + $0x6] sm:$0xc] %vm45_vm4, %v44_v25  }
  0x82   :  { %60 = vst.msk [vmem:[#allocation0] sm:$0x3] %vm59_vm5, %v58_v27  }
  0x83   :  { %62 = vst.msk [vmem:[#allocation0 + $0x6] sm:$0xc] %vm59_vm5, %v58_v27  }
  0x84   :  { %74 = vst.msk [vmem:[#allocation0] sm:$0x3] %vm73_vm6, %v72_v22  }
  0x85   :  { %76 = vst.msk [vmem:[#allocation0 + $0x6] sm:$0xc] %vm73_vm6, %v72_v22   ;;  %v100_v28 = vpop.permute.xlu0 %99  }
  0x86   :  { %88 = vst.msk [vmem:[#allocation0] sm:$0x3] %vm87_vm7, %v86_v23  }
  0x87   :  { %90 = vst.msk [vmem:[#allocation0 + $0x6] sm:$0xc] %vm87_vm7, %v86_v23  }
  0x88   :  { %102 = vst.msk [vmem:[#allocation0] sm:$0x3] %vm101_vm8, %v100_v28  }
  0x89   :  { %104 = vst.msk [vmem:[#allocation0 + $0x6] sm:$0xc] %vm101_vm8, %v100_v28  }
  0x8f   :  { %v107_v29 = vld [vmem:[#allocation0] sm:$0x3] }
  0x90   :  { %110 = vst [vmem:[%s215_s1] sm:$0x3] %v107_v29  ;;  %v112_v30 = vld [vmem:[#allocation0 + $0x8] sm:$0x3] }
  0x91   :  { %131 = vst [vmem:[%s215_s1 + $0x2] sm:$0x3] %v112_v30 }

// kernel: rna_model_forward.1
= control target key start
LH: loop header
LB: loop body
LE: loop exit
PB: predicated region body
PF: predicated region fallthrough
CT: control target
= control target key end

     0   :  { %v7057_v0 = vmov 0   ;;  %s7058_s6 = smov 1   ;;  %s7059_s10 = smov 5   ;;  %v153_v12 = vlaneseq  ;;  %v7062_v15 = vmov 0.0   ;;  %vm8720_vm1 = vcmask 64512   ;;  %s8713_s0 = inlined_call_operand.smem [shape: u32[37], index: -1, kind: input, shape index: {}] }
   0x1   :  { %6744 = vset.pattern.permute.xlu1 %v7057_v0  ;;  %6743 = vset.pattern.permute.xlu0 %v7057_v0  ;;  %s1_s5 = sld [smem:[%s8713_s0]]   ;;  %s7060_s14 = smov 6   ;;  %vm8746_vm9 = vcmask 261120  }
   0x2   :  { %6745 = vset.pattern.permute.xlu2 %v7057_v0  ;;  %s5501_s9 = sld [smem:[%s8713_s0 + %s7058_s6]]   ;;  %s7061_s18 = smov 7   ;;  %v154_v13 = vand.u32 127, %v153_v12 }
   0x3   :  { %s7122_s13 = sld [smem:[%s8713_s0 + %s7059_s10]]   ;;  %s7063_s22 = smov 8  }
   0x4   :  { %s5506_s17 = sld [smem:[%s8713_s0 + %s7060_s14]]   ;;  %s7064_s26 = smov 4  }
   0x5   :  { %s5507_s21 = sld [smem:[%s8713_s0 + %s7061_s18]]   ;;  %s7065_s30 = smov 9  }
   0x6   :  { %s5508_s25 = sld [smem:[%s8713_s0 + %s7063_s22]]   ;;  %s7067_s4 = smov 14  }
   0x7   :  { %v156_v1 = vld [vmem:[%s1_s5 + $0x8] sm:$0xff]  ;;  %v155_v2 = vld [vmem:[%s1_s5] sm:$0xff]  ;;  %v158_v6 = vld [vmem:[%s1_s5 + $0x18] sm:$0xff]  ;;  %s5504_s29 = sld [smem:[%s8713_s0 + %s7064_s26]]   ;;  %s7068_s8 = smov 15  }
   0x8   :  { %163 = vperm.xlu1 %6744, %v156_v1   ;;  %160 = vperm.xlu0 %6743, %v155_v2   ;;  %v186_v3 = vld [vmem:[%s5501_s9 + $0x18] sm:$0xff]  ;;  %v184_v4 = vld [vmem:[%s5501_s9 + $0x8] sm:$0xff]  ;;  %v183_v5 = vld [vmem:[%s5501_s9] sm:$0xff]  ;;  %s5509_s3 = sld [smem:[%s8713_s0 + %s7065_s30]]   ;;  %s7069_s12 = smov 16  }
   0x9   :  { %197 = vperm.xlu2 %6745, %v186_v3   ;;  %v185_v7 = vld [vmem:[%s5501_s9 + $0x10] sm:$0xff]  ;;  %v476_v9 = vld [vmem:[%s7122_s13 + $0x8] sm:$0xff]  ;;  %v475_v19 = vld [vmem:[%s7122_s13] sm:$0xff]  ;;  %s7186_s7 = sld [smem:[%s8713_s0 + %s7067_s4]]   ;;  %s8737_s20 = smov 88  }
   0xa   :  { %v157_v8 = vld [vmem:[%s1_s5 + $0x10] sm:$0xff]  ;;  %v211_v10 = vld [vmem:[%s5506_s17] sm:$0xff]  ;;  %s7192_s11 = sld [smem:[%s8713_s0 + %s7068_s8]]   ;;  %s7073_s22 = smov 80  }
   0xb   :  { %294 = vmatpush.msra.mxu1 %v211_v10  ;;  %v212_v11 = vld [vmem:[%s5507_s21] sm:$0xff]  ;;  %s7203_s16 = sld [smem:[%s8713_s0 + %s7069_s12]]   ;;  %s8739_s21 = smov 120  }
   0xc   :  { %6690 = vmatpush.msra.mxu3 %v212_v11  ;;  %241 = vmatpush.msra.mxu0 %v212_v11  ;;  %v6551_v32 = vld [vmem:[%s5508_s25 + $0x8] sm:$0xff]  ;;  %v6550_v33 = vld [vmem:[%s5508_s25] sm:$0xff]  ;;  %v6553_v34 = vld [vmem:[%s5508_s25 + $0x18] sm:$0xff]  ;;  %s8735_s23 = smov 96   ;;  %s8733_s24 = smov 112  }
   0xd   :  { %337 = vmatpush.bf16.msra.mxu2 %v6553_v34  ;;  %v6552_v35 = vld [vmem:[%s5508_s25 + $0x10] sm:$0xff]  ;;  %v263_v37 = vld [vmem:[%s5504_s29] sm:$0xff]  ;;  %v264_v38 = vld [vmem:[%s5504_s29 + $0x8] sm:$0xff]  ;;  %s7076_s25 = smov 2   ;;  %s8728_s30 = smov 48  }
   0xe   :  { %6691 = vmatpush.msrb.mxu3 %v211_v10  ;;  %v265_v47 = vld [vmem:[%s5504_s29 + $0x10] sm:$0xff]  ;;  %v266_v49 = vld [vmem:[%s5504_s29 + $0x18] sm:$0xff]  ;;  %v7154_v57 = vld [vmem:[%s5509_s3] ss:$0 sm:$0xff]  ;;  %s7276_s28 = sld [smem:[%s8713_s0 + %s7076_s25]]   ;;  %s8731_s29 = smov 56  }
   0xf   :  { %s8723_s1 = smov 64   ;;  %s8721_s2 = smov 72  }
  0x10   :  { %191 = vperm.xlu1 %6744, %v184_v4   ;;  %188 = vperm.xlu0 %6743, %v183_v5   ;;  %s8716_s3 = smov 104   ;;  %s7082_s4 = smov 18  }
  0x11   :  { %169 = vperm.xlu2 %6745, %v158_v6   ;;  %338 = vmatpush.bf16.msra.mxu2 %v6552_v35  ;;  %s7317_s8 = sld [smem:[%s8713_s0 + %s7082_s4]]   ;;  %s8714_s9 = smov 40  }
  0x12   :  { %s7084_s10 = smov 19   ;;  %s7086_s26 = smov 21  }
  0x13   :  { %s7409_s15 = sld [smem:[%s8713_s0 + %s7084_s10]]   ;;  %s7087_s6 = smov 22  }
  0x14   :  { %s7469_s5 = sld [smem:[%s8713_s0 + %s7086_s26]]   ;;  %s7089_s27 = smov 24  }
  0x15   :  { %s7505_s14 = sld [smem:[%s8713_s0 + %s7087_s6]]   ;;  %s7090_s12 = smov 25  }
  0x16   :  { %s7540_s10 = sld [smem:[%s8713_s0 + %s7089_s27]]   ;;  %s7091_s27 = smov 26  }
  0x17   :  { %s7551_s18 = sld [smem:[%s8713_s0 + %s7090_s12]]   ;;  %s7095_s4 = smov 30  }
  0x18   :  { %194 = vperm.xlu1 %6744, %v185_v7   ;;  %166 = vperm.xlu0 %6743, %v157_v8   ;;  %s7574_s12 = sld [smem:[%s8713_s0 + %s7091_s27]]   ;;  %s8809_s17 = smov 40  }
  0x19   :  { %481 = vperm.xlu2 %6745, %v475_v19  }
  0x20   :  { %486 = vperm.xlu0 %6743, %v476_v9  }
  0x63   :  { %v198_v14 = vpop.permute.xlu2 %197 }
  0x64   :  { %vm202_vm0 = vcmp.eq.s32.totalorder %v198_v14, %v154_v13 }
  0x65   :  { %v5544_v16 = vsel %vm202_vm0, 1.0, %v7062_v15 }
  0x66   :  { %5548 = vmatmul.msk.f32.vlgmr.msra.gmra.mxu3 %vm8720_vm1, %v5544_v16 }
  0x67   :  { %374 = vmatpush.bf16.msra.mxu3 %v6551_v32 }
  0x6b   :  { %v170_v17 = vpop.permute.xlu2 %169  ;;  %375 = vmatpush.bf16.msra.mxu3 %v6550_v33 }
  0x6c   :  { %vm174_vm2 = vcmp.eq.s32.totalorder %v170_v17, %v154_v13 }
  0x6d   :  { %v5540_v18 = vsel %vm174_vm2, 1.0, %v7062_v15 }
  0x6e   :  { %5552 = vmatmul.msk.f32.vlgmr.msrb.gmra.mxu3 %vm8720_vm1, %v5540_v18 }
  0x7a   :  { %v164_v20 = vpop.permute.xlu1 %163  ;;  %v161_v21 = vpop.permute.xlu0 %160 }
  0x7b   :  { %vm171_vm3 = vcmp.eq.s32.totalorder %v161_v21, %v154_v13  ;;  %vm172_vm4 = vcmp.eq.s32.totalorder %v164_v20, %v154_v13 }
  0x7c   :  { %v5537_v22 = vsel %vm171_vm3, 1.0, %v7062_v15  ;;  %v5538_v24 = vsel %vm172_vm4, 1.0, %v7062_v15 }
  0x7d   :  { %5549 = vmatmul.msk.f32.vlgmr.msra.gmra.mxu1 %vm8720_vm1, %v5537_v22  ;;  %v482_v22 = vpop.permute.xlu2 %481 }
  0x82   :  { %v189_v23 = vpop.permute.xlu0 %188  ;;  %v192_v25 = vpop.permute.xlu1 %191 }
  0x83   :  { %vm199_vm5 = vcmp.eq.s32.totalorder %v189_v23, %v154_v13  ;;  %vm200_vm6 = vcmp.eq.s32.totalorder %v192_v25, %v154_v13 }
  0x84   :  { %v5541_v26 = vsel %vm199_vm5, 1.0, %v7062_v15  ;;  %v5542_v28 = vsel %vm200_vm6, 1.0, %v7062_v15 }
  0x85   :  { %5545 = vmatmul.msk.f32.vlgmr.msra.gmra.mxu0 %vm8720_vm1, %v5541_v26  ;;  %5550 = vmatmul.msk.f32.gmra.mxu1 %vm8720_vm1, %v5538_v24 }
  0x8a   :  { %v167_v27 = vpop.permute.xlu0 %166  ;;  %v195_v30 = vpop.permute.xlu1 %194 }
  0x8b   :  { %vm173_vm7 = vcmp.eq.s32.totalorder %v167_v27, %v154_v13  ;;  %vm201_vm8 = vcmp.eq.s32.totalorder %v195_v30, %v154_v13 }
  0x8c   :  { %v5539_v29 = vsel %vm173_vm7, 1.0, %v7062_v15  ;;  %v5543_v31 = vsel %vm201_vm8, 1.0, %v7062_v15 }
  0x8d   :  { %5546 = vmatmul.msk.f32.gmra.mxu0 %vm8720_vm1, %v5542_v28  ;;  %5551 = vmatmul.msk.f32.gmra.mxu1 %vm8720_vm1, %v5539_v29 }
  0x92   :  { %v487_v33 = vpop.permute.xlu0 %486 }
  0x95   :  { %5547 = vmatmul.msk.f32.gmra.mxu0 %vm8720_vm1, %v5543_v31 }
  0xe9   :  { %v252_v43 = vpop.f32.mrf.mxu3 }
  0xf1   :  { %v305_v50 = vpop.f32.mrf.mxu3 }
  0xf2   :  { %v306_v52 = vadd.f32 %v305_v50, %v266_v49 }
  0xfa   :  { %v296_v36 = vpop.f32.mrf.mxu1 }
  0xfb   :  { %v297_v41 = vadd.f32 %v296_v36, %v263_v37  ;;  %v477_v36 = vld [vmem:[%s7122_s13 + $0x10] sm:$0xff] }
 0x102   :  { %v243_v39 = vpop.f32.mrf.mxu0  ;;  %v299_v40 = vpop.f32.mrf.mxu1 }
 0x103   :  { %v300_v42 = vadd.f32 %v299_v40, %v264_v38 }
 0x105   :  { %v308_v44 = vpack.c.bf16 %v300_v42, %v297_v41  ;;  %v7066_v41 = vmov 32.0  }
 0x107   :  { %5571 = vmatmul.msk.bf16.vlgmr.msra.gmra.mxu3 %vm8746_vm9, %v308_v44 }
 0x10a   :  { %v246_v45 = vpop.f32.mrf.mxu0  ;;  %v302_v48 = vpop.f32.mrf.mxu1 }
 0x10b   :  { %v310_v46 = vpack.c.bf16 %v246_v45, %v243_v39  ;;  %v303_v51 = vadd.f32 %v302_v48, %v265_v47 }
 0x10d   :  { %5561 = vmatmul.msk.bf16.vlgmr.msra.gmra.mxu2 %vm8746_vm9, %v310_v46  ;;  %v309_v53 = vpack.c.bf16 %v306_v52, %v303_v51 }
 0x112   :  { %v249_v54 = vpop.f32.mrf.mxu0 }
 0x113   :  { %v311_v55 = vpack.c.bf16 %v252_v43, %v249_v54 }
 0x117   :  { %5572 = vmatmul.msk.bf16.gmra.mxu3 %vm8746_vm9, %v309_v53 }
 0x11d   :  { %5562 = vmatmul.msk.bf16.gmra.mxu2 %vm8746_vm9, %v311_v55 }
 0x18a   :  { %v377_v56 = vpop.f32.mrf.mxu3 }
 0x190   :  { %v340_v58 = vpop.f32.mrf.mxu2 }
 0x191   :  { %v378_v59 = vadd.f32 %v377_v56, %v340_v58 }
 0x192   :  { %v379_v62 = vpop.f32.mrf.mxu3 }
 0x193   :  { %v391_v60 = vadd.f32 %v7154_v57, %v378_v59 }
 0x195   :  { %v5573_v61 = vmul.f32 -1.442695, %v391_v60 }
 0x197   :  { %6779 = vpow2.f32 %v5573_v61 }
 0x198   :  { %v342_v63 = vpop.f32.mrf.mxu2 }
 0x199   :  { %v380_v0 = vadd.f32 %v379_v62, %v342_v63 }
 0x19a   :  { %v382_v38 = vpop.f32.mrf.mxu3 }
 0x19b   :  { %v392_v1 = vadd.f32 %v7154_v57, %v380_v0 }
 0x19d   :  { %v6780_v2 = vpop.eup %6779  ;;  %v5574_v3 = vmul.f32 -1.442695, %v392_v1 }
 0x19e   :  { %v407_v4 = vadd.f32 1.0, %v6780_v2 }
 0x19f   :  { %6781 = vpow2.f32 %v5574_v3 }
 0x1a0   :  { %6783 = vrcp.f32 %v407_v4  ;;  %v422_v10 = vand.u32 2147483648, %v407_v4  ;;  %v420_v13 = vand.u32 2147483647, %v407_v4  ;;  %vm416_vm11 = vweird.f32 %v407_v4  ;;  %v345_v37 = vpop.f32.mrf.mxu2 }
 0x1a1   :  { %v383_v39 = vadd.f32 %v382_v38, %v345_v37 }
 0x1a2   :  { %v423_v16 = vor.u32 1.1754944e-38, %v422_v10  ;;  %vm421_vm13 = vcmp.eq.f32.partialorder %v420_v13, 8.507059e+37  ;;  %v478_v13 = vld [vmem:[%s7122_s13 + $0x18] sm:$0xff]  ;;  %s7070_s13 = smov 17  }
 0x1a3   :  { %v393_v40 = vadd.f32 %v7154_v57, %v383_v39  ;;  %s7232_s19 = sld [smem:[%s8713_s0 + %s7070_s13]]   ;;  %s7085_s13 = smov 20  }
 0x1a4   :  { %s7463_s25 = sld [smem:[%s8713_s0 + %s7085_s13]]   ;;  %s7088_s13 = smov 23  }
 0x1a5   :  { %v6782_v5 = vpop.eup %6781  ;;  %v5575_v42 = vmul.f32 -1.442695, %v393_v40  ;;  %s7529_s26 = sld [smem:[%s8713_s0 + %s7088_s13]]   ;;  %s7092_s13 = smov 27  }
 0x1a6   :  { %v6784_v6 = vpop.eup %6783  ;;  %v408_v7 = vadd.f32 1.0, %v6782_v5 }
 0x1a7   :  { %v412_v8 = vmul.f32 %v6784_v6, %v407_v4  ;;  %vm417_vm10 = vweird.f32 %v6784_v6 }
 0x1a8   :  { %6785 = vrcp.f32 %v408_v7  ;;  %vm418_vm12 = vmor %vm416_vm11, %vm417_vm10  ;;  %v437_v23 = vand.u32 2147483648, %v408_v7  ;;  %v435_v25 = vand.u32 2147483647, %v408_v7  ;;  %vm431_vm15 = vweird.f32 %v408_v7 }
 0x1a9   :  { %v413_v9 = vsub.f32 1.0, %v412_v8  ;;  %6787 = vrcp.f32 %v7066_v41 }
 0x1aa   :  { %v438_v29 = vor.u32 1.1754944e-38, %v437_v23  ;;  %vm436_vm2 = vcmp.eq.f32.partialorder %v435_v25, 8.507059e+37  ;;  %6789 = vpow2.f32 %v5575_v42 }
 0x1ab   :  { %v414_v11 = vmul.f32 %v6784_v6, %v413_v9 }
 0x1ad   :  { %v415_v14 = vadd.f32 %v6784_v6, %v414_v11 }
 0x1ae   :  { %v6786_v15 = vpop.eup %6785 }
 0x1af   :  { %v419_v17 = vsel %vm418_vm12, %v6784_v6, %v415_v14  ;;  %v427_v18 = vmul.f32 %v6786_v15, %v408_v7  ;;  %vm432_vm14 = vweird.f32 %v6786_v15  ;;  %v6788_v43 = vpop.eup %6787  ;;  %v347_v14 = vpop.f32.mrf.mxu2 }
 0x1b0   :  { %v424_v19 = vsel %vm421_vm13, %v423_v16, %v419_v17  ;;  %vm433_vm0 = vmor %vm431_vm15, %vm432_vm14  ;;  %v635_v44 = vmul.f32 32.0, %v6788_v43  ;;  %v6790_v45 = vpop.eup %6789  ;;  %vm639_vm3 = vweird.f32 %v6788_v43 }
 0x1b1   :  { %v471_v20 = vmul.f32 %v424_v19, %v391_v60  ;;  %v428_v21 = vsub.f32 1.0, %v427_v18  ;;  %v409_v47 = vadd.f32 1.0, %v6790_v45 }
 0x1b2   :  { %v636_v46 = vsub.f32 1.0, %v635_v44 }
 0x1b3   :  { %v429_v24 = vmul.f32 %v6786_v15, %v428_v21  ;;  %v7158_v26 = vmul.f32 %v482_v22, %v471_v20  ;;  %6791 = vrcp.f32 %v409_v47  ;;  %v452_v2 = vand.u32 2147483648, %v409_v47 }
 0x1b4   :  { %v637_v48 = vmul.f32 %v6788_v43, %v636_v46  ;;  %vm446_vm5 = vweird.f32 %v409_v47  ;;  %v450_v4 = vand.u32 2147483647, %v409_v47 }
 0x1b5   :  { %v430_v27 = vadd.f32 %v6786_v15, %v429_v24  ;;  %v622_v28 = vsel %vm8746_vm9, %v7158_v26, 0.0  ;;  %v453_v6 = vor.u32 1.1754944e-38, %v452_v2  ;;  %v6555_v24 = vld [vmem:[%s7203_s16 + $0x8] sm:$0xff]  ;;  %v7222_v2 = vld [vmem:[%s7186_s7] ss:$0 sm:$0xff] }
 0x1b6   :  { %623 = vadd.xlane.f32.xlu1 %v622_v28  ;;  %v638_v49 = vadd.f32 %v6788_v43, %v637_v48  ;;  %vm451_vm7 = vcmp.eq.f32.partialorder %v450_v4, 8.507059e+37  ;;  %765 = vmatpush.bf16.msrb.mxu0 %v6555_v24  ;;  %v6554_v28 = vld [vmem:[%s7203_s16] sm:$0xff] }
 0x1b7   :  { %v434_v30 = vsel %vm433_vm0, %v6786_v15, %v430_v27  ;;  %v384_v15 = vpop.f32.mrf.mxu3 }
 0x1b8   :  { %v439_v31 = vsel %vm436_vm2, %v438_v29, %v434_v30  ;;  %v7168_v51 = vsel %vm639_vm3, %v6788_v43, %v638_v49  ;;  %v385_v16 = vadd.f32 %v384_v15, %v347_v14 }
 0x1b9   :  { %v472_v32 = vmul.f32 %v439_v31, %v392_v1  ;;  %v6792_v50 = vpop.eup %6791 }
 0x1ba   :  { %v442_v54 = vmul.f32 %v6792_v50, %v409_v47  ;;  %vm447_vm4 = vweird.f32 %v6792_v50  ;;  %v394_v17 = vadd.f32 %v7154_v57, %v385_v16  ;;  %766 = vmatpush.bf16.msrb.mxu0 %v6554_v28 }
 0x1bb   :  { %v7162_v34 = vmul.f32 %v487_v33, %v472_v32  ;;  %vm448_vm6 = vmor %vm446_vm5, %vm447_vm4 }
 0x1bc   :  { %v443_v58 = vsub.f32 1.0, %v442_v54  ;;  %v5576_v18 = vmul.f32 -1.442695, %v394_v17 }
 0x1bd   :  { %v625_v35 = vsel %vm8746_vm9, %v7162_v34, 0.0 }
 0x1be   :  { %626 = vadd.xlane.f32.xlu2 %v625_v35  ;;  %v444_v62 = vmul.f32 %v6792_v50, %v443_v58  ;;  %6793 = vpow2.f32 %v5576_v18  ;;  %v7242_v18 = vld [vmem:[%s7232_s19] ss:$0 sm:$0xff] }
 0x1c0   :  { %v445_v1 = vadd.f32 %v6792_v50, %v444_v62 }
 0x1c2   :  { %v449_v5 = vsel %vm448_vm6, %v6792_v50, %v445_v1 }
 0x1c3   :  { %v454_v7 = vsel %vm451_vm7, %v453_v6, %v449_v5 }
 0x1c4   :  { %v473_v8 = vmul.f32 %v454_v7, %v393_v40  ;;  %v6794_v19 = vpop.eup %6793  ;;  %v7227_v7 = vld [vmem:[%s7192_s11] ss:$0 sm:$0xff] }
 0x1c5   :  { %v410_v20 = vadd.f32 1.0, %v6794_v19 }
 0x1c7   :  { %6795 = vrcp.f32 %v410_v20  ;;  %v467_v31 = vand.u32 2147483648, %v410_v20  ;;  %vm461_vm10 = vweird.f32 %v410_v20  ;;  %v465_v32 = vand.u32 2147483647, %v410_v20 }
 0x1c9   :  { %v468_v37 = vor.u32 1.1754944e-38, %v467_v31  ;;  %vm466_vm12 = vcmp.eq.f32.partialorder %v465_v32, 8.507059e+37 }
 0x1cd   :  { %v6796_v21 = vpop.eup %6795 }
 0x1ce   :  { %v457_v22 = vmul.f32 %v6796_v21, %v410_v20  ;;  %vm462_vm8 = vweird.f32 %v6796_v21 }
 0x1cf   :  { %491 = vperm.xlu1 %6744, %v477_v36   ;;  %vm463_vm11 = vmor %vm461_vm10, %vm462_vm8 }
 0x1d0   :  { %v458_v23 = vsub.f32 1.0, %v457_v22 }
 0x1d2   :  { %v459_v27 = vmul.f32 %v6796_v21, %v458_v23 }
 0x1d4   :  { %v460_v30 = vadd.f32 %v6796_v21, %v459_v27 }
 0x1d6   :  { %v464_v36 = vsel %vm463_vm11, %v6796_v21, %v460_v30  ;;  %vm8719_vm11 = vcmask 130048  }
 0x1d7   :  { %v469_v41 = vsel %vm466_vm12, %v468_v37, %v464_v36  ;;  %vm8718_vm12 = vcmask 1043456  }
 0x1d8   :  { %v474_v43 = vmul.f32 %v469_v41, %v394_v17 }
 0x229   :  { %v624_v52 = vpop.xlane.xlu1 %623 }
 0x22a   :  { %v641_v53 = vmul.f32 %v7168_v51, %v624_v52 }
 0x22c   :  { %v7172_v55 = vsub.f32 %v7158_v26, %v641_v53 }
 0x22e   :  { %v649_v56 = vmul.f32 %v7172_v55, %v7172_v55 }
 0x230   :  { %v653_v59 = vsel %vm8746_vm9, %v649_v56, 0.0 }
 0x231   :  { %654 = vadd.xlane.f32.xlu0 %v653_v59  ;;  %v627_v60 = vpop.xlane.xlu2 %626 }
 0x232   :  { %v642_v61 = vmul.f32 %v7168_v51, %v627_v60 }
 0x234   :  { %v7179_v63 = vsub.f32 %v7162_v34, %v642_v61 }
 0x236   :  { %v650_v0 = vmul.f32 %v7179_v63, %v7179_v63 }
 0x238   :  { %v656_v3 = vsel %vm8746_vm9, %v650_v0, 0.0 }
 0x239   :  { %657 = vadd.xlane.f32.xlu2 %v656_v3 }
 0x241   :  { %v492_v9 = vpop.permute.xlu1 %491 }
 0x242   :  { %v7194_v10 = vmul.f32 %v492_v9, %v473_v8 }
 0x244   :  { %v628_v11 = vsel %vm8746_vm9, %v7194_v10, 0.0 }
 0x245   :  { %629 = vadd.xlane.f32.xlu0 %v628_v11 }
 0x251   :  { %496 = vperm.xlu2 %6745, %v478_v13  }
 0x2a4   :  { %v655_v25 = vpop.xlane.xlu0 %654 }
 0x2a5   :  { %v665_v57 = vmul.f32 %v655_v25, %v7168_v51 }
 0x2a7   :  { %v669_v29 = vadd.f32 1e-05, %v665_v57 }
 0x2a9   :  { %6797 = vrsqrt.f32 %v669_v29  ;;  %vm679_vm14 = vweird.f32 %v669_v29 }
 0x2ac   :  { %v658_v33 = vpop.xlane.xlu2 %657 }
 0x2ad   :  { %v666_v35 = vmul.f32 %v658_v33, %v7168_v51 }
 0x2af   :  { %v6798_v38 = vpop.eup %6797  ;;  %v670_v39 = vadd.f32 1e-05, %v666_v35 }
 0x2b0   :  { %v674_v40 = vmul.f32 %v6798_v38, %v669_v29  ;;  %vm680_vm13 = vweird.f32 %v6798_v38 }
 0x2b1   :  { %6799 = vrsqrt.f32 %v670_v39  ;;  %vm681_vm15 = vmor %vm679_vm14, %vm680_vm13  ;;  %vm689_vm2 = vweird.f32 %v670_v39 }
 0x2b2   :  { %v675_v42 = vmul.f32 %v6798_v38, %v674_v40 }
 0x2b4   :  { %v676_v44 = vmul.f32 0.5, %v675_v42  ;;  %v497_v45 = vpop.permute.xlu2 %496 }
 0x2b5   :  { %v7209_v46 = vmul.f32 %v497_v45, %v474_v43 }
 0x2b6   :  { %v677_v47 = vsub.f32 1.5, %v676_v44 }
 0x2b7   :  { %v6800_v48 = vpop.eup %6799  ;;  %v631_v49 = vsel %vm8746_vm9, %v7209_v46, 0.0 }
 0x2b8   :  { %v678_v50 = vmul.f32 %v6798_v38, %v677_v47  ;;  %v684_v52 = vmul.f32 %v6800_v48, %v670_v39  ;;  %632 = vadd.xlane.f32.xlu0 %v631_v49  ;;  %v630_v53 = vpop.xlane.xlu0 %629  ;;  %vm690_vm0 = vweird.f32 %v6800_v48 }
 0x2b9   :  { %v643_v54 = vmul.f32 %v7168_v51, %v630_v53  ;;  %vm691_vm3 = vmor %vm689_vm2, %vm690_vm0 }
 0x2ba   :  { %v685_v56 = vmul.f32 %v6800_v48, %v684_v52  ;;  %v682_v59 = vsel %vm681_vm15, %v6798_v38, %v678_v50 }
 0x2bb   :  { %v7215_v58 = vsub.f32 %v7194_v10, %v643_v54  ;;  %v713_v0 = vmul.f32 %v682_v59, %v7172_v55 }
 0x2bc   :  { %v686_v60 = vmul.f32 0.5, %v685_v56 }
 0x2bd   :  { %v651_v61 = vmul.f32 %v7215_v58, %v7215_v58  ;;  %v720_v6 = vmul.f32 %v7222_v2, %v713_v0 }
 0x2be   :  { %v687_v62 = vsub.f32 1.5, %v686_v60 }
 0x2bf   :  { %v659_v1 = vsel %vm8746_vm9, %v651_v61, 0.0  ;;  %v727_v8 = vadd.f32 %v7227_v7, %v720_v6  ;;  %v5595_v6 = vld [vmem:[%s7276_s28 + $0x20] sm:$0xff] }
 0x2c0   :  { %v688_v3 = vmul.f32 %v6800_v48, %v687_v62  ;;  %660 = vadd.xlane.f32.xlu0 %v659_v1  ;;  %v5589_v1 = vld [vmem:[%s7276_s28 + $0x10] sm:$0xff] }
 0x2c2   :  { %v692_v4 = vsel %vm691_vm3, %v6800_v48, %v688_v3 }
 0x2c3   :  { %v714_v5 = vmul.f32 %v692_v4, %v7179_v63 }
 0x2c5   :  { %v721_v55 = vmul.f32 %v7222_v2, %v714_v5 }
 0x2c7   :  { %v728_v9 = vadd.f32 %v7227_v7, %v721_v55 }
 0x2c9   :  { %v731_v11 = vpack.c.bf16 %v728_v9, %v727_v8 }
 0x2cb   :  { %5585 = vmatmul.msk.bf16.vlgmr.msrb.gmra.mxu0 %vm8746_vm9, %v731_v11 }
 0x32b   :  { %v633_v63 = vpop.xlane.xlu0 %632 }
 0x32c   :  { %v644_v13 = vmul.f32 %v7168_v51, %v633_v63 }
 0x32e   :  { %v648_v14 = vsub.f32 %v7209_v46, %v644_v13 }
 0x330   :  { %v652_v15 = vmul.f32 %v648_v14, %v648_v14 }
 0x332   :  { %v662_v16 = vsel %vm8746_vm9, %v652_v15, 0.0 }
 0x333   :  { %663 = vadd.xlane.f32.xlu1 %v662_v16  ;;  %v661_v23 = vpop.xlane.xlu0 %660 }
 0x334   :  { %v667_v24 = vmul.f32 %v661_v23, %v7168_v51 }
 0x336   :  { %v671_v25 = vadd.f32 1e-05, %v667_v24 }
 0x338   :  { %6801 = vrsqrt.f32 %v671_v25  ;;  %vm699_vm5 = vweird.f32 %v671_v25 }
 0x33e   :  { %v6802_v57 = vpop.eup %6801 }
 0x33f   :  { %v694_v27 = vmul.f32 %v6802_v57, %v671_v25  ;;  %vm700_vm4 = vweird.f32 %v6802_v57 }
 0x340   :  { %vm701_vm6 = vmor %vm699_vm5, %vm700_vm4 }
 0x341   :  { %v695_v28 = vmul.f32 %v6802_v57, %v694_v27 }
 0x343   :  { %v696_v32 = vmul.f32 0.5, %v695_v28 }
 0x345   :  { %v697_v33 = vsub.f32 1.5, %v696_v32 }
 0x347   :  { %v698_v38 = vmul.f32 %v6802_v57, %v697_v33 }
 0x348   :  { %v768_v17 = vpop.f32.mrf.mxu0 }
 0x349   :  { %v769_v20 = vadd.f32 %v7242_v18, %v768_v17  ;;  %v702_v41 = vsel %vm701_vm6, %v6802_v57, %v698_v38 }
 0x34a   :  { %v715_v47 = vmul.f32 %v702_v41, %v7215_v58  ;;  %v783_v41 = vld [vmem:[%s7276_s28] sm:$0xff] }
 0x34c   :  { %v722_v52 = vmul.f32 %v7222_v2, %v715_v47  ;;  %v784_v47 = vld [vmem:[%s7276_s28 + $0x8] sm:$0xff] }
 0x34e   :  { %v729_v54 = vadd.f32 %v7227_v7, %v722_v52 }
 0x350   :  { %v770_v19 = vpop.f32.mrf.mxu0 }
 0x351   :  { %v771_v21 = vadd.f32 %v7242_v18, %v770_v19 }
 0x353   :  { %v7246_v22 = vpack.c.bf16 %v771_v21, %v769_v20 }
 0x355   :  { %858 = vrot.lane.b32.xlu2 %v7246_v22, %s8737_s20  ;;  %856 = vrot.lane.b32.xlu0 %v7246_v22, %s8739_s21 }
 0x35d   :  { %970 = vrot.lane.b32.xlu2 %v7246_v22, %s7073_s22  ;;  %786 = vrot.lane.b32.xlu0 %v7246_v22, %s8735_s23 }
 0x365   :  { %968 = vrot.lane.b32.xlu2 %v7246_v22, %s8733_s24 }
 0x3a6   :  { %v664_v29 = vpop.xlane.xlu1 %663 }
 0x3a7   :  { %v668_v30 = vmul.f32 %v664_v29, %v7168_v51 }
 0x3a9   :  { %v672_v31 = vadd.f32 1e-05, %v668_v30 }
 0x3ab   :  { %6803 = vrsqrt.f32 %v672_v31  ;;  %vm709_vm8 = vweird.f32 %v672_v31 }
 0x3af   :  { %v859_v35 = vpop.permute.xlu2 %858 }
 0x3b0   :  { %v864_v36 = vsel %vm8720_vm1, %v859_v35, 0 }
 0x3b1   :  { %v6804_v37 = vpop.eup %6803  ;;  %873 = vmatpush.bf16.xpose.msrb.mxu3 %v864_v36 }
 0x3b2   :  { %v704_v39 = vmul.f32 %v6804_v37, %v672_v31  ;;  %vm710_vm7 = vweird.f32 %v6804_v37 }
 0x3b3   :  { %vm711_vm10 = vmor %vm709_vm8, %vm710_vm7 }
 0x3b4   :  { %v705_v40 = vmul.f32 %v6804_v37, %v704_v39 }
 0x3b6   :  { %v706_v42 = vmul.f32 0.5, %v705_v40 }
 0x3b7   :  { %v971_v43 = vpop.permute.xlu2 %970 }
 0x3b8   :  { %v707_v44 = vsub.f32 1.5, %v706_v42  ;;  %v976_v45 = vsel %vm8720_vm1, %v971_v43, 0 }
 0x3b9   :  { %985 = vmatpush.bf16.xpose.msra.mxu0 %v976_v45 }
 0x3ba   :  { %v708_v48 = vmul.f32 %v6804_v37, %v707_v44 }
 0x3bc   :  { %v712_v49 = vsel %vm711_vm10, %v6804_v37, %v708_v48 }
 0x3bd   :  { %v716_v50 = vmul.f32 %v712_v49, %v648_v14  ;;  %v5596_v14 = vld [vmem:[%s7276_s28 + $0x28] sm:$0xff] }
 0x3bf   :  { %v723_v53 = vmul.f32 %v7222_v2, %v716_v50  ;;  %v969_v62 = vpop.permute.xlu2 %968 }
 0x3c1   :  { %v730_v56 = vadd.f32 %v7227_v7, %v723_v53  ;;  %v5590_v7 = vld [vmem:[%s7276_s28 + $0x18] sm:$0xff] }
 0x3c3   :  { %v732_v59 = vpack.c.bf16 %v730_v56, %v729_v54 }
 0x3c5   :  { %5586 = vmatmul.msk.bf16.gmra.mxu0 %vm8746_vm9, %v732_v59 }
 0x3c7   :  { %v857_v60 = vpop.permute.xlu0 %856 }
 0x3c8   :  { %5591 = vmatmul.msk.bf16.vlgmr.msrb.gmra.mxu3 %vm8720_vm1, %v857_v60 }
 0x3cf   :  { %v787_v58 = vpop.permute.xlu0 %786 }
 0x3d0   :  { %v792_v61 = vsel %vm8720_vm1, %v787_v58, 0 }
 0x3d1   :  { %801 = vmatpush.bf16.xpose.msrb.mxu1 %v792_v61 }
 0x3d5   :  { %5597 = vmatmul.msk.bf16.vlgmr.msra.gmra.mxu0 %vm8720_vm1, %v969_v62 }
 0x3d8   :  { %5587 = vmatmul.msk.bf16.vlgmr.msrb.gmra.mxu1 %vm8720_vm1, %v7246_v22 }
 0x442   :  { %v7278_v0 = vpop.f32.mrf.mxu0 }
 0x44a   :  { %v7281_v2 = vpop.f32.mrf.mxu0 }
 0x44b   :  { %v875_v3 = vpop.f32.mrf.mxu3 }
 0x44c   :  { %v876_v4 = vadd.f32 %v5589_v1, %v875_v3 }
 0x44e   :  { %v880_v5 = vsel %vm8719_vm11, %v876_v4, -inf }
 0x44f   :  { %881 = vmax.xlane.f32.xlu2 %v880_v5 }
 0x452   :  { %v987_v55 = vpop.f32.mrf.mxu0 }
 0x453   :  { %v988_v8 = vadd.f32 %v5595_v6, %v987_v55  ;;  %v877_v9 = vpop.f32.mrf.mxu3  ;;  %v778_v6 = vld [vmem:[%s7317_s8] sm:$0xf] }
 0x454   :  { %v878_v11 = vadd.f32 %v5590_v7, %v877_v9  ;;  %v7321_v55 = vsel %vm8718_vm12, %v778_v6, 0  ;;  %v5600_v6 = vld [vmem:[%s7276_s28 + $0x30] sm:$0xff] }
 0x455   :  { %v992_v63 = vsel %vm8719_vm11, %v988_v8, -inf  ;;  %v803_v38 = vpop.f32.mrf.mxu1  ;;  %958 = vmatpush.bf16.msra.mxu3 %v7321_v55 }
 0x456   :  { %993 = vmax.xlane.f32.xlu1 %v992_v63  ;;  %v883_v13 = vsel %vm8719_vm11, %v878_v11, -inf  ;;  %v804_v42 = vadd.f32 %v803_v38, %v783_v41 }
 0x457   :  { %884 = vmax.xlane.f32.xlu0 %v883_v13 }
 0x458   :  { %v809_v44 = vsel %vm8719_vm11, %v804_v42, -inf }
 0x45a   :  { %v989_v15 = vpop.f32.mrf.mxu0 }
 0x45b   :  { %v990_v16 = vadd.f32 %v5596_v14, %v989_v15 }
 0x45d   :  { %v995_v17 = vsel %vm8719_vm11, %v990_v16, -inf  ;;  %v805_v48 = vpop.f32.mrf.mxu1 }
 0x45e   :  { %996 = vmax.xlane.f32.xlu1 %v995_v17  ;;  %v806_v49 = vadd.f32 %v805_v48, %v784_v47 }
 0x460   :  { %v812_v50 = vsel %vm8719_vm11, %v806_v49, -inf }
 0x467   :  { %903 = vrot.lane.b32.xlu2 %v7246_v22, %s8731_s29 }
 0x4c2   :  { %v882_v19 = vpop.xlane.xlu2 %881 }
 0x4c3   :  { %v886_v24 = vsub.f32 %v876_v4, %v882_v19 }
 0x4c5   :  { %v888_v57 = vmul.f32 1.442695, %v886_v24  ;;  %v774_v24 = vadd.f32 %v7242_v18, %v7278_v0 }
 0x4c9   :  { %v994_v20 = vpop.xlane.xlu1 %993 }
 0x4ca   :  { %v998_v21 = vsub.f32 %v988_v8, %v994_v20  ;;  %v904_v23 = vpop.permute.xlu2 %903  ;;  %v885_v27 = vpop.xlane.xlu0 %884 }
 0x4cb   :  { %916 = vmatpush.bf16.msra.mxu1 %v904_v23  ;;  %v887_v31 = vsub.f32 %v878_v11, %v885_v27  ;;  %v776_v23 = vadd.f32 %v7242_v18, %v7281_v2  ;;  %v780_v18 = vld [vmem:[%s7317_s8 + $0x8] sm:$0xf] }
 0x4cc   :  { %v1000_v25 = vmul.f32 1.442695, %v998_v21 }
 0x4cd   :  { %v890_v35 = vmul.f32 1.442695, %v887_v31 }
 0x4ce   :  { %6805 = vpow2.f32 %v1000_v25  ;;  %v7334_v25 = vpack.c.bf16 %v776_v23, %v774_v24 }
 0x4cf   :  { %6807 = vpow2.f32 %v888_v57 }
 0x4d1   :  { %v997_v28 = vpop.xlane.xlu1 %996 }
 0x4d2   :  { %v999_v29 = vsub.f32 %v990_v16, %v997_v28  ;;  %v779_v28 = vld [vmem:[%s7317_s8 + $0x4] sm:$0xf] }
 0x4d4   :  { %v7292_v30 = vpop.eup %6805  ;;  %v1002_v32 = vmul.f32 1.442695, %v999_v29  ;;  %v929_v29 = vsel %vm8718_vm12, %v779_v28, 0 }
 0x4d5   :  { %v1004_v33 = vsel %vm8719_vm11, %v7292_v30, 0.0  ;;  %v6808_v36 = vpop.eup %6807 }
 0x4d6   :  { %6809 = vpow2.f32 %v1002_v32  ;;  %1005 = vadd.xlane.f32.xlu1 %v1004_v33  ;;  %v892_v40 = vsel %vm8719_vm11, %v6808_v36, 0.0 }
 0x4d7   :  { %6811 = vpow2.f32 %v890_v35 }
 0x4dc   :  { %v7296_v37 = vpop.eup %6809 }
 0x4dd   :  { %v1007_v39 = vsel %vm8719_vm11, %v7296_v37, 0.0  ;;  %v6812_v43 = vpop.eup %6811 }
 0x4de   :  { %1008 = vadd.xlane.f32.xlu0 %v1007_v39  ;;  %893 = vadd.xlane.f32.xlu1 %v892_v40  ;;  %v895_v45 = vsel %vm8719_vm11, %v6812_v43, 0.0 }
 0x4e6   :  { %810 = vmax.xlane.f32.xlu0 %v809_v44  ;;  %896 = vadd.xlane.f32.xlu1 %v895_v45 }
 0x4ee   :  { %813 = vmax.xlane.f32.xlu0 %v812_v50 }
 0x4ff   :  { %1015 = vrot.lane.b32.xlu1 %v7246_v22, %s8728_s30 }
 0x507   :  { %832 = vrot.lane.b32.xlu1 %v7246_v22, %s8723_s1 }
 0x50f   :  { %1063 = vrot.lane.b32.xlu1 %v7246_v22, %s8721_s2 }
 0x517   :  { %1061 = vrot.lane.b32.xlu1 %v7246_v22, %s8716_s3 }
 0x549   :  { %v1006_v52 = vpop.xlane.xlu1 %1005 }
 0x551   :  { %v894_v53 = vpop.xlane.xlu1 %893  ;;  %v1009_v54 = vpop.xlane.xlu0 %1008 }
 0x552   :  { %6813 = vrcp.f32 %v894_v53 }
 0x558   :  { %v6814_v61 = vpop.eup %6813 }
 0x559   :  { %v897_v56 = vpop.xlane.xlu1 %896  ;;  %v811_v59 = vpop.xlane.xlu0 %810  ;;  %v900_v1 = vmul.f32 %v6814_v61, %v6808_v36  ;;  %v5606_v61 = vld [vmem:[%s7276_s28 + $0x88] sm:$0xff] }
 0x55a   :  { %6815 = vrcp.f32 %v897_v56  ;;  %v815_v60 = vsub.f32 %v804_v42, %v811_v59  ;;  %v5605_v56 = vld [vmem:[%s7276_s28 + $0x80] sm:$0xff] }
 0x55c   :  { %v817_v58 = vmul.f32 1.442695, %v815_v60 }
 0x55e   :  { %6817 = vpow2.f32 %v817_v58 }
 0x55f   :  { %6819 = vrcp.f32 %v1009_v54 }
 0x560   :  { %v6816_v62 = vpop.eup %6815 }
 0x561   :  { %v901_v3 = vmul.f32 %v6816_v62, %v6812_v43  ;;  %v814_v4 = vpop.xlane.xlu0 %813 }
 0x562   :  { %v816_v5 = vsub.f32 %v806_v49, %v814_v4 }
 0x563   :  { %v902_v7 = vpack.c.bf16 %v901_v3, %v900_v1 }
 0x564   :  { %v6818_v8 = vpop.eup %6817  ;;  %v819_v9 = vmul.f32 1.442695, %v816_v5 }
 0x565   :  { %5592 = vmatmul.msk.bf16.vlgmr.msra.gmra.mxu1 %vm8719_vm11, %v902_v7  ;;  %v821_v11 = vsel %vm8719_vm11, %v6818_v8, 0.0  ;;  %v6820_v63 = vpop.eup %6819 }
 0x566   :  { %6821 = vpow2.f32 %v819_v9  ;;  %822 = vadd.xlane.f32.xlu2 %v821_v11  ;;  %v1013_v16 = vmul.f32 %v6820_v63, %v7296_v37  ;;  %v1040_v37 = vsel %vm8718_vm12, %v780_v18, 0  ;;  %v5601_v11 = vld [vmem:[%s7276_s28 + $0x38] sm:$0xff] }
 0x567   :  { %6823 = vrcp.f32 %v1006_v52 }
 0x56c   :  { %v6822_v13 = vpop.eup %6821 }
 0x56d   :  { %v824_v14 = vsel %vm8719_vm11, %v6822_v13, 0.0  ;;  %v6824_v15 = vpop.eup %6823 }
 0x56e   :  { %825 = vadd.xlane.f32.xlu0 %v824_v14  ;;  %v1012_v17 = vmul.f32 %v6824_v15, %v7292_v30 }
 0x570   :  { %v1014_v20 = vpack.c.bf16 %v1013_v16, %v1012_v17 }
 0x571   :  { %v1016_v19 = vpop.permute.xlu1 %1015 }
 0x572   :  { %1028 = vmatpush.bf16.msrb.mxu1 %v1016_v19 }
 0x575   :  { %5598 = vmatmul.msk.bf16.vlgmr.msrb.gmra.mxu1 %vm8719_vm11, %v1014_v20 }
 0x579   :  { %v833_v21 = vpop.permute.xlu1 %832 }
 0x57a   :  { %845 = vmatpush.bf16.msrb.mxu2 %v833_v21 }
 0x57e   :  { %938 = vmatpush.bf16.msra.mxu2 %v929_v29 }
 0x581   :  { %v1064_v57 = vpop.permute.xlu1 %1063 }
 0x582   :  { %v1069_v27 = vsel %vm8720_vm1, %v1064_v57, 0  ;;  %1164 = vrot.lane.b32.xlu0 %v7334_v25, %s8735_s23  ;;  %s8785_s23 = smov 48  }
 0x583   :  { %1078 = vmatpush.bf16.xpose.msrb.mxu3 %v1069_v27 }
 0x589   :  { %v1062_v52 = vpop.permute.xlu1 %1061 }
 0x5d9   :  { %v823_v30 = vpop.xlane.xlu2 %822 }
 0x5da   :  { %6825 = vrcp.f32 %v823_v30 }
 0x5e0   :  { %v6826_v31 = vpop.eup %6825 }
 0x5e1   :  { %v826_v2 = vpop.xlane.xlu0 %825  ;;  %v829_v0 = vmul.f32 %v6826_v31, %v6818_v8 }
 0x5e2   :  { %6827 = vrcp.f32 %v826_v2  ;;  %v918_v35 = vpop.f32.mrf.mxu1 }
 0x5e8   :  { %v6828_v32 = vpop.eup %6827 }
 0x5e9   :  { %v830_v33 = vmul.f32 %v6828_v32, %v6822_v13 }
 0x5ea   :  { %v920_v38 = vpop.f32.mrf.mxu1 }
 0x5eb   :  { %v831_v36 = vpack.c.bf16 %v830_v33, %v829_v0  ;;  %v923_v40 = vpack.c.bf16 %v920_v38, %v918_v35 }
 0x5ed   :  { %5588 = vmatmul.msk.bf16.vlgmr.msrb.gmra.mxu2 %vm8719_vm11, %v831_v36 }
 0x5ee   :  { %1049 = vmatpush.bf16.msrb.mxu2 %v1040_v37 }
 0x5f2   :  { %v1030_v42 = vpop.f32.mrf.mxu1 }
 0x5f4   :  { %v1165_v39 = vpop.permute.xlu0 %1164 }
 0x5f5   :  { %v1170_v41 = vsel %vm8720_vm1, %v1165_v39, 0 }
 0x5fa   :  { %v1032_v43 = vpop.f32.mrf.mxu1 }
 0x5fb   :  { %v1035_v44 = vpack.c.bf16 %v1032_v43, %v1030_v42 }
 0x5fd   :  { %5593 = vmatmul.msk.bf16.vlgmr.msra.gmra.mxu2 %vm8720_vm1, %v923_v40 }
 0x5fe   :  { %1179 = vmatpush.bf16.xpose.msra.mxu2 %v1170_v41 }
 0x60d   :  { %5599 = vmatmul.msk.bf16.vlgmr.msrb.gmra.mxu2 %vm8720_vm1, %v1035_v44 }
 0x60e   :  { %1311 = vmatpush.bf16.msrb.mxu2 %v929_v29 }
 0x61d   :  { %5607 = vmatmul.msk.bf16.vlgmr.msra.gmra.mxu2 %vm8720_vm1, %v7334_v25 }
 0x61e   :  { %1416 = vmatpush.bf16.msra.mxu2 %v1040_v37 }
 0x670   :  { %v847_v45 = vpop.f32.mrf.mxu2 }
 0x678   :  { %v849_v47 = vpop.f32.mrf.mxu2 }
 0x679   :  { %v852_v48 = vpack.c.bf16 %v849_v47, %v847_v45 }
 0x67b   :  { %5594 = vmatmul.msk.bf16.vlgmr.msra.gmra.mxu3 %vm8720_vm1, %v852_v48 }
 0x680   :  { %v7350_v49 = vpop.f32.mrf.mxu2 }
 0x688   :  { %v7352_v50 = vpop.f32.mrf.mxu2 }
 0x68b   :  { %5602 = vmatmul.msk.bf16.vlgmr.msrb.gmra.mxu3 %vm8720_vm1, %v1062_v52 }
 0x690   :  { %v7355_v53 = vpop.f32.mrf.mxu2 }
 0x698   :  { %v7357_v54 = vpop.f32.mrf.mxu2 }
 0x6a0   :  { %v1181_v59 = vpop.f32.mrf.mxu2 }
 0x6a1   :  { %v1182_v60 = vadd.f32 %v5605_v56, %v1181_v59 }
 0x6a3   :  { %v1186_v58 = vsel %vm8719_vm11, %v1182_v60, -inf }
 0x6a4   :  { %1187 = vmax.xlane.f32.xlu0 %v1186_v58 }
 0x6a8   :  { %v1183_v62 = vpop.f32.mrf.mxu2 }
 0x6a9   :  { %v1184_v1 = vadd.f32 %v5606_v61, %v1183_v62 }
 0x6ab   :  { %v1189_v3 = vsel %vm8719_vm11, %v1184_v1, -inf }
 0x6ac   :  { %1190 = vmax.xlane.f32.xlu1 %v1189_v3 }
 0x6fe   :  { %v7363_v4 = vpop.f32.mrf.mxu3 }
 0x706   :  { %v7365_v5 = vpop.f32.mrf.mxu3 }
 0x70e   :  { %v1080_v7 = vpop.f32.mrf.mxu3 }
 0x70f   :  { %v1081_v8 = vadd.f32 %v5600_v6, %v1080_v7 }
 0x711   :  { %v1085_v9 = vsel %vm8719_vm11, %v1081_v8, -inf }
 0x712   :  { %1086 = vmax.xlane.f32.xlu0 %v1085_v9 }
 0x716   :  { %v1082_v63 = vpop.f32.mrf.mxu3 }
 0x717   :  { %v1083_v13 = vadd.f32 %v5601_v11, %v1082_v63  ;;  %v1188_v14 = vpop.xlane.xlu0 %1187  ;;  %v781_v63 = vld [vmem:[%s7317_s8 + $0xc] sm:$0xf] }
 0x718   :  { %v1192_v15 = vsub.f32 %v1182_v60, %v1188_v14 }
 0x719   :  { %v1088_v16 = vsel %vm8719_vm11, %v1083_v13, -inf }
 0x71a   :  { %v1194_v17 = vmul.f32 1.442695, %v1192_v15  ;;  %1089 = vmax.xlane.f32.xlu1 %v1088_v16 }
 0x71c   :  { %6829 = vpow2.f32 %v1194_v17  ;;  %v5609_v17 = vld [vmem:[%s7276_s28 + $0x90] sm:$0xff] }
 0x71f   :  { %v1191_v19 = vpop.xlane.xlu1 %1190 }
 0x720   :  { %v1193_v20 = vsub.f32 %v1184_v1, %v1191_v19 }
 0x722   :  { %v6830_v21 = vpop.eup %6829  ;;  %v1196_v23 = vmul.f32 1.442695, %v1193_v20 }
 0x723   :  { %v1198_v24 = vsel %vm8719_vm11, %v6830_v21, 0.0 }
 0x724   :  { %6831 = vpow2.f32 %v1196_v23  ;;  %1199 = vadd.xlane.f32.xlu2 %v1198_v24  ;;  %v5610_v23 = vld [vmem:[%s7276_s28 + $0x98] sm:$0xff] }
 0x72a   :  { %v6832_v57 = vpop.eup %6831 }
 0x72b   :  { %v1201_v27 = vsel %vm8719_vm11, %v6832_v57, 0.0 }
 0x72c   :  { %1202 = vadd.xlane.f32.xlu2 %v1201_v27 }
 0x733   :  { %1108 = vrot.lane.b32.xlu1 %v7246_v22, %s8714_s9 }
 0x73b   :  { %1233 = vrot.lane.b32.xlu1 %v7334_v25, %s8739_s21 }
 0x743   :  { %1430 = vrot.lane.b32.xlu1 %v7334_v25, %s8721_s2 }
 0x744   :  { %1209 = vrot.lane.b32.xlu2 %v7334_v25, %s8723_s1 }
 0x785   :  { %v1087_v28 = vpop.xlane.xlu0 %1086 }
 0x786   :  { %v1091_v29 = vsub.f32 %v1081_v8, %v1087_v28  ;;  %v5615_v28 = vld [vmem:[%s7276_s28 + $0xa0] sm:$0xff] }
 0x788   :  { %v1093_v30 = vmul.f32 1.442695, %v1091_v29 }
 0x78a   :  { %6833 = vpow2.f32 %v1093_v30 }
 0x78d   :  { %v1090_v2 = vpop.xlane.xlu1 %1089 }
 0x78e   :  { %v1092_v31 = vsub.f32 %v1083_v13, %v1090_v2  ;;  %v7403_v13 = vsel %vm8718_vm12, %v781_v63, 0 }
 0x78f   :  { %1142 = vmatpush.bf16.msra.mxu1 %v7403_v13 }
 0x790   :  { %v6834_v32 = vpop.eup %6833  ;;  %v1095_v18 = vmul.f32 1.442695, %v1092_v31 }
 0x791   :  { %v1097_v0 = vsel %vm8719_vm11, %v6834_v32, 0.0 }
 0x792   :  { %6835 = vpow2.f32 %v1095_v18  ;;  %1098 = vadd.xlane.f32.xlu2 %v1097_v0 }
 0x797   :  { %v1200_v22 = vpop.xlane.xlu2 %1199 }
 0x798   :  { %v6836_v33 = vpop.eup %6835  ;;  %6837 = vrcp.f32 %v1200_v22 }
 0x799   :  { %v1100_v35 = vsel %vm8719_vm11, %v6836_v33, 0.0 }
 0x79a   :  { %1101 = vadd.xlane.f32.xlu0 %v1100_v35  ;;  %v5620_v35 = vld [vmem:[%s7276_s28 + $0xb0] sm:$0xff] }
 0x79e   :  { %v6838_v37 = vpop.eup %6837 }
 0x79f   :  { %v1203_v36 = vpop.xlane.xlu2 %1202  ;;  %v1206_v40 = vmul.f32 %v6838_v37, %v6830_v21 }
 0x7a0   :  { %6839 = vrcp.f32 %v1203_v36 }
 0x7a5   :  { %v1109_v38 = vpop.permute.xlu1 %1108 }
 0x7a6   :  { %v6840_v39 = vpop.eup %6839  ;;  %1121 = vmatpush.bf16.msrb.mxu0 %v1109_v38 }
 0x7a7   :  { %v1207_v41 = vmul.f32 %v6840_v39, %v6832_v57  ;;  %v1210_v42 = vpop.permute.xlu2 %1209  ;;  %v5621_v39 = vld [vmem:[%s7276_s28 + $0xb8] sm:$0xff] }
 0x7a8   :  { %1222 = vmatpush.bf16.msra.mxu3 %v1210_v42 }
 0x7a9   :  { %v1208_v43 = vpack.c.bf16 %v1207_v41, %v1206_v40 }
 0x7aa   :  { %1428 = vrot.lane.b32.xlu2 %v7334_v25, %s8716_s3  ;;  %s7579_s3 = sld [smem:[%s8713_s0 + %s7092_s13]]   ;;  %s7094_s13 = smov 29  }
 0x7ab   :  { %5608 = vmatmul.msk.bf16.vlgmr.msra.gmra.mxu3 %vm8719_vm11, %v1208_v43  ;;  %v961_v43 = vadd.f32 %v7363_v4, %v7350_v49  ;;  %s7701_s27 = sld [smem:[%s8713_s0 + %s7094_s13]]   ;;  %s8788_s13 = smov 104  }
 0x7ac   :  { %1328 = vmatpush.bf16.msrb.mxu3 %v7321_v55 }
 0x7ad   :  { %v1234_v44 = vpop.permute.xlu1 %1233 }
 0x7ae   :  { %1235 = vrot.lane.b32.xlu0 %v7334_v25, %s8737_s20  ;;  %s8779_s20 = smov 56  }
 0x7b5   :  { %v1431_v45 = vpop.permute.xlu1 %1430 }
 0x7b6   :  { %v1436_v47 = vsel %vm8720_vm1, %v1431_v45, 0  ;;  %1340 = vrot.lane.b32.xlu0 %v7334_v25, %s7073_s22  ;;  %v1056_v45 = vadd.f32 %v7355_v53, %v961_v43 }
 0x7b7   :  { %1445 = vmatpush.bf16.xpose.msra.mxu3 %v1436_v47  ;;  %v6750_v47 = vld [vmem:[%s7409_s15] ss:$0 sm:$0xff] }
 0x7be   :  { %1338 = vrot.lane.b32.xlu0 %v7334_v25, %s8733_s24  ;;  %s7101_s24 = smov 34  }
 0x7bf   :  { %s8025_s21 = sld [smem:[%s8713_s0 + %s7101_s24]]   ;;  %s8786_s24 = smov 64  }
 0x805   :  { %v1099_v55 = vpop.xlane.xlu2 %1098 }
 0x806   :  { %6841 = vrcp.f32 %v1099_v55 }
 0x80c   :  { %v6842_v52 = vpop.eup %6841 }
 0x80d   :  { %v1102_v48 = vpop.xlane.xlu0 %1101  ;;  %v1105_v59 = vmul.f32 %v6842_v52, %v6834_v32  ;;  %v1429_v11 = vpop.permute.xlu2 %1428  ;;  %v5616_v32 = vld [vmem:[%s7276_s28 + $0xa8] sm:$0xff] }
 0x80e   :  { %6843 = vrcp.f32 %v1102_v48 }
 0x814   :  { %v6844_v56 = vpop.eup %6843 }
 0x815   :  { %v1106_v60 = vmul.f32 %v6844_v56, %v6836_v33 }
 0x817   :  { %v1107_v58 = vpack.c.bf16 %v1106_v60, %v1105_v59  ;;  %v963_v59 = vadd.f32 %v7365_v5, %v7352_v50 }
 0x819   :  { %5603 = vmatmul.msk.bf16.vlgmr.msrb.gmra.mxu0 %vm8719_vm11, %v1107_v58 }
 0x820   :  { %v1236_v61 = vpop.permute.xlu0 %1235 }
 0x821   :  { %v1241_v62 = vsel %vm8720_vm1, %v1236_v61, 0  ;;  %v1057_v61 = vadd.f32 %v7357_v54, %v963_v59 }
 0x822   :  { %1250 = vmatpush.bf16.xpose.msra.mxu0 %v1241_v62 }
 0x828   :  { %v1341_v1 = vpop.permute.xlu0 %1340 }
 0x829   :  { %v1346_v3 = vsel %vm8720_vm1, %v1341_v1, 0  ;;  %5611 = vmatmul.msk.bf16.vlgmr.msra.gmra.mxu0 %vm8720_vm1, %v1234_v44 }
 0x82a   :  { %1355 = vmatpush.bf16.xpose.msrb.mxu0 %v1346_v3 }
 0x82e   :  { %v1224_v6 = vpop.f32.mrf.mxu3 }
 0x830   :  { %v1339_v9 = vpop.permute.xlu0 %1338 }
 0x836   :  { %v1226_v7 = vpop.f32.mrf.mxu3 }
 0x837   :  { %v1229_v8 = vpack.c.bf16 %v1226_v7, %v1224_v6 }
 0x839   :  { %5614 = vmatmul.msk.bf16.vlgmr.msrb.gmra.mxu3 %vm8720_vm1, %v1229_v8  ;;  %5617 = vmatmul.msk.bf16.vlgmr.msrb.gmra.mxu0 %vm8720_vm1, %v1339_v9 }
 0x849   :  { %5622 = vmatmul.msk.bf16.vlgmr.msra.gmra.mxu3 %vm8720_vm1, %v1429_v11 }
 0x896   :  { %v1123_v14 = vpop.f32.mrf.mxu0 }
 0x89e   :  { %v1125_v15 = vpop.f32.mrf.mxu0 }
 0x89f   :  { %v1128_v16 = vpack.c.bf16 %v1125_v15, %v1123_v14 }
 0x8a1   :  { %5604 = vmatmul.msk.bf16.vlgmr.msra.gmra.mxu1 %vm8720_vm1, %v1128_v16 }
 0x8a6   :  { %v1252_v19 = vpop.f32.mrf.mxu0 }
 0x8a7   :  { %v1253_v20 = vadd.f32 %v5609_v17, %v1252_v19 }
 0x8a9   :  { %v1257_v21 = vsel %vm8719_vm11, %v1253_v20, -inf }
 0x8aa   :  { %1258 = vmax.xlane.f32.xlu1 %v1257_v21 }
 0x8ae   :  { %v1254_v24 = vpop.f32.mrf.mxu0 }
 0x8af   :  { %v1255_v57 = vadd.f32 %v5610_v23, %v1254_v24 }
 0x8b1   :  { %v1260_v27 = vsel %vm8719_vm11, %v1255_v57, -inf }
 0x8b2   :  { %1261 = vmax.xlane.f32.xlu0 %v1260_v27 }
 0x8b6   :  { %v1357_v29 = vpop.f32.mrf.mxu0 }
 0x8b7   :  { %v1358_v30 = vadd.f32 %v5615_v28, %v1357_v29 }
 0x8b9   :  { %v1362_v2 = vsel %vm8719_vm11, %v1358_v30, -inf }
 0x8ba   :  { %1363 = vmax.xlane.f32.xlu2 %v1362_v2 }
 0x8bc   :  { %v7418_v31 = vpop.f32.mrf.mxu3 }
 0x8be   :  { %v1359_v18 = vpop.f32.mrf.mxu0 }
 0x8bf   :  { %v1360_v0 = vadd.f32 %v5616_v32, %v1359_v18 }
 0x8c1   :  { %v1365_v22 = vsel %vm8719_vm11, %v1360_v0, -inf }
 0x8c2   :  { %1366 = vmax.xlane.f32.xlu1 %v1365_v22 }
 0x8c4   :  { %v7422_v33 = vpop.f32.mrf.mxu3 }
 0x8cc   :  { %v1447_v36 = vpop.f32.mrf.mxu3 }
 0x8cd   :  { %v1448_v37 = vadd.f32 %v5620_v35, %v1447_v36 }
 0x8cf   :  { %v1452_v38 = vsel %vm8719_vm11, %v1448_v37, -inf }
 0x8d0   :  { %1453 = vmax.xlane.f32.xlu0 %v1452_v38 }
 0x8d4   :  { %v1449_v40 = vpop.f32.mrf.mxu3 }
 0x8d5   :  { %v1450_v41 = vadd.f32 %v5621_v39, %v1449_v40 }
 0x8d7   :  { %v1455_v42 = vsel %vm8719_vm11, %v1450_v41, -inf }
 0x8d8   :  { %1456 = vmax.xlane.f32.xlu1 %v1455_v42 }
 0x91d   :  { %v1259_v44 = vpop.xlane.xlu1 %1258 }
 0x91e   :  { %v1263_v55 = vsub.f32 %v1253_v20, %v1259_v44  ;;  %v1144_v48 = vpop.f32.mrf.mxu1 }
 0x91f   :  { %v1149_v52 = vadd.f32 %v1144_v48, %v1056_v45 }
 0x920   :  { %v1265_v56 = vmul.f32 1.442695, %v1263_v55 }
 0x921   :  { %v1155_v60 = vadd.f32 %v6750_v47, %v1149_v52 }
 0x922   :  { %6845 = vpow2.f32 %v1265_v56 }
 0x923   :  { %1157 = vst.msk [vmem:[#allocation2] sm:$0xff] %vm8746_vm9, %v1155_v60 }
 0x925   :  { %v1262_v58 = vpop.xlane.xlu0 %1261 }
 0x926   :  { %v1264_v62 = vsub.f32 %v1255_v57, %v1262_v58  ;;  %v1146_v49 = vpop.f32.mrf.mxu1 }
 0x927   :  { %v1150_v4 = vadd.f32 %v1146_v49, %v1057_v61 }
 0x928   :  { %v6846_v1 = vpop.eup %6845  ;;  %v1267_v53 = vmul.f32 1.442695, %v1264_v62 }
 0x929   :  { %v1156_v3 = vadd.f32 %v6750_v47, %v1150_v4  ;;  %v1269_v6 = vsel %vm8719_vm11, %v6846_v1, 0.0 }
 0x92a   :  { %6847 = vpow2.f32 %v1267_v53  ;;  %1270 = vadd.xlane.f32.xlu0 %v1269_v6  ;;  %v1523_v2 = vld [vmem:[#allocation2] sm:$0xff] }
 0x92b   :  { %1158 = vst.msk [vmem:[#allocation2 + $0x8] sm:$0xff] %vm8746_vm9, %v1156_v3  ;;  %v7448_v32 = vadd.f32 %v1523_v2, %v7158_v26 }
 0x92d   :  { %v1364_v50 = vpop.xlane.xlu2 %1363  ;;  %v1533_v18 = vsel %vm8746_vm9, %v7448_v32, 0.0 }
 0x92e   :  { %v1368_v5 = vsub.f32 %v1358_v30, %v1364_v50 }
 0x930   :  { %v6848_v7 = vpop.eup %6847  ;;  %v1370_v8 = vmul.f32 1.442695, %v1368_v5 }
 0x931   :  { %v1272_v9 = vsel %vm8719_vm11, %v6848_v7, 0.0 }
 0x932   :  { %6849 = vpow2.f32 %v1370_v8  ;;  %1273 = vadd.xlane.f32.xlu1 %v1272_v9 }
 0x935   :  { %v1367_v54 = vpop.xlane.xlu1 %1366 }
 0x936   :  { %v1369_v11 = vsub.f32 %v1360_v0, %v1367_v54  ;;  %v1524_v0 = vld [vmem:[#allocation2 + $0x8] sm:$0xff] }
 0x937   :  { %v7455_v22 = vadd.f32 %v1524_v0, %v7162_v34 }
 0x938   :  { %v6850_v63 = vpop.eup %6849  ;;  %v1372_v14 = vmul.f32 1.442695, %v1369_v11 }
 0x939   :  { %v1374_v15 = vsel %vm8719_vm11, %v6850_v63, 0.0  ;;  %v1536_v35 = vsel %vm8746_vm9, %v7455_v22, 0.0 }
 0x93a   :  { %6851 = vpow2.f32 %v1372_v14  ;;  %1375 = vadd.xlane.f32.xlu2 %v1374_v15 }
 0x93e   :  { %1280 = vrot.lane.b32.xlu0 %v7334_v25, %s8731_s29 }
 0x940   :  { %v6852_v16 = vpop.eup %6851 }
 0x941   :  { %v1377_v17 = vsel %vm8719_vm11, %v6852_v16, 0.0 }
 0x942   :  { %1378 = vadd.xlane.f32.xlu1 %v1377_v17 }
 0x943   :  { %v1454_v19 = vpop.xlane.xlu0 %1453 }
 0x944   :  { %v1458_v20 = vsub.f32 %v1448_v37, %v1454_v19 }
 0x946   :  { %v1460_v21 = vmul.f32 1.442695, %v1458_v20  ;;  %1475 = vrot.lane.b32.xlu0 %v7334_v25, %s8714_s9  ;;  %v6753_v20 = vld [vmem:[%s7409_s15] ss:$0 sm:$0xff]  ;;  %s7093_s9 = smov 28  }
 0x947   :  { %s7602_s6 = sld [smem:[%s8713_s0 + %s7093_s9]]  }
 0x948   :  { %6853 = vpow2.f32 %v1460_v21  ;;  %s7738_s9 = sld [smem:[%s8713_s0 + %s7095_s4]]   ;;  %s7096_s4 = smov 31  }
 0x949   :  { %s7780_s2 = sld [smem:[%s8713_s0 + %s7096_s4]]   ;;  %s7097_s4 = smov 32  }
 0x94a   :  { %s7807_s1 = sld [smem:[%s8713_s0 + %s7097_s4]]   ;;  %s7099_s4 = smov 33  }
 0x94b   :  { %v1457_v23 = vpop.xlane.xlu1 %1456 }
 0x94c   :  { %v1459_v24 = vsub.f32 %v1450_v41, %v1457_v23 }
 0x94e   :  { %v6854_v57 = vpop.eup %6853  ;;  %v1462_v27 = vmul.f32 1.442695, %v1459_v24 }
 0x94f   :  { %v1464_v28 = vsel %vm8719_vm11, %v6854_v57, 0.0 }
 0x950   :  { %6855 = vpow2.f32 %v1462_v27  ;;  %1465 = vadd.xlane.f32.xlu2 %v1464_v28 }
 0x956   :  { %v6856_v29 = vpop.eup %6855 }
 0x957   :  { %v1467_v30 = vsel %vm8719_vm11, %v6856_v29, 0.0 }
 0x958   :  { %1468 = vadd.xlane.f32.xlu1 %v1467_v30 }
 0x960   :  { %1534 = vadd.xlane.f32.xlu1 %v1533_v18 }
 0x968   :  { %1385 = vrot.lane.b32.xlu2 %v7334_v25, %s8728_s30  ;;  %s8000_s30 = sld [smem:[%s8713_s0 + %s7099_s4]]   ;;  %s7100_s4 = smov 35  }
 0x969   :  { %s8020_s29 = sld [smem:[%s8713_s0 + %s7100_s4]]   ;;  %s8787_s4 = smov 72  }
 0x970   :  { %1537 = vadd.xlane.f32.xlu0 %v1536_v35 }
 0x99d   :  { %v1271_v36 = vpop.xlane.xlu0 %1270 }
 0x9a5   :  { %v1274_v37 = vpop.xlane.xlu1 %1273 }
 0x9a6   :  { %6857 = vrcp.f32 %v1274_v37 }
 0x9a7   :  { %6859 = vrcp.f32 %v1271_v36 }
 0x9ac   :  { %v6858_v26 = vpop.eup %6857 }
 0x9ad   :  { %v6860_v38 = vpop.eup %6859  ;;  %v1278_v39 = vmul.f32 %v6858_v26, %v6848_v7  ;;  %v1376_v34 = vpop.xlane.xlu2 %1375 }
 0x9ae   :  { %v1277_v40 = vmul.f32 %v6860_v38, %v6846_v1 }
 0x9b0   :  { %v1281_v41 = vpop.permute.xlu0 %1280  ;;  %v1279_v42 = vpack.c.bf16 %v1278_v39, %v1277_v40 }
 0x9b1   :  { %1293 = vmatpush.bf16.msrb.mxu1 %v1281_v41 }
 0x9b4   :  { %5612 = vmatmul.msk.bf16.vlgmr.msrb.gmra.mxu1 %vm8719_vm11, %v1279_v42 }
 0x9b5   :  { %v1379_v43 = vpop.xlane.xlu1 %1378 }
 0x9b6   :  { %6861 = vrcp.f32 %v1379_v43 }
 0x9b7   :  { %6863 = vrcp.f32 %v1376_v34 }
 0x9b8   :  { %v1476_v25 = vpop.permute.xlu0 %1475 }
 0x9b9   :  { %1488 = vmatpush.bf16.msra.mxu0 %v1476_v25 }
 0x9bc   :  { %v6862_v45 = vpop.eup %6861 }
 0x9bd   :  { %v6864_v47 = vpop.eup %6863  ;;  %v1383_v55 = vmul.f32 %v6862_v45, %v6852_v16 }
 0x9be   :  { %v1382_v48 = vmul.f32 %v6864_v47, %v6850_v63  ;;  %v6557_v47 = vld [vmem:[%s7505_s14 + $0x8] sm:$0xff] }
 0x9c0   :  { %v1384_v59 = vpack.c.bf16 %v1383_v55, %v1382_v48 }
 0x9c3   :  { %v1466_v44 = vpop.xlane.xlu2 %1465 }
 0x9c4   :  { %6865 = vrcp.f32 %v1466_v44 }
 0x9ca   :  { %v6866_v60 = vpop.eup %6865 }
 0x9cb   :  { %v1469_v52 = vpop.xlane.xlu1 %1468  ;;  %v1386_v56 = vpop.permute.xlu2 %1385  ;;  %v1472_v61 = vmul.f32 %v6866_v60, %v6854_v57 }
 0x9cc   :  { %6867 = vrcp.f32 %v1469_v52  ;;  %1398 = vmatpush.bf16.msra.mxu1 %v1386_v56  ;;  %v6556_v56 = vld [vmem:[%s7505_s14] sm:$0xff] }
 0x9cf   :  { %5618 = vmatmul.msk.bf16.vlgmr.msra.gmra.mxu1 %vm8719_vm11, %v1384_v59 }
 0x9d0   :  { %1506 = vmatpush.bf16.msrb.mxu1 %v7403_v13 }
 0x9d2   :  { %v6868_v58 = vpop.eup %6867 }
 0x9d3   :  { %v1473_v62 = vmul.f32 %v6868_v58, %v6856_v29  ;;  %v1535_v49 = vpop.xlane.xlu1 %1534 }
 0x9d4   :  { %v1545_v4 = vmul.f32 %v1535_v49, %v7168_v51 }
 0x9d5   :  { %v1474_v1 = vpack.c.bf16 %v1473_v62, %v1472_v61 }
 0x9d6   :  { %v7474_v53 = vsub.f32 %v7448_v32, %v1545_v4 }
 0x9d7   :  { %5623 = vmatmul.msk.bf16.vlgmr.msra.gmra.mxu0 %vm8719_vm11, %v1474_v1 }
 0x9d8   :  { %v1553_v13 = vmul.f32 %v7474_v53, %v7474_v53 }
 0x9da   :  { %v1557_v3 = vsel %vm8746_vm9, %v1553_v13, 0.0 }
 0x9db   :  { %1558 = vadd.xlane.f32.xlu2 %v1557_v3 }
 0x9e3   :  { %v1538_v35 = vpop.xlane.xlu0 %1537 }
 0xa31   :  { %v1295_v6 = vpop.f32.mrf.mxu1 }
 0xa39   :  { %v1297_v50 = vpop.f32.mrf.mxu1 }
 0xa3a   :  { %v1300_v5 = vpack.c.bf16 %v1297_v50, %v1295_v6 }
 0xa3c   :  { %5613 = vmatmul.msk.bf16.vlgmr.msrb.gmra.mxu2 %vm8720_vm1, %v1300_v5 }
 0xa3d   :  { %1669 = vmatpush.bf16.msrb.mxu2 %v6557_v47 }
 0xa41   :  { %1670 = vmatpush.bf16.msrb.mxu2 %v6556_v56  ;;  %v6559_v56 = vld [vmem:[%s7540_s10 + $0x8] sm:$0xff] }
 0xa4c   :  { %v1400_v7 = vpop.f32.mrf.mxu1 }
 0xa4e   :  { %v1559_v40 = vpop.xlane.xlu2 %1558 }
 0xa4f   :  { %v1569_v41 = vmul.f32 %v1559_v40, %v7168_v51 }
 0xa51   :  { %v1573_v42 = vadd.f32 1e-05, %v1569_v41 }
 0xa53   :  { %6869 = vrsqrt.f32 %v1573_v42  ;;  %vm1583_vm14 = vweird.f32 %v1573_v42 }
 0xa54   :  { %v1402_v8 = vpop.f32.mrf.mxu1  ;;  %v1490_v9 = vpop.f32.mrf.mxu0 }
 0xa55   :  { %v1405_v54 = vpack.c.bf16 %v1402_v8, %v1400_v7 }
 0xa57   :  { %5619 = vmatmul.msk.bf16.vlgmr.msra.gmra.mxu2 %vm8720_vm1, %v1405_v54  ;;  %v6751_v54 = vld [vmem:[%s7463_s25] ss:$0 sm:$0xff] }
 0xa59   :  { %v6870_v55 = vpop.eup %6869 }
 0xa5a   :  { %v1578_v59 = vmul.f32 %v6870_v55, %v1573_v42  ;;  %vm1584_vm13 = vweird.f32 %v6870_v55 }
 0xa5b   :  { %vm1585_vm15 = vmor %vm1583_vm14, %vm1584_vm13  ;;  %vm8745_vm13 = vcmask 523264  }
 0xa5c   :  { %v1492_v11 = vpop.f32.mrf.mxu0  ;;  %v1579_v61 = vmul.f32 %v6870_v55, %v1578_v59 }
 0xa5d   :  { %v1495_v63 = vpack.c.bf16 %v1492_v11, %v1490_v9 }
 0xa5e   :  { %v1580_v1 = vmul.f32 0.5, %v1579_v61 }
 0xa5f   :  { %5624 = vmatmul.msk.bf16.vlgmr.msrb.gmra.mxu1 %vm8720_vm1, %v1495_v63 }
 0xa60   :  { %v1581_v13 = vsub.f32 1.5, %v1580_v1 }
 0xa62   :  { %v1582_v6 = vmul.f32 %v6870_v55, %v1581_v13 }
 0xa64   :  { %v1586_v7 = vsel %vm1585_vm15, %v6870_v55, %v1582_v6  ;;  %v6561_v55 = vld [vmem:[%s7540_s10 + $0x18] sm:$0xff] }
 0xa65   :  { %v1617_v11 = vmul.f32 %v1586_v7, %v7474_v53  ;;  %1767 = vmatpush.bf16.msrb.mxu3 %v6561_v55 }
 0xabf   :  { %v1313_v14 = vpop.f32.mrf.mxu2 }
 0xac0   :  { %v1331_v16 = vadd.f32 %v7418_v31, %v1313_v14 }
 0xac7   :  { %v1315_v15 = vpop.f32.mrf.mxu2 }
 0xac8   :  { %v1333_v57 = vadd.f32 %v7422_v33, %v1315_v15  ;;  %v1546_v33 = vmul.f32 %v1538_v35, %v7168_v51  ;;  %v6752_v15 = vld [vmem:[%s7469_s5] ss:$0 sm:$0xff] }
 0xaca   :  { %v1550_v26 = vsub.f32 %v7455_v22, %v1546_v33 }
 0xacc   :  { %v1554_v39 = vmul.f32 %v1550_v26, %v1550_v26 }
 0xada   :  { %v1418_v17 = vpop.f32.mrf.mxu2 }
 0xadb   :  { %v1423_v19 = vadd.f32 %v1418_v17, %v1331_v16  ;;  %v1624_v16 = vmul.f32 %v6751_v54, %v1617_v11 }
 0xadc   :  { %v1508_v21 = vpop.f32.mrf.mxu1 }
 0xadd   :  { %v1513_v23 = vadd.f32 %v1508_v21, %v1423_v19 }
 0xadf   :  { %v1519_v24 = vadd.f32 %v6753_v20, %v1513_v23 }
 0xae1   :  { %1521 = vst.msk [vmem:[#allocation2 + $0x10] sm:$0xff] %vm8746_vm9, %v1519_v24 }
 0xae2   :  { %v1420_v27 = vpop.f32.mrf.mxu2 }
 0xae3   :  { %v1424_v28 = vadd.f32 %v1420_v27, %v1333_v57 }
 0xae4   :  { %v1510_v29 = vpop.f32.mrf.mxu1 }
 0xae5   :  { %v1514_v30 = vadd.f32 %v1510_v29, %v1424_v28 }
 0xae7   :  { %v1520_v2 = vadd.f32 %v6753_v20, %v1514_v30  ;;  %v1631_v20 = vadd.f32 %v6752_v15, %v1624_v16 }
 0xae8   :  { %v1525_v18 = vld [vmem:[#allocation2 + $0x10] sm:$0xff] }
 0xae9   :  { %1522 = vst.msk [vmem:[#allocation2 + $0x18] sm:$0xff] %vm8746_vm9, %v1520_v2  ;;  %v7489_v31 = vadd.f32 %v1525_v18, %v7194_v10  ;;  %v1560_v10 = vsel %vm8746_vm9, %v1554_v39, 0.0 }
 0xaeb   :  { %v1539_v0 = vsel %vm8746_vm9, %v7489_v31, 0.0 }
 0xaec   :  { %1540 = vadd.xlane.f32.xlu1 %v1539_v0 }
 0xaf0   :  { %v1526_v36 = vld [vmem:[#allocation2 + $0x18] sm:$0xff] }
 0xaf1   :  { %v7495_v37 = vadd.f32 %v1526_v36, %v7209_v46 }
 0xaf3   :  { %v1542_v38 = vsel %vm8746_vm9, %v7495_v37, 0.0 }
 0xaf4   :  { %1543 = vadd.xlane.f32.xlu1 %v1542_v38 }
 0xafc   :  { %1561 = vadd.xlane.f32.xlu1 %v1560_v10 }
 0xb5f   :  { %v1541_v25 = vpop.xlane.xlu1 %1540 }
 0xb60   :  { %v1547_v46 = vmul.f32 %v1541_v25, %v7168_v51 }
 0xb62   :  { %v7509_v34 = vsub.f32 %v7489_v31, %v1547_v46 }
 0xb64   :  { %v1555_v43 = vmul.f32 %v7509_v34, %v7509_v34 }
 0xb66   :  { %v1563_v44 = vsel %vm8746_vm9, %v1555_v43, 0.0 }
 0xb67   :  { %v1544_v45 = vpop.xlane.xlu1 %1543  ;;  %1564 = vadd.xlane.f32.xlu1 %v1563_v44 }
 0xb68   :  { %v1548_v48 = vmul.f32 %v1544_v45, %v7168_v51 }
 0xb6a   :  { %v7517_v52 = vsub.f32 %v7495_v37, %v1548_v48  ;;  %v6560_v48 = vld [vmem:[%s7540_s10 + $0x10] sm:$0xff] }
 0xb6b   :  { %1768 = vmatpush.bf16.msrb.mxu3 %v6560_v48 }
 0xb6c   :  { %v1556_v60 = vmul.f32 %v7517_v52, %v7517_v52 }
 0xb6e   :  { %v1566_v58 = vsel %vm8746_vm9, %v1556_v60, 0.0 }
 0xb6f   :  { %1567 = vadd.xlane.f32.xlu1 %v1566_v58  ;;  %v1562_v62 = vpop.xlane.xlu1 %1561  ;;  %1769 = vmatpush.bf16.msrb.mxu3 %v6559_v56  ;;  %v6558_v58 = vld [vmem:[%s7540_s10] sm:$0xff] }
 0xb70   :  { %v1570_v49 = vmul.f32 %v1562_v62, %v7168_v51 }
 0xb72   :  { %v1574_v4 = vadd.f32 1e-05, %v1570_v49 }
 0xb73   :  { %1770 = vmatpush.bf16.msrb.mxu3 %v6558_v58 }
 0xb74   :  { %6871 = vrsqrt.f32 %v1574_v4  ;;  %vm1593_vm2 = vweird.f32 %v1574_v4 }
 0xb7a   :  { %v6872_v3 = vpop.eup %6871 }
 0xb7b   :  { %v1588_v50 = vmul.f32 %v6872_v3, %v1574_v4  ;;  %vm1594_vm0 = vweird.f32 %v6872_v3 }
 0xb7c   :  { %vm1595_vm3 = vmor %vm1593_vm2, %vm1594_vm0 }
 0xb7d   :  { %v1589_v5 = vmul.f32 %v6872_v3, %v1588_v50 }
 0xb7f   :  { %v1590_v8 = vmul.f32 0.5, %v1589_v5 }
 0xb81   :  { %v1591_v9 = vsub.f32 1.5, %v1590_v8 }
 0xb83   :  { %v1592_v63 = vmul.f32 %v6872_v3, %v1591_v9 }
 0xb85   :  { %v1596_v14 = vsel %vm1595_vm3, %v6872_v3, %v1592_v63 }
 0xb86   :  { %v1618_v17 = vmul.f32 %v1596_v14, %v1550_v26 }
 0xb88   :  { %v1625_v19 = vmul.f32 %v6751_v54, %v1618_v17 }
 0xb8a   :  { %v1632_v21 = vadd.f32 %v6752_v15, %v1625_v19 }
 0xb8c   :  { %v1635_v23 = vpack.c.bf16 %v1632_v21, %v1631_v20 }
 0xb8e   :  { %5633 = vmatmul.msk.bf16.vlgmr.msrb.gmra.mxu2 %vm8746_vm9, %v1635_v23 }
 0xbda   :  { %v1565_v53 = vpop.xlane.xlu1 %1564 }
 0xbdb   :  { %v1571_v24 = vmul.f32 %v1565_v53, %v7168_v51 }
 0xbdd   :  { %v1575_v57 = vadd.f32 1e-05, %v1571_v24 }
 0xbdf   :  { %6873 = vrsqrt.f32 %v1575_v57  ;;  %vm1603_vm5 = vweird.f32 %v1575_v57 }
 0xbe2   :  { %v1568_v27 = vpop.xlane.xlu1 %1567 }
 0xbe3   :  { %v1572_v28 = vmul.f32 %v1568_v27, %v7168_v51 }
 0xbe5   :  { %v6874_v29 = vpop.eup %6873  ;;  %v1576_v30 = vadd.f32 1e-05, %v1572_v28 }
 0xbe6   :  { %v1598_v2 = vmul.f32 %v6874_v29, %v1575_v57  ;;  %vm1604_vm4 = vweird.f32 %v6874_v29 }
 0xbe7   :  { %6875 = vrsqrt.f32 %v1576_v30  ;;  %vm1605_vm6 = vmor %vm1603_vm5, %vm1604_vm4  ;;  %vm1613_vm8 = vweird.f32 %v1576_v30 }
 0xbe8   :  { %v1599_v18 = vmul.f32 %v6874_v29, %v1598_v2 }
 0xbea   :  { %v1600_v0 = vmul.f32 0.5, %v1599_v18 }
 0xbec   :  { %v1601_v35 = vsub.f32 1.5, %v1600_v0 }
 0xbed   :  { %v6876_v33 = vpop.eup %6875 }
 0xbee   :  { %v1602_v36 = vmul.f32 %v6874_v29, %v1601_v35  ;;  %v1608_v26 = vmul.f32 %v6876_v33, %v1576_v30  ;;  %vm1614_vm7 = vweird.f32 %v6876_v33 }
 0xbef   :  { %vm1615_vm10 = vmor %vm1613_vm8, %vm1614_vm7 }
 0xbf0   :  { %v1609_v38 = vmul.f32 %v6876_v33, %v1608_v26  ;;  %v1606_v39 = vsel %vm1605_vm6, %v6874_v29, %v1602_v36 }
 0xbf1   :  { %v1619_v41 = vmul.f32 %v1606_v39, %v7509_v34 }
 0xbf2   :  { %v1610_v10 = vmul.f32 0.5, %v1609_v38 }
 0xbf3   :  { %v1626_v43 = vmul.f32 %v6751_v54, %v1619_v41 }
 0xbf4   :  { %v1611_v40 = vsub.f32 1.5, %v1610_v10 }
 0xbf5   :  { %v1633_v45 = vadd.f32 %v6752_v15, %v1626_v43 }
 0xbf6   :  { %v1612_v42 = vmul.f32 %v6876_v33, %v1611_v40 }
 0xbf8   :  { %v1616_v25 = vsel %vm1615_vm10, %v6876_v33, %v1612_v42 }
 0xbf9   :  { %v1620_v46 = vmul.f32 %v1616_v25, %v7517_v52  ;;  %v6754_v52 = vld [vmem:[%s7529_s26] ss:$0 sm:$0xff] }
 0xbfb   :  { %v1627_v44 = vmul.f32 %v6751_v54, %v1620_v46  ;;  %v6755_v46 = vld [vmem:[%s7551_s18] ss:$0 sm:$0xff] }
 0xbfd   :  { %v1634_v47 = vadd.f32 %v6752_v15, %v1627_v44 }
 0xbff   :  { %v1636_v34 = vpack.c.bf16 %v1634_v47, %v1633_v45 }
 0xc01   :  { %5634 = vmatmul.msk.bf16.gmra.mxu2 %vm8746_vm9, %v1636_v34 }
 0xc11   :  { %v1672_v59 = vpop.f32.mrf.mxu2 }
 0xc12   :  { %v1673_v60 = vadd.f32 %v6754_v52, %v1672_v59 }
 0xc14   :  { %v1682_v61 = vmul.f32 %v1673_v60, %v1673_v60 }
 0xc16   :  { %v1686_v62 = vmul.f32 %v1682_v61, %v1673_v60 }
 0xc18   :  { %v1690_v49 = vmul.f32 0.044715, %v1686_v62 }
 0xc19   :  { %v1674_v4 = vpop.f32.mrf.mxu2 }
 0xc1a   :  { %v1694_v1 = vadd.f32 %v1690_v49, %v1673_v60  ;;  %v1675_v13 = vadd.f32 %v6754_v52, %v1674_v4 }
 0xc1c   :  { %v1698_v3 = vmul.f32 0.7978846, %v1694_v1  ;;  %v1683_v6 = vmul.f32 %v1675_v13, %v1675_v13 }
 0xc1e   :  { %v1687_v50 = vmul.f32 %v1683_v6, %v1675_v13  ;;  %6877 = vtanh.f32 %v1698_v3 }
 0xc20   :  { %v1691_v5 = vmul.f32 0.044715, %v1687_v50 }
 0xc22   :  { %v1695_v7 = vadd.f32 %v1691_v5, %v1675_v13 }
 0xc24   :  { %v1699_v8 = vmul.f32 0.7978846, %v1695_v7  ;;  %v6878_v9 = vpop.eup %6877 }
 0xc25   :  { %v1706_v54 = vadd.f32 1.0, %v6878_v9 }
 0xc26   :  { %6879 = vtanh.f32 %v1699_v8 }
 0xc27   :  { %v1710_v63 = vmul.f32 0.5, %v1706_v54 }
 0xc29   :  { %v1714_v16 = vmul.f32 %v1710_v63, %v1673_v60 }
 0xc2c   :  { %v6880_v11 = vpop.eup %6879 }
 0xc2d   :  { %v1707_v14 = vadd.f32 1.0, %v6880_v11 }
 0xc2f   :  { %v1711_v15 = vmul.f32 0.5, %v1707_v14 }
 0xc31   :  { %v1715_v17 = vmul.f32 %v1711_v15, %v1675_v13 }
 0xc33   :  { %v1718_v19 = vpack.c.bf16 %v1715_v17, %v1714_v16 }
 0xc35   :  { %5651 = vmatmul.msk.bf16.vlgmr.msrb.gmra.mxu3 %vm8745_vm13, %v1718_v19  ;;  %v6565_v19 = vld [vmem:[%s7602_s6 + $0x18] sm:$0xff] }
 0xc36   :  { %1948 = vmatpush.bf16.msrb.mxu0 %v6565_v19 }
 0xc84   :  { %v1677_v20 = vpop.f32.mrf.mxu2 }
 0xc85   :  { %v1678_v21 = vadd.f32 %v6754_v52, %v1677_v20 }
 0xc87   :  { %v1684_v23 = vmul.f32 %v1678_v21, %v1678_v21 }
 0xc89   :  { %v1688_v53 = vmul.f32 %v1684_v23, %v1678_v21  ;;  %v6564_v23 = vld [vmem:[%s7602_s6 + $0x10] sm:$0xff] }
 0xc8a   :  { %1949 = vmatpush.bf16.msrb.mxu0 %v6564_v23 }
 0xc8b   :  { %v1692_v24 = vmul.f32 0.044715, %v1688_v53 }
 0xc8c   :  { %v1679_v57 = vpop.f32.mrf.mxu2 }
 0xc8d   :  { %v1696_v27 = vadd.f32 %v1692_v24, %v1678_v21  ;;  %v1680_v28 = vadd.f32 %v6754_v52, %v1679_v57 }
 0xc8f   :  { %v1700_v29 = vmul.f32 0.7978846, %v1696_v27  ;;  %v1685_v30 = vmul.f32 %v1680_v28, %v1680_v28 }
 0xc91   :  { %v1689_v2 = vmul.f32 %v1685_v30, %v1680_v28  ;;  %6881 = vtanh.f32 %v1700_v29 }
 0xc93   :  { %v1693_v18 = vmul.f32 0.044715, %v1689_v2 }
 0xc95   :  { %v1697_v0 = vadd.f32 %v1693_v18, %v1680_v28 }
 0xc97   :  { %v1701_v35 = vmul.f32 0.7978846, %v1697_v0  ;;  %v6882_v33 = vpop.eup %6881 }
 0xc98   :  { %v1708_v36 = vadd.f32 1.0, %v6882_v33 }
 0xc99   :  { %6883 = vtanh.f32 %v1701_v35 }
 0xc9a   :  { %v1712_v39 = vmul.f32 0.5, %v1708_v36 }
 0xc9c   :  { %v1716_v40 = vmul.f32 %v1712_v39, %v1678_v21 }
 0xc9f   :  { %v6884_v26 = vpop.eup %6883 }
 0xca0   :  { %v1709_v38 = vadd.f32 1.0, %v6884_v26  ;;  %v7616_v26 = vld [vmem:[%s7574_s12] ss:$0 sm:$0xff] }
 0xca2   :  { %v1713_v10 = vmul.f32 0.5, %v1709_v38 }
 0xca4   :  { %v1717_v41 = vmul.f32 %v1713_v10, %v1680_v28 }
 0xca6   :  { %v1719_v42 = vpack.c.bf16 %v1717_v41, %v1716_v40  ;;  %v7619_v40 = vld [vmem:[%s7579_s3] ss:$0 sm:$0xff] }
 0xca8   :  { %5652 = vmatmul.msk.bf16.gmra.mxu3 %vm8745_vm13, %v1719_v42 }
 0xcb8   :  { %v1772_v25 = vpop.f32.mrf.mxu3 }
 0xcb9   :  { %v1773_v47 = vadd.f32 %v6755_v46, %v1772_v25 }
 0xcbb   :  { %v7562_v55 = vadd.f32 %v1773_v47, %v7448_v32 }
 0xcbd   :  { %v1788_v48 = vsel %vm8746_vm9, %v7562_v55, 0.0 }
 0xcc0   :  { %v1774_v43 = vpop.f32.mrf.mxu3 }
 0xcc1   :  { %v1775_v44 = vadd.f32 %v6755_v46, %v1774_v43  ;;  %v7623_v43 = vshrl.u32 %v153_v12, 7 }
 0xcc3   :  { %v7557_v45 = vadd.f32 %v1775_v44, %v7455_v22  ;;  %vm8743_vm5 = vcmp.lt.s32.totalorder %v7623_v43, 1  ;;  %vm8744_vm6 = vcmp.lt.s32.totalorder %v7623_v43, 7 }
 0xcc5   :  { %v1791_v34 = vsel %vm8746_vm9, %v7557_v45, 0.0 }
 0xcc6   :  { %1792 = vadd.xlane.f32.xlu0 %v1791_v34 }
 0xcce   :  { %1789 = vadd.xlane.f32.xlu0 %v1788_v48 }
 0xd2b   :  { %v1777_v52 = vpop.f32.mrf.mxu3 }
 0xd2c   :  { %v1778_v56 = vadd.f32 %v6755_v46, %v1777_v52 }
 0xd2e   :  { %v7567_v59 = vadd.f32 %v1778_v56, %v7489_v31 }
 0xd30   :  { %v1794_v22 = vsel %vm8746_vm9, %v7567_v59, 0.0 }
 0xd31   :  { %1795 = vadd.xlane.f32.xlu1 %v1794_v22 }
 0xd33   :  { %v1779_v32 = vpop.f32.mrf.mxu3 }
 0xd34   :  { %v1780_v60 = vadd.f32 %v6755_v46, %v1779_v32 }
 0xd36   :  { %v7582_v31 = vadd.f32 %v1780_v60, %v7495_v37 }
 0xd38   :  { %v1797_v58 = vsel %vm8746_vm9, %v7582_v31, 0.0 }
 0xd39   :  { %v1793_v61 = vpop.xlane.xlu0 %1792  ;;  %1798 = vadd.xlane.f32.xlu1 %v1797_v58  ;;  %v6567_v58 = vld [vmem:[%s7602_s6 + $0x28] sm:$0xff] }
 0xd3a   :  { %v1801_v62 = vmul.f32 %v1793_v61, %v7168_v51  ;;  %2050 = vmatpush.bf16.msra.mxu2 %v6567_v58  ;;  %v6566_v61 = vld [vmem:[%s7602_s6 + $0x20] sm:$0xff] }
 0xd3c   :  { %v1805_v49 = vsub.f32 %v7557_v45, %v1801_v62 }
 0xd3e   :  { %v1809_v4 = vmul.f32 %v1805_v49, %v1805_v49  ;;  %2051 = vmatpush.bf16.msra.mxu2 %v6566_v61 }
 0xd40   :  { %v1815_v1 = vsel %vm8746_vm9, %v1809_v4, 0.0 }
 0xd41   :  { %1816 = vadd.xlane.f32.xlu2 %v1815_v1  ;;  %v1790_v13 = vpop.xlane.xlu0 %1789  ;;  %v6563_v1 = vld [vmem:[%s7602_s6 + $0x8] sm:$0xff] }
 0xd42   :  { %v1800_v3 = vmul.f32 %v1790_v13, %v7168_v51  ;;  %1985 = vmatpush.bf16.msra.mxu1 %v6563_v1  ;;  %v6562_v13 = vld [vmem:[%s7602_s6] sm:$0xff]  ;;  %v6575_v1 = vld [vmem:[%s7738_s9 + $0x38] sm:$0xff] }
 0xd43   :  { %2222 = vmatpush.bf16.msra.mxu3 %v6575_v1 }
 0xd44   :  { %v1804_v6 = vsub.f32 %v7562_v55, %v1800_v3 }
 0xd46   :  { %v1808_v37 = vmul.f32 %v1804_v6, %v1804_v6  ;;  %1986 = vmatpush.bf16.msra.mxu1 %v6562_v13 }
 0xd48   :  { %v1812_v50 = vsel %vm8746_vm9, %v1808_v37, 0.0 }
 0xd49   :  { %1813 = vadd.xlane.f32.xlu1 %v1812_v50 }
 0xda4   :  { %v1796_v5 = vpop.xlane.xlu1 %1795 }
 0xda5   :  { %v1802_v7 = vmul.f32 %v1796_v5, %v7168_v51 }
 0xda7   :  { %v7594_v8 = vsub.f32 %v7567_v59, %v1802_v7 }
 0xda9   :  { %v1810_v9 = vmul.f32 %v7594_v8, %v7594_v8 }
 0xdab   :  { %v1818_v54 = vsel %vm8746_vm9, %v1810_v9, 0.0 }
 0xdac   :  { %1819 = vadd.xlane.f32.xlu0 %v1818_v54  ;;  %v1799_v11 = vpop.xlane.xlu1 %1798  ;;  %v7660_v54 = vadd.s32 8, %v7623_v43 }
 0xdad   :  { %v1803_v63 = vmul.f32 %v1799_v11, %v7168_v51 }
 0xdaf   :  { %v7606_v14 = vsub.f32 %v7582_v31, %v1803_v63 }
 0xdb1   :  { %v1811_v15 = vmul.f32 %v7606_v14, %v7606_v14 }
 0xdb3   :  { %v1821_v16 = vsel %vm8746_vm9, %v1811_v15, 0.0 }
 0xdb4   :  { %v1817_v17 = vpop.xlane.xlu2 %1816  ;;  %1822 = vadd.xlane.f32.xlu2 %v1821_v16 }
 0xdb5   :  { %v1825_v20 = vmul.f32 %v1817_v17, %v7168_v51  ;;  %v519_v17 = vand.u32 15, %v7660_v54 }
 0xdb7   :  { %v1829_v21 = vadd.f32 1e-05, %v1825_v20 }
 0xdb9   :  { %6885 = vrsqrt.f32 %v1829_v21  ;;  %vm1848_vm15 = vweird.f32 %v1829_v21 }
 0xdbc   :  { %v1814_v53 = vpop.xlane.xlu1 %1813 }
 0xdbd   :  { %v1824_v24 = vmul.f32 %v1814_v53, %v7168_v51 }
 0xdbf   :  { %v6886_v57 = vpop.eup %6885  ;;  %v1828_v27 = vadd.f32 1e-05, %v1824_v24  ;;  %v7667_v24 = vadd.s32 1, %v519_v17 }
 0xdc0   :  { %v1843_v28 = vmul.f32 %v6886_v57, %v1829_v21  ;;  %vm1849_vm14 = vweird.f32 %v6886_v57 }
 0xdc1   :  { %6887 = vrsqrt.f32 %v1828_v27  ;;  %vm1850_vm0 = vmor %vm1848_vm15, %vm1849_vm14  ;;  %vm1838_vm3 = vweird.f32 %v1828_v27 }
 0xdc2   :  { %v1844_v29 = vmul.f32 %v6886_v57, %v1843_v28 }
 0xdc4   :  { %v1845_v30 = vmul.f32 0.5, %v1844_v29 }
 0xdc6   :  { %v1846_v2 = vsub.f32 1.5, %v1845_v30  ;;  %v512_v30 = vand.u32 15, %v7623_v43 }
 0xdc7   :  { %v6888_v18 = vpop.eup %6887 }
 0xdc8   :  { %v1847_v0 = vmul.f32 %v6886_v57, %v1846_v2  ;;  %v1833_v35 = vmul.f32 %v6888_v18, %v1828_v27  ;;  %vm1839_vm2 = vweird.f32 %v6888_v18 }
 0xdc9   :  { %vm1840_vm4 = vmor %vm1838_vm3, %vm1839_vm2  ;;  %vm8742_vm2 = vcmp.lt.s32.totalorder %v7667_v24, 16 }
 0xdca   :  { %v1851_v33 = vsel %vm1850_vm0, %v6886_v57, %v1847_v0  ;;  %v1834_v36 = vmul.f32 %v6888_v18, %v1833_v35  ;;  %v7676_v0 = vadd.s32 24, %v7623_v43 }
 0xdcb   :  { %v1873_v38 = vmul.f32 %v1851_v33, %v1805_v49 }
 0xdcc   :  { %v1835_v39 = vmul.f32 0.5, %v1834_v36 }
 0xdcd   :  { %v1880_v41 = vmul.f32 %v7616_v26, %v1873_v38  ;;  %v7683_v38 = vadd.s32 4294967295, %v512_v30 }
 0xdce   :  { %v1836_v10 = vsub.f32 1.5, %v1835_v39  ;;  %v533_v39 = vand.u32 15, %v7676_v0 }
 0xdcf   :  { %v7626_v44 = vadd.f32 %v7619_v40, %v1880_v41  ;;  %vm8730_vm3 = vcmp.ge.s32.totalorder %v7683_v38, 0 }
 0xdd0   :  { %v1837_v42 = vmul.f32 %v6888_v18, %v1836_v10 }
 0xdd1   :  { %v1999_v48 = vrot.slane %v7626_v44, 1  ;;  %v1891_v22 = vrot.slane %v7626_v44, 7 }
 0xdd2   :  { %v1841_v25 = vsel %vm1840_vm4, %v6888_v18, %v1837_v42  ;;  %v7696_v42 = vadd.s32 1, %v533_v39 }
 0xdd3   :  { %v1872_v46 = vmul.f32 %v1841_v25, %v1804_v6 }
 0xdd4   :  { %vm8725_vm4 = vcmp.lt.s32.totalorder %v7696_v42, 16 }
 0xdd5   :  { %v1879_v47 = vmul.f32 %v7616_v26, %v1872_v46 }
 0xdd7   :  { %v7630_v34 = vadd.f32 %v7619_v40, %v1879_v47  ;;  %v7707_v47 = vadd.s32 16, %v7623_v43 }
 0xdd9   :  { %v1917_v12 = vpack.c.bf16 %v7626_v44, %v7630_v34  ;;  %v1998_v52 = vrot.slane %v7630_v34, 1  ;;  %v1890_v56 = vrot.slane %v7630_v34, 7 }
 0xddb   :  { %5665 = vmatmul.msk.bf16.vlgmr.msrb.gmra.mxu0 %vm8746_vm9, %v1917_v12  ;;  %v2005_v32 = vsel %vm8744_vm6, %v1998_v52, %v1999_v48  ;;  %v7651_v60 = vsel %vm8743_vm5, %v1890_v56, %v1891_v22  ;;  %v526_v12 = vand.u32 15, %v7707_v47 }
 0xddd   :  { %v7722_v58 = vadd.s32 4294967295, %v526_v12 }
 0xe1f   :  { %v1820_v62 = vpop.xlane.xlu0 %1819 }
 0xe20   :  { %v1826_v49 = vmul.f32 %v1820_v62, %v7168_v51 }
 0xe22   :  { %v1830_v4 = vadd.f32 1e-05, %v1826_v49 }
 0xe24   :  { %6889 = vrsqrt.f32 %v1830_v4  ;;  %vm1858_vm8 = vweird.f32 %v1830_v4 }
 0xe27   :  { %v1823_v3 = vpop.xlane.xlu2 %1822 }
 0xe28   :  { %v1827_v6 = vmul.f32 %v1823_v3, %v7168_v51  ;;  %v6758_v3 = vld [vmem:[%s7701_s27] ss:$0 sm:$0xff] }
 0xe2a   :  { %v6890_v37 = vpop.eup %6889  ;;  %v1831_v50 = vadd.f32 1e-05, %v1827_v6 }
 0xe2b   :  { %v1853_v5 = vmul.f32 %v6890_v37, %v1830_v4  ;;  %vm1859_vm7 = vweird.f32 %v6890_v37 }
 0xe2c   :  { %6891 = vrsqrt.f32 %v1831_v50  ;;  %vm1860_vm10 = vmor %vm1858_vm8, %vm1859_vm7  ;;  %vm1868_vm15 = vweird.f32 %v1831_v50  ;;  %vm8727_vm7 = vcmp.ge.s32.totalorder %v7722_v58, 0 }
 0xe2d   :  { %v1854_v7 = vmul.f32 %v6890_v37, %v1853_v5 }
 0xe2f   :  { %v1855_v9 = vmul.f32 0.5, %v1854_v7 }
 0xe31   :  { %v1856_v11 = vsub.f32 1.5, %v1855_v9 }
 0xe32   :  { %v6892_v63 = vpop.eup %6891 }
 0xe33   :  { %v1857_v15 = vmul.f32 %v6890_v37, %v1856_v11  ;;  %v1863_v16 = vmul.f32 %v6892_v63, %v1831_v50  ;;  %vm1869_vm14 = vweird.f32 %v6892_v63 }
 0xe34   :  { %vm1870_vm0 = vmor %vm1868_vm15, %vm1869_vm14 }
 0xe35   :  { %v1861_v19 = vsel %vm1860_vm10, %v6890_v37, %v1857_v15  ;;  %v1864_v20 = vmul.f32 %v6892_v63, %v1863_v16  ;;  %v6574_v37 = vld [vmem:[%s7738_s9 + $0x30] sm:$0xff] }
 0xe36   :  { %v1874_v21 = vmul.f32 %v1861_v19, %v7594_v8  ;;  %2223 = vmatpush.bf16.msra.mxu3 %v6574_v37  ;;  %v6572_v19 = vld [vmem:[%s7738_s9 + $0x20] sm:$0xff] }
 0xe37   :  { %v1865_v23 = vmul.f32 0.5, %v1864_v20  ;;  %v6579_v20 = vld [vmem:[%s7738_s9 + $0x58] sm:$0xff] }
 0xe38   :  { %v1881_v53 = vmul.f32 %v7616_v26, %v1874_v21  ;;  %2343 = vmatpush.bf16.msrb.mxu1 %v6579_v20 }
 0xe39   :  { %v1866_v57 = vsub.f32 1.5, %v1865_v23 }
 0xe3a   :  { %v1888_v27 = vadd.f32 %v7619_v40, %v1881_v53 }
 0xe3b   :  { %v1867_v28 = vmul.f32 %v6892_v63, %v1866_v57 }
 0xe3c   :  { %v2000_v29 = vrot.slane %v1888_v27, 1  ;;  %v1892_v61 = vrot.slane %v1888_v27, 7 }
 0xe3d   :  { %v1871_v8 = vsel %vm1870_vm0, %v6892_v63, %v1867_v28  ;;  %v6573_v63 = vld [vmem:[%s7738_s9 + $0x28] sm:$0xff] }
 0xe3e   :  { %v1875_v2 = vmul.f32 %v1871_v8, %v7606_v14  ;;  %v2004_v18 = vsel %vm8744_vm6, %v1999_v48, %v2000_v29  ;;  %v1896_v34 = vsel %vm8743_vm5, %v1891_v22, %v1892_v61  ;;  %2224 = vmatpush.bf16.msra.mxu3 %v6573_v63  ;;  %v6578_v8 = vld [vmem:[%s7738_s9 + $0x50] sm:$0xff] }
 0xe3f   :  { %v2016_v35 = vsel %vm8742_vm2, %v2004_v18, 0.0  ;;  %v1909_v62 = vsel %vm8727_vm7, %v1896_v34, 0.0  ;;  %2344 = vmatpush.bf16.msrb.mxu1 %v6578_v8 }
 0xe40   :  { %v2019_v33 = vpack.c.bf16 %v2016_v35, %v2005_v32  ;;  %v1882_v36 = vmul.f32 %v7616_v26, %v1875_v2  ;;  %v6571_v35 = vld [vmem:[%s7738_s9 + $0x18] sm:$0xff] }
 0xe41   :  { %2271 = vmatpush.bf16.msra.mxu0 %v6571_v35 }
 0xe42   :  { %5689 = vmatmul.msk.bf16.vlgmr.msra.gmra.mxu2 %vm8746_vm9, %v2019_v33  ;;  %v1889_v14 = vadd.f32 %v7619_v40, %v1882_v36  ;;  %2225 = vmatpush.bf16.msra.mxu3 %v6572_v19  ;;  %v6577_v33 = vld [vmem:[%s7738_s9 + $0x48] sm:$0xff] }
 0xe43   :  { %2345 = vmatpush.bf16.msrb.mxu1 %v6577_v33 }
 0xe44   :  { %v1893_v10 = vrot.slane %v1889_v14, 7  ;;  %v1918_v41 = vpack.c.bf16 %v1889_v14, %v1888_v27  ;;  %v2001_v25 = vrot.slane %v1889_v14, 1 }
 0xe46   :  { %5666 = vmatmul.msk.bf16.gmra.mxu0 %vm8746_vm9, %v1918_v41  ;;  %v1898_v26 = vsel %vm8743_vm5, %v1893_v10, %v1890_v56  ;;  %v2006_v48 = vsel %vm8744_vm6, %v2001_v25, %v1998_v52  ;;  %v2003_v56 = vsel %vm8744_vm6, %v2000_v29, %v2001_v25  ;;  %v1895_v52 = vsel %vm8743_vm5, %v1892_v61, %v1893_v10 }
 0xe47   :  { %v1907_v40 = vsel %vm8730_vm3, %v1898_v26, 0.0  ;;  %v2018_v32 = vsel %vm8725_vm4, %v2006_v48, 0.0  ;;  %v1912_v49 = vpack.c.bf16 %v1895_v52, %v1909_v62  ;;  %v6576_v48 = vld [vmem:[%s7738_s9 + $0x40] sm:$0xff]  ;;  %v6569_v52 = vld [vmem:[%s7738_s9 + $0x8] sm:$0xff] }
 0xe48   :  { %v1911_v46 = vpack.c.bf16 %v7651_v60, %v1907_v40  ;;  %v2020_v60 = vpack.c.bf16 %v2018_v32, %v2003_v56  ;;  %2346 = vmatpush.bf16.msrb.mxu1 %v6576_v48 }
 0xe4a   :  { %5675 = vmatmul.msk.bf16.vlgmr.msra.gmra.mxu1 %vm8746_vm9, %v1911_v46  ;;  %v6570_v46 = vld [vmem:[%s7738_s9 + $0x10] sm:$0xff] }
 0xe4b   :  { %2272 = vmatpush.bf16.msra.mxu0 %v6570_v46 }
 0xe4f   :  { %2273 = vmatpush.bf16.msra.mxu0 %v6569_v52 }
 0xe52   :  { %5690 = vmatmul.msk.bf16.gmra.mxu2 %vm8746_vm9, %v2020_v60 }
 0xe58   :  { %v1951_v44 = vpop.f32.mrf.mxu0 }
 0xe5a   :  { %5676 = vmatmul.msk.bf16.gmra.mxu1 %vm8746_vm9, %v1912_v49 }
 0xe60   :  { %v1953_v5 = vpop.f32.mrf.mxu0 }
 0xec3   :  { %v1956_v23 = vpop.f32.mrf.mxu0 }
 0xec5   :  { %v2053_v22 = vpop.f32.mrf.mxu2 }
 0xec7   :  { %v1988_v4 = vpop.f32.mrf.mxu1 }
 0xec8   :  { %v1989_v13 = vadd.f32 %v1988_v4, %v1951_v44 }
 0xeca   :  { %v2063_v6 = vadd.f32 %v2053_v22, %v1989_v13  ;;  %v6568_v13 = vld [vmem:[%s7738_s9] sm:$0xff] }
 0xecb   :  { %v1958_v26 = vpop.f32.mrf.mxu0  ;;  %2274 = vmatpush.bf16.msra.mxu0 %v6568_v13 }
 0xecc   :  { %v7743_v50 = vadd.f32 %v6758_v3, %v2063_v6 }
 0xecd   :  { %v2055_v7 = vpop.f32.mrf.mxu2 }
 0xece   :  { %v5691_v9 = vmul.f32 -1.442695, %v7743_v50 }
 0xecf   :  { %v1990_v11 = vpop.f32.mrf.mxu1 }
 0xed0   :  { %6893 = vpow2.f32 %v5691_v9  ;;  %v1991_v15 = vadd.f32 %v1990_v11, %v1953_v5 }
 0xed2   :  { %v2064_v16 = vadd.f32 %v2055_v7, %v1991_v15 }
 0xed4   :  { %v7749_v21 = vadd.f32 %v6758_v3, %v2064_v16 }
 0xed5   :  { %v2058_v28 = vpop.f32.mrf.mxu2 }
 0xed6   :  { %v6894_v53 = vpop.eup %6893  ;;  %v5692_v57 = vmul.f32 -1.442695, %v7749_v21 }
 0xed7   :  { %v2087_v27 = vadd.f32 1.0, %v6894_v53  ;;  %v1993_v29 = vpop.f32.mrf.mxu1 }
 0xed8   :  { %6895 = vpow2.f32 %v5692_v57  ;;  %v1994_v2 = vadd.f32 %v1993_v29, %v1956_v23 }
 0xed9   :  { %6897 = vrcp.f32 %v2087_v27  ;;  %v2102_v5 = vand.u32 2147483648, %v2087_v27  ;;  %vm2096_vm10 = vweird.f32 %v2087_v27  ;;  %v2100_v9 = vand.u32 2147483647, %v2087_v27 }
 0xeda   :  { %v2065_v18 = vadd.f32 %v2058_v28, %v1994_v2 }
 0xedb   :  { %v2103_v19 = vor.u32 1.1754944e-38, %v2102_v5  ;;  %vm2101_vm12 = vcmp.eq.f32.partialorder %v2100_v9, 8.507059e+37 }
 0xedc   :  { %v7755_v36 = vadd.f32 %v6758_v3, %v2065_v18 }
 0xedd   :  { %v2060_v60 = vpop.f32.mrf.mxu2 }
 0xede   :  { %v6896_v14 = vpop.eup %6895  ;;  %v5693_v10 = vmul.f32 -1.442695, %v7755_v36 }
 0xedf   :  { %v6898_v41 = vpop.eup %6897  ;;  %v2088_v25 = vadd.f32 1.0, %v6896_v14  ;;  %v1995_v40 = vpop.f32.mrf.mxu1 }
 0xee0   :  { %v2092_v56 = vmul.f32 %v6898_v41, %v2087_v27  ;;  %6899 = vpow2.f32 %v5693_v10  ;;  %v1996_v32 = vadd.f32 %v1995_v40, %v1958_v26  ;;  %vm2097_vm8 = vweird.f32 %v6898_v41 }
 0xee1   :  { %6901 = vrcp.f32 %v2088_v25  ;;  %vm2098_vm14 = vmor %vm2096_vm10, %vm2097_vm8  ;;  %v2115_v63 = vand.u32 2147483647, %v2088_v25  ;;  %vm2111_vm0 = vweird.f32 %v2088_v25 }
 0xee2   :  { %v2093_v61 = vsub.f32 1.0, %v2092_v56  ;;  %v2066_v34 = vadd.f32 %v2060_v60, %v1996_v32 }
 0xee3   :  { %vm2116_vm1 = vcmp.eq.f32.partialorder %v2115_v63, 8.507059e+37 }
 0xee4   :  { %v7761_v62 = vadd.f32 %v6758_v3, %v2066_v34  ;;  %v2094_v49 = vmul.f32 %v6898_v41, %v2093_v61  ;;  %v2117_v3 = vand.u32 2147483648, %v2088_v25 }
 0xee6   :  { %v6900_v44 = vpop.eup %6899  ;;  %v5694_v22 = vmul.f32 -1.442695, %v7761_v62  ;;  %v2095_v37 = vadd.f32 %v6898_v41, %v2094_v49  ;;  %v2118_v53 = vor.u32 1.1754944e-38, %v2117_v3 }
 0xee7   :  { %v6902_v4 = vpop.eup %6901  ;;  %v2089_v1 = vadd.f32 1.0, %v6900_v44 }
 0xee8   :  { %v2107_v6 = vmul.f32 %v6902_v4, %v2088_v25  ;;  %6903 = vpow2.f32 %v5694_v22  ;;  %vm2112_vm15 = vweird.f32 %v6902_v4  ;;  %v2099_v15 = vsel %vm2098_vm14, %v6898_v41, %v2095_v37 }
 0xee9   :  { %6905 = vrcp.f32 %v2089_v1  ;;  %vm2113_vm11 = vmor %vm2111_vm0, %vm2112_vm15  ;;  %v2104_v28 = vsel %vm2101_vm12, %v2103_v19, %v2099_v15  ;;  %v2132_v33 = vand.u32 2147483648, %v2089_v1  ;;  %v2130_v10 = vand.u32 2147483647, %v2089_v1 }
 0xeea   :  { %v2108_v7 = vsub.f32 1.0, %v2107_v6  ;;  %v2151_v35 = vmul.f32 %v2104_v28, %v7743_v50  ;;  %vm2126_vm10 = vweird.f32 %v2089_v1 }
 0xeeb   :  { %v2133_v40 = vor.u32 1.1754944e-38, %v2132_v33  ;;  %v6601_v33 = vld [vmem:[%s7807_s1 + $0xa8] sm:$0xff] }
 0xeec   :  { %v2109_v11 = vmul.f32 %v6902_v4, %v2108_v7  ;;  %v2286_v49 = vrot.slane %v2151_v35, 1  ;;  %v2155_v9 = vrot.slane %v2151_v35, 7 }
 0xeee   :  { %v6904_v16 = vpop.eup %6903  ;;  %v2110_v20 = vadd.f32 %v6902_v4, %v2109_v11 }
 0xeef   :  { %v6906_v23 = vpop.eup %6905  ;;  %v2090_v57 = vadd.f32 1.0, %v6904_v16 }
 0xef0   :  { %v2114_v29 = vsel %vm2113_vm11, %v6902_v4, %v2110_v20  ;;  %v2122_v8 = vmul.f32 %v6906_v23, %v2089_v1  ;;  %vm2127_vm8 = vweird.f32 %v6906_v23 }
 0xef1   :  { %v2119_v27 = vsel %vm2116_vm1, %v2118_v53, %v2114_v29  ;;  %6907 = vrcp.f32 %v2090_v57  ;;  %vm2128_vm14 = vmor %vm2126_vm10, %vm2127_vm8  ;;  %vm2131_vm1 = vcmp.eq.f32.partialorder %v2130_v10, 8.507059e+37  ;;  %v2147_v60 = vand.u32 2147483648, %v2090_v57  ;;  %v6611_v10 = vld [vmem:[%s7807_s1 + $0xf8] sm:$0xff] }
 0xef2   :  { %v2152_v2 = vmul.f32 %v2119_v27, %v7749_v21  ;;  %v2123_v18 = vsub.f32 1.0, %v2122_v8  ;;  %v2145_v52 = vand.u32 2147483647, %v2090_v57  ;;  %vm2141_vm12 = vweird.f32 %v2090_v57  ;;  %2823 = vmatpush.bf16.msra.mxu1 %v6611_v10  ;;  %v6582_v10 = vld [vmem:[%s7807_s1 + $0x10] sm:$0xff] }
 0xef3   :  { %v2148_v4 = vor.u32 1.1754944e-38, %v2147_v60  ;;  %v6609_v60 = vld [vmem:[%s7807_s1 + $0xe8] sm:$0xff] }
 0xef4   :  { %v2124_v14 = vmul.f32 %v6906_v23, %v2123_v18  ;;  %v2177_v41 = vpack.c.bf16 %v2152_v2, %v2151_v35  ;;  %v2287_v50 = vrot.slane %v2152_v2, 1  ;;  %vm2146_vm0 = vcmp.eq.f32.partialorder %v2145_v52, 8.507059e+37  ;;  %v6603_v18 = vld [vmem:[%s7807_s1 + $0xb8] sm:$0xff]  ;;  %v6602_v35 = vld [vmem:[%s7807_s1 + $0xb0] sm:$0xff] }
 0xef5   :  { %v2156_v7 = vrot.slane %v2152_v2, 7  ;;  %2721 = vmatpush.bf16.msrb.mxu0 %v6603_v18 }
 0xef6   :  { %v2125_v26 = vadd.f32 %v6906_v23, %v2124_v14  ;;  %5719 = vmatmul.msk.bf16.vlgmr.msra.gmra.mxu3 %vm8745_vm13, %v2177_v41  ;;  %v2292_v1 = vsel %vm8744_vm6, %v2286_v49, %v2287_v50 }
 0xef7   :  { %v6908_v25 = vpop.eup %6907 }
 0xef8   :  { %v2129_v46 = vsel %vm2128_vm14, %v6906_v23, %v2125_v26  ;;  %v2137_v48 = vmul.f32 %v6908_v25, %v2090_v57  ;;  %vm2142_vm11 = vweird.f32 %v6908_v25  ;;  %v6600_v26 = vld [vmem:[%s7807_s1 + $0xa0] sm:$0xff] }
 0xef9   :  { %v2134_v56 = vsel %vm2131_vm1, %v2133_v40, %v2129_v46  ;;  %vm2143_vm15 = vmor %vm2141_vm12, %vm2142_vm11  ;;  %2722 = vmatpush.bf16.msrb.mxu0 %v6602_v35  ;;  %v6599_v46 = vld [vmem:[%s7807_s1 + $0x98] sm:$0xff] }
 0xefa   :  { %v2153_v21 = vmul.f32 %v2134_v56, %v7755_v36  ;;  %v2138_v32 = vsub.f32 1.0, %v2137_v48  ;;  %v7817_v56 = vld [vmem:[%s7780_s2] ss:$0 sm:$0xff] }
 0xefc   :  { %v2288_v61 = vrot.slane %v2153_v21, 1  ;;  %v2139_v34 = vmul.f32 %v6908_v25, %v2138_v32  ;;  %v2157_v57 = vrot.slane %v2153_v21, 7  ;;  %v6595_v32 = vld [vmem:[%s7807_s1 + $0x78] sm:$0xff] }
 0xefd   :  { %2723 = vmatpush.bf16.msrb.mxu0 %v6601_v33  ;;  %2568 = vmatpush.bf16.msrb.mxu2 %v6595_v32 }
 0xefe   :  { %v2140_v44 = vadd.f32 %v6908_v25, %v2139_v34  ;;  %v2291_v22 = vsel %vm8744_vm6, %v2287_v50, %v2288_v61  ;;  %v2160_v29 = vsel %vm8743_vm5, %v2156_v7, %v2157_v57  ;;  %v6587_v50 = vld [vmem:[%s7807_s1 + $0x38] sm:$0xff]  ;;  %v6598_v34 = vld [vmem:[%s7807_s1 + $0x90] sm:$0xff] }
 0xeff   :  { %v2295_v36 = vsel %vm8742_vm2, %v2291_v22, 0.0  ;;  %v2165_v27 = vsel %vm8727_vm7, %v2160_v29, 0.0  ;;  %2635 = vmatpush.bf16.msrb.mxu3 %v6587_v50  ;;  %v6594_v22 = vld [vmem:[%s7807_s1 + $0x70] sm:$0xff] }
 0xf00   :  { %v2144_v13 = vsel %vm2143_vm15, %v6908_v25, %v2140_v44  ;;  %v2298_v6 = vpack.c.bf16 %v2295_v36, %v2292_v1  ;;  %v6610_v25 = vld [vmem:[%s7807_s1 + $0xf0] sm:$0xff]  ;;  %v6608_v1 = vld [vmem:[%s7807_s1 + $0xe0] sm:$0xff] }
 0xf01   :  { %v2149_v37 = vsel %vm2146_vm0, %v2148_v4, %v2144_v13  ;;  %2724 = vmatpush.bf16.msrb.mxu0 %v6600_v26  ;;  %2824 = vmatpush.bf16.msra.mxu1 %v6610_v25  ;;  %v6586_v4 = vld [vmem:[%s7807_s1 + $0x30] sm:$0xff]  ;;  %v6597_v13 = vld [vmem:[%s7807_s1 + $0x88] sm:$0xff] }
 0xf02   :  { %v2154_v5 = vmul.f32 %v2149_v37, %v7761_v62  ;;  %5763 = vmatmul.msk.bf16.vlgmr.msrb.gmra.mxu1 %vm8745_vm13, %v2298_v6  ;;  %v2161_v62 = vsel %vm8743_vm5, %v2155_v9, %v2156_v7  ;;  %2569 = vmatpush.bf16.msrb.mxu2 %v6594_v22  ;;  %v6585_v7 = vld [vmem:[%s7807_s1 + $0x28] sm:$0xff]  ;;  %v6580_v22 = vld [vmem:[%s7807_s1] sm:$0xff] }
 0xf03   :  { %2636 = vmatpush.bf16.msrb.mxu3 %v6586_v4 }
 0xf04   :  { %v2158_v3 = vrot.slane %v2154_v5, 7  ;;  %v2178_v11 = vpack.c.bf16 %v2154_v5, %v2153_v21  ;;  %v2289_v63 = vrot.slane %v2154_v5, 1  ;;  %v6593_v5 = vld [vmem:[%s7807_s1 + $0x68] sm:$0xff] }
 0xf05   :  { %2725 = vmatpush.bf16.msrb.mxu0 %v6599_v46  ;;  %2825 = vmatpush.bf16.msra.mxu1 %v6609_v60 }
 0xf06   :  { %v2162_v15 = vsel %vm8743_vm5, %v2158_v3, %v2155_v9  ;;  %5720 = vmatmul.msk.bf16.gmra.mxu3 %vm8745_vm13, %v2178_v11  ;;  %v2293_v20 = vsel %vm8744_vm6, %v2289_v63, %v2286_v49  ;;  %v2290_v23 = vsel %vm8744_vm6, %v2288_v61, %v2289_v63  ;;  %v2159_v8 = vsel %vm8743_vm5, %v2157_v57, %v2158_v3  ;;  %v6607_v9 = vld [vmem:[%s7807_s1 + $0xd8] sm:$0xff]  ;;  %v6596_v3 = vld [vmem:[%s7807_s1 + $0x80] sm:$0xff] }
 0xf07   :  { %v2163_v16 = vsel %vm8730_vm3, %v2162_v15, 0.0  ;;  %v2297_v53 = vsel %vm8725_vm4, %v2293_v20, 0.0  ;;  %v2168_v2 = vpack.c.bf16 %v2159_v8, %v2165_v27  ;;  %2570 = vmatpush.bf16.msrb.mxu2 %v6593_v5  ;;  %2637 = vmatpush.bf16.msrb.mxu3 %v6585_v7  ;;  %v6606_v20 = vld [vmem:[%s7807_s1 + $0xd0] sm:$0xff]  ;;  %v6591_v8 = vld [vmem:[%s7807_s1 + $0x58] sm:$0xff] }
 0xf08   :  { %v2167_v19 = vpack.c.bf16 %v2161_v62, %v2163_v16  ;;  %v2299_v28 = vpack.c.bf16 %v2297_v53, %v2290_v23  ;;  %v6592_v16 = vld [vmem:[%s7807_s1 + $0x60] sm:$0xff]  ;;  %v6583_v27 = vld [vmem:[%s7807_s1 + $0x18] sm:$0xff] }
 0xf09   :  { %2726 = vmatpush.bf16.msrb.mxu0 %v6598_v34  ;;  %2826 = vmatpush.bf16.msra.mxu1 %v6608_v1  ;;  %v6581_v34 = vld [vmem:[%s7807_s1 + $0x8] sm:$0xff]  ;;  %v6619_v5 = vld [vmem:[%s7807_s1 + $0x138] sm:$0xff] }
 0xf0a   :  { %5737 = vmatmul.msk.bf16.vlgmr.msra.gmra.mxu0 %vm8745_vm13, %v2167_v19  ;;  %v6584_v19 = vld [vmem:[%s7807_s1 + $0x20] sm:$0xff] }
 0xf0b   :  { %2571 = vmatpush.bf16.msrb.mxu2 %v6592_v16  ;;  %2638 = vmatpush.bf16.msrb.mxu3 %v6584_v19 }
 0xf0d   :  { %2727 = vmatpush.bf16.msrb.mxu0 %v6597_v13  ;;  %2827 = vmatpush.bf16.msra.mxu1 %v6607_v9 }
 0xf0f   :  { %2572 = vmatpush.bf16.msrb.mxu2 %v6591_v8  ;;  %2639 = vmatpush.bf16.msrb.mxu3 %v6583_v27 }
 0xf11   :  { %2728 = vmatpush.bf16.msrb.mxu0 %v6596_v3  ;;  %2828 = vmatpush.bf16.msra.mxu1 %v6606_v20  ;;  %v6618_v3 = vld [vmem:[%s7807_s1 + $0x130] sm:$0xff] }
 0xf12   :  { %5764 = vmatmul.msk.bf16.gmra.mxu1 %vm8745_vm13, %v2299_v28 }
 0xf13   :  { %2640 = vmatpush.bf16.msrb.mxu3 %v6582_v10 }
 0xf17   :  { %2641 = vmatpush.bf16.msrb.mxu3 %v6581_v34  ;;  %v6615_v34 = vld [vmem:[%s7807_s1 + $0x118] sm:$0xff] }
 0xf1a   :  { %5738 = vmatmul.msk.bf16.gmra.mxu0 %vm8745_vm13, %v2168_v2  ;;  %v6605_v2 = vld [vmem:[%s7807_s1 + $0xc8] sm:$0xff] }
 0xf1b   :  { %2829 = vmatpush.bf16.msra.mxu1 %v6605_v2  ;;  %2642 = vmatpush.bf16.msrb.mxu3 %v6580_v22 }
 0xf79   :  { %v2227_v14 = vpop.f32.mrf.mxu3 }
 0xf7f   :  { %v2348_v41 = vpop.f32.mrf.mxu1 }
 0xf81   :  { %v2229_v61 = vpop.f32.mrf.mxu3 }
 0xf87   :  { %v2276_v40 = vpop.f32.mrf.mxu0  ;;  %v2350_v49 = vpop.f32.mrf.mxu1 }
 0xf88   :  { %v2277_v48 = vadd.f32 %v2276_v40, %v2227_v14  ;;  %v6590_v14 = vld [vmem:[%s7807_s1 + $0x50] sm:$0xff] }
 0xf89   :  { %v2232_v63 = vpop.f32.mrf.mxu3  ;;  %2573 = vmatpush.bf16.msrb.mxu2 %v6590_v14 }
 0xf8a   :  { %v2358_v21 = vadd.f32 %v2348_v41, %v2277_v48  ;;  %v6604_v41 = vld [vmem:[%s7807_s1 + $0xc0] sm:$0xff] }
 0xf8b   :  { %2830 = vmatpush.bf16.msra.mxu1 %v6604_v41 }
 0xf8c   :  { %v7824_v52 = vadd.f32 %v7817_v56, %v2358_v21 }
 0xf8e   :  { %v5765_v44 = vmul.f32 -1.442695, %v7824_v52 }
 0xf8f   :  { %v2278_v36 = vpop.f32.mrf.mxu0  ;;  %v2353_v53 = vpop.f32.mrf.mxu1 }
 0xf90   :  { %6909 = vpow2.f32 %v5765_v44  ;;  %v2279_v6 = vadd.f32 %v2278_v36, %v2229_v61  ;;  %v6589_v61 = vld [vmem:[%s7807_s1 + $0x48] sm:$0xff]  ;;  %v6588_v44 = vld [vmem:[%s7807_s1 + $0x40] sm:$0xff] }
 0xf91   :  { %v2234_v40 = vpop.f32.mrf.mxu3  ;;  %2574 = vmatpush.bf16.msrb.mxu2 %v6589_v61 }
 0xf92   :  { %v2359_v37 = vadd.f32 %v2350_v49, %v2279_v6 }
 0xf94   :  { %v7836_v11 = vadd.f32 %v7817_v56, %v2359_v37 }
 0xf95   :  { %2575 = vmatpush.bf16.msrb.mxu2 %v6588_v44 }
 0xf96   :  { %v6910_v15 = vpop.eup %6909  ;;  %v5766_v62 = vmul.f32 -1.442695, %v7836_v11 }
 0xf97   :  { %v7842_v23 = vadd.f32 1.0, %v6910_v15  ;;  %v2281_v57 = vpop.f32.mrf.mxu0  ;;  %v2355_v32 = vpop.f32.mrf.mxu1 }
 0xf98   :  { %6911 = vpow2.f32 %v5766_v62  ;;  %v2282_v28 = vadd.f32 %v2281_v57, %v2232_v63  ;;  %v6613_v62 = vld [vmem:[%s7807_s1 + $0x108] sm:$0xff] }
 0xf99   :  { %6913 = vrcp.f32 %v7842_v23  ;;  %v2397_v9 = vand.u32 2147483648, %v7842_v23  ;;  %2934 = vmatpush.bf16.msra.mxu2 %v6619_v5  ;;  %vm2391_vm10 = vweird.f32 %v7842_v23  ;;  %v2395_v63 = vand.u32 2147483647, %v7842_v23 }
 0xf9a   :  { %v2360_v29 = vadd.f32 %v2353_v53, %v2282_v28 }
 0xf9b   :  { %v2398_v28 = vor.u32 1.1754944e-38, %v2397_v9  ;;  %vm2396_vm12 = vcmp.eq.f32.partialorder %v2395_v63, 8.507059e+37 }
 0xf9c   :  { %v7849_v18 = vadd.f32 %v7817_v56, %v2360_v29 }
 0xf9d   :  { %2935 = vmatpush.bf16.msra.mxu2 %v6618_v3 }
 0xf9e   :  { %v6912_v35 = vpop.eup %6911  ;;  %v5767_v33 = vmul.f32 -1.442695, %v7849_v18 }
 0xf9f   :  { %v6914_v26 = vpop.eup %6913  ;;  %v2383_v25 = vadd.f32 1.0, %v6912_v35  ;;  %v2283_v46 = vpop.f32.mrf.mxu0 }
 0xfa0   :  { %v2387_v48 = vmul.f32 %v6914_v26, %v7842_v23  ;;  %6915 = vpow2.f32 %v5767_v33  ;;  %v2284_v21 = vadd.f32 %v2283_v46, %v2234_v40  ;;  %vm2392_vm8 = vweird.f32 %v6914_v26  ;;  %v6617_v33 = vld [vmem:[%s7807_s1 + $0x128] sm:$0xff] }
 0xfa1   :  { %6917 = vrcp.f32 %v2383_v25  ;;  %v2412_v15 = vand.u32 2147483648, %v2383_v25  ;;  %vm7869_vm14 = vmor %vm2391_vm10, %vm2392_vm8  ;;  %v2410_v19 = vand.u32 2147483647, %v2383_v25  ;;  %vm2406_vm11 = vweird.f32 %v2383_v25  ;;  %2936 = vmatpush.bf16.msra.mxu2 %v6617_v33 }
 0xfa2   :  { %v2388_v50 = vsub.f32 1.0, %v2387_v48  ;;  %v2361_v60 = vadd.f32 %v2355_v32, %v2284_v21 }
 0xfa3   :  { %v2413_v23 = vor.u32 1.1754944e-38, %v2412_v15  ;;  %vm2411_vm0 = vcmp.eq.f32.partialorder %v2410_v19, 8.507059e+37  ;;  %v556_v15 = vadd.s32 4294967294, %v512_v30  ;;  %v6612_v30 = vld [vmem:[%s7807_s1 + $0x100] sm:$0xff] }
 0xfa4   :  { %v7859_v49 = vadd.f32 %v7817_v56, %v2361_v60  ;;  %v2389_v1 = vmul.f32 %v6914_v26, %v2388_v50 }
 0xfa6   :  { %v6916_v4 = vpop.eup %6915  ;;  %v5768_v36 = vmul.f32 -1.442695, %v7859_v49  ;;  %v2390_v7 = vadd.f32 %v6914_v26, %v2389_v1 }
 0xfa7   :  { %v6918_v13 = vpop.eup %6917  ;;  %v2384_v6 = vadd.f32 1.0, %v6916_v4 }
 0xfa8   :  { %v2402_v37 = vmul.f32 %v6918_v13, %v2383_v25  ;;  %6919 = vpow2.f32 %v5768_v36  ;;  %vm2407_vm1 = vweird.f32 %v6918_v13  ;;  %v2394_v53 = vsel %vm7869_vm14, %v6914_v26, %v2390_v7  ;;  %v6616_v25 = vld [vmem:[%s7807_s1 + $0x120] sm:$0xff] }
 0xfa9   :  { %6921 = vrcp.f32 %v2384_v6  ;;  %vm2408_vm15 = vmor %vm2406_vm11, %vm2407_vm1  ;;  %v2399_v2 = vsel %vm2396_vm12, %v2398_v28, %v2394_v53  ;;  %v2427_v26 = vand.u32 2147483648, %v2384_v6  ;;  %v2425_v48 = vand.u32 2147483647, %v2384_v6  ;;  %2937 = vmatpush.bf16.msra.mxu2 %v6616_v25 }
 0xfaa   :  { %v2403_v56 = vsub.f32 1.0, %v2402_v37  ;;  %v7881_v40 = vmul.f32 %v2399_v2, %v7824_v52  ;;  %vm2421_vm10 = vweird.f32 %v2384_v6 }
 0xfab   :  { %vm2426_vm1 = vcmp.eq.f32.partialorder %v2425_v48, 8.507059e+37 }
 0xfac   :  { %v2404_v16 = vmul.f32 %v6918_v13, %v2403_v56  ;;  %v2744_v1 = vrot.slane %v7881_v40, 1  ;;  %v2450_v28 = vrot.slane %v7881_v40, 6 }
 0xfad   :  { %2938 = vmatpush.bf16.msra.mxu2 %v6615_v34 }
 0xfae   :  { %v6920_v20 = vpop.eup %6919  ;;  %v2405_v29 = vadd.f32 %v6918_v13, %v2404_v16 }
 0xfaf   :  { %v6922_v57 = vpop.eup %6921  ;;  %v2385_v8 = vadd.f32 1.0, %v6920_v20 }
 0xfb0   :  { %v2417_v27 = vmul.f32 %v6922_v57, %v2384_v6  ;;  %v2409_v35 = vsel %vm2408_vm15, %v6918_v13, %v2405_v29  ;;  %vm2422_vm8 = vweird.f32 %v6922_v57  ;;  %v6614_v13 = vld [vmem:[%s7807_s1 + $0x110] sm:$0xff]  ;;  %vm7098_vm15 = vmmov 1  }
 0xfb1   :  { %6923 = vrcp.f32 %v2385_v8  ;;  %v2414_v14 = vsel %vm2411_vm0, %v2413_v23, %v2409_v35  ;;  %vm2423_vm14 = vmor %vm2421_vm10, %vm2422_vm8  ;;  %v2442_v36 = vand.u32 2147483648, %v2385_v8  ;;  %v2440_v5 = vand.u32 2147483647, %v2385_v8  ;;  %2939 = vmatpush.bf16.msra.mxu2 %v6614_v13 }
 0xfb2   :  { %v2418_v10 = vsub.f32 1.0, %v2417_v27  ;;  %v7877_v41 = vmul.f32 %v2414_v14, %v7836_v11  ;;  %v2428_v11 = vor.u32 1.1754944e-38, %v2427_v26  ;;  %vm2436_vm12 = vweird.f32 %v2385_v8  ;;  %vm7900_vm0 = vmpackc.low %vm8742_vm2, %vm7098_vm15 }
 0xfb3   :  { %v2443_v3 = vor.u32 1.1754944e-38, %v2442_v36  ;;  %vm2441_vm10 = vcmp.eq.f32.partialorder %v2440_v5, 8.507059e+37  ;;  %v2489_v29 = vrot.slane %v7881_v40, 7  ;;  %v605_v13 = vadd.s32 2, %v519_v17 }
 0xfb4   :  { %v2419_v46 = vmul.f32 %v6922_v57, %v2418_v10  ;;  %v2654_v32 = vpack.c.bf16 %v7877_v41, %v7881_v40  ;;  %v2745_v44 = vrot.slane %v7877_v41, 1  ;;  %v2451_v20 = vrot.slane %v7877_v41, 6 }
 0xfb5   :  { %v2490_v53 = vrot.slane %v7877_v41, 7  ;;  %2940 = vmatpush.bf16.msra.mxu2 %v6613_v62  ;;  %v2846_v5 = vrot.slane %v7881_v40, 2  ;;  %v607_v17 = vadd.s32 2, %v533_v39  ;;  %v6620_v62 = vld [vmem:[%s8025_s21] sm:$0xff] }
 0xfb6   :  { %v2420_v21 = vadd.f32 %v6922_v57, %v2419_v46  ;;  %2729 = vmatmul.bf16.vlgmr.msrb.gmra.mxu0 %v2654_v32 }
 0xfb7   :  { %v6924_v50 = vpop.eup %6923 }
 0xfb8   :  { %v2424_v60 = vsel %vm2423_vm14, %v6922_v57, %v2420_v21  ;;  %v2432_v61 = vmul.f32 %v6924_v50, %v2385_v8  ;;  %vm2437_vm11 = vweird.f32 %v6924_v50  ;;  %vm560_vm14 = vcmp.ge.s32.totalorder %v556_v15, 0  ;;  %v6621_v15 = vld [vmem:[%s8025_s21 + $0x8] sm:$0xff] }
 0xfb9   :  { %v2429_v52 = vsel %vm2426_vm1, %v2428_v11, %v2424_v60  ;;  %vm2438_vm8 = vmor %vm2436_vm12, %vm2437_vm11  ;;  %vm8726_vm1 = vcmp.lt.s32.totalorder %v7623_v43, 2  ;;  %2941 = vmatpush.bf16.msra.mxu2 %v6612_v30  ;;  %v558_v11 = vadd.s32 4294967294, %v526_v12  ;;  %2999 = vmatpush.bf16.msra.mxu3 %v6621_v15 }
 0xfba   :  { %v7888_v22 = vmul.f32 %v2429_v52, %v7849_v18  ;;  %v2433_v4 = vsub.f32 1.0, %v2432_v61  ;;  %v2750_v18 = vsel %vm8744_vm6, %v2744_v1, %v2745_v44  ;;  %vm7920_vm11 = vmpackc.low %vm7098_vm15, %vm8730_vm3  ;;  %v2457_v33 = vsel %vm8726_vm1, %v2450_v28, %v2451_v20 }
 0xfbb   :  { %vm7933_vm12 = vmpackc.low %vm7098_vm15, %vm560_vm14  ;;  %vm615_vm3 = vcmp.lt.s32.totalorder %v607_v17, 16 }
 0xfbc   :  { %v2746_v6 = vrot.slane %v7888_v22, 1  ;;  %v2434_v37 = vmul.f32 %v6924_v50, %v2433_v4  ;;  %v2491_v60 = vrot.slane %v7888_v22, 7  ;;  %v2452_v61 = vrot.slane %v7888_v22, 6  ;;  %vm7965_vm14 = vmpackc.low %vm7098_vm15, %vm8727_vm7 }
 0xfbd   :  { %3000 = vmatpush.bf16.msra.mxu3 %v6620_v62 }
 0xfbe   :  { %v2435_v7 = vadd.f32 %v6924_v50, %v2434_v37  ;;  %v2749_v56 = vsel %vm8744_vm6, %v2745_v44, %v2746_v6  ;;  %v2494_v12 = vsel %vm8743_vm5, %v2490_v53, %v2491_v60  ;;  %v2456_v44 = vsel %vm8726_vm1, %v2451_v20, %v2452_v61 }
 0xfbf   :  { %v5958_v63 = vpack.c.bf16 %v2749_v56, %v2750_v18  ;;  %v2847_v37 = vrot.slane %v7877_v41, 2 }
 0xfc0   :  { %v2439_v16 = vsel %vm2438_vm8, %v6924_v50, %v2435_v7  ;;  %vm7948_vm8 = vmpackc.low %vm8725_vm4, %vm7098_vm15 }
 0xfc1   :  { %v2444_v19 = vsel %vm2441_vm10, %v2443_v3, %v2439_v16  ;;  %5959 = vmatmul.msk.bf16.vlgmr.msra.gmra.mxu1 %vm7900_vm0, %v5958_v63  ;;  %vm562_vm10 = vcmp.ge.s32.totalorder %v558_v11, 0 }
 0xfc2   :  { %v2449_v57 = vmul.f32 %v2444_v19, %v7859_v49  ;;  %v2495_v49 = vsel %vm8743_vm5, %v2489_v29, %v2490_v53  ;;  %vm7974_vm4 = vmpackc.low %vm7098_vm15, %vm562_vm10  ;;  %vm8741_vm10 = vcmp.lt.s32.totalorder %v7623_v43, 6 }
 0xfc3   :  { %v2853_v56 = vsel %vm8741_vm10, %v2846_v5, %v2847_v37 }
 0xfc4   :  { %v2453_v8 = vrot.slane %v2449_v57, 6  ;;  %v2492_v23 = vrot.slane %v2449_v57, 7  ;;  %v2655_v27 = vpack.c.bf16 %v2449_v57, %v7888_v22  ;;  %v2747_v46 = vrot.slane %v2449_v57, 1 }
 0xfc5   :  { %v2849_v41 = vrot.slane %v2449_v57, 2 }
 0xfc6   :  { %v2496_v35 = vsel %vm8743_vm5, %v2492_v23, %v2489_v29  ;;  %v2458_v14 = vsel %vm8726_vm1, %v2453_v8, %v2450_v28  ;;  %2734 = vmatmul.bf16.gmra.mxu0 %v2655_v27  ;;  %v2748_v48 = vsel %vm8744_vm6, %v2746_v6, %v2747_v46  ;;  %v2751_v21 = vsel %vm8744_vm6, %v2747_v46, %v2744_v1 }
 0xfc7   :  { %v5818_v26 = vpack.c.bf16 %v2495_v49, %v2496_v35  ;;  %v5856_v25 = vpack.c.bf16 %v2457_v33, %v2458_v14  ;;  %v5961_v50 = vpack.c.bf16 %v2751_v21, %v2748_v48  ;;  %v2493_v52 = vsel %vm8743_vm5, %v2491_v60, %v2492_v23 }
 0xfc8   :  { %v2455_v34 = vsel %vm8726_vm1, %v2452_v61, %v2453_v8  ;;  %v5821_v1 = vpack.c.bf16 %v2493_v52, %v2494_v12  ;;  %v2848_v6 = vrot.slane %v7888_v22, 2  ;;  %vm613_vm1 = vcmp.lt.s32.totalorder %v605_v13, 16 }
 0xfc9   :  { %5819 = vmatmul.msk.bf16.vlgmr.msrb.gmra.mxu2 %vm7920_vm11, %v5818_v26  ;;  %5857 = vmatmul.msk.bf16.vlgmr.msrb.gmra.mxu3 %vm7933_vm12, %v5856_v25  ;;  %v5859_v36 = vpack.c.bf16 %v2455_v34, %v2456_v44  ;;  %vm7993_vm7 = vmpackc.low %vm613_vm1, %vm7098_vm15  ;;  %v2854_v22 = vsel %vm8741_vm10, %v2849_v41, %v2846_v5  ;;  %v6760_v25 = vld [vmem:[%s8000_s30] ss:$0 sm:$0xff] }
 0xfca   :  { %v2852_v7 = vsel %vm8741_vm10, %v2847_v37, %v2848_v6  ;;  %v2851_v40 = vsel %vm8741_vm10, %v2848_v6, %v2849_v41  ;;  %vm8011_vm1 = vmpackc.low %vm615_vm3, %vm7098_vm15 }
 0xfcb   :  { %v6012_v54 = vpack.c.bf16 %v2852_v7, %v2853_v56  ;;  %v6015_v63 = vpack.c.bf16 %v2854_v22, %v2851_v40 }
 0xfd1   :  { %5962 = vmatmul.msk.bf16.gmra.mxu1 %vm7948_vm8, %v5961_v50 }
 0xfd9   :  { %5822 = vmatmul.msk.bf16.gmra.mxu2 %vm7965_vm14, %v5821_v1  ;;  %5860 = vmatmul.msk.bf16.gmra.mxu3 %vm7974_vm4, %v5859_v36 }
 0xfe9   :  { %6013 = vmatmul.msk.bf16.vlgmr.msra.gmra.mxu2 %vm7993_vm7, %v6012_v54 }
 0xff9   :  { %6016 = vmatmul.msk.bf16.gmra.mxu2 %vm8011_vm1, %v6015_v63  ;;  %v8033_v63 = vld [vmem:[%s8020_s29] ss:$0 sm:$0xff] }
0x1033   :  { %v2730_v20 = vpop.f32.mrf.mxu0 }
0x103b   :  { %v2732_v29 = vpop.f32.mrf.mxu0 }
0x103e   :  { %v2832_v53 = vpop.f32.mrf.mxu1 }
0x1043   :  { %v2735_v48 = vpop.f32.mrf.mxu0 }
0x1046   :  { %v2834_v49 = vpop.f32.mrf.mxu1 }
0x104b   :  { %v2737_v13 = vpop.f32.mrf.mxu0 }
0x104c   :  { %v2577_v0 = vpop.f32.mrf.mxu2  ;;  %v2644_v16 = vpop.f32.mrf.mxu3 }
0x104d   :  { %v2645_v30 = vadd.f32 %v2644_v16, %v2577_v0 }
0x104e   :  { %v2837_v61 = vpop.f32.mrf.mxu1 }
0x104f   :  { %v2740_v27 = vadd.f32 %v2730_v20, %v2645_v30 }
0x1051   :  { %v2842_v14 = vadd.f32 %v2832_v53, %v2740_v27 }
0x1054   :  { %v2579_v39 = vpop.f32.mrf.mxu2  ;;  %v2646_v57 = vpop.f32.mrf.mxu3 }
0x1055   :  { %v2647_v8 = vadd.f32 %v2646_v57, %v2579_v39 }
0x1056   :  { %v2839_v5 = vpop.f32.mrf.mxu1 }
0x1057   :  { %v2741_v33 = vadd.f32 %v2732_v29, %v2647_v8 }
0x1059   :  { %v2843_v46 = vadd.f32 %v2834_v49, %v2741_v33  ;;  %v6623_v33 = vld [vmem:[%s7203_s16 + $0x18] sm:$0xff] }
0x105a   :  { %3158 = vmatpush.bf16.msra.mxu0 %v6623_v33 }
0x105c   :  { %v2582_v19 = vpop.f32.mrf.mxu2  ;;  %v2649_v35 = vpop.f32.mrf.mxu3 }
0x105d   :  { %v2650_v34 = vadd.f32 %v2649_v35, %v2582_v19 }
0x105f   :  { %v2742_v36 = vadd.f32 %v2735_v48, %v2650_v34 }
0x1061   :  { %v2844_v37 = vadd.f32 %v2837_v61, %v2742_v36 }
0x1064   :  { %v2584_v28 = vpop.f32.mrf.mxu2  ;;  %v2651_v52 = vpop.f32.mrf.mxu3 }
0x1065   :  { %v2652_v44 = vadd.f32 %v2651_v52, %v2584_v28 }
0x1067   :  { %v2743_v6 = vadd.f32 %v2737_v13, %v2652_v44 }
0x1069   :  { %v2845_v56 = vadd.f32 %v2839_v5, %v2743_v6 }
0x106c   :  { %v2943_v23 = vpop.f32.mrf.mxu2 }
0x106d   :  { %v2953_v26 = vadd.f32 %v2943_v23, %v2842_v14 }
0x106f   :  { %v2961_v11 = vadd.f32 %v6760_v25, %v2953_v26 }
0x1074   :  { %v2945_v21 = vpop.f32.mrf.mxu2 }
0x1075   :  { %v2954_v50 = vadd.f32 %v2945_v21, %v2843_v46 }
0x1077   :  { %v2962_v60 = vadd.f32 %v6760_v25, %v2954_v50 }
0x1079   :  { %v2965_v12 = vpack.c.bf16 %v2962_v60, %v2961_v11 }
0x107b   :  { %6025 = vmatmul.msk.bf16.vlgmr.msra.gmra.mxu3 %vm8746_vm9, %v2965_v12 }
0x107c   :  { %v2948_v1 = vpop.f32.mrf.mxu2 }
0x107d   :  { %v2955_v7 = vadd.f32 %v2948_v1, %v2844_v37  ;;  %v8058_v37 = vld [vmem:[%s7186_s7 + $0x1] ss:$0 sm:$0xff]  ;;  %s8765_s7 = smov 120  }
0x107f   :  { %v2963_v41 = vadd.f32 %v6760_v25, %v2955_v7 }
0x1084   :  { %v2950_v54 = vpop.f32.mrf.mxu2 }
0x1085   :  { %v2956_v17 = vadd.f32 %v2950_v54, %v2845_v56  ;;  %v8061_v54 = vld [vmem:[%s7192_s11 + $0x1] ss:$0 sm:$0xff]  ;;  %s8766_s11 = smov 88  }
0x1087   :  { %v2964_v40 = vadd.f32 %v6760_v25, %v2956_v17  ;;  %v6622_v25 = vld [vmem:[%s7203_s16 + $0x10] sm:$0xff]  ;;  %s8767_s16 = smov 96  }
0x1088   :  { %3159 = vmatpush.bf16.msra.mxu0 %v6622_v25 }
0x1089   :  { %v2966_v22 = vpack.c.bf16 %v2964_v40, %v2963_v41 }
0x108b   :  { %6026 = vmatmul.msk.bf16.gmra.mxu3 %vm8746_vm9, %v2966_v22 }
0x10fe   :  { %v3002_v0 = vpop.f32.mrf.mxu3 }
0x10ff   :  { %v3003_v39 = vadd.f32 %v8033_v63, %v3002_v0 }
0x1101   :  { %v8037_v15 = vadd.f32 %v3003_v39, %v7562_v55 }
0x1103   :  { %v3020_v62 = vsel %vm8746_vm9, %v8037_v15, 0.0 }
0x1104   :  { %3021 = vadd.xlane.f32.xlu0 %v3020_v62 }
0x1106   :  { %v3004_v16 = vpop.f32.mrf.mxu3 }
0x1107   :  { %v3005_v19 = vadd.f32 %v8033_v63, %v3004_v16  ;;  %v8069_v16 = vld [vmem:[%s7232_s19 + $0x1] ss:$0 sm:$0xff]  ;;  %s8768_s19 = smov 112  }
0x1109   :  { %v8043_v20 = vadd.f32 %v3005_v19, %v7557_v45 }
0x110b   :  { %v3023_v53 = vsel %vm8746_vm9, %v8043_v20, 0.0 }
0x110c   :  { %3024 = vadd.xlane.f32.xlu1 %v3023_v53 }
0x1177   :  { %v3022_v57 = vpop.xlane.xlu0 %3021 }
0x1178   :  { %v3032_v28 = vmul.f32 %v3022_v57, %v7168_v51 }
0x117a   :  { %v3036_v55 = vsub.f32 %v8037_v15, %v3032_v28 }
0x117c   :  { %v3040_v30 = vmul.f32 %v3036_v55, %v3036_v55 }
0x117e   :  { %v3044_v29 = vsel %vm8746_vm9, %v3040_v30, 0.0 }
0x117f   :  { %v3025_v8 = vpop.xlane.xlu1 %3024  ;;  %3045 = vadd.xlane.f32.xlu2 %v3044_v29 }
0x1180   :  { %v3033_v23 = vmul.f32 %v3025_v8, %v7168_v51 }
0x1182   :  { %v3037_v45 = vsub.f32 %v8043_v20, %v3033_v23 }
0x1184   :  { %v3041_v27 = vmul.f32 %v3037_v45, %v3037_v45 }
0x1186   :  { %v3047_v49 = vsel %vm8746_vm9, %v3041_v27, 0.0 }
0x1187   :  { %3048 = vadd.xlane.f32.xlu0 %v3047_v49 }
0x11f2   :  { %v3046_v35 = vpop.xlane.xlu2 %3045 }
0x11f3   :  { %v3056_v14 = vmul.f32 %v3046_v35, %v7168_v51 }
0x11f5   :  { %v3060_v26 = vadd.f32 1e-05, %v3056_v14 }
0x11f7   :  { %6925 = vrsqrt.f32 %v3060_v26  ;;  %vm3070_vm15 = vweird.f32 %v3060_v26 }
0x11fa   :  { %v3049_v46 = vpop.xlane.xlu0 %3048 }
0x11fb   :  { %v3057_v48 = vmul.f32 %v3049_v46, %v7168_v51 }
0x11fd   :  { %v6926_v21 = vpop.eup %6925  ;;  %v3061_v50 = vadd.f32 1e-05, %v3057_v48  ;;  %v6052_v48 = vld [vmem:[%s7276_s28 + $0x50] sm:$0xff] }
0x11fe   :  { %v3065_v11 = vmul.f32 %v6926_v21, %v3060_v26  ;;  %vm3071_vm3 = vweird.f32 %v6926_v21 }
0x11ff   :  { %6927 = vrsqrt.f32 %v3061_v50  ;;  %vm3072_vm10 = vmor %vm3070_vm15, %vm3071_vm3  ;;  %vm3080_vm5 = vweird.f32 %v3061_v50 }
0x1200   :  { %v3066_v60 = vmul.f32 %v6926_v21, %v3065_v11 }
0x1202   :  { %v3067_v61 = vmul.f32 0.5, %v3066_v60 }
0x1204   :  { %v3068_v52 = vsub.f32 1.5, %v3067_v61 }
0x1205   :  { %v6928_v34 = vpop.eup %6927 }
0x1206   :  { %v3069_v12 = vmul.f32 %v6926_v21, %v3068_v52  ;;  %v3075_v44 = vmul.f32 %v6928_v34, %v3061_v50  ;;  %vm3081_vm2 = vweird.f32 %v6928_v34  ;;  %v6053_v52 = vld [vmem:[%s7276_s28 + $0x58] sm:$0xff] }
0x1207   :  { %vm3082_vm6 = vmor %vm3080_vm5, %vm3081_vm2  ;;  %vm8769_vm5 = vcmask 64512  }
0x1208   :  { %v3076_v1 = vmul.f32 %v6928_v34, %v3075_v44  ;;  %v3073_v36 = vsel %vm3072_vm10, %v6926_v21, %v3069_v12  ;;  %vm8771_vm2 = vmmov %vm8769_vm5 }
0x1209   :  { %v3104_v5 = vmul.f32 %v3073_v36, %v3036_v55  ;;  %v3007_v55 = vpop.f32.mrf.mxu3  ;;  %vm8772_vm10 = vmmov %vm8771_vm2 }
0x120a   :  { %v3077_v13 = vmul.f32 0.5, %v3076_v1  ;;  %v3008_v30 = vadd.f32 %v8033_v63, %v3007_v55  ;;  %vm8773_vm3 = vmmov %vm8771_vm2 }
0x120b   :  { %v3111_v17 = vmul.f32 %v8058_v37, %v3104_v5  ;;  %vm8774_vm15 = vmmov %vm8771_vm2 }
0x120c   :  { %v3078_v6 = vsub.f32 1.5, %v3077_v13  ;;  %v8087_v29 = vadd.f32 %v3008_v30, %v7567_v59 }
0x120d   :  { %v3118_v22 = vadd.f32 %v8061_v54, %v3111_v17 }
0x120e   :  { %v3079_v7 = vmul.f32 %v6928_v34, %v3078_v6  ;;  %v3026_v23 = vsel %vm8746_vm9, %v8087_v29, 0.0  ;;  %v6058_v6 = vld [vmem:[%s7276_s28 + $0x60] sm:$0xff] }
0x1210   :  { %v3083_v56 = vsel %vm3082_vm6, %v6928_v34, %v3079_v7  ;;  %vm8770_vm6 = vmmov %vm8769_vm5 }
0x1211   :  { %v3105_v41 = vmul.f32 %v3083_v56, %v3037_v45  ;;  %v3009_v8 = vpop.f32.mrf.mxu3 }
0x1212   :  { %v3010_v45 = vadd.f32 %v8033_v63, %v3009_v8 }
0x1213   :  { %v3112_v40 = vmul.f32 %v8058_v37, %v3105_v41 }
0x1214   :  { %v8093_v27 = vadd.f32 %v3010_v45, %v7582_v31 }
0x1215   :  { %v3119_v0 = vadd.f32 %v8061_v54, %v3112_v40  ;;  %v6059_v40 = vld [vmem:[%s7276_s28 + $0x68] sm:$0xff] }
0x1216   :  { %v3029_v49 = vsel %vm8746_vm9, %v8093_v27, 0.0 }
0x1217   :  { %v3122_v39 = vpack.c.bf16 %v3119_v0, %v3118_v22 }
0x1219   :  { %6042 = vmatmul.msk.bf16.vlgmr.msra.gmra.mxu0 %vm8746_vm9, %v3122_v39 }
0x1296   :  { %v3161_v62 = vpop.f32.mrf.mxu0 }
0x1297   :  { %v3162_v53 = vadd.f32 %v8069_v16, %v3161_v62 }
0x129e   :  { %v3163_v19 = vpop.f32.mrf.mxu0 }
0x129f   :  { %v3164_v57 = vadd.f32 %v8069_v16, %v3163_v19 }
0x12a1   :  { %v8073_v28 = vpack.c.bf16 %v3164_v57, %v3162_v53 }
0x12a3   :  { %3363 = vrot.lane.b32.xlu0 %v8073_v28, %s7073_s22  ;;  %3250 = vrot.lane.b32.xlu2 %v8073_v28, %s8765_s7 }
0x12a4   :  { %3252 = vrot.lane.b32.xlu1 %v8073_v28, %s8766_s11 }
0x12ab   :  { %3181 = vrot.lane.b32.xlu0 %v8073_v28, %s8767_s16 }
0x12ac   :  { %3361 = vrot.lane.b32.xlu1 %v8073_v28, %s8768_s19 }
0x12cc   :  { %3027 = vadd.xlane.f32.xlu2 %v3026_v23 }
0x12d6   :  { %3030 = vadd.xlane.f32.xlu1 %v3029_v49 }
0x12fd   :  { %v3251_v25 = vpop.permute.xlu2 %3250 }
0x1315   :  { %v3364_v35 = vpop.permute.xlu0 %3363 }
0x1316   :  { %v3369_v33 = vsel %vm8769_vm5, %v3364_v35, 0  ;;  %v3253_v59 = vpop.permute.xlu1 %3252  ;;  %vm8775_vm5 = vcmask 130048  }
0x1317   :  { %v3258_v14 = vsel %vm8770_vm6, %v3253_v59, 0  ;;  %vm8776_vm6 = vmmov %vm8775_vm5 }
0x1318   :  { %3267 = vmatpush.bf16.xpose.msrb.mxu2 %v3258_v14 }
0x131d   :  { %v3182_v26 = vpop.permute.xlu0 %3181 }
0x131e   :  { %v3187_v63 = vsel %vm8771_vm2, %v3182_v26, 0  ;;  %v3362_v31 = vpop.permute.xlu1 %3361  ;;  %vm8777_vm2 = vmmov %vm8775_vm5 }
0x131f   :  { %6054 = vmatmul.msk.bf16.vlgmr.msrb.gmra.mxu2 %vm8772_vm10, %v3251_v25  ;;  %3196 = vmatpush.bf16.xpose.msrb.mxu1 %v3187_v63  ;;  %vm8778_vm10 = vmmov %vm8777_vm2 }
0x1320   :  { %3378 = vmatpush.bf16.xpose.msra.mxu2 %v3369_v33 }
0x1326   :  { %6050 = vmatmul.msk.bf16.vlgmr.msrb.gmra.mxu1 %vm8773_vm3, %v8073_v28  ;;  %vm8780_vm3 = vmmov %vm8777_vm2 }
0x132f   :  { %6060 = vmatmul.msk.bf16.vlgmr.msra.gmra.mxu2 %vm8774_vm15, %v3362_v31  ;;  %vm8781_vm15 = vmmov %vm8777_vm2 }
0x133f   :  { %v3028_v46 = vpop.xlane.xlu2 %3027 }
0x1340   :  { %v3034_v21 = vmul.f32 %v3028_v46, %v7168_v51 }
0x1342   :  { %v8107_v60 = vsub.f32 %v8087_v29, %v3034_v21 }
0x1344   :  { %v3042_v34 = vmul.f32 %v8107_v60, %v8107_v60 }
0x1346   :  { %v3050_v36 = vsel %vm8746_vm9, %v3042_v34, 0.0 }
0x1349   :  { %v3031_v13 = vpop.xlane.xlu1 %3030 }
0x134a   :  { %v3035_v5 = vmul.f32 %v3031_v13, %v7168_v51 }
0x134c   :  { %v8118_v17 = vsub.f32 %v8093_v27, %v3035_v5 }
0x134e   :  { %v3043_v22 = vmul.f32 %v8118_v17, %v8118_v17 }
0x1350   :  { %v3053_v19 = vsel %vm8746_vm9, %v3043_v22, 0.0 }
0x13a2   :  { %v3269_v50 = vpop.f32.mrf.mxu2 }
0x13a3   :  { %v3270_v11 = vadd.f32 %v6052_v48, %v3269_v50  ;;  %v3198_v5 = vpop.f32.mrf.mxu1 }
0x13a5   :  { %v3274_v61 = vsel %vm8775_vm5, %v3270_v11, -inf  ;;  %vm8782_vm5 = vmmov %vm8777_vm2 }
0x13a6   :  { %3275 = vmax.xlane.f32.xlu0 %v3274_v61 }
0x13aa   :  { %v3271_v12 = vpop.f32.mrf.mxu2 }
0x13ab   :  { %v3272_v44 = vadd.f32 %v6053_v52, %v3271_v12 }
0x13ad   :  { %v3277_v1 = vsel %vm8776_vm6, %v3272_v44, -inf  ;;  %vm8783_vm6 = vmmov %vm8777_vm2 }
0x13ae   :  { %3278 = vmax.xlane.f32.xlu2 %v3277_v1  ;;  %3051 = vadd.xlane.f32.xlu0 %v3050_v36 }
0x13b2   :  { %v3380_v7 = vpop.f32.mrf.mxu2 }
0x13b3   :  { %v3381_v56 = vadd.f32 %v6058_v6, %v3380_v7 }
0x13b5   :  { %v3385_v41 = vsel %vm8777_vm2, %v3381_v56, -inf }
0x13b6   :  { %3386 = vmax.xlane.f32.xlu1 %v3385_v41  ;;  %v6048_v41 = vld [vmem:[%s7276_s28 + $0x40] sm:$0xff] }
0x13ba   :  { %v3382_v0 = vpop.f32.mrf.mxu2 }
0x13bb   :  { %v3383_v39 = vadd.f32 %v6059_v40, %v3382_v0 }
0x13bd   :  { %v3388_v62 = vsel %vm8778_vm10, %v3383_v39, -inf }
0x13be   :  { %3389 = vmax.xlane.f32.xlu2 %v3388_v62  ;;  %3054 = vadd.xlane.f32.xlu1 %v3053_v19 }
0x13d7   :  { %3297 = vrot.lane.b32.xlu1 %v8073_v28, %s8779_s20 }
0x1419   :  { %v3276_v53 = vpop.xlane.xlu0 %3275 }
0x141a   :  { %v3280_v57 = vsub.f32 %v3270_v11, %v3276_v53 }
0x141c   :  { %v3282_v55 = vmul.f32 1.442695, %v3280_v57 }
0x141e   :  { %6929 = vpow2.f32 %v3282_v55 }
0x1421   :  { %v3279_v30 = vpop.xlane.xlu2 %3278  ;;  %v3052_v8 = vpop.xlane.xlu0 %3051 }
0x1422   :  { %v3281_v23 = vsub.f32 %v3272_v44, %v3279_v30  ;;  %v3058_v45 = vmul.f32 %v3052_v8, %v7168_v51  ;;  %v6049_v30 = vld [vmem:[%s7276_s28 + $0x48] sm:$0xff]  ;;  %v3200_v8 = vpop.f32.mrf.mxu1 }
0x1424   :  { %v8129_v49 = vpop.eup %6929  ;;  %v3284_v35 = vmul.f32 1.442695, %v3281_v23  ;;  %v3062_v33 = vadd.f32 1e-05, %v3058_v45 }
0x1425   :  { %v3286_v59 = vsel %vm8780_vm3, %v8129_v49, 0.0 }
0x1426   :  { %6931 = vpow2.f32 %v3284_v35  ;;  %3287 = vadd.xlane.f32.xlu2 %v3286_v59  ;;  %vm3090_vm10 = vweird.f32 %v3062_v33  ;;  %v3201_v35 = vadd.f32 %v6049_v30, %v3200_v8  ;;  %v6045_v30 = vld [vmem:[%s7317_s8 + $0x14] sm:$0xf] }
0x1427   :  { %6933 = vrsqrt.f32 %v3062_v33 }
0x1429   :  { %v3387_v14 = vpop.xlane.xlu1 %3386 }
0x142a   :  { %v3391_v26 = vsub.f32 %v3381_v56, %v3387_v14 }
0x142c   :  { %v8133_v25 = vpop.eup %6931  ;;  %v3393_v63 = vmul.f32 1.442695, %v3391_v26 }
0x142d   :  { %v6934_v31 = vpop.eup %6933  ;;  %v3289_v46 = vsel %vm8781_vm15, %v8133_v25, 0.0 }
0x142e   :  { %v3085_v48 = vmul.f32 %v6934_v31, %v3062_v33  ;;  %6935 = vpow2.f32 %v3393_v63  ;;  %3290 = vadd.xlane.f32.xlu0 %v3289_v46  ;;  %vm3091_vm2 = vweird.f32 %v6934_v31 }
0x142f   :  { %vm3092_vm3 = vmor %vm3090_vm10, %vm3091_vm2 }
0x1430   :  { %v3086_v11 = vmul.f32 %v6934_v31, %v3085_v48  ;;  %vm8784_vm2 = vmmov %vm8782_vm5 }
0x1431   :  { %v3390_v21 = vpop.xlane.xlu2 %3389  ;;  %v3055_v50 = vpop.xlane.xlu1 %3054  ;;  %vm8790_vm10 = vmmov %vm8784_vm2 }
0x1432   :  { %v3392_v61 = vsub.f32 %v3383_v39, %v3390_v21  ;;  %v3059_v52 = vmul.f32 %v3055_v50, %v7168_v51  ;;  %v3087_v36 = vmul.f32 0.5, %v3086_v11  ;;  %v3199_v39 = vadd.f32 %v6048_v41, %v3198_v5 }
0x1434   :  { %v8138_v34 = vpop.eup %6935  ;;  %v3395_v12 = vmul.f32 1.442695, %v3392_v61  ;;  %v3063_v44 = vadd.f32 1e-05, %v3059_v52  ;;  %v3088_v13 = vsub.f32 1.5, %v3087_v36  ;;  %v3203_v55 = vsel %vm8782_vm5, %v3199_v39, -inf }
0x1435   :  { %v3397_v1 = vsel %vm8782_vm5, %v8138_v34, 0.0  ;;  %vm8793_vm5 = vcmask 1043456  }
0x1436   :  { %6937 = vpow2.f32 %v3395_v12  ;;  %3398 = vadd.xlane.f32.xlu2 %v3397_v1  ;;  %v3089_v40 = vmul.f32 %v6934_v31, %v3088_v13  ;;  %v3322_v8 = vsel %vm8793_vm5, %v6045_v30, 0 }
0x1437   :  { %6939 = vrsqrt.f32 %v3063_v44  ;;  %3331 = vmatpush.bf16.msrb.mxu0 %v3322_v8 }
0x1438   :  { %v3093_v62 = vsel %vm3092_vm3, %v6934_v31, %v3089_v40  ;;  %vm8791_vm3 = vmmov %vm8784_vm2 }
0x1439   :  { %v3106_v57 = vmul.f32 %v3093_v62, %v8107_v60  ;;  %v3206_v60 = vsel %vm8784_vm2, %v3201_v35, -inf }
0x143b   :  { %v3113_v14 = vmul.f32 %v8058_v37, %v3106_v57 }
0x143c   :  { %v6938_v6 = vpop.eup %6937 }
0x143d   :  { %v6940_v7 = vpop.eup %6939  ;;  %v3400_v56 = vsel %vm8783_vm6, %v6938_v6, 0.0  ;;  %vm3100_vm6 = vweird.f32 %v3063_v44  ;;  %v3120_v63 = vadd.f32 %v8061_v54, %v3113_v14 }
0x143e   :  { %v3095_v22 = vmul.f32 %v6940_v7, %v3063_v44  ;;  %3401 = vadd.xlane.f32.xlu0 %v3400_v56  ;;  %vm3101_vm15 = vweird.f32 %v6940_v7 }
0x143f   :  { %vm3102_vm13 = vmor %vm3100_vm6, %vm3101_vm15 }
0x1440   :  { %v3096_v0 = vmul.f32 %v6940_v7, %v3095_v22  ;;  %vm8792_vm15 = vmmov %vm8784_vm2 }
0x1441   :  { %vm8794_vm6 = vmmov %vm8793_vm5 }
0x1442   :  { %v3097_v19 = vmul.f32 0.5, %v3096_v0 }
0x1444   :  { %v3098_v53 = vsub.f32 1.5, %v3097_v19 }
0x1446   :  { %v3099_v23 = vmul.f32 %v6940_v7, %v3098_v53  ;;  %3204 = vmax.xlane.f32.xlu0 %v3203_v55 }
0x1448   :  { %v3103_v45 = vsel %vm3102_vm13, %v6940_v7, %v3099_v23  ;;  %vm8789_vm13 = vmmov %vm8784_vm2  ;;  %v6046_v23 = vld [vmem:[%s7317_s8 + $0x18] sm:$0xf] }
0x1449   :  { %v3107_v33 = vmul.f32 %v3103_v45, %v8118_v17  ;;  %v3298_v59 = vpop.permute.xlu1 %3297  ;;  %v3433_v45 = vsel %vm8794_vm6, %v6046_v23, 0  ;;  %vm8795_vm2 = vmmov %vm8793_vm5 }
0x144a   :  { %3310 = vmatpush.bf16.msrb.mxu3 %v3298_v59  ;;  %3442 = vmatpush.bf16.msra.mxu0 %v3433_v45 }
0x144b   :  { %v3114_v26 = vmul.f32 %v8058_v37, %v3107_v33 }
0x144d   :  { %v3121_v31 = vadd.f32 %v8061_v54, %v3114_v26 }
0x144e   :  { %3207 = vmax.xlane.f32.xlu0 %v3206_v60  ;;  %3408 = vrot.lane.b32.xlu2 %v8073_v28, %s8785_s23 }
0x144f   :  { %v3123_v46 = vpack.c.bf16 %v3121_v31, %v3120_v63 }
0x1451   :  { %6043 = vmatmul.msk.bf16.gmra.mxu0 %vm8746_vm9, %v3123_v46 }
0x1456   :  { %3226 = vrot.lane.b32.xlu2 %v8073_v28, %s8786_s24 }
0x145e   :  { %3456 = vrot.lane.b32.xlu2 %v8073_v28, %s8787_s4 }
0x1466   :  { %3454 = vrot.lane.b32.xlu2 %v8073_v28, %s8788_s13 }
0x1499   :  { %v3288_v37 = vpop.xlane.xlu2 %3287 }
0x149a   :  { %6941 = vrcp.f32 %v3288_v37 }
0x14a0   :  { %v6942_v54 = vpop.eup %6941 }
0x14a1   :  { %v3291_v17 = vpop.xlane.xlu0 %3290  ;;  %v3294_v21 = vmul.f32 %v6942_v54, %v8129_v49 }
0x14a2   :  { %6943 = vrcp.f32 %v3291_v17 }
0x14a8   :  { %v6944_v48 = vpop.eup %6943 }
0x14a9   :  { %v3295_v50 = vmul.f32 %v6944_v48, %v8133_v25  ;;  %v3399_v11 = vpop.xlane.xlu2 %3398 }
0x14aa   :  { %6945 = vrcp.f32 %v3399_v11 }
0x14ab   :  { %v3296_v61 = vpack.c.bf16 %v3295_v50, %v3294_v21 }
0x14ad   :  { %6055 = vmatmul.msk.bf16.vlgmr.msrb.gmra.mxu3 %vm8789_vm13, %v3296_v61  ;;  %vm8796_vm13 = vcmask 64512  }
0x14b0   :  { %v6946_v44 = vpop.eup %6945 }
0x14b1   :  { %v3402_v52 = vpop.xlane.xlu0 %3401  ;;  %v3409_v12 = vpop.permute.xlu2 %3408  ;;  %v3405_v36 = vmul.f32 %v6946_v44, %v8138_v34 }
0x14b2   :  { %6947 = vrcp.f32 %v3402_v52  ;;  %3421 = vmatpush.bf16.msra.mxu3 %v3409_v12 }
0x14b8   :  { %v6948_v1 = vpop.eup %6947 }
0x14b9   :  { %v3406_v13 = vmul.f32 %v6948_v1, %v6938_v6  ;;  %v3205_v5 = vpop.xlane.xlu0 %3204  ;;  %v3227_v7 = vpop.permute.xlu2 %3226 }
0x14ba   :  { %v3209_v56 = vsub.f32 %v3199_v39, %v3205_v5  ;;  %3239 = vmatpush.bf16.msra.mxu1 %v3227_v7 }
0x14bb   :  { %v3407_v49 = vpack.c.bf16 %v3406_v13, %v3405_v36 }
0x14bc   :  { %v3211_v25 = vmul.f32 1.442695, %v3209_v56  ;;  %v6069_v56 = vld [vmem:[%s7276_s28 + $0xc0] sm:$0xff] }
0x14bd   :  { %6061 = vmatmul.msk.bf16.vlgmr.msra.gmra.mxu3 %vm8790_vm10, %v3407_v49  ;;  %vm8797_vm10 = vmmov %vm8796_vm13 }
0x14be   :  { %6949 = vpow2.f32 %v3211_v25 }
0x14c1   :  { %v3208_v41 = vpop.xlane.xlu0 %3207  ;;  %v3457_v21 = vpop.permute.xlu2 %3456 }
0x14c2   :  { %v3210_v40 = vsub.f32 %v3201_v35, %v3208_v41  ;;  %v6044_v35 = vld [vmem:[%s7317_s8 + $0x10] sm:$0xf] }
0x14c3   :  { %v8181_v33 = vsel %vm8795_vm2, %v6044_v35, 0 }
0x14c4   :  { %v6950_v22 = vpop.eup %6949  ;;  %v3213_v0 = vmul.f32 1.442695, %v3210_v40  ;;  %3351 = vmatpush.bf16.msrb.mxu1 %v8181_v33  ;;  %v6070_v40 = vld [vmem:[%s7276_s28 + $0xc8] sm:$0xff] }
0x14c5   :  { %v3215_v62 = vsel %vm8791_vm3, %v6950_v22, 0.0  ;;  %vm8798_vm3 = vmmov %vm8797_vm10 }
0x14c6   :  { %6951 = vpow2.f32 %v3213_v0  ;;  %3216 = vadd.xlane.f32.xlu1 %v3215_v62  ;;  %v3462_v11 = vsel %vm8798_vm3, %v3457_v21, 0  ;;  %vm8799_vm5 = vmmov %vm8798_vm3 }
0x14c7   :  { %vm8800_vm6 = vmmov %vm8798_vm3 }
0x14c8   :  { %vm8801_vm2 = vmmov %vm8798_vm3 }
0x14c9   :  { %v3455_v62 = vpop.permute.xlu2 %3454 }
0x14cc   :  { %v6952_v34 = vpop.eup %6951 }
0x14cd   :  { %v3218_v6 = vsel %vm8792_vm15, %v6952_v34, 0.0 }
0x14ce   :  { %3219 = vadd.xlane.f32.xlu0 %v3218_v6  ;;  %v3166_v39 = vpop.f32.mrf.mxu0 }
0x14cf   :  { %v3167_v57 = vadd.f32 %v8069_v16, %v3166_v39 }
0x14d6   :  { %v3168_v19 = vpop.f32.mrf.mxu0 }
0x14d7   :  { %v3169_v53 = vadd.f32 %v8069_v16, %v3168_v19 }
0x14d9   :  { %v8171_v55 = vpack.c.bf16 %v3169_v53, %v3167_v57 }
0x14e2   :  { %3558 = vrot.lane.b32.xlu0 %v8171_v55, %s8767_s16 }
0x1530   :  { %v3312_v16 = vpop.f32.mrf.mxu3 }
0x1538   :  { %v3314_v59 = vpop.f32.mrf.mxu3 }
0x1539   :  { %v3317_v14 = vpack.c.bf16 %v3314_v59, %v3312_v16  ;;  %v3217_v26 = vpop.xlane.xlu1 %3216  ;;  %v6063_v16 = vld [vmem:[%s7276_s28 + $0x70] sm:$0xff] }
0x153a   :  { %6953 = vrcp.f32 %v3217_v26 }
0x153b   :  { %6056 = vmatmul.msk.bf16.vlgmr.msrb.gmra.mxu0 %vm8796_vm13, %v3317_v14  ;;  %vm8802_vm13 = vmmov %vm8792_vm15 }
0x153c   :  { %vm8804_vm3 = vmmov %vm8802_vm13 }
0x1540   :  { %v3423_v60 = vpop.f32.mrf.mxu3  ;;  %v6954_v31 = vpop.eup %6953 }
0x1541   :  { %v3220_v63 = vpop.xlane.xlu0 %3219  ;;  %v3223_v17 = vmul.f32 %v6954_v31, %v6950_v22  ;;  %v6064_v31 = vld [vmem:[%s7276_s28 + $0x78] sm:$0xff] }
0x1542   :  { %6955 = vrcp.f32 %v3220_v63 }
0x1548   :  { %v6956_v46 = vpop.eup %6955  ;;  %v3425_v37 = vpop.f32.mrf.mxu3 }
0x1549   :  { %v3224_v54 = vmul.f32 %v6956_v46, %v6952_v34  ;;  %v3428_v48 = vpack.c.bf16 %v3425_v37, %v3423_v60 }
0x154b   :  { %v3225_v50 = vpack.c.bf16 %v3224_v54, %v3223_v17  ;;  %6062 = vmatmul.msk.bf16.vlgmr.msra.gmra.mxu0 %vm8797_vm10, %v3428_v48  ;;  %vm8803_vm10 = vmmov %vm8801_vm2 }
0x154d   :  { %6051 = vmatmul.msk.bf16.vlgmr.msra.gmra.mxu1 %vm8792_vm15, %v3225_v50  ;;  %vm8805_vm15 = vmmov %vm8804_vm3 }
0x154e   :  { %3471 = vmatpush.bf16.xpose.msra.mxu1 %v3462_v11 }
0x1554   :  { %v3559_v61 = vpop.permute.xlu0 %3558 }
0x1555   :  { %v3564_v52 = vsel %vm8799_vm5, %v3559_v61, 0  ;;  %vm8806_vm5 = vmmov %vm8804_vm3 }
0x1556   :  { %3573 = vmatpush.bf16.xpose.msrb.mxu0 %v3564_v52 }
0x155d   :  { %6071 = vmatmul.msk.bf16.vlgmr.msrb.gmra.mxu0 %vm8800_vm6, %v8171_v55  ;;  %vm8807_vm6 = vmmov %vm8804_vm3 }
0x155e   :  { %3705 = vmatpush.bf16.msra.mxu0 %v3322_v8 }
0x1562   :  { %3810 = vmatpush.bf16.msrb.mxu0 %v3433_v45 }
0x15b8   :  { %v8191_v12 = vpop.f32.mrf.mxu0 }
0x15c0   :  { %v8193_v44 = vpop.f32.mrf.mxu0 }
0x15c8   :  { %v8195_v1 = vpop.f32.mrf.mxu0 }
0x15ca   :  { %v3241_v36 = vpop.f32.mrf.mxu1 }
0x15d0   :  { %v8197_v13 = vpop.f32.mrf.mxu0 }
0x15d2   :  { %v3243_v5 = vpop.f32.mrf.mxu1 }
0x15d3   :  { %v3246_v7 = vpack.c.bf16 %v3243_v5, %v3241_v36 }
0x15d5   :  { %6057 = vmatmul.msk.bf16.vlgmr.msrb.gmra.mxu1 %vm8801_vm2, %v3246_v7  ;;  %vm8808_vm2 = vmmov %vm8804_vm3 }
0x15da   :  { %v3575_v49 = vpop.f32.mrf.mxu0 }
0x15db   :  { %v3576_v25 = vadd.f32 %v6069_v56, %v3575_v49 }
0x15dd   :  { %v3580_v41 = vsel %vm8802_vm13, %v3576_v25, -inf  ;;  %vm8810_vm13 = vmmov %vm8808_vm2 }
0x15de   :  { %3581 = vmax.xlane.f32.xlu0 %v3580_v41 }
0x15e2   :  { %v3577_v22 = vpop.f32.mrf.mxu0 }
0x15e3   :  { %v3578_v0 = vadd.f32 %v6070_v40, %v3577_v22 }
0x15e5   :  { %6065 = vmatmul.msk.bf16.vlgmr.msra.gmra.mxu1 %vm8803_vm10, %v3455_v62  ;;  %v3583_v34 = vsel %vm8804_vm3, %v3578_v0, -inf  ;;  %vm8811_vm10 = vmmov %vm8808_vm2 }
0x15e6   :  { %3584 = vmax.xlane.f32.xlu2 %v3583_v34  ;;  %vm8812_vm3 = vmmov %vm8808_vm2 }
0x1651   :  { %v3582_v6 = vpop.xlane.xlu0 %3581 }
0x1652   :  { %v3586_v39 = vsub.f32 %v3576_v25, %v3582_v6  ;;  %v8205_v19 = vpop.f32.mrf.mxu1 }
0x1654   :  { %v3588_v53 = vmul.f32 1.442695, %v3586_v39 }
0x1656   :  { %6957 = vpow2.f32 %v3588_v53 }
0x1659   :  { %v3585_v57 = vpop.xlane.xlu2 %3584 }
0x165a   :  { %v3587_v30 = vsub.f32 %v3578_v0, %v3585_v57  ;;  %v8207_v8 = vpop.f32.mrf.mxu1 }
0x165c   :  { %v6958_v23 = vpop.eup %6957  ;;  %v3590_v45 = vmul.f32 1.442695, %v3587_v30 }
0x165d   :  { %v3592_v35 = vsel %vm8805_vm15, %v6958_v23, 0.0  ;;  %vm8813_vm15 = vcmask 64512  }
0x165e   :  { %6959 = vpow2.f32 %v3590_v45  ;;  %3593 = vadd.xlane.f32.xlu1 %v3592_v35 }
0x1662   :  { %v3473_v59 = vpop.f32.mrf.mxu1 }
0x1663   :  { %v3474_v14 = vadd.f32 %v6063_v16, %v3473_v59 }
0x1664   :  { %v6960_v26 = vpop.eup %6959 }
0x1665   :  { %v3595_v60 = vsel %vm8806_vm5, %v6960_v26, 0.0  ;;  %v3478_v63 = vsel %vm8807_vm6, %v3474_v14, -inf  ;;  %vm8814_vm5 = vmmov %vm8813_vm15 }
0x1666   :  { %3596 = vadd.xlane.f32.xlu1 %v3595_v60  ;;  %3479 = vmax.xlane.f32.xlu0 %v3478_v63  ;;  %vm8815_vm6 = vmmov %vm8808_vm2 }
0x166a   :  { %v3475_v46 = vpop.f32.mrf.mxu1 }
0x166b   :  { %v3476_v37 = vadd.f32 %v6064_v31, %v3475_v46 }
0x166d   :  { %v3481_v17 = vsel %vm8808_vm2, %v3476_v37, -inf  ;;  %vm8816_vm2 = vmmov %vm8814_vm5 }
0x166e   :  { %3482 = vmax.xlane.f32.xlu2 %v3481_v17  ;;  %v6047_v17 = vld [vmem:[%s7317_s8 + $0x1c] sm:$0xf] }
0x167f   :  { %3603 = vrot.lane.b32.xlu1 %v8171_v55, %s8786_s24 }
0x1687   :  { %3501 = vrot.lane.b32.xlu1 %v8073_v28, %s8809_s17 }
0x168f   :  { %3734 = vrot.lane.b32.xlu1 %v8171_v55, %s7073_s22 }
0x1697   :  { %3824 = vrot.lane.b32.xlu1 %v8171_v55, %s8787_s4 }
0x169f   :  { %3822 = vrot.lane.b32.xlu1 %v8171_v55, %s8788_s13 }
0x16d1   :  { %v3594_v54 = vpop.xlane.xlu1 %3593 }
0x16d9   :  { %v3480_v48 = vpop.xlane.xlu0 %3479  ;;  %v3597_v61 = vpop.xlane.xlu1 %3596 }
0x16da   :  { %v3484_v21 = vsub.f32 %v3474_v14, %v3480_v48 }
0x16dc   :  { %v3486_v50 = vmul.f32 1.442695, %v3484_v21 }
0x16de   :  { %6961 = vpow2.f32 %v3486_v50 }
0x16df   :  { %6963 = vrcp.f32 %v3597_v61  ;;  %v6073_v61 = vld [vmem:[%s7276_s28 + $0xd0] sm:$0xff] }
0x16e1   :  { %v3483_v11 = vpop.xlane.xlu2 %3482 }
0x16e2   :  { %v3485_v52 = vsub.f32 %v3476_v37, %v3483_v11 }
0x16e4   :  { %v6962_v36 = vpop.eup %6961  ;;  %v3488_v5 = vmul.f32 1.442695, %v3485_v52 }
0x16e5   :  { %v3490_v28 = vsel %vm8810_vm13, %v6962_v36, 0.0  ;;  %v6964_v7 = vpop.eup %6963  ;;  %vm8817_vm13 = vmmov %vm8816_vm2 }
0x16e6   :  { %6965 = vpow2.f32 %v3488_v5  ;;  %3491 = vadd.xlane.f32.xlu0 %v3490_v28  ;;  %v3601_v41 = vmul.f32 %v6964_v7, %v6960_v26  ;;  %v6074_v7 = vld [vmem:[%s7276_s28 + $0xd8] sm:$0xff] }
0x16e7   :  { %6967 = vrcp.f32 %v3594_v54 }
0x16ec   :  { %v6966_v56 = vpop.eup %6965 }
0x16ed   :  { %v3493_v49 = vsel %vm8811_vm10, %v6966_v56, 0.0  ;;  %v6968_v25 = vpop.eup %6967  ;;  %vm8818_vm10 = vmmov %vm8816_vm2 }
0x16ee   :  { %3494 = vadd.xlane.f32.xlu2 %v3493_v49  ;;  %v3600_v40 = vmul.f32 %v6968_v25, %v6958_v23  ;;  %v6084_v49 = vld [vmem:[%s7276_s28 + $0xf0] sm:$0xff] }
0x16f0   :  { %v3602_v0 = vpack.c.bf16 %v3601_v41, %v3600_v40 }
0x16f1   :  { %v3604_v22 = vpop.permute.xlu1 %3603 }
0x16f2   :  { %3616 = vmatpush.bf16.msrb.mxu1 %v3604_v22 }
0x16f5   :  { %6072 = vmatmul.msk.bf16.vlgmr.msrb.gmra.mxu1 %vm8812_vm3, %v3602_v0  ;;  %vm8819_vm3 = vmmov %vm8816_vm2 }
0x16f6   :  { %3722 = vmatpush.bf16.msra.mxu1 %v8181_v33 }
0x16f9   :  { %v3502_v62 = vpop.permute.xlu1 %3501 }
0x16fa   :  { %3629 = vrot.lane.b32.xlu0 %v8171_v55, %s8766_s11  ;;  %3514 = vmatpush.bf16.msrb.mxu2 %v3502_v62  ;;  %v6079_v62 = vld [vmem:[%s7276_s28 + $0xe0] sm:$0xff] }
0x1701   :  { %v3735_v34 = vpop.permute.xlu1 %3734 }
0x1702   :  { %3732 = vrot.lane.b32.xlu0 %v8171_v55, %s8768_s19  ;;  %v3740_v14 = vsel %vm8816_vm2, %v3735_v34, 0 }
0x1706   :  { %3627 = vrot.lane.b32.xlu2 %v8171_v55, %s8765_s7  ;;  %s7107_s7 = smov 36  }
0x1707   :  { %s5536_s19 = sld [smem:[%s8713_s0 + %s7107_s7]]  }
0x1709   :  { %v3825_v6 = vpop.permute.xlu1 %3824 }
0x170a   :  { %v3830_v39 = vsel %vm8813_vm15, %v3825_v6, 0  ;;  %vm8820_vm15 = vmmov %vm8816_vm2  ;;  %v6085_v6 = vld [vmem:[%s7276_s28 + $0xf8] sm:$0xff] }
0x170b   :  { %3839 = vmatpush.bf16.xpose.msrb.mxu1 %v3830_v39 }
0x1711   :  { %v3823_v46 = vpop.permute.xlu1 %3822 }
0x1759   :  { %v3492_v53 = vpop.xlane.xlu0 %3491 }
0x175a   :  { %6969 = vrcp.f32 %v3492_v53 }
0x1760   :  { %v6970_v57 = vpop.eup %6969 }
0x1761   :  { %v3495_v33 = vpop.xlane.xlu2 %3494  ;;  %v3498_v23 = vmul.f32 %v6970_v57, %v6962_v36 }
0x1762   :  { %6971 = vrcp.f32 %v3495_v33 }
0x1768   :  { %v6972_v30 = vpop.eup %6971 }
0x1769   :  { %v3499_v45 = vmul.f32 %v6972_v30, %v6966_v56  ;;  %v3628_v31 = vpop.permute.xlu2 %3627 }
0x176b   :  { %v3500_v35 = vpack.c.bf16 %v3499_v45, %v3498_v23  ;;  %v6080_v23 = vld [vmem:[%s7276_s28 + $0xe8] sm:$0xff] }
0x176c   :  { %v3630_v16 = vpop.permute.xlu0 %3629 }
0x176d   :  { %v3635_v59 = vsel %vm8814_vm5, %v3630_v16, 0  ;;  %6066 = vmatmul.msk.bf16.vlgmr.msrb.gmra.mxu2 %vm8815_vm6, %v3500_v35  ;;  %vm8821_vm5 = vcmask 1043456   ;;  %vm8822_vm6 = vmmov %vm8816_vm2  ;;  %vm8823_vm2 = vcmask 130048  }
0x176e   :  { %3644 = vmatpush.bf16.xpose.msra.mxu2 %v3635_v59  ;;  %v8245_v54 = vsel %vm8821_vm5, %v6047_v17, 0  ;;  %vm8828_vm5 = vmmov %vm8823_vm2 }
0x176f   :  { %3535 = vmatpush.bf16.msrb.mxu3 %v8245_v54 }
0x1772   :  { %v3618_v26 = vpop.f32.mrf.mxu1 }
0x1774   :  { %v3733_v37 = vpop.permute.xlu0 %3732 }
0x1776   :  { %3749 = vmatpush.bf16.xpose.msrb.mxu2 %v3740_v14 }
0x177a   :  { %v3620_v60 = vpop.f32.mrf.mxu1 }
0x177b   :  { %v3623_v63 = vpack.c.bf16 %v3620_v60, %v3618_v26  ;;  %v3354_v26 = vadd.f32 %v8205_v19, %v8191_v12 }
0x177d   :  { %6075 = vmatmul.msk.bf16.vlgmr.msra.gmra.mxu2 %vm8817_vm13, %v3628_v31  ;;  %6078 = vmatmul.msk.bf16.vlgmr.msra.gmra.mxu1 %vm8818_vm10, %v3623_v63  ;;  %vm8824_vm13 = vmmov %vm8823_vm2  ;;  %v3449_v63 = vadd.f32 %v8195_v1, %v3354_v26  ;;  %v6765_v31 = vld [vmem:[%s7409_s15 + $0x1] ss:$0 sm:$0xff] }
0x177e   :  { %vm8825_vm10 = vmmov %vm8823_vm2 }
0x178d   :  { %6081 = vmatmul.msk.bf16.vlgmr.msrb.gmra.mxu2 %vm8819_vm3, %v3733_v37  ;;  %6086 = vmatmul.msk.bf16.vlgmr.msrb.gmra.mxu1 %vm8820_vm15, %v3823_v46  ;;  %vm8826_vm3 = vmmov %vm8823_vm2 }
0x178e   :  { %vm8827_vm15 = vmmov %vm8823_vm2 }
0x17f0   :  { %v3516_v48 = vpop.f32.mrf.mxu2 }
0x17f8   :  { %v3518_v21 = vpop.f32.mrf.mxu2 }
0x17f9   :  { %v3521_v50 = vpack.c.bf16 %v3518_v21, %v3516_v48  ;;  %v3356_v21 = vadd.f32 %v8207_v8, %v8193_v44 }
0x17fa   :  { %v8248_v11 = vpop.f32.mrf.mxu1 }
0x17fb   :  { %6067 = vmatmul.msk.bf16.vlgmr.msrb.gmra.mxu3 %vm8822_vm6, %v3521_v50  ;;  %vm8829_vm6 = vmmov %vm8823_vm2  ;;  %v3450_v12 = vadd.f32 %v8197_v13, %v3356_v21 }
0x1800   :  { %v3646_v52 = vpop.f32.mrf.mxu2 }
0x1801   :  { %v3647_v36 = vadd.f32 %v6073_v61, %v3646_v52 }
0x1802   :  { %v8252_v5 = vpop.f32.mrf.mxu1 }
0x1803   :  { %v3651_v28 = vsel %vm8823_vm2, %v3647_v36, -inf }
0x1804   :  { %3652 = vmax.xlane.f32.xlu2 %v3651_v28 }
0x1808   :  { %v3648_v56 = vpop.f32.mrf.mxu2 }
0x1809   :  { %v3649_v25 = vadd.f32 %v6074_v7, %v3648_v56 }
0x180a   :  { %v3841_v41 = vpop.f32.mrf.mxu1 }
0x180b   :  { %v3842_v40 = vadd.f32 %v6084_v49, %v3841_v41  ;;  %v3654_v22 = vsel %vm8824_vm13, %v3649_v25, -inf  ;;  %vm8830_vm13 = vmmov %vm8823_vm2 }
0x180c   :  { %3655 = vmax.xlane.f32.xlu0 %v3654_v22 }
0x180d   :  { %v3846_v0 = vsel %vm8825_vm10, %v3842_v40, -inf  ;;  %vm8831_vm10 = vmmov %vm8823_vm2 }
0x180e   :  { %3847 = vmax.xlane.f32.xlu1 %v3846_v0 }
0x1810   :  { %v3751_v34 = vpop.f32.mrf.mxu2 }
0x1811   :  { %v3752_v39 = vadd.f32 %v6079_v62, %v3751_v34 }
0x1812   :  { %v3843_v53 = vpop.f32.mrf.mxu1 }
0x1813   :  { %v3844_v33 = vadd.f32 %v6085_v6, %v3843_v53  ;;  %v3756_v57 = vsel %vm8826_vm3, %v3752_v39, -inf  ;;  %vm8832_vm3 = vmmov %vm8823_vm2 }
0x1814   :  { %3757 = vmax.xlane.f32.xlu0 %v3756_v57 }
0x1815   :  { %v3849_v30 = vsel %vm8827_vm15, %v3844_v33, -inf  ;;  %vm8833_vm15 = vmmov %vm8823_vm2 }
0x1816   :  { %3850 = vmax.xlane.f32.xlu2 %v3849_v30 }
0x1818   :  { %v3753_v45 = vpop.f32.mrf.mxu2 }
0x1819   :  { %v3754_v35 = vadd.f32 %v6080_v23, %v3753_v45 }
0x181b   :  { %v3759_v16 = vsel %vm8828_vm5, %v3754_v35, -inf  ;;  %vm8834_vm5 = vmmov %vm8823_vm2 }
0x181c   :  { %3760 = vmax.xlane.f32.xlu1 %v3759_v16 }
0x1835   :  { %3674 = vrot.lane.b32.xlu1 %v8171_v55, %s8779_s20 }
0x1877   :  { %v3653_v59 = vpop.xlane.xlu2 %3652 }
0x1878   :  { %v3657_v14 = vsub.f32 %v3647_v36, %v3653_v59 }
0x187a   :  { %v3659_v60 = vmul.f32 1.442695, %v3657_v14 }
0x187c   :  { %6973 = vpow2.f32 %v3659_v60 }
0x187e   :  { %v3537_v46 = vpop.f32.mrf.mxu3 }
0x187f   :  { %v3542_v37 = vadd.f32 %v3537_v46, %v3449_v63  ;;  %v3656_v17 = vpop.xlane.xlu0 %3655 }
0x1880   :  { %v3658_v48 = vsub.f32 %v3649_v25, %v3656_v17 }
0x1881   :  { %v3549_v50 = vadd.f32 %v6765_v31, %v3542_v37  ;;  %v3848_v19 = vpop.xlane.xlu1 %3847 }
0x1882   :  { %v6974_v61 = vpop.eup %6973  ;;  %v3661_v52 = vmul.f32 1.442695, %v3658_v48  ;;  %v3852_v41 = vsub.f32 %v3842_v40, %v3848_v19 }
0x1883   :  { %3551 = vst.msk [vmem:[#allocation2] sm:$0xff] %vm8746_vm9, %v3549_v50  ;;  %v3663_v36 = vsel %vm8829_vm6, %v6974_v61, 0.0  ;;  %vm8835_vm6 = vmmov %vm8823_vm2 }
0x1884   :  { %6975 = vpow2.f32 %v3661_v52  ;;  %3664 = vadd.xlane.f32.xlu2 %v3663_v36  ;;  %v3854_v62 = vmul.f32 1.442695, %v3852_v41 }
0x1886   :  { %v3539_v1 = vpop.f32.mrf.mxu3 }
0x1887   :  { %v3543_v28 = vadd.f32 %v3539_v1, %v3450_v12  ;;  %v3758_v7 = vpop.xlane.xlu0 %3757 }
0x1888   :  { %v3762_v56 = vsub.f32 %v3752_v39, %v3758_v7 }
0x1889   :  { %v3550_v49 = vadd.f32 %v6765_v31, %v3543_v28  ;;  %v3851_v34 = vpop.xlane.xlu2 %3850 }
0x188a   :  { %v6976_v25 = vpop.eup %6975  ;;  %v3764_v44 = vmul.f32 1.442695, %v3762_v56  ;;  %v3917_v8 = vld [vmem:[#allocation2] sm:$0xff]  ;;  %v3853_v53 = vsub.f32 %v3844_v33, %v3851_v34 }
0x188b   :  { %3552 = vst.msk [vmem:[#allocation2 + $0x8] sm:$0xff] %vm8746_vm9, %v3550_v49  ;;  %v3666_v22 = vsel %vm8823_vm2, %v6976_v25, 0.0  ;;  %v8279_v0 = vadd.f32 %v3917_v8, %v8037_v15 }
0x188c   :  { %6977 = vpow2.f32 %v3764_v44  ;;  %3667 = vadd.xlane.f32.xlu0 %v3666_v22  ;;  %v3856_v15 = vmul.f32 1.442695, %v3853_v53 }
0x188d   :  { %v3929_v13 = vsel %vm8746_vm9, %v8279_v0, 0.0  ;;  %6979 = vpow2.f32 %v3854_v62 }
0x188e   :  { %3930 = vadd.xlane.f32.xlu1 %v3929_v13 }
0x188f   :  { %v3761_v6 = vpop.xlane.xlu1 %3760 }
0x1890   :  { %v3763_v39 = vsub.f32 %v3754_v35, %v3761_v6 }
0x1892   :  { %v6978_v40 = vpop.eup %6977  ;;  %v3766_v57 = vmul.f32 1.442695, %v3763_v39  ;;  %v3918_v26 = vld [vmem:[#allocation2 + $0x8] sm:$0xff] }
0x1893   :  { %v3768_v30 = vsel %vm8830_vm13, %v6978_v40, 0.0  ;;  %v6980_v23 = vpop.eup %6979  ;;  %v8292_v60 = vadd.f32 %v3918_v26, %v8043_v20  ;;  %vm8836_vm13 = vcmask 64512  }
0x1894   :  { %6981 = vpow2.f32 %v3766_v57  ;;  %3769 = vadd.xlane.f32.xlu2 %v3768_v30  ;;  %v3858_v16 = vsel %vm8831_vm10, %v6980_v23, 0.0  ;;  %vm8837_vm10 = vmmov %vm8836_vm13 }
0x1895   :  { %6983 = vpow2.f32 %v3856_v15  ;;  %v3932_v63 = vsel %vm8746_vm9, %v8292_v60, 0.0 }
0x189a   :  { %v6982_v45 = vpop.eup %6981 }
0x189b   :  { %v3771_v59 = vsel %vm8832_vm3, %v6982_v45, 0.0  ;;  %v6984_v14 = vpop.eup %6983  ;;  %vm8838_vm3 = vmmov %vm8837_vm10 }
0x189c   :  { %3859 = vadd.xlane.f32.xlu2 %v3858_v16  ;;  %3772 = vadd.xlane.f32.xlu0 %v3771_v59  ;;  %v3861_v35 = vsel %vm8833_vm15, %v6984_v14, 0.0  ;;  %v6766_v59 = vld [vmem:[%s7409_s15 + $0x1] ss:$0 sm:$0xff] }
0x18a4   :  { %3862 = vadd.xlane.f32.xlu0 %v3861_v35 }
0x18a7   :  { %v3675_v33 = vpop.permute.xlu1 %3674 }
0x18a8   :  { %3687 = vmatpush.bf16.msra.mxu3 %v3675_v33 }
0x18b4   :  { %3869 = vrot.lane.b32.xlu2 %v8171_v55, %s8809_s17 }
0x18b8   :  { %3779 = vrot.lane.b32.xlu0 %v8171_v55, %s8785_s23 }
0x18e2   :  { %3933 = vadd.xlane.f32.xlu0 %v3932_v63 }
0x18f7   :  { %v3665_v31 = vpop.xlane.xlu2 %3664 }
0x18f8   :  { %6985 = vrcp.f32 %v3665_v31 }
0x18fe   :  { %v6986_v37 = vpop.eup %6985 }
0x18ff   :  { %v3668_v46 = vpop.xlane.xlu0 %3667  ;;  %v3671_v48 = vmul.f32 %v6986_v37, %v6974_v61 }
0x1900   :  { %6987 = vrcp.f32 %v3668_v46 }
0x1906   :  { %v6988_v17 = vpop.eup %6987 }
0x1907   :  { %v3672_v21 = vmul.f32 %v6988_v17, %v6976_v25  ;;  %v3770_v50 = vpop.xlane.xlu2 %3769 }
0x1909   :  { %v3673_v52 = vpack.c.bf16 %v3672_v21, %v3671_v48  ;;  %v3931_v21 = vpop.xlane.xlu1 %3930 }
0x190b   :  { %6076 = vmatmul.msk.bf16.vlgmr.msra.gmra.mxu3 %vm8834_vm5, %v3673_v52 }
0x190f   :  { %v3860_v55 = vpop.xlane.xlu2 %3859  ;;  %v3773_v36 = vpop.xlane.xlu0 %3772 }
0x1910   :  { %6989 = vrcp.f32 %v3860_v55 }
0x1916   :  { %v6990_v1 = vpop.eup %6989 }
0x1917   :  { %v3870_v20 = vpop.permute.xlu2 %3869  ;;  %v3863_v12 = vpop.xlane.xlu0 %3862  ;;  %v3866_v28 = vmul.f32 %v6990_v1, %v6980_v23 }
0x1918   :  { %6991 = vrcp.f32 %v3863_v12  ;;  %3882 = vmatpush.bf16.msra.mxu2 %v3870_v20 }
0x1919   :  { %6993 = vrcp.f32 %v3773_v36 }
0x191a   :  { %6995 = vrcp.f32 %v3770_v50 }
0x191e   :  { %v6992_v19 = vpop.eup %6991 }
0x191f   :  { %v3867_v7 = vmul.f32 %v6992_v19, %v6984_v14  ;;  %v6994_v61 = vpop.eup %6993 }
0x1920   :  { %v6996_v49 = vpop.eup %6995  ;;  %v3777_v25 = vmul.f32 %v6994_v61, %v6982_v45 }
0x1921   :  { %v3868_v56 = vpack.c.bf16 %v3867_v7, %v3866_v28  ;;  %v3776_v41 = vmul.f32 %v6996_v49, %v6978_v40 }
0x1923   :  { %6087 = vmatmul.msk.bf16.vlgmr.msra.gmra.mxu2 %vm8835_vm6, %v3868_v56  ;;  %v3778_v8 = vpack.c.bf16 %v3777_v25, %v3776_v41 }
0x192a   :  { %v3780_v44 = vpop.permute.xlu0 %3779 }
0x192b   :  { %3792 = vmatpush.bf16.msrb.mxu3 %v3780_v44 }
0x192e   :  { %6082 = vmatmul.msk.bf16.vlgmr.msrb.gmra.mxu3 %vm8823_vm2, %v3778_v8 }
0x192f   :  { %3900 = vmatpush.bf16.msra.mxu3 %v8245_v54 }
0x1955   :  { %v3934_v20 = vpop.xlane.xlu0 %3933 }
0x198e   :  { %v3689_v22 = vpop.f32.mrf.mxu3 }
0x1996   :  { %v3691_v13 = vpop.f32.mrf.mxu3 }
0x1997   :  { %v3694_v62 = vpack.c.bf16 %v3691_v13, %v3689_v22 }
0x1999   :  { %6077 = vmatmul.msk.bf16.vlgmr.msra.gmra.mxu0 %vm8836_vm13, %v3694_v62  ;;  %v6625_v62 = vld [vmem:[%s7505_s14 + $0x18] sm:$0xff] }
0x199a   :  { %4067 = vmatpush.bf16.msra.mxu0 %v6625_v62 }
0x19a6   :  { %v3884_v34 = vpop.f32.mrf.mxu2 }
0x19ae   :  { %v3886_v6 = vpop.f32.mrf.mxu2 }
0x19af   :  { %v3889_v39 = vpack.c.bf16 %v3886_v6, %v3884_v34 }
0x19b1   :  { %v3794_v53 = vpop.f32.mrf.mxu3  ;;  %6088 = vmatmul.msk.bf16.vlgmr.msra.gmra.mxu3 %vm8837_vm10, %v3889_v39 }
0x19b9   :  { %v3796_v40 = vpop.f32.mrf.mxu3 }
0x19ba   :  { %v3799_v57 = vpack.c.bf16 %v3796_v40, %v3794_v53  ;;  %v6624_v53 = vld [vmem:[%s7505_s14 + $0x10] sm:$0xff]  ;;  %s7105_s14 = smov 12  }
0x19bb   :  { %4068 = vmatpush.bf16.msra.mxu0 %v6624_v53 }
0x19bc   :  { %6083 = vmatmul.msk.bf16.vlgmr.msrb.gmra.mxu0 %vm8838_vm3, %v3799_v57 }
0x1a16   :  { %v3707_v30 = vpop.f32.mrf.mxu0 }
0x1a17   :  { %v3725_v15 = vadd.f32 %v8248_v11, %v3707_v30 }
0x1a1e   :  { %v3709_v54 = vpop.f32.mrf.mxu0 }
0x1a1f   :  { %v3727_v33 = vadd.f32 %v8252_v5, %v3709_v54  ;;  %v3941_v5 = vmul.f32 %v3931_v21, %v7168_v51  ;;  %v6768_v21 = vld [vmem:[%s7469_s5 + $0x1] ss:$0 sm:$0xff] }
0x1a21   :  { %v3945_v55 = vsub.f32 %v8279_v0, %v3941_v5 }
0x1a23   :  { %v3949_v12 = vmul.f32 %v3945_v55, %v3945_v55 }
0x1a25   :  { %v3953_v19 = vsel %vm8746_vm9, %v3949_v12, 0.0 }
0x1a34   :  { %v3902_v23 = vpop.f32.mrf.mxu3 }
0x1a39   :  { %v3812_v45 = vpop.f32.mrf.mxu0 }
0x1a3a   :  { %v3817_v16 = vadd.f32 %v3812_v45, %v3725_v15 }
0x1a3c   :  { %v3907_v14 = vadd.f32 %v3902_v23, %v3817_v16  ;;  %v3904_v31 = vpop.f32.mrf.mxu3 }
0x1a3e   :  { %v3913_v35 = vadd.f32 %v6766_v59, %v3907_v14 }
0x1a40   :  { %3915 = vst.msk [vmem:[#allocation2 + $0x10] sm:$0xff] %vm8746_vm9, %v3913_v35 }
0x1a41   :  { %v3814_v26 = vpop.f32.mrf.mxu0 }
0x1a42   :  { %v3818_v63 = vadd.f32 %v3814_v26, %v3727_v33 }
0x1a44   :  { %v3908_v46 = vadd.f32 %v3904_v31, %v3818_v63 }
0x1a46   :  { %v3914_v37 = vadd.f32 %v6766_v59, %v3908_v46  ;;  %v6767_v46 = vld [vmem:[%s7463_s25 + $0x1] ss:$0 sm:$0xff] }
0x1a47   :  { %v3919_v17 = vld [vmem:[#allocation2 + $0x10] sm:$0xff] }
0x1a48   :  { %3916 = vst.msk [vmem:[#allocation2 + $0x18] sm:$0xff] %vm8746_vm9, %v3914_v37  ;;  %v8309_v11 = vadd.f32 %v3919_v17, %v8087_v29  ;;  %v3942_v29 = vmul.f32 %v3934_v20, %v7168_v51 }
0x1a4a   :  { %v3935_v48 = vsel %vm8746_vm9, %v8309_v11, 0.0  ;;  %v3946_v1 = vsub.f32 %v8292_v60, %v3942_v29 }
0x1a4b   :  { %3936 = vadd.xlane.f32.xlu2 %v3935_v48 }
0x1a4c   :  { %v3950_v28 = vmul.f32 %v3946_v1, %v3946_v1 }
0x1a4f   :  { %v3920_v50 = vld [vmem:[#allocation2 + $0x18] sm:$0xff] }
0x1a50   :  { %v8315_v52 = vadd.f32 %v3920_v50, %v8093_v27  ;;  %v3956_v27 = vsel %vm8746_vm9, %v3950_v28, 0.0 }
0x1a52   :  { %v3938_v36 = vsel %vm8746_vm9, %v8315_v52, 0.0 }
0x1a53   :  { %3939 = vadd.xlane.f32.xlu1 %v3938_v36 }
0x1a5b   :  { %3954 = vadd.xlane.f32.xlu1 %v3953_v19 }
0x1a63   :  { %3957 = vadd.xlane.f32.xlu1 %v3956_v27 }
0x1abe   :  { %v3937_v7 = vpop.xlane.xlu2 %3936 }
0x1abf   :  { %v3943_v56 = vmul.f32 %v3937_v7, %v7168_v51 }
0x1ac1   :  { %v8326_v61 = vsub.f32 %v8309_v11, %v3943_v56 }
0x1ac3   :  { %v3951_v49 = vmul.f32 %v8326_v61, %v8326_v61 }
0x1ac5   :  { %v3959_v25 = vsel %vm8746_vm9, %v3951_v49, 0.0 }
0x1ac6   :  { %3960 = vadd.xlane.f32.xlu0 %v3959_v25  ;;  %v3940_v41 = vpop.xlane.xlu1 %3939 }
0x1ac7   :  { %v3944_v44 = vmul.f32 %v3940_v41, %v7168_v51 }
0x1ac9   :  { %v8333_v8 = vsub.f32 %v8315_v52, %v3944_v44 }
0x1acb   :  { %v3952_v22 = vmul.f32 %v8333_v8, %v8333_v8 }
0x1acd   :  { %v3962_v13 = vsel %vm8746_vm9, %v3952_v22, 0.0 }
0x1ace   :  { %3963 = vadd.xlane.f32.xlu2 %v3962_v13  ;;  %v3955_v34 = vpop.xlane.xlu1 %3954 }
0x1acf   :  { %v3965_v6 = vmul.f32 %v3955_v34, %v7168_v51 }
0x1ad1   :  { %v3969_v39 = vadd.f32 1e-05, %v3965_v6 }
0x1ad3   :  { %6997 = vrsqrt.f32 %v3969_v39  ;;  %vm3979_vm5 = vweird.f32 %v3969_v39 }
0x1ad6   :  { %v3958_v40 = vpop.xlane.xlu1 %3957 }
0x1ad7   :  { %v3966_v57 = vmul.f32 %v3958_v40, %v7168_v51 }
0x1ad9   :  { %v6998_v30 = vpop.eup %6997  ;;  %v3970_v54 = vadd.f32 1e-05, %v3966_v57 }
0x1ada   :  { %v3974_v15 = vmul.f32 %v6998_v30, %v3969_v39  ;;  %vm3980_vm15 = vweird.f32 %v6998_v30 }
0x1adb   :  { %6999 = vrsqrt.f32 %v3970_v54  ;;  %vm3981_vm6 = vmor %vm3979_vm5, %vm3980_vm15  ;;  %vm3989_vm13 = vweird.f32 %v3970_v54 }
0x1adc   :  { %v3975_v23 = vmul.f32 %v6998_v30, %v3974_v15 }
0x1ade   :  { %v3976_v45 = vmul.f32 0.5, %v3975_v23 }
0x1ae0   :  { %v3977_v16 = vsub.f32 1.5, %v3976_v45 }
0x1ae1   :  { %v7000_v59 = vpop.eup %6999 }
0x1ae2   :  { %v3978_v14 = vmul.f32 %v6998_v30, %v3977_v16  ;;  %v3984_v35 = vmul.f32 %v7000_v59, %v3970_v54  ;;  %vm3990_vm2 = vweird.f32 %v7000_v59 }
0x1ae3   :  { %vm3991_vm10 = vmor %vm3989_vm13, %vm3990_vm2 }
0x1ae4   :  { %v3985_v33 = vmul.f32 %v7000_v59, %v3984_v35  ;;  %v3982_v26 = vsel %vm3981_vm6, %v6998_v30, %v3978_v14  ;;  %v6629_v14 = vld [vmem:[%s7540_s10 + $0x38] sm:$0xff]  ;;  %v6628_v35 = vld [vmem:[%s7540_s10 + $0x30] sm:$0xff] }
0x1ae5   :  { %v4013_v37 = vmul.f32 %v3982_v26, %v3945_v55  ;;  %4166 = vmatpush.bf16.msra.mxu1 %v6629_v14 }
0x1ae6   :  { %v3986_v63 = vmul.f32 0.5, %v3985_v33  ;;  %v6769_v33 = vld [vmem:[%s7529_s26 + $0x1] ss:$0 sm:$0xff] }
0x1ae7   :  { %v4020_v5 = vmul.f32 %v6767_v46, %v4013_v37 }
0x1ae8   :  { %v3987_v31 = vsub.f32 1.5, %v3986_v63  ;;  %v6626_v63 = vld [vmem:[%s7540_s10 + $0x20] sm:$0xff] }
0x1ae9   :  { %v4027_v20 = vadd.f32 %v6768_v21, %v4020_v5  ;;  %4167 = vmatpush.bf16.msra.mxu1 %v6628_v35 }
0x1aea   :  { %v3988_v17 = vmul.f32 %v7000_v59, %v3987_v31 }
0x1aec   :  { %v3992_v48 = vsel %vm3991_vm10, %v7000_v59, %v3988_v17  ;;  %vm8839_vm10 = vcmask 523264  }
0x1aed   :  { %v4014_v50 = vmul.f32 %v3992_v48, %v3946_v1 }
0x1aef   :  { %v4021_v36 = vmul.f32 %v6767_v46, %v4014_v50 }
0x1af1   :  { %v4028_v29 = vadd.f32 %v6768_v21, %v4021_v36 }
0x1af3   :  { %v4031_v12 = vpack.c.bf16 %v4028_v29, %v4027_v20 }
0x1af5   :  { %6105 = vmatmul.msk.bf16.vlgmr.msra.gmra.mxu0 %vm8746_vm9, %v4031_v12 }
0x1b39   :  { %v3961_v19 = vpop.xlane.xlu0 %3960 }
0x1b3a   :  { %v3967_v28 = vmul.f32 %v3961_v19, %v7168_v51 }
0x1b3c   :  { %v3971_v27 = vadd.f32 1e-05, %v3967_v28 }
0x1b3e   :  { %7001 = vrsqrt.f32 %v3971_v27  ;;  %vm3999_vm15 = vweird.f32 %v3971_v27 }
0x1b41   :  { %v3964_v7 = vpop.xlane.xlu2 %3963 }
0x1b42   :  { %v3968_v55 = vmul.f32 %v3964_v7, %v7168_v51 }
0x1b44   :  { %v7002_v56 = vpop.eup %7001  ;;  %v3972_v49 = vadd.f32 1e-05, %v3968_v55 }
0x1b45   :  { %v3994_v25 = vmul.f32 %v7002_v56, %v3971_v27  ;;  %vm4000_vm3 = vweird.f32 %v7002_v56 }
0x1b46   :  { %7003 = vrsqrt.f32 %v3972_v49  ;;  %vm4001_vm5 = vmor %vm3999_vm15, %vm4000_vm3  ;;  %vm4009_vm2 = vweird.f32 %v3972_v49 }
0x1b47   :  { %v3995_v41 = vmul.f32 %v7002_v56, %v3994_v25  ;;  %vm8840_vm3 = vmmov %vm8839_vm10 }
0x1b49   :  { %v3996_v1 = vmul.f32 0.5, %v3995_v41 }
0x1b4b   :  { %v3997_v44 = vsub.f32 1.5, %v3996_v1 }
0x1b4c   :  { %v7004_v22 = vpop.eup %7003 }
0x1b4d   :  { %v3998_v13 = vmul.f32 %v7002_v56, %v3997_v44  ;;  %v4004_v62 = vmul.f32 %v7004_v22, %v3972_v49  ;;  %vm4010_vm6 = vweird.f32 %v7004_v22 }
0x1b4e   :  { %vm4011_vm13 = vmor %vm4009_vm2, %vm4010_vm6 }
0x1b4f   :  { %v4005_v34 = vmul.f32 %v7004_v22, %v4004_v62  ;;  %v4002_v6 = vsel %vm4001_vm5, %v7002_v56, %v3998_v13 }
0x1b50   :  { %v4015_v40 = vmul.f32 %v4002_v6, %v8326_v61  ;;  %v6627_v61 = vld [vmem:[%s7540_s10 + $0x28] sm:$0xff] }
0x1b51   :  { %v4006_v39 = vmul.f32 0.5, %v4005_v34  ;;  %4168 = vmatpush.bf16.msra.mxu1 %v6627_v61 }
0x1b52   :  { %v4022_v15 = vmul.f32 %v6767_v46, %v4015_v40 }
0x1b53   :  { %v4007_v53 = vsub.f32 1.5, %v4006_v39 }
0x1b54   :  { %v4029_v45 = vadd.f32 %v6768_v21, %v4022_v15 }
0x1b55   :  { %v4008_v57 = vmul.f32 %v7004_v22, %v4007_v53  ;;  %4169 = vmatpush.bf16.msra.mxu1 %v6626_v63 }
0x1b57   :  { %v4012_v30 = vsel %vm4011_vm13, %v7004_v22, %v4008_v57 }
0x1b58   :  { %v4016_v54 = vmul.f32 %v4012_v30, %v8333_v8 }
0x1b5a   :  { %v4023_v23 = vmul.f32 %v6767_v46, %v4016_v54 }
0x1b5c   :  { %v4030_v16 = vadd.f32 %v6768_v21, %v4023_v23 }
0x1b5e   :  { %v4032_v59 = vpack.c.bf16 %v4030_v16, %v4029_v45 }
0x1b60   :  { %6106 = vmatmul.msk.bf16.gmra.mxu0 %vm8746_vm9, %v4032_v59 }
0x1b72   :  { %v4070_v26 = vpop.f32.mrf.mxu0 }
0x1b73   :  { %v4071_v31 = vadd.f32 %v6769_v33, %v4070_v26 }
0x1b75   :  { %v4080_v37 = vmul.f32 %v4071_v31, %v4071_v31 }
0x1b77   :  { %v4084_v8 = vmul.f32 %v4080_v37, %v4071_v31 }
0x1b79   :  { %v4088_v17 = vmul.f32 0.044715, %v4084_v8 }
0x1b7a   :  { %v4072_v46 = vpop.f32.mrf.mxu0 }
0x1b7b   :  { %v4092_v48 = vadd.f32 %v4088_v17, %v4071_v31  ;;  %v4073_v21 = vadd.f32 %v6769_v33, %v4072_v46 }
0x1b7d   :  { %v4096_v5 = vmul.f32 0.7978846, %v4092_v48  ;;  %v4081_v50 = vmul.f32 %v4073_v21, %v4073_v21 }
0x1b7f   :  { %v4085_v36 = vmul.f32 %v4081_v50, %v4073_v21  ;;  %7005 = vtanh.f32 %v4096_v5 }
0x1b81   :  { %v4089_v20 = vmul.f32 0.044715, %v4085_v36 }
0x1b83   :  { %v4093_v29 = vadd.f32 %v4089_v20, %v4073_v21 }
0x1b85   :  { %v4097_v12 = vmul.f32 0.7978846, %v4093_v29  ;;  %v7006_v19 = vpop.eup %7005 }
0x1b86   :  { %v4104_v28 = vadd.f32 1.0, %v7006_v19 }
0x1b87   :  { %7007 = vtanh.f32 %v4097_v12 }
0x1b88   :  { %v4108_v7 = vmul.f32 0.5, %v4104_v28 }
0x1b8a   :  { %v4112_v49 = vmul.f32 %v4108_v7, %v4071_v31 }
0x1b8d   :  { %v7008_v27 = vpop.eup %7007 }
0x1b8e   :  { %v4105_v55 = vadd.f32 1.0, %v7008_v27 }
0x1b90   :  { %v4109_v56 = vmul.f32 0.5, %v4105_v55 }
0x1b92   :  { %v4113_v25 = vmul.f32 %v4109_v56, %v4073_v21 }
0x1b94   :  { %v4116_v41 = vpack.c.bf16 %v4113_v25, %v4112_v49 }
0x1b96   :  { %6132 = vmatmul.msk.bf16.vlgmr.msra.gmra.mxu1 %vm8839_vm10, %v4116_v41 }
0x1bdd   :  { %v4075_v1 = vpop.f32.mrf.mxu0 }
0x1bde   :  { %v4076_v44 = vadd.f32 %v6769_v33, %v4075_v1 }
0x1be0   :  { %v4082_v22 = vmul.f32 %v4076_v44, %v4076_v44 }
0x1be2   :  { %v4086_v13 = vmul.f32 %v4082_v22, %v4076_v44 }
0x1be4   :  { %v4090_v62 = vmul.f32 0.044715, %v4086_v13 }
0x1be5   :  { %v4077_v34 = vpop.f32.mrf.mxu0 }
0x1be6   :  { %v4094_v6 = vadd.f32 %v4090_v62, %v4076_v44  ;;  %v4078_v39 = vadd.f32 %v6769_v33, %v4077_v34  ;;  %v6770_v33 = vld [vmem:[%s7551_s18 + $0x1] ss:$0 sm:$0xff]  ;;  %s5512_s18 = sld [smem:[%s8713_s0 + %s7105_s14]]  }
0x1be8   :  { %v4098_v53 = vmul.f32 0.7978846, %v4094_v6  ;;  %v4083_v40 = vmul.f32 %v4078_v39, %v4078_v39 }
0x1bea   :  { %v4087_v57 = vmul.f32 %v4083_v40, %v4078_v39  ;;  %7009 = vtanh.f32 %v4098_v53 }
0x1bec   :  { %v4091_v30 = vmul.f32 0.044715, %v4087_v57  ;;  %v6633_v57 = vld [vmem:[%s7602_s6 + $0x48] sm:$0xff] }
0x1bed   :  { %4341 = vmatpush.bf16.msrb.mxu2 %v6633_v57 }
0x1bee   :  { %v4095_v54 = vadd.f32 %v4091_v30, %v4078_v39 }
0x1bf0   :  { %v4099_v15 = vmul.f32 0.7978846, %v4095_v54  ;;  %v7010_v23 = vpop.eup %7009 }
0x1bf1   :  { %v4106_v45 = vadd.f32 1.0, %v7010_v23  ;;  %v6632_v23 = vld [vmem:[%s7602_s6 + $0x40] sm:$0xff] }
0x1bf2   :  { %7011 = vtanh.f32 %v4099_v15  ;;  %4342 = vmatpush.bf16.msrb.mxu2 %v6632_v23 }
0x1bf3   :  { %v4110_v59 = vmul.f32 0.5, %v4106_v45 }
0x1bf5   :  { %v4114_v61 = vmul.f32 %v4110_v59, %v4076_v44 }
0x1bf8   :  { %v7012_v16 = vpop.eup %7011 }
0x1bf9   :  { %v4107_v14 = vadd.f32 1.0, %v7012_v16 }
0x1bfb   :  { %v4111_v35 = vmul.f32 0.5, %v4107_v14 }
0x1bfd   :  { %v4115_v26 = vmul.f32 %v4111_v35, %v4078_v39 }
0x1bff   :  { %v4117_v63 = vpack.c.bf16 %v4115_v26, %v4114_v61 }
0x1c01   :  { %6133 = vmatmul.msk.bf16.gmra.mxu1 %vm8840_vm3, %v4117_v63  ;;  %vm8841_vm3 = vcmp.lt.s32.totalorder %v7623_v43, 7 }
0x1c13   :  { %v4171_v31 = vpop.f32.mrf.mxu1 }
0x1c14   :  { %v4172_v37 = vadd.f32 %v6770_v33, %v4171_v31 }
0x1c16   :  { %v8359_v8 = vadd.f32 %v4172_v37, %v8279_v0 }
0x1c18   :  { %v4189_v17 = vsel %vm8746_vm9, %v8359_v8, 0.0 }
0x1c19   :  { %4190 = vadd.xlane.f32.xlu1 %v4189_v17 }
0x1c1b   :  { %v4173_v46 = vpop.f32.mrf.mxu1 }
0x1c1c   :  { %v4174_v48 = vadd.f32 %v6770_v33, %v4173_v46 }
0x1c1e   :  { %v8364_v21 = vadd.f32 %v4174_v48, %v8292_v60  ;;  %v8403_v48 = vld [vmem:[%s7574_s12 + $0x1] ss:$0 sm:$0xff]  ;;  %s7106_s12 = smov 13  }
0x1c20   :  { %v4192_v5 = vsel %vm8746_vm9, %v8364_v21, 0.0 }
0x1c21   :  { %4193 = vadd.xlane.f32.xlu2 %v4192_v5 }
0x1c7e   :  { %v4176_v50 = vpop.f32.mrf.mxu1 }
0x1c7f   :  { %v4177_v36 = vadd.f32 %v6770_v33, %v4176_v50 }
0x1c81   :  { %v8369_v20 = vadd.f32 %v4177_v36, %v8309_v11 }
0x1c83   :  { %v4195_v0 = vsel %vm8746_vm9, %v8369_v20, 0.0 }
0x1c84   :  { %4196 = vadd.xlane.f32.xlu1 %v4195_v0  ;;  %v8406_v0 = vld [vmem:[%s7579_s3 + $0x1] ss:$0 sm:$0xff] }
0x1c86   :  { %v4178_v29 = vpop.f32.mrf.mxu1 }
0x1c87   :  { %v4179_v12 = vadd.f32 %v6770_v33, %v4178_v29 }
0x1c89   :  { %v8374_v19 = vadd.f32 %v4179_v12, %v8315_v52 }
0x1c8b   :  { %v4198_v60 = vsel %vm8746_vm9, %v8374_v19, 0.0 }
0x1c8c   :  { %4199 = vadd.xlane.f32.xlu0 %v4198_v60  ;;  %v4191_v28 = vpop.xlane.xlu1 %4190 }
0x1c8d   :  { %v4201_v27 = vmul.f32 %v4191_v28, %v7168_v51 }
0x1c8f   :  { %v4205_v7 = vsub.f32 %v8359_v8, %v4201_v27 }
0x1c91   :  { %v4209_v11 = vmul.f32 %v4205_v7, %v4205_v7 }
0x1c93   :  { %v4213_v55 = vsel %vm8746_vm9, %v4209_v11, 0.0 }
0x1c94   :  { %v4194_v56 = vpop.xlane.xlu2 %4193  ;;  %4214 = vadd.xlane.f32.xlu0 %v4213_v55 }
0x1c95   :  { %v4202_v49 = vmul.f32 %v4194_v56, %v7168_v51 }
0x1c97   :  { %v4206_v52 = vsub.f32 %v8364_v21, %v4202_v49 }
0x1c99   :  { %v4210_v25 = vmul.f32 %v4206_v52, %v4206_v52 }
0x1c9b   :  { %v4216_v41 = vsel %vm8746_vm9, %v4210_v25, 0.0 }
0x1c9c   :  { %4217 = vadd.xlane.f32.xlu1 %v4216_v41 }
0x1cf7   :  { %v4197_v1 = vpop.xlane.xlu1 %4196 }
0x1cf8   :  { %v4203_v44 = vmul.f32 %v4197_v1, %v7168_v51 }
0x1cfa   :  { %v8386_v22 = vsub.f32 %v8369_v20, %v4203_v44  ;;  %v6635_v44 = vld [vmem:[%s7602_s6 + $0x58] sm:$0xff] }
0x1cfb   :  { %4434 = vmatpush.bf16.msrb.mxu0 %v6635_v44 }
0x1cfc   :  { %v4211_v13 = vmul.f32 %v8386_v22, %v8386_v22 }
0x1cfe   :  { %v4219_v62 = vsel %vm8746_vm9, %v4211_v13, 0.0  ;;  %v6634_v13 = vld [vmem:[%s7602_s6 + $0x50] sm:$0xff] }
0x1cff   :  { %v4200_v34 = vpop.xlane.xlu0 %4199  ;;  %4220 = vadd.xlane.f32.xlu0 %v4219_v62  ;;  %4435 = vmatpush.bf16.msrb.mxu0 %v6634_v13 }
0x1d00   :  { %v4204_v6 = vmul.f32 %v4200_v34, %v7168_v51 }
0x1d02   :  { %v8393_v39 = vsub.f32 %v8374_v19, %v4204_v6 }
0x1d04   :  { %v4212_v53 = vmul.f32 %v8393_v39, %v8393_v39 }
0x1d06   :  { %v4222_v40 = vsel %vm8746_vm9, %v4212_v53, 0.0  ;;  %v6631_v53 = vld [vmem:[%s7602_s6 + $0x38] sm:$0xff] }
0x1d07   :  { %4223 = vadd.xlane.f32.xlu2 %v4222_v40  ;;  %v4215_v30 = vpop.xlane.xlu0 %4214  ;;  %4378 = vmatpush.bf16.msrb.mxu3 %v6631_v53  ;;  %v6630_v40 = vld [vmem:[%s7602_s6 + $0x30] sm:$0xff] }
0x1d08   :  { %v4225_v54 = vmul.f32 %v4215_v30, %v7168_v51 }
0x1d0a   :  { %v4229_v15 = vadd.f32 1e-05, %v4225_v54 }
0x1d0b   :  { %4379 = vmatpush.bf16.msrb.mxu3 %v6630_v40 }
0x1d0c   :  { %7013 = vrsqrt.f32 %v4229_v15  ;;  %vm4239_vm5 = vweird.f32 %v4229_v15 }
0x1d0f   :  { %v4218_v45 = vpop.xlane.xlu1 %4217 }
0x1d10   :  { %v4226_v16 = vmul.f32 %v4218_v45, %v7168_v51 }
0x1d12   :  { %v7014_v59 = vpop.eup %7013  ;;  %v4230_v14 = vadd.f32 1e-05, %v4226_v16 }
0x1d13   :  { %v4234_v35 = vmul.f32 %v7014_v59, %v4229_v15  ;;  %vm4240_vm15 = vweird.f32 %v7014_v59 }
0x1d14   :  { %7015 = vrsqrt.f32 %v4230_v14  ;;  %vm4241_vm6 = vmor %vm4239_vm5, %vm4240_vm15  ;;  %vm4249_vm13 = vweird.f32 %v4230_v14  ;;  %vm8842_vm15 = vcmp.lt.s32.totalorder %v7623_v43, 1 }
0x1d15   :  { %v4235_v61 = vmul.f32 %v7014_v59, %v4234_v35 }
0x1d17   :  { %v4236_v26 = vmul.f32 0.5, %v4235_v61 }
0x1d19   :  { %v4237_v63 = vsub.f32 1.5, %v4236_v26 }
0x1d1a   :  { %v7016_v33 = vpop.eup %7015 }
0x1d1b   :  { %v4238_v31 = vmul.f32 %v7014_v59, %v4237_v63  ;;  %v4244_v37 = vmul.f32 %v7016_v33, %v4230_v14  ;;  %vm4250_vm2 = vweird.f32 %v7016_v33 }
0x1d1c   :  { %vm4251_vm10 = vmor %vm4249_vm13, %vm4250_vm2 }
0x1d1d   :  { %v4242_v17 = vsel %vm4241_vm6, %v7014_v59, %v4238_v31  ;;  %v4245_v46 = vmul.f32 %v7016_v33, %v4244_v37 }
0x1d1e   :  { %v4273_v5 = vmul.f32 %v4242_v17, %v4205_v7 }
0x1d1f   :  { %v4246_v50 = vmul.f32 0.5, %v4245_v46 }
0x1d20   :  { %v4280_v29 = vmul.f32 %v8403_v48, %v4273_v5 }
0x1d21   :  { %v4247_v36 = vsub.f32 1.5, %v4246_v50 }
0x1d22   :  { %v8410_v27 = vadd.f32 %v8406_v0, %v4280_v29 }
0x1d23   :  { %v4248_v12 = vmul.f32 %v7016_v33, %v4247_v36 }
0x1d24   :  { %v4291_v55 = vrot.slane %v8410_v27, 7  ;;  %v4391_v56 = vrot.slane %v8410_v27, 1 }
0x1d25   :  { %v4252_v60 = vsel %vm4251_vm10, %v7016_v33, %v4248_v12 }
0x1d26   :  { %v4274_v28 = vmul.f32 %v4252_v60, %v4206_v52 }
0x1d28   :  { %v4281_v11 = vmul.f32 %v8403_v48, %v4274_v28 }
0x1d2a   :  { %v8414_v7 = vadd.f32 %v8406_v0, %v4281_v11 }
0x1d2c   :  { %v4292_v49 = vrot.slane %v8414_v7, 7  ;;  %v4392_v25 = vrot.slane %v8414_v7, 1  ;;  %v4310_v52 = vpack.c.bf16 %v8414_v7, %v8410_v27  ;;  %v6773_v7 = vld [vmem:[%s7701_s27 + $0x1] ss:$0 sm:$0xff] }
0x1d2e   :  { %6152 = vmatmul.msk.bf16.vlgmr.msrb.gmra.mxu2 %vm8746_vm9, %v4310_v52  ;;  %v4397_v41 = vsel %vm8841_vm3, %v4391_v56, %v4392_v25  ;;  %v4297_v1 = vsel %vm8842_vm15, %v4291_v55, %v4292_v49  ;;  %vm8843_vm15 = vcmp.lt.s32.totalorder %v7623_v43, 7 }
0x1d72   :  { %v4221_v62 = vpop.xlane.xlu0 %4220 }
0x1d73   :  { %v4227_v34 = vmul.f32 %v4221_v62, %v7168_v51 }
0x1d75   :  { %v4231_v6 = vadd.f32 1e-05, %v4227_v34 }
0x1d77   :  { %7017 = vrsqrt.f32 %v4231_v6  ;;  %vm4259_vm6 = vweird.f32 %v4231_v6 }
0x1d7a   :  { %v4224_v57 = vpop.xlane.xlu2 %4223 }
0x1d7b   :  { %v4228_v30 = vmul.f32 %v4224_v57, %v7168_v51  ;;  %v6643_v57 = vld [vmem:[%s7738_s9 + $0x98] sm:$0xff] }
0x1d7c   :  { %4608 = vmatpush.bf16.msrb.mxu1 %v6643_v57 }
0x1d7d   :  { %v7018_v54 = vpop.eup %7017  ;;  %v4232_v15 = vadd.f32 1e-05, %v4228_v30 }
0x1d7e   :  { %v4254_v23 = vmul.f32 %v7018_v54, %v4231_v6  ;;  %vm4260_vm5 = vweird.f32 %v7018_v54 }
0x1d7f   :  { %7019 = vrsqrt.f32 %v4232_v15  ;;  %vm4261_vm2 = vmor %vm4259_vm6, %vm4260_vm5  ;;  %vm4269_vm10 = vweird.f32 %v4232_v15  ;;  %vm8844_vm5 = vcmp.lt.s32.totalorder %v7667_v24, 16  ;;  %vm8845_vm6 = vcmp.lt.s32.totalorder %v7623_v43, 1 }
0x1d80   :  { %v4255_v45 = vmul.f32 %v7018_v54, %v4254_v23 }
0x1d82   :  { %v4256_v16 = vmul.f32 0.5, %v4255_v45 }
0x1d84   :  { %v4257_v59 = vsub.f32 1.5, %v4256_v16 }
0x1d85   :  { %v7020_v14 = vpop.eup %7019 }
0x1d86   :  { %v4258_v35 = vmul.f32 %v7018_v54, %v4257_v59  ;;  %v4264_v61 = vmul.f32 %v7020_v14, %v4232_v15  ;;  %vm4270_vm13 = vweird.f32 %v7020_v14 }
0x1d87   :  { %vm4271_vm3 = vmor %vm4269_vm10, %vm4270_vm13 }
0x1d88   :  { %v4262_v26 = vsel %vm4261_vm2, %v7018_v54, %v4258_v35  ;;  %v4265_v63 = vmul.f32 %v7020_v14, %v4264_v61  ;;  %vm8846_vm2 = vcmp.ge.s32.totalorder %v7683_v38, 0  ;;  %vm8847_vm13 = vmmov %vm8843_vm15  ;;  %v6642_v54 = vld [vmem:[%s7738_s9 + $0x90] sm:$0xff] }
0x1d89   :  { %v4275_v33 = vmul.f32 %v4262_v26, %v8386_v22  ;;  %vm8848_vm10 = vmmov %vm8847_vm13  ;;  %4609 = vmatpush.bf16.msrb.mxu1 %v6642_v54  ;;  %v6640_v26 = vld [vmem:[%s7738_s9 + $0x80] sm:$0xff] }
0x1d8a   :  { %v4266_v31 = vmul.f32 0.5, %v4265_v63  ;;  %v6647_v63 = vld [vmem:[%s7738_s9 + $0xb8] sm:$0xff] }
0x1d8b   :  { %v4282_v51 = vmul.f32 %v8403_v48, %v4275_v33  ;;  %4729 = vmatpush.bf16.msra.mxu3 %v6647_v63 }
0x1d8c   :  { %v4267_v37 = vsub.f32 1.5, %v4266_v31 }
0x1d8d   :  { %v4289_v17 = vadd.f32 %v8406_v0, %v4282_v51 }
0x1d8e   :  { %v4268_v46 = vmul.f32 %v7020_v14, %v4267_v37 }
0x1d8f   :  { %v4393_v5 = vrot.slane %v4289_v17, 1  ;;  %v4293_v62 = vrot.slane %v4289_v17, 7 }
0x1d90   :  { %v4272_v50 = vsel %vm4271_vm3, %v7020_v14, %v4268_v46  ;;  %vm8849_vm3 = vcmp.lt.s32.totalorder %v7696_v42, 16  ;;  %v6641_v14 = vld [vmem:[%s7738_s9 + $0x88] sm:$0xff] }
0x1d91   :  { %v4276_v36 = vmul.f32 %v4272_v50, %v8393_v39  ;;  %v4396_v29 = vsel %vm8843_vm15, %v4392_v25, %v4393_v5  ;;  %vm8850_vm15 = vmmov %vm8845_vm6  ;;  %4610 = vmatpush.bf16.msrb.mxu1 %v6641_v14  ;;  %v6646_v50 = vld [vmem:[%s7738_s9 + $0xb0] sm:$0xff] }
0x1d92   :  { %v4400_v22 = vsel %vm8844_vm5, %v4396_v29, 0.0  ;;  %v4296_v27 = vsel %vm8850_vm15, %v4292_v49, %v4293_v62  ;;  %vm8851_vm5 = vmmov %vm8845_vm6  ;;  %4730 = vmatpush.bf16.msra.mxu3 %v6646_v50 }
0x1d93   :  { %v4283_v12 = vmul.f32 %v8403_v48, %v4276_v36  ;;  %v4403_v60 = vpack.c.bf16 %v4400_v22, %v4397_v41  ;;  %v6639_v22 = vld [vmem:[%s7738_s9 + $0x78] sm:$0xff] }
0x1d94   :  { %4657 = vmatpush.bf16.msra.mxu2 %v6639_v22 }
0x1d95   :  { %6176 = vmatmul.msk.bf16.vlgmr.msrb.gmra.mxu0 %vm8746_vm9, %v4403_v60  ;;  %v4290_v28 = vadd.f32 %v8406_v0, %v4283_v12  ;;  %4611 = vmatpush.bf16.msrb.mxu1 %v6640_v26  ;;  %v6645_v12 = vld [vmem:[%s7738_s9 + $0xa8] sm:$0xff] }
0x1d96   :  { %4731 = vmatpush.bf16.msra.mxu3 %v6645_v12 }
0x1d97   :  { %v4294_v11 = vrot.slane %v4290_v28, 7  ;;  %v4311_v52 = vpack.c.bf16 %v4290_v28, %v4289_v17  ;;  %v4394_v44 = vrot.slane %v4290_v28, 1 }
0x1d99   :  { %6153 = vmatmul.msk.bf16.gmra.mxu2 %vm8746_vm9, %v4311_v52  ;;  %v4298_v39 = vsel %vm8845_vm6, %v4294_v11, %v4291_v55  ;;  %v4398_v48 = vsel %vm8847_vm13, %v4394_v44, %v4391_v56  ;;  %v4395_v0 = vsel %vm8848_vm10, %v4393_v5, %v4394_v44  ;;  %v4295_v56 = vsel %vm8851_vm5, %v4293_v62, %v4294_v11 }
0x1d9a   :  { %v4299_v25 = vsel %vm8846_vm2, %v4298_v39, 0.0  ;;  %v4402_v55 = vsel %vm8849_vm3, %v4398_v48, 0.0  ;;  %vm8852_vm6 = vcmp.ge.s32.totalorder %v7722_v58, 0  ;;  %v6644_v48 = vld [vmem:[%s7738_s9 + $0xa0] sm:$0xff] }
0x1d9b   :  { %v4303_v13 = vpack.c.bf16 %v4297_v1, %v4299_v25  ;;  %v4404_v41 = vpack.c.bf16 %v4402_v55, %v4395_v0  ;;  %v4301_v1 = vsel %vm8852_vm6, %v4296_v27, 0.0  ;;  %4732 = vmatpush.bf16.msra.mxu3 %v6644_v48 }
0x1d9c   :  { %v4304_v34 = vpack.c.bf16 %v4295_v56, %v4301_v1  ;;  %v6637_v56 = vld [vmem:[%s7738_s9 + $0x68] sm:$0xff] }
0x1d9d   :  { %6162 = vmatmul.msk.bf16.vlgmr.msrb.gmra.mxu3 %vm8746_vm9, %v4303_v13  ;;  %v6638_v13 = vld [vmem:[%s7738_s9 + $0x70] sm:$0xff] }
0x1d9e   :  { %4658 = vmatpush.bf16.msra.mxu2 %v6638_v13 }
0x1da2   :  { %4659 = vmatpush.bf16.msra.mxu2 %v6637_v56 }
0x1da5   :  { %6177 = vmatmul.msk.bf16.gmra.mxu0 %vm8746_vm9, %v4404_v41 }
0x1dad   :  { %6163 = vmatmul.msk.bf16.gmra.mxu3 %vm8746_vm9, %v4304_v34 }
0x1db1   :  { %v4344_v6 = vpop.f32.mrf.mxu2 }
0x1db9   :  { %v4346_v23 = vpop.f32.mrf.mxu2 }
0x1e12   :  { %v4437_v53 = vpop.f32.mrf.mxu0 }
0x1e1a   :  { %v4439_v45 = vpop.f32.mrf.mxu0 }
0x1e1c   :  { %v4349_v31 = vpop.f32.mrf.mxu2 }
0x1e20   :  { %v4381_v40 = vpop.f32.mrf.mxu3 }
0x1e21   :  { %v4382_v30 = vadd.f32 %v4381_v40, %v4344_v6 }
0x1e22   :  { %v4442_v46 = vpop.f32.mrf.mxu0 }
0x1e23   :  { %v4447_v49 = vadd.f32 %v4437_v53, %v4382_v30  ;;  %v6636_v30 = vld [vmem:[%s7738_s9 + $0x60] sm:$0xff]  ;;  %s5513_s9 = sld [smem:[%s8713_s0 + %s7106_s12]]  }
0x1e24   :  { %v4351_v39 = vpop.f32.mrf.mxu2  ;;  %4660 = vmatpush.bf16.msra.mxu2 %v6636_v30 }
0x1e25   :  { %v8475_v15 = vadd.f32 %v6773_v7, %v4447_v49 }
0x1e27   :  { %v6179_v16 = vmul.f32 -1.442695, %v8475_v15 }
0x1e28   :  { %v4383_v59 = vpop.f32.mrf.mxu3 }
0x1e29   :  { %7021 = vpow2.f32 %v6179_v16  ;;  %v4384_v35 = vadd.f32 %v4383_v59, %v4346_v23 }
0x1e2a   :  { %v4444_v41 = vpop.f32.mrf.mxu0 }
0x1e2b   :  { %v4448_v61 = vadd.f32 %v4439_v45, %v4384_v35 }
0x1e2d   :  { %v8481_v33 = vadd.f32 %v6773_v7, %v4448_v61 }
0x1e2f   :  { %v7022_v51 = vpop.eup %7021  ;;  %v6180_v37 = vmul.f32 -1.442695, %v8481_v33 }
0x1e30   :  { %v4472_v17 = vadd.f32 1.0, %v7022_v51  ;;  %v4386_v5 = vpop.f32.mrf.mxu3 }
0x1e31   :  { %7023 = vpow2.f32 %v6180_v37  ;;  %v4387_v36 = vadd.f32 %v4386_v5, %v4349_v31 }
0x1e32   :  { %7025 = vrcp.f32 %v4472_v17  ;;  %v4487_v23 = vand.u32 2147483648, %v4472_v17  ;;  %vm4481_vm13 = vweird.f32 %v4472_v17  ;;  %v4485_v45 = vand.u32 2147483647, %v4472_v17 }
0x1e33   :  { %v4449_v29 = vadd.f32 %v4442_v46, %v4387_v36 }
0x1e34   :  { %v4488_v61 = vor.u32 1.1754944e-38, %v4487_v23  ;;  %vm4486_vm15 = vcmp.eq.f32.partialorder %v4485_v45, 8.507059e+37 }
0x1e35   :  { %v8487_v60 = vadd.f32 %v6773_v7, %v4449_v29 }
0x1e37   :  { %v7024_v28 = vpop.eup %7023  ;;  %v6181_v11 = vmul.f32 -1.442695, %v8487_v60 }
0x1e38   :  { %v7026_v52 = vpop.eup %7025  ;;  %v4473_v44 = vadd.f32 1.0, %v7024_v28  ;;  %v4388_v25 = vpop.f32.mrf.mxu3 }
0x1e39   :  { %v4477_v0 = vmul.f32 %v7026_v52, %v4472_v17  ;;  %7027 = vpow2.f32 %v6181_v11  ;;  %v4389_v55 = vadd.f32 %v4388_v25, %v4351_v39  ;;  %vm4482_vm2 = vweird.f32 %v7026_v52 }
0x1e3a   :  { %7029 = vrcp.f32 %v4473_v44  ;;  %vm4483_vm10 = vmor %vm4481_vm13, %vm4482_vm2  ;;  %v4500_v35 = vand.u32 2147483647, %v4473_v44  ;;  %vm4496_vm5 = vweird.f32 %v4473_v44 }
0x1e3b   :  { %v4478_v62 = vsub.f32 1.0, %v4477_v0  ;;  %v4450_v27 = vadd.f32 %v4444_v41, %v4389_v55 }
0x1e3c   :  { %vm4501_vm9 = vcmp.eq.f32.partialorder %v4500_v35, 8.507059e+37 }
0x1e3d   :  { %v4479_v1 = vmul.f32 %v7026_v52, %v4478_v62  ;;  %v8493_v34 = vadd.f32 %v6773_v7, %v4450_v27  ;;  %v4502_v7 = vand.u32 2147483648, %v4473_v44 }
0x1e3f   :  { %v7028_v6 = vpop.eup %7027  ;;  %v6182_v53 = vmul.f32 -1.442695, %v8493_v34  ;;  %v4480_v49 = vadd.f32 %v7026_v52, %v4479_v1  ;;  %v4503_v37 = vor.u32 1.1754944e-38, %v4502_v7 }
0x1e40   :  { %v7030_v40 = vpop.eup %7029  ;;  %v4474_v57 = vadd.f32 1.0, %v7028_v6 }
0x1e41   :  { %v4492_v54 = vmul.f32 %v7030_v40, %v4473_v44  ;;  %7031 = vpow2.f32 %v6182_v53  ;;  %v4484_v59 = vsel %vm4483_vm10, %v7026_v52, %v4480_v49  ;;  %vm4497_vm3 = vweird.f32 %v7030_v40 }
0x1e42   :  { %7033 = vrcp.f32 %v4474_v57  ;;  %v4489_v51 = vsel %vm4486_vm15, %v4488_v61, %v4484_v59  ;;  %vm4498_vm6 = vmor %vm4496_vm5, %vm4497_vm3  ;;  %v4517_v12 = vand.u32 2147483648, %v4474_v57  ;;  %v4515_v52 = vand.u32 2147483647, %v4474_v57 }
0x1e43   :  { %v4493_v16 = vsub.f32 1.0, %v4492_v54  ;;  %v4536_v36 = vmul.f32 %v4489_v51, %v8475_v15  ;;  %vm4511_vm13 = vweird.f32 %v4474_v57  ;;  %vm8853_vm10 = vcmask 523264  }
0x1e44   :  { %v4518_v25 = vor.u32 1.1754944e-38, %v4517_v12  ;;  %vm8854_vm5 = vcmp.lt.s32.totalorder %v7623_v43, 7 }
0x1e45   :  { %v4494_v14 = vmul.f32 %v7030_v40, %v4493_v16  ;;  %v4672_v1 = vrot.slane %v4536_v36, 1  ;;  %v4540_v16 = vrot.slane %v4536_v36, 7 }
0x1e47   :  { %v7032_v26 = vpop.eup %7031  ;;  %v4495_v63 = vadd.f32 %v7030_v40, %v4494_v14 }
0x1e48   :  { %v7034_v31 = vpop.eup %7033  ;;  %v4475_v46 = vadd.f32 1.0, %v7032_v26 }
0x1e49   :  { %v4499_v5 = vsel %vm4498_vm6, %v7030_v40, %v4495_v63  ;;  %v4507_v17 = vmul.f32 %v7034_v31, %v4474_v57  ;;  %vm4512_vm2 = vweird.f32 %v7034_v31 }
0x1e4a   :  { %v4504_v50 = vsel %vm4501_vm9, %v4503_v37, %v4499_v5  ;;  %7035 = vrcp.f32 %v4475_v46  ;;  %vm4513_vm3 = vmor %vm4511_vm13, %vm4512_vm2  ;;  %vm4516_vm9 = vcmp.eq.f32.partialorder %v4515_v52, 8.507059e+37  ;;  %v4532_v41 = vand.u32 2147483648, %v4475_v46  ;;  %v6667_v52 = vld [vmem:[%s7807_s1 + $0x1d8] sm:$0xff] }
0x1e4b   :  { %v4537_v29 = vmul.f32 %v4504_v50, %v8481_v33  ;;  %v4508_v22 = vsub.f32 1.0, %v4507_v17  ;;  %v4530_v56 = vand.u32 2147483647, %v4475_v46  ;;  %vm4526_vm6 = vweird.f32 %v4475_v46  ;;  %vm8855_vm2 = vmmov %vm8854_vm5  ;;  %v6670_v50 = vld [vmem:[%s7807_s1 + $0x1f0] sm:$0xff] }
0x1e4c   :  { %vm8856_vm13 = vcmp.lt.s32.totalorder %v7667_v24, 16 }
0x1e4d   :  { %v4563_v28 = vpack.c.bf16 %v4537_v29, %v4536_v36  ;;  %v4509_v11 = vmul.f32 %v7034_v31, %v4508_v22  ;;  %v4673_v55 = vrot.slane %v4537_v29, 1  ;;  %v4541_v45 = vrot.slane %v4537_v29, 7  ;;  %v6669_v36 = vld [vmem:[%s7807_s1 + $0x1e8] sm:$0xff]  ;;  %v6679_v22 = vld [vmem:[%s7807_s1 + $0x238] sm:$0xff] }
0x1e4e   :  { %5202 = vmatpush.bf16.msrb.mxu3 %v6679_v22 }
0x1e4f   :  { %v4510_v39 = vadd.f32 %v7034_v31, %v4509_v11  ;;  %6215 = vmatmul.msk.bf16.vlgmr.msrb.gmra.mxu1 %vm8853_vm10, %v4563_v28  ;;  %v4678_v40 = vsel %vm8855_vm2, %v4672_v1, %v4673_v55  ;;  %v6678_v28 = vld [vmem:[%s7807_s1 + $0x230] sm:$0xff] }
0x1e50   :  { %v7036_v44 = vpop.eup %7035 }
0x1e51   :  { %v4514_v13 = vsel %vm4513_vm3, %v7034_v31, %v4510_v39  ;;  %v4522_v48 = vmul.f32 %v7036_v44, %v4475_v46  ;;  %vm4527_vm15 = vweird.f32 %v7036_v44  ;;  %vm4531_vm3 = vcmp.eq.f32.partialorder %v4530_v56, 8.507059e+37  ;;  %v6654_v56 = vld [vmem:[%s7807_s1 + $0x170] sm:$0xff] }
0x1e52   :  { %v4519_v0 = vsel %vm4516_vm9, %v4518_v25, %v4514_v13  ;;  %vm4528_vm10 = vmor %vm4526_vm6, %vm4527_vm15  ;;  %vm8857_vm9 = vcmask 523264   ;;  %vm8861_vm6 = vcmp.ge.s32.totalorder %v7683_v38, 0  ;;  %5203 = vmatpush.bf16.msrb.mxu3 %v6678_v28  ;;  %v6663_v13 = vld [vmem:[%s7807_s1 + $0x1b8] sm:$0xff] }
0x1e53   :  { %v4538_v15 = vmul.f32 %v4519_v0, %v8487_v60  ;;  %v4523_v33 = vsub.f32 1.0, %v4522_v48  ;;  %v4533_v60 = vor.u32 1.1754944e-38, %v4532_v41  ;;  %vm8859_vm2 = vmmov %vm8857_vm9  ;;  %v6655_v48 = vld [vmem:[%s7807_s1 + $0x178] sm:$0xff]  ;;  %v6677_v0 = vld [vmem:[%s7807_s1 + $0x228] sm:$0xff]  ;;  %4947 = vmatpush.bf16.msra.mxu0 %v6663_v13 }
0x1e54   :  { %5014 = vmatpush.bf16.msra.mxu1 %v6655_v48  ;;  %v6649_v13 = vld [vmem:[%s7807_s1 + $0x148] sm:$0xff] }
0x1e55   :  { %v4674_v62 = vrot.slane %v4538_v15, 1  ;;  %v4524_v27 = vmul.f32 %v7036_v44, %v4523_v33  ;;  %v4542_v51 = vrot.slane %v4538_v15, 7  ;;  %v6666_v33 = vld [vmem:[%s7807_s1 + $0x1d0] sm:$0xff] }
0x1e56   :  { %5204 = vmatpush.bf16.msrb.mxu3 %v6677_v0  ;;  %v6656_v0 = vld [vmem:[%s7807_s1 + $0x180] sm:$0xff] }
0x1e57   :  { %v4677_v6 = vsel %vm8854_vm5, %v4673_v55, %v4674_v62  ;;  %v4525_v53 = vadd.f32 %v7036_v44, %v4524_v27  ;;  %vm8858_vm5 = vcmp.lt.s32.totalorder %v7623_v43, 1  ;;  %v6662_v27 = vld [vmem:[%s7807_s1 + $0x1b0] sm:$0xff] }
0x1e58   :  { %v4681_v57 = vsel %vm8856_vm13, %v4677_v6, 0.0  ;;  %vm8860_vm15 = vmmov %vm8858_vm5  ;;  %4948 = vmatpush.bf16.msra.mxu0 %v6662_v27  ;;  %5015 = vmatpush.bf16.msra.mxu1 %v6654_v56 }
0x1e59   :  { %v4529_v30 = vsel %vm4528_vm10, %v7036_v44, %v4525_v53  ;;  %v4684_v49 = vpack.c.bf16 %v4681_v57, %v4678_v40  ;;  %v4546_v24 = vsel %vm8860_vm15, %v4540_v16, %v4541_v45  ;;  %vm8862_vm13 = vmmov %vm8859_vm2  ;;  %vm8863_vm10 = vcmp.lt.s32.totalorder %v7623_v43, 7  ;;  %v8539_v44 = vld [vmem:[%s7780_s2 + $0x1] ss:$0 sm:$0xff]  ;;  %v6665_v53 = vld [vmem:[%s7807_s1 + $0x1c8] sm:$0xff] }
0x1e5a   :  { %v4534_v54 = vsel %vm4531_vm3, %v4533_v60, %v4529_v30  ;;  %vm8864_vm3 = vmmov %vm8863_vm10  ;;  %v6661_v60 = vld [vmem:[%s7807_s1 + $0x1a8] sm:$0xff] }
0x1e5b   :  { %v4539_v23 = vmul.f32 %v4534_v54, %v8493_v34  ;;  %6259 = vmatmul.msk.bf16.vlgmr.msra.gmra.mxu3 %vm8857_vm9, %v4684_v49  ;;  %vm8865_vm9 = vcmp.lt.s32.totalorder %v7696_v42, 16  ;;  %v6671_v42 = vld [vmem:[%s7807_s1 + $0x1f8] sm:$0xff]  ;;  %v6653_v30 = vld [vmem:[%s7807_s1 + $0x168] sm:$0xff]  ;;  %v6664_v54 = vld [vmem:[%s7807_s1 + $0x1c0] sm:$0xff] }
0x1e5c   :  { %5100 = vmatpush.bf16.msrb.mxu2 %v6671_v42  ;;  %v6675_v49 = vld [vmem:[%s7807_s1 + $0x218] sm:$0xff]  ;;  %4949 = vmatpush.bf16.msra.mxu0 %v6661_v60  ;;  %v6650_v42 = vld [vmem:[%s7807_s1 + $0x150] sm:$0xff] }
0x1e5d   :  { %v4543_v7 = vrot.slane %v4539_v23, 7  ;;  %v4564_v59 = vpack.c.bf16 %v4539_v23, %v4538_v15  ;;  %v4675_v35 = vrot.slane %v4539_v23, 1  ;;  %5016 = vmatpush.bf16.msra.mxu1 %v6653_v30 }
0x1e5f   :  { %v4547_v14 = vsel %vm8858_vm5, %v4543_v7, %v4540_v16  ;;  %6216 = vmatmul.msk.bf16.gmra.mxu1 %vm8859_vm2, %v4564_v59  ;;  %v4679_v26 = vsel %vm8863_vm10, %v4675_v35, %v4672_v1  ;;  %v4676_v63 = vsel %vm8864_vm3, %v4674_v62, %v4675_v35  ;;  %vm8866_vm5 = vmmov %vm8859_vm2  ;;  %v6676_v1 = vld [vmem:[%s7807_s1 + $0x220] sm:$0xff]  ;;  %v6674_v35 = vld [vmem:[%s7807_s1 + $0x210] sm:$0xff] }
0x1e60   :  { %v4548_v61 = vsel %vm8861_vm6, %v4547_v14, 0.0  ;;  %v4683_v31 = vsel %vm8865_vm9, %v4679_v26, 0.0  ;;  %vm8867_vm2 = vmmov %vm8860_vm15  ;;  %vm8869_vm6 = vcmp.ge.s32.totalorder %v7722_v58, 0  ;;  %5101 = vmatpush.bf16.msrb.mxu2 %v6670_v50  ;;  %v6668_v58 = vld [vmem:[%s7807_s1 + $0x1e0] sm:$0xff]  ;;  %5205 = vmatpush.bf16.msrb.mxu3 %v6676_v1 }
0x1e61   :  { %v4552_v34 = vpack.c.bf16 %v4546_v24, %v4548_v61  ;;  %v4685_v37 = vpack.c.bf16 %v4683_v31, %v4676_v63  ;;  %v4545_v38 = vsel %vm8867_vm2, %v4541_v45, %v4542_v51  ;;  %vm8868_vm15 = vmmov %vm8867_vm2  ;;  %v6660_v59 = vld [vmem:[%s7807_s1 + $0x1a0] sm:$0xff]  ;;  %v6659_v31 = vld [vmem:[%s7807_s1 + $0x198] sm:$0xff] }
0x1e62   :  { %v4544_v46 = vsel %vm8868_vm15, %v4542_v51, %v4543_v7  ;;  %v4550_v5 = vsel %vm8869_vm6, %v4545_v38, 0.0  ;;  %v6652_v14 = vld [vmem:[%s7807_s1 + $0x160] sm:$0xff]  ;;  %4950 = vmatpush.bf16.msra.mxu0 %v6660_v59  ;;  %v6651_v51 = vld [vmem:[%s7807_s1 + $0x158] sm:$0xff] }
0x1e63   :  { %6233 = vmatmul.msk.bf16.vlgmr.msra.gmra.mxu2 %vm8862_vm13, %v4552_v34  ;;  %v4553_v17 = vpack.c.bf16 %v4544_v46, %v4550_v5  ;;  %vm8870_vm13 = vmmov %vm8866_vm5  ;;  %5017 = vmatpush.bf16.msra.mxu1 %v6652_v14  ;;  %v6672_v50 = vld [vmem:[%s7807_s1 + $0x200] sm:$0xff] }
0x1e64   :  { %5102 = vmatpush.bf16.msrb.mxu2 %v6669_v36  ;;  %5206 = vmatpush.bf16.msrb.mxu3 %v6675_v49 }
0x1e66   :  { %4951 = vmatpush.bf16.msra.mxu0 %v6659_v31  ;;  %v6685_v31 = vld [vmem:[%s7807_s1 + $0x268] sm:$0xff] }
0x1e67   :  { %5018 = vmatpush.bf16.msra.mxu1 %v6651_v51 }
0x1e68   :  { %5103 = vmatpush.bf16.msrb.mxu2 %v6668_v58  ;;  %5207 = vmatpush.bf16.msrb.mxu3 %v6674_v35 }
0x1e6b   :  { %6260 = vmatmul.msk.bf16.gmra.mxu3 %vm8866_vm5, %v4685_v37  ;;  %v6673_v37 = vld [vmem:[%s7807_s1 + $0x208] sm:$0xff]  ;;  %5019 = vmatpush.bf16.msra.mxu1 %v6650_v42 }
0x1e6c   :  { %5104 = vmatpush.bf16.msrb.mxu2 %v6667_v52  ;;  %5208 = vmatpush.bf16.msrb.mxu3 %v6673_v37 }
0x1e6f   :  { %5020 = vmatpush.bf16.msra.mxu1 %v6649_v13 }
0x1e70   :  { %5105 = vmatpush.bf16.msrb.mxu2 %v6666_v33  ;;  %5209 = vmatpush.bf16.msrb.mxu3 %v6672_v50 }
0x1e73   :  { %6234 = vmatmul.msk.bf16.gmra.mxu2 %vm8870_vm13, %v4553_v17  ;;  %v6658_v17 = vld [vmem:[%s7807_s1 + $0x190] sm:$0xff] }
0x1e74   :  { %5106 = vmatpush.bf16.msrb.mxu2 %v6665_v53  ;;  %4952 = vmatpush.bf16.msra.mxu0 %v6658_v17  ;;  %v6684_v17 = vld [vmem:[%s7807_s1 + $0x260] sm:$0xff] }
0x1e78   :  { %5107 = vmatpush.bf16.msrb.mxu2 %v6664_v54 }
0x1ecc   :  { %v4613_v29 = vpop.f32.mrf.mxu1 }
0x1ed4   :  { %v4615_v15 = vpop.f32.mrf.mxu1 }
0x1edc   :  { %v4618_v45 = vpop.f32.mrf.mxu1 }
0x1ede   :  { %v4734_v12 = vpop.f32.mrf.mxu3 }
0x1ee6   :  { %v4662_v11 = vpop.f32.mrf.mxu2  ;;  %v4736_v41 = vpop.f32.mrf.mxu3 }
0x1ee7   :  { %v4663_v39 = vadd.f32 %v4662_v11, %v4613_v29  ;;  %v4620_v29 = vpop.f32.mrf.mxu1 }
0x1ee9   :  { %v4744_v25 = vadd.f32 %v4734_v12, %v4663_v39 }
0x1eeb   :  { %v8546_v55 = vadd.f32 %v8539_v44, %v4744_v25  ;;  %v6657_v25 = vld [vmem:[%s7807_s1 + $0x188] sm:$0xff] }
0x1eec   :  { %4953 = vmatpush.bf16.msra.mxu0 %v6657_v25 }
0x1eed   :  { %v6262_v62 = vmul.f32 -1.442695, %v8546_v55 }
0x1eee   :  { %v4664_v6 = vpop.f32.mrf.mxu2  ;;  %v4739_v61 = vpop.f32.mrf.mxu3 }
0x1eef   :  { %7037 = vpow2.f32 %v6262_v62  ;;  %v4665_v40 = vadd.f32 %v4664_v6, %v4615_v15  ;;  %v6648_v15 = vld [vmem:[%s7807_s1 + $0x140] sm:$0xff]  ;;  %v6687_v6 = vld [vmem:[%s7807_s1 + $0x278] sm:$0xff] }
0x1ef0   :  { %4954 = vmatpush.bf16.msra.mxu0 %v6656_v0  ;;  %5021 = vmatpush.bf16.msra.mxu1 %v6648_v15  ;;  %v6682_v15 = vld [vmem:[%s7807_s1 + $0x250] sm:$0xff] }
0x1ef1   :  { %v4745_v57 = vadd.f32 %v4736_v41, %v4665_v40 }
0x1ef3   :  { %v8558_v23 = vadd.f32 %v8539_v44, %v4745_v57  ;;  %v6686_v57 = vld [vmem:[%s7807_s1 + $0x270] sm:$0xff] }
0x1ef4   :  { %5304 = vmatpush.bf16.msrb.mxu0 %v6687_v6 }
0x1ef5   :  { %v7038_v16 = vpop.eup %7037  ;;  %v6263_v7 = vmul.f32 -1.442695, %v8558_v23 }
0x1ef6   :  { %v8564_v24 = vadd.f32 1.0, %v7038_v16  ;;  %v4667_v34 = vpop.f32.mrf.mxu2  ;;  %v4741_v11 = vpop.f32.mrf.mxu3 }
0x1ef7   :  { %7039 = vpow2.f32 %v6263_v7  ;;  %v4668_v26 = vadd.f32 %v4667_v34, %v4618_v45 }
0x1ef8   :  { %7041 = vrcp.f32 %v8564_v24  ;;  %v4784_v40 = vand.u32 2147483648, %v8564_v24  ;;  %vm4778_vm3 = vweird.f32 %v8564_v24  ;;  %v4782_v60 = vand.u32 2147483647, %v8564_v24  ;;  %5305 = vmatpush.bf16.msrb.mxu0 %v6686_v57 }
0x1ef9   :  { %v4746_v63 = vadd.f32 %v4739_v61, %v4668_v26 }
0x1efa   :  { %v4785_v14 = vor.u32 1.1754944e-38, %v4784_v40  ;;  %vm4783_vm15 = vcmp.eq.f32.partialorder %v4782_v60, 8.507059e+37 }
0x1efb   :  { %v8571_v38 = vadd.f32 %v8539_v44, %v4746_v63 }
0x1efc   :  { %5306 = vmatpush.bf16.msrb.mxu0 %v6685_v31 }
0x1efd   :  { %v7040_v46 = vpop.eup %7039  ;;  %v6264_v5 = vmul.f32 -1.442695, %v8571_v38 }
0x1efe   :  { %v7042_v36 = vpop.eup %7041  ;;  %v4770_v22 = vadd.f32 1.0, %v7040_v46  ;;  %v4669_v12 = vpop.f32.mrf.mxu2 }
0x1eff   :  { %v4774_v58 = vmul.f32 %v7042_v36, %v8564_v24  ;;  %7043 = vpow2.f32 %v6264_v5  ;;  %v4670_v28 = vadd.f32 %v4669_v12, %v4620_v29  ;;  %vm4779_vm10 = vweird.f32 %v7042_v36 }
0x1f00   :  { %7045 = vrcp.f32 %v4770_v22  ;;  %v4799_v30 = vand.u32 2147483648, %v4770_v22  ;;  %vm8591_vm9 = vmor %vm4778_vm3, %vm4779_vm10  ;;  %v4797_v45 = vand.u32 2147483647, %v4770_v22  ;;  %vm4793_vm2 = vweird.f32 %v4770_v22  ;;  %5307 = vmatpush.bf16.msrb.mxu0 %v6684_v17 }
0x1f01   :  { %v4775_v52 = vsub.f32 1.0, %v4774_v58  ;;  %v4747_v39 = vadd.f32 %v4741_v11, %v4670_v28  ;;  %v6683_v11 = vld [vmem:[%s7807_s1 + $0x258] sm:$0xff] }
0x1f02   :  { %v4800_v24 = vor.u32 1.1754944e-38, %v4799_v30  ;;  %vm4798_vm13 = vcmp.eq.f32.partialorder %v4797_v45, 8.507059e+37 }
0x1f03   :  { %v8581_v48 = vadd.f32 %v8539_v44, %v4747_v39  ;;  %v4776_v41 = vmul.f32 %v7042_v36, %v4775_v52 }
0x1f04   :  { %5308 = vmatpush.bf16.msrb.mxu0 %v6683_v11  ;;  %v6689_v11 = vld [vmem:[%s8025_s21 + $0x18] sm:$0xff] }
0x1f05   :  { %v7044_v33 = vpop.eup %7043  ;;  %v6265_v62 = vmul.f32 -1.442695, %v8581_v48  ;;  %v4777_v53 = vadd.f32 %v7042_v36, %v4776_v41  ;;  %5372 = vmatpush.bf16.msrb.mxu1 %v6689_v11 }
0x1f06   :  { %v7046_v27 = vpop.eup %7045  ;;  %v4771_v56 = vadd.f32 1.0, %v7044_v33 }
0x1f07   :  { %v4789_v1 = vmul.f32 %v7046_v27, %v4770_v22  ;;  %7047 = vpow2.f32 %v6265_v62  ;;  %vm4794_vm5 = vweird.f32 %v7046_v27  ;;  %v4781_v7 = vsel %vm8591_vm9, %v7042_v36, %v4777_v53  ;;  %v6681_v53 = vld [vmem:[%s7807_s1 + $0x248] sm:$0xff] }
0x1f08   :  { %7049 = vrcp.f32 %v4771_v56  ;;  %vm4795_vm6 = vmor %vm4793_vm2, %vm4794_vm5  ;;  %v4786_v26 = vsel %vm4783_vm15, %v4785_v14, %v4781_v7  ;;  %v4814_v5 = vand.u32 2147483648, %v4771_v56  ;;  %v4812_v36 = vand.u32 2147483647, %v4771_v56  ;;  %5309 = vmatpush.bf16.msrb.mxu0 %v6682_v15 }
0x1f09   :  { %v4790_v44 = vsub.f32 1.0, %v4789_v1  ;;  %v8603_v42 = vmul.f32 %v4786_v26, %v8546_v55  ;;  %vm4808_vm3 = vweird.f32 %v4771_v56 }
0x1f0a   :  { %vm4813_vm5 = vcmp.eq.f32.partialorder %v4812_v36, 8.507059e+37 }
0x1f0b   :  { %v4791_v54 = vmul.f32 %v7046_v27, %v4790_v44  ;;  %v5123_v13 = vrot.slane %v8603_v42, 1  ;;  %v4837_v49 = vrot.slane %v8603_v42, 6  ;;  %v4868_v45 = vrot.slane %v8603_v42, 7 }
0x1f0c   :  { %5310 = vmatpush.bf16.msrb.mxu0 %v6681_v53  ;;  %v6775_v53 = vld [vmem:[%s8000_s30 + $0x1] ss:$0 sm:$0xff] }
0x1f0d   :  { %v7048_v16 = vpop.eup %7047  ;;  %v4792_v35 = vadd.f32 %v7046_v27, %v4791_v54  ;;  %v6680_v54 = vld [vmem:[%s7807_s1 + $0x240] sm:$0xff]  ;;  %s7103_s1 = smov 3  }
0x1f0e   :  { %v7050_v59 = vpop.eup %7049  ;;  %v4772_v61 = vadd.f32 1.0, %v7048_v16  ;;  %s5503_s8 = sld [smem:[%s8713_s0 + %s7103_s1]]  }
0x1f0f   :  { %v4804_v34 = vmul.f32 %v7050_v59, %v4771_v56  ;;  %v4796_v63 = vsel %vm4795_vm6, %v7046_v27, %v4792_v35  ;;  %vm4809_vm10 = vweird.f32 %v7050_v59  ;;  %vm8873_vm6 = vcmp.lt.s32.totalorder %v7623_v43, 7 }
0x1f10   :  { %7051 = vrcp.f32 %v4772_v61  ;;  %v4801_v51 = vsel %vm4798_vm13, %v4800_v24, %v4796_v63  ;;  %vm4810_vm9 = vmor %vm4808_vm3, %vm4809_vm10  ;;  %v4829_v0 = vand.u32 2147483648, %v4772_v61  ;;  %v4827_v62 = vand.u32 2147483647, %v4772_v61  ;;  %5311 = vmatpush.bf16.msrb.mxu0 %v6680_v54 }
0x1f11   :  { %v4805_v37 = vsub.f32 1.0, %v4804_v34  ;;  %v8599_v46 = vmul.f32 %v4801_v51, %v8558_v23  ;;  %v4815_v23 = vor.u32 1.1754944e-38, %v4814_v5  ;;  %vm4823_vm15 = vweird.f32 %v4772_v61  ;;  %vm8874_vm13 = vmmov %vm8873_vm6 }
0x1f12   :  { %v4830_v1 = vor.u32 1.1754944e-38, %v4829_v0  ;;  %vm4828_vm3 = vcmp.eq.f32.partialorder %v4827_v62, 8.507059e+37 }
0x1f13   :  { %v4806_v50 = vmul.f32 %v7050_v59, %v4805_v37  ;;  %v5033_v22 = vpack.c.bf16 %v8599_v46, %v8603_v42  ;;  %v5124_v52 = vrot.slane %v8599_v46, 1  ;;  %v4838_v57 = vrot.slane %v8599_v46, 6 }
0x1f14   :  { %v4869_v60 = vrot.slane %v8599_v46, 7 }
0x1f15   :  { %v4807_v29 = vadd.f32 %v7050_v59, %v4806_v50  ;;  %5108 = vmatmul.bf16.vlgmr.msrb.gmra.mxu2 %v5033_v22  ;;  %v5225_v22 = vrot.slane %v8603_v42, 2 }
0x1f16   :  { %v7052_v12 = vpop.eup %7051 }
0x1f17   :  { %v4811_v58 = vsel %vm4810_vm9, %v7050_v59, %v4807_v29  ;;  %v4819_v28 = vmul.f32 %v7052_v12, %v4772_v61  ;;  %vm4824_vm2 = vweird.f32 %v7052_v12  ;;  %vm8875_vm9 = vcmp.lt.s32.totalorder %v7623_v43, 1 }
0x1f18   :  { %v4816_v55 = vsel %vm4813_vm5, %v4815_v23, %v4811_v58  ;;  %vm4825_vm10 = vmor %vm4823_vm15, %vm4824_vm2  ;;  %v4874_v9 = vsel %vm8875_vm9, %v4868_v45, %v4869_v60  ;;  %vm8877_vm5 = vcmp.lt.s32.totalorder %v7623_v43, 2  ;;  %v5226_v29 = vrot.slane %v8599_v46, 2 }
0x1f19   :  { %v8610_v39 = vmul.f32 %v4816_v55, %v8571_v38  ;;  %v4820_v25 = vsub.f32 1.0, %v4819_v28  ;;  %v5129_v38 = vsel %vm8874_vm13, %v5123_v13, %v5124_v52  ;;  %v4843_v35 = vsel %vm8877_vm5, %v4837_v49, %v4838_v57  ;;  %vm8878_vm2 = vmmov %vm8877_vm5 }
0x1f1a   :  { %vm8879_vm15 = vmmov %vm8873_vm6 }
0x1f1b   :  { %v5125_v33 = vrot.slane %v8610_v39, 1  ;;  %v4821_v41 = vmul.f32 %v7052_v12, %v4820_v25  ;;  %v4870_v51 = vrot.slane %v8610_v39, 7  ;;  %v4839_v37 = vrot.slane %v8610_v39, 6 }
0x1f1c   :  { %v5227_v32 = vrot.slane %v8610_v39, 2 }
0x1f1d   :  { %v4822_v27 = vadd.f32 %v7052_v12, %v4821_v41  ;;  %v5128_v56 = vsel %vm8873_vm6, %v5124_v52, %v5125_v33  ;;  %v6688_v52 = vld [vmem:[%s8025_s21 + $0x10] sm:$0xff]  ;;  %s7102_s21 = smov 10  }
0x1f1e   :  { %v6471_v6 = vpack.c.bf16 %v5128_v56, %v5129_v38  ;;  %5373 = vmatpush.bf16.msrb.mxu1 %v6688_v52  ;;  %s8684_s30 = sld [smem:[%s8713_s0 + %s7102_s21]]   ;;  %v5465_v52 = vld [vmem:[%s5512_s18 + $0x8] sm:$0xff] }
0x1f1f   :  { %v4826_v44 = vsel %vm4825_vm10, %v7052_v12, %v4822_v27  ;;  %vm8883_vm10 = vmmov %vm8878_vm2 }
0x1f20   :  { %v4831_v40 = vsel %vm4828_vm3, %v4830_v1, %v4826_v44  ;;  %6472 = vmatmul.msk.bf16.vlgmr.msrb.gmra.mxu3 %vm7900_vm0, %v6471_v6  ;;  %vm8876_vm0 = vmmov %vm8875_vm9  ;;  %v4842_v17 = vsel %vm8883_vm10, %v4838_v57, %v4839_v37 }
0x1f21   :  { %v4836_v30 = vmul.f32 %v4831_v40, %v8581_v48  ;;  %vm8880_vm13 = vmmov %vm8876_vm0 }
0x1f23   :  { %v4840_v16 = vrot.slane %v4836_v30, 6  ;;  %v4871_v7 = vrot.slane %v4836_v30, 7  ;;  %v5034_v59 = vpack.c.bf16 %v4836_v30, %v8610_v39  ;;  %v5126_v34 = vrot.slane %v4836_v30, 1 }
0x1f24   :  { %v5228_v47 = vrot.slane %v4836_v30, 2 }
0x1f25   :  { %v4875_v14 = vsel %vm8876_vm0, %v4871_v7, %v4868_v45  ;;  %v4844_v48 = vsel %vm8878_vm2, %v4840_v16, %v4837_v49  ;;  %5113 = vmatmul.bf16.gmra.mxu2 %v5034_v59  ;;  %v5127_v26 = vsel %vm8879_vm15, %v5125_v33, %v5126_v34  ;;  %v5130_v63 = vsel %vm8873_vm6, %v5126_v34, %v5123_v13 }
0x1f26   :  { %v6331_v61 = vpack.c.bf16 %v4874_v9, %v4875_v14  ;;  %v6369_v24 = vpack.c.bf16 %v4843_v35, %v4844_v48  ;;  %v6474_v31 = vpack.c.bf16 %v5130_v63, %v5127_v26  ;;  %v4872_v2 = vsel %vm8880_vm13, %v4870_v51, %v4871_v7 }
0x1f28   :  { %6332 = vmatmul.msk.bf16.vlgmr.msra.gmra.mxu0 %vm7920_vm11, %v6331_v61  ;;  %6370 = vmatmul.msk.bf16.vlgmr.msra.gmra.mxu1 %vm7933_vm12, %v6369_v24  ;;  %vm8881_vm11 = vmmov %vm8878_vm2 }
0x1f29   :  { %v4841_v10 = vsel %vm8881_vm11, %v4839_v37, %v4840_v16  ;;  %vm8882_vm12 = vmmov %vm8876_vm0  ;;  %vm5495_vm11 = vcmask 1024  }
0x1f2a   :  { %v4873_v5 = vsel %vm8882_vm12, %v4869_v60, %v4870_v51  ;;  %v6372_v36 = vpack.c.bf16 %v4841_v10, %v4842_v17  ;;  %v5415_v17 = vld [vmem:[%s8684_s30 + $0x10] sm:$0xff] }
0x1f2b   :  { %v6334_v50 = vpack.c.bf16 %v4872_v2, %v4873_v5  ;;  %v5416_v5 = vld [vmem:[%s8684_s30 + $0x18] sm:$0xff] }
0x1f2c   :  { %5436 = vmatpush.msra.mxu3 %v5416_v5 }
0x1f2e   :  { %5437 = vmatpush.msra.mxu3 %v5415_v17 }
0x1f30   :  { %6475 = vmatmul.msk.bf16.gmra.mxu3 %vm7948_vm8, %v6474_v31  ;;  %vm8884_vm8 = vcmp.lt.s32.totalorder %v7623_v43, 6 }
0x1f31   :  { %v5230_v12 = vsel %vm8884_vm8, %v5226_v29, %v5227_v32  ;;  %vm8885_vm3 = vmmov %vm8884_vm8 }
0x1f32   :  { %v5231_v23 = vsel %vm8885_vm3, %v5225_v22, %v5226_v29  ;;  %v6776_v29 = vld [vmem:[%s8020_s29 + $0x1] ss:$0 sm:$0xff]  ;;  %s7104_s29 = smov 11  }
0x1f33   :  { %v6525_v58 = vpack.c.bf16 %v5230_v12, %v5231_v23  ;;  %s5511_s5 = sld [smem:[%s8713_s0 + %s7104_s29]]  }
0x1f38   :  { %6335 = vmatmul.msk.bf16.gmra.mxu0 %vm7965_vm14, %v6334_v50  ;;  %6373 = vmatmul.msk.bf16.gmra.mxu1 %vm7974_vm4, %v6372_v36  ;;  %vm8886_vm4 = vmmov %vm8885_vm3  ;;  %v5414_v50 = vld [vmem:[%s8684_s30 + $0x8] sm:$0xff] }
0x1f39   :  { %v5229_v4 = vsel %vm8886_vm4, %v5227_v32, %v5228_v47  ;;  %vm8887_vm14 = vmmov %vm8885_vm3  ;;  %5438 = vmatpush.msra.mxu3 %v5414_v50 }
0x1f3a   :  { %v5232_v28 = vsel %vm8887_vm14, %v5228_v47, %v5225_v22 }
0x1f3b   :  { %v6528_v46 = vpack.c.bf16 %v5232_v28, %v5229_v4 }
0x1f48   :  { %6526 = vmatmul.msk.bf16.vlgmr.msrb.gmra.mxu0 %vm7993_vm7, %v6525_v58  ;;  %vm8888_vm7 = vcmask 261120  }
0x1f58   :  { %6529 = vmatmul.msk.bf16.gmra.mxu0 %vm8011_vm1, %v6528_v46  ;;  %vm8889_vm1 = vmmov %vm8888_vm7 }
0x1f59   :  { %vm8890_vm9 = vmmov %vm8889_vm1 }
0x1f5a   :  { %vm8891_vm0 = vmmov %vm8889_vm1 }
0x1f5b   :  { %vm8892_vm13 = vmmov %vm8891_vm0 }
0x1f98   :  { %v5109_v25 = vpop.f32.mrf.mxu2 }
0x1fa0   :  { %v5111_v43 = vpop.f32.mrf.mxu2 }
0x1fa3   :  { %v5211_v13 = vpop.f32.mrf.mxu3 }
0x1fa5   :  { %v4956_v42 = vpop.f32.mrf.mxu0  ;;  %v5023_v39 = vpop.f32.mrf.mxu1 }
0x1fa6   :  { %v5024_v33 = vadd.f32 %v5023_v39, %v4956_v42  ;;  %v5464_v39 = vld [vmem:[%s5512_s18] sm:$0xff] }
0x1fa8   :  { %v5119_v27 = vadd.f32 %v5109_v25, %v5024_v33  ;;  %v5114_v40 = vpop.f32.mrf.mxu2 }
0x1faa   :  { %v5221_v1 = vadd.f32 %v5211_v13, %v5119_v27  ;;  %v78_v13 = vstv %s5513_s9 }
0x1fab   :  { %v5213_v3 = vpop.f32.mrf.mxu3  ;;  %79 = vst [vmem:[#allocation3] sm:$0x1] %v78_v13 }
0x1fad   :  { %v4958_v55 = vpop.f32.mrf.mxu0  ;;  %v5025_v0 = vpop.f32.mrf.mxu1 }
0x1fae   :  { %v5026_v41 = vadd.f32 %v5025_v0, %v4958_v55  ;;  %v5389_v55 = vld [vmem:[%s5503_s8] sm:$0x3] }
0x1fb0   :  { %v5120_v38 = vadd.f32 %v5111_v43, %v5026_v41  ;;  %v5116_v35 = vpop.f32.mrf.mxu2 }
0x1fb2   :  { %v5222_v44 = vadd.f32 %v5213_v3, %v5120_v38 }
0x1fb3   :  { %v5216_v54 = vpop.f32.mrf.mxu3 }
0x1fb5   :  { %v4961_v18 = vpop.f32.mrf.mxu0  ;;  %v5028_v56 = vpop.f32.mrf.mxu1 }
0x1fb6   :  { %v5029_v16 = vadd.f32 %v5028_v56, %v4961_v18 }
0x1fb8   :  { %v5121_v14 = vadd.f32 %v5114_v40, %v5029_v16  ;;  %v6778_v40 = vld [vmem:[#allocation3] ss:$0 sm:$0xff] }
0x1fba   :  { %v5223_v61 = vadd.f32 %v5216_v54, %v5121_v14 }
0x1fbb   :  { %v5218_v24 = vpop.f32.mrf.mxu3 }
0x1fbd   :  { %v4963_v15 = vpop.f32.mrf.mxu0  ;;  %v5030_v45 = vpop.f32.mrf.mxu1 }
0x1fbe   :  { %v5031_v59 = vadd.f32 %v5030_v45, %v4963_v15 }
0x1fc0   :  { %v5122_v48 = vadd.f32 %v5116_v35, %v5031_v59 }
0x1fc2   :  { %v5224_v26 = vadd.f32 %v5218_v24, %v5122_v48 }
0x1fc5   :  { %v5313_v62 = vpop.f32.mrf.mxu0 }
0x1fc6   :  { %v5323_v6 = vadd.f32 %v5313_v62, %v5221_v1 }
0x1fc8   :  { %v5332_v30 = vadd.f32 %v6775_v53, %v5323_v6 }
0x1fcd   :  { %v5315_v57 = vpop.f32.mrf.mxu0 }
0x1fce   :  { %v5324_v60 = vadd.f32 %v5315_v57, %v5222_v44 }
0x1fd0   :  { %v5333_v49 = vadd.f32 %v6775_v53, %v5324_v60 }
0x1fd2   :  { %v5336_v7 = vpack.c.bf16 %v5333_v49, %v5332_v30 }
0x1fd4   :  { %6544 = vmatmul.msk.bf16.vlgmr.msrb.gmra.mxu1 %vm8888_vm7, %v5336_v7 }
0x1fd5   :  { %v5318_v9 = vpop.f32.mrf.mxu0 }
0x1fd6   :  { %v5325_v34 = vadd.f32 %v5318_v9, %v5223_v61 }
0x1fd8   :  { %v5334_v51 = vadd.f32 %v6775_v53, %v5325_v34 }
0x1fdd   :  { %v5320_v63 = vpop.f32.mrf.mxu0 }
0x1fde   :  { %v5326_v31 = vadd.f32 %v5320_v63, %v5224_v26 }
0x1fe0   :  { %v5335_v37 = vadd.f32 %v6775_v53, %v5326_v31 }
0x1fe2   :  { %v5337_v2 = vpack.c.bf16 %v5335_v37, %v5334_v51 }
0x1fe4   :  { %6545 = vmatmul.msk.bf16.gmra.mxu1 %vm8889_vm1, %v5337_v2 }
0x2051   :  { %v5375_v10 = vpop.f32.mrf.mxu1 }
0x2052   :  { %v5376_v4 = vadd.f32 %v6776_v29, %v5375_v10 }
0x2054   :  { %v5385_v42 = vadd.f32 %v5376_v4, %v8359_v8  ;;  %v5467_v8 = vld [vmem:[%s5512_s18 + $0x18] sm:$0xff] }
0x2059   :  { %v5377_v36 = vpop.f32.mrf.mxu1 }
0x205a   :  { %v5378_v58 = vadd.f32 %v6776_v29, %v5377_v36 }
0x205c   :  { %v5386_v46 = vadd.f32 %v5378_v58, %v8364_v21  ;;  %v6777_v21 = vld [vmem:[%s5511_s5] ss:$0 sm:$0xff] }
0x2061   :  { %v5380_v32 = vpop.f32.mrf.mxu1 }
0x2062   :  { %v5381_v12 = vadd.f32 %v6776_v29, %v5380_v32 }
0x2064   :  { %v5387_v28 = vadd.f32 %v5381_v12, %v8369_v20  ;;  %v5466_v20 = vld [vmem:[%s5512_s18 + $0x10] sm:$0xff] }
0x2069   :  { %v5382_v22 = vpop.f32.mrf.mxu1 }
0x206a   :  { %v5383_v23 = vadd.f32 %v6776_v29, %v5382_v22 }
0x206c   :  { %v5388_v47 = vadd.f32 %v5383_v23, %v8374_v19  ;;  %v5413_v19 = vld [vmem:[%s8684_s30] sm:$0xff] }
0x206d   :  { %5439 = vmatpush.msra.mxu3 %v5413_v19 }
0x206e   :  { %5405 = vmatpush.msra.mxu2 %v5388_v47 }
0x2070   :  { %5406 = vmatpush.msra.mxu2 %v5387_v28 }
0x2072   :  { %5407 = vmatpush.msra.mxu2 %v5386_v46 }
0x2074   :  { %5408 = vmatpush.msra.mxu2 %v5385_v42 }
0x2075   :  { %6546 = vmatmul.msk.f32.vlgmr.msra.gmra.mxu2 %vm8890_vm9, %v5389_v55 }
0x2076   :  { %5487 = vmatpush.msrb.mxu2 %v5467_v8 }
0x2078   :  { %5488 = vmatpush.msrb.mxu2 %v5466_v20 }
0x207a   :  { %5489 = vmatpush.msrb.mxu2 %v5465_v52 }
0x207c   :  { %5490 = vmatpush.msrb.mxu2 %v5464_v39 }
0x20f8   :  { %v5410_v11 = vpop.f32.mrf.mxu2 }
0x20f9   :  { %6547 = vmatmul.msk.f32.vlgmr.msra.gmra.mxu3 %vm8891_vm0, %v5410_v11 }
0x217c   :  { %v5441_v18 = vpop.f32.mrf.mxu3 }
0x217d   :  { %v5442_v25 = vadd.f32 %v6777_v21, %v5441_v18 }
0x217f   :  { %v6548_v0 = vmul.f32 -1.442695, %v5442_v25 }
0x2181   :  { %7053 = vpow2.f32 %v6548_v0 }
0x2187   :  { %v7054_v15 = vpop.eup %7053 }
0x2188   :  { %v5447_v33 = vadd.f32 1.0, %v7054_v15 }
0x218a   :  { %7055 = vrcp.f32 %v5447_v33  ;;  %v5459_v27 = vand.u32 2147483648, %v5447_v33  ;;  %v5457_v56 = vand.u32 2147483647, %v5447_v33  ;;  %vm5453_vm2 = vweird.f32 %v5447_v33 }
0x218c   :  { %v5460_v1 = vor.u32 1.1754944e-38, %v5459_v27  ;;  %vm5458_vm6 = vcmp.eq.f32.partialorder %v5457_v56, 8.507059e+37 }
0x2190   :  { %v7056_v43 = vpop.eup %7055 }
0x2191   :  { %v5449_v41 = vmul.f32 %v7056_v43, %v5447_v33  ;;  %vm5454_vm5 = vweird.f32 %v7056_v43 }
0x2192   :  { %vm5455_vm15 = vmor %vm5453_vm2, %vm5454_vm5 }
0x2193   :  { %v5450_v62 = vsub.f32 1.0, %v5449_v41 }
0x2195   :  { %v5451_v3 = vmul.f32 %v7056_v43, %v5450_v62 }
0x2197   :  { %v5452_v38 = vadd.f32 %v7056_v43, %v5451_v3 }
0x2199   :  { %v5456_v6 = vsel %vm5455_vm15, %v7056_v43, %v5452_v38 }
0x219a   :  { %v5461_v53 = vsel %vm5458_vm6, %v5460_v1, %v5456_v6 }
0x219b   :  { %v5463_v44 = vmul.f32 %v5461_v53, %v5442_v25 }
0x219d   :  { %6549 = vmatmul.msk.f32.vlgmr.msrb.gmra.mxu2 %vm8892_vm13, %v5463_v44 }
0x2220   :  { %v5492_v57 = vpop.f32.mrf.mxu2 }
0x2221   :  { %v5493_v60 = vadd.f32 %v6778_v40, %v5492_v57 }
0x2223   :  { %5496 = vst.msk [vmem:[%s5536_s19] sm:$0x3] %vm5495_vm11, %v5493_v60 }

</bundles_post_ra>
